<compile_context>
chip_gen: v6e
topology: v6e:2x2x1
jax: 0.10.0
libtpu: 0.0.40
codegen_flags: <defaults>
</compile_context>

<pallas_src>
import math
from functools import partial

import jax
import jax.numpy as jnp
from jax.experimental import pallas as pl
from jax.experimental.pallas import tpu as pltpu

# MXU input dtype (accumulation stays float32 via preferred_element_type).
MM_DTYPE = jnp.bfloat16
TM = 512                      # rows (B*T axis) per block
TN = 512                      # output columns per block
TK = 2048                     # contraction tile (only used when K is huge)
VMEM_LIMIT = 40 * 1024 * 1024
LN_EPS = 1e-5


def _round_up(x, m):
    return (x + m - 1) // m * m


def _row_tiles(M, tm):
    """Pick (Mp, tm_eff) so Mp % tm_eff == 0 with minimal padding."""
    if M <= tm:
        Mp = _round_up(M, 8)
        return Mp, Mp
    if M % tm == 0:
        return M, tm
    return _round_up(M, tm), tm


def _sigmoid(x):
    # exp + approx reciprocal both issue on the EUP slot, keeping the VALU free.
    return pl.reciprocal(1.0 + jnp.exp(-x), approx=True)


def _layer_norm(x, g, b):
    mu = jnp.mean(x, axis=-1, keepdims=True)
    var = jnp.mean(jnp.square(x - mu), axis=-1, keepdims=True)
    return (x - mu) * jax.lax.rsqrt(var + LN_EPS) * g + b


# --------------------- fused tiled linear (the workhorse) ---------------------

def _linear_kernel(*refs, act, has_ln, ln_cached, has_res, res_scale,
                   has_mask, nk):
    it = iter(refs)
    x_ref, w_ref, b_ref = next(it), next(it), next(it)
    ln_g_ref = next(it) if has_ln else None
    ln_b_ref = next(it) if has_ln else None
    res_ref = next(it) if has_res else None
    mask_ref = next(it) if has_mask else None
    o_ref = next(it)
    acc_ref = next(it) if nk > 1 else None
    ln_cache_ref = next(it) if ln_cached else None

    if has_ln:
        if ln_cached:
            # Compute the LN prologue once per row-block (j == 0) and reuse the bf16
            # result from VMEM for every other N-tile.
            @pl.when(pl.program_id(1) == 0)
            def _():
                ln_cache_ref[...] = _layer_norm(
                    x_ref[...], ln_g_ref[...], ln_b_ref[...]).astype(MM_DTYPE)
            x_mm = ln_cache_ref[...]
        else:
            x_mm = _layer_norm(x_ref[...], ln_g_ref[...], ln_b_ref[...]).astype(MM_DTYPE)
    else:
        x_mm = x_ref[...].astype(MM_DTYPE)

    # Weights are already bf16 (prepare_params) -> no in-kernel weight cast.
    part = jnp.dot(x_mm, w_ref[...], preferred_element_type=jnp.float32)

    def epilogue(y):
        y = y + b_ref[...]
        if act == "relu":
            y = jnp.maximum(y, 0.0)
        elif act == "silu":
            y = y * _sigmoid(y)
        if has_mask:
            y = y * mask_ref[...]                # zero padded frames
        if has_res:
            y = res_ref[...] + res_scale * y     # fused residual (incl. 0.5 half-step)
        o_ref[...] = y

    if nk == 1:
        epilogue(part)
    else:
        @pl.when(pl.program_id(2) == 0)
        def _():
            acc_ref[...] = jnp.zeros_like(acc_ref)

        acc_ref[...] += part

        @pl.when(pl.program_id(2) == nk - 1)
        def _():
            epilogue(acc_ref[...])


def pallas_linear(x2d, w, b, *, act="none", ln=None, residual=None,
                  res_scale=1.0, mask=None, tm=TM, tn=TN, tk=TK):
    """y = epilogue(LN?(x) @ w + b).  Weights are expected bf16 (prepare_params);
    pads below are cold fallbacks — the encoder path never triggers them."""
    M, K = x2d.shape
    Kw, N = w.shape
    assert Kw == K
    has_ln = ln is not None
    has_res = residual is not None
    has_mask = mask is not None

    Mp, tm_eff = _row_tiles(M, tm)

    # lane-dense columns: only pad when N > 128 and not already a multiple of 128
    # (weights that need it are pre-padded at prep time).
    if N % 128 == 0 or N <= 128:
        Np = N
    else:
        Np = _round_up(N, 128)
    if Np <= tn:
        tn_eff = Np
    elif Np % tn == 0:
        tn_eff = tn
    else:
        tn_eff = 256 if Np % 256 == 0 else 128

    if has_ln or K <= 4096:                       # LN needs the full feature dim
        Kp, tk_eff = K, K
    elif K % tk == 0:
        Kp, tk_eff = K, tk
    else:
        Kp, tk_eff = _round_up(K, tk), tk
    nk = Kp // tk_eff
    nj = Np // tn_eff
    ln_cached = has_ln and nj > 1

    xp = x2d if (Mp, Kp) == (M, K) else jnp.pad(x2d, ((0, Mp - M), (0, Kp - K)))
    wp = w if (Kp, Np) == (K, N) else jnp.pad(w, ((0, Kp - K), (0, Np - N)))
    bp = b.reshape(1, N)
    if Np != N:
        bp = jnp.pad(bp, ((0, 0), (0, Np - N)))

    inputs = [xp, wp, bp]
    in_specs = [
        pl.BlockSpec((tm_eff, tk_eff), lambda i, j, k: (i, k)),
        pl.BlockSpec((tk_eff, tn_eff), lambda i, j, k: (k, j)),
        pl.BlockSpec((1, tn_eff), lambda i, j, k: (0, j)),
    ]
    if has_ln:
        g, beta = ln
        inputs += [g.reshape(1, K), beta.reshape(1, K)]
        in_specs += [pl.BlockSpec((1, tk_eff), lambda i, j, k: (0, k)),
                     pl.BlockSpec((1, tk_eff), lambda i, j, k: (0, k))]
    if has_res:
        rp = residual
        if (Mp, Np) != residual.shape:
            rp = jnp.pad(residual, ((0, Mp - M), (0, Np - N)))
        inputs.append(rp)
        in_specs.append(pl.BlockSpec((tm_eff, tn_eff), lambda i, j, k: (i, j)))
    if has_mask:
        mp = mask.reshape(M, 1)
        if Mp != M:
            mp = jnp.pad(mp, ((0, Mp - M), (0, 0)))
        inputs.append(mp)
        in_specs.append(pl.BlockSpec((tm_eff, 1), lambda i, j, k: (i, 0)))

    grid = (Mp // tm_eff, nj, nk)
    scratch = []
    if nk > 1:
        scratch.append(pltpu.VMEM((tm_eff, tn_eff), jnp.float32))
    if ln_cached:
        scratch.append(pltpu.VMEM((tm_eff, Kp), MM_DTYPE))

    # When the LN cache is live, j must stay sequential per-core (cache validity),
    # so only the row axis is megacore-parallel.
    dims = ("parallel", "arbitrary" if ln_cached else "parallel", "arbitrary")

    out = pl.pallas_call(
        partial(_linear_kernel, act=act, has_ln=has_ln, ln_cached=ln_cached,
                has_res=has_res, res_scale=res_scale, has_mask=has_mask, nk=nk),
        out_shape=jax.ShapeDtypeStruct((Mp, Np), jnp.float32),
        grid=grid,
        in_specs=in_specs,
        out_specs=pl.BlockSpec((tm_eff, tn_eff), lambda i, j, k: (i, j)),
        scratch_shapes=scratch,
        compiler_params=pltpu.CompilerParams(
            dimension_semantics=dims, vmem_limit_bytes=VMEM_LIMIT),
    )(*inputs)

    if (Mp, Np) != (M, N):
        out = out[:M, :N]
    return out


# --------------------- fused LN + GLU pointwise conv (conv module) ---------------------

def _glu_ln_kernel(x_ref, w_ref, b_ref, lg_ref, lb_ref, m_ref, o_ref, *, D):
    xn = _layer_norm(x_ref[...], lg_ref[...], lb_ref[...]).astype(MM_DTYPE)
    # single MXU matmul on the concatenated (K, 2D) weight, split a|g from lanes
    y = jnp.dot(xn, w_ref[...], preferred_element_type=jnp.float32) + b_ref[...]
    a = y[:, :D]
    g = y[:, D:]
    # GLU, then zero padded time frames so the depthwise conv sees no garbage.
    o_ref[...] = a * _sigmoid(g) * m_ref[...]


def pallas_glu_ln(x2d, w, b, ln_g, ln_b, maskcol, tm=TM):
    M, K = x2d.shape
    N2 = w.shape[1]
    D = N2 // 2
    Mp, tm_eff = _row_tiles(M, tm)
    xp = x2d if Mp == M else jnp.pad(x2d, ((0, Mp - M), (0, 0)))
    mp = maskcol if Mp == M else jnp.pad(maskcol, ((0, Mp - M), (0, 0)))

    out = pl.pallas_call(
        partial(_glu_ln_kernel, D=D),
        out_shape=jax.ShapeDtypeStruct((Mp, D), jnp.float32),
        grid=(Mp // tm_eff,),
        in_specs=[
            pl.BlockSpec((tm_eff, K), lambda i: (i, 0)),
            pl.BlockSpec((K, N2), lambda i: (0, 0)),
            pl.BlockSpec((1, N2), lambda i: (0, 0)),
            pl.BlockSpec((1, K), lambda i: (0, 0)),
            pl.BlockSpec((1, K), lambda i: (0, 0)),
            pl.BlockSpec((tm_eff, 1), lambda i: (i, 0)),
        ],
        out_specs=pl.BlockSpec((tm_eff, D), lambda i: (i, 0)),
        compiler_params=pltpu.CompilerParams(
            dimension_semantics=("parallel",), vmem_limit_bytes=VMEM_LIMIT),
    )(xp, w, b.reshape(1, N2), ln_g.reshape(1, K), ln_b.reshape(1, K), mp)
    return out[:M] if Mp != M else out


# --------------------- depthwise conv + BN(eval) + SiLU ---------------------

def _dwconv_kernel(x_ref, w_ref, b_ref, scale_ref, shift_ref, o_ref, *, K, T):
    x = x_ref[0]                                  # (T+K-1, D), loaded ONCE
    w = w_ref[...]                                # (K, D)
    acc = x[0:T, :] * w[0:1, :]
    # TODO(synk): the k-shifted sublane slices could be moved onto the XLU with
    # pltpu.roll to take pressure off the VALU/load path; kept as slices for safety.
    for k in range(1, K):
        acc = acc + x[k:k + T, :] * w[k:k + 1, :]
    y = acc + b_ref[...]
    y = y * scale_ref[...] + shift_ref[...]       # BatchNorm (eval) folded
    o_ref[0] = y * _sigmoid(y)                    # SiLU


def pallas_dwconv_bn_silu(x, w, b, scale, shift, K):
    # x: (B, T, D) already masked at padded frames; 'same' padding (odd K).
    B, T, D = x.shape
    pad = (K - 1) // 2
    xp = jnp.pad(x, ((0, 0), (pad, pad), (0, 0)))
    Tp = T + 2 * pad
    return pl.pallas_call(
        partial(_dwconv_kernel, K=K, T=T),
        out_shape=jax.ShapeDtypeStruct((B, T, D), jnp.float32),
        grid=(B,),
        in_specs=[
            pl.BlockSpec((1, Tp, D), lambda bi: (bi, 0, 0)),
            pl.BlockSpec((K, D), lambda bi: (0, 0)),
            pl.BlockSpec((1, D), lambda bi: (0, 0)),
            pl.BlockSpec((1, D), lambda bi: (0, 0)),
            pl.BlockSpec((1, D), lambda bi: (0, 0)),
        ],
        out_specs=pl.BlockSpec((1, T, D), lambda bi: (bi, 0, 0)),
        compiler_params=pltpu.CompilerParams(
            dimension_semantics=("parallel",), vmem_limit_bytes=VMEM_LIMIT),
    )(xp, w, b.reshape(1, D), scale.reshape(1, D), shift.reshape(1, D))


# --------------------- multi-head self attention (Wo + residual fused) ---------------------

def _attn_kernel(qkv_ref, m_ref, wo_ref, bo_ref, res_ref, o_ref,
                 *, scale, H, Dh, D):
    neg = m_ref[0] * (-1e9)                        # (1, T): 1.0 => padded key frame
    acc = res_ref[0] + bo_ref[...]                 # residual + output bias, (T, D)
    for h in range(H):                             # all heads, Wo fused per head
        q = (qkv_ref[0, :, h * Dh:(h + 1) * Dh] * scale).astype(MM_DTYPE)
        k = qkv_ref[0, :, D + h * Dh:D + (h + 1) * Dh].astype(MM_DTYPE)
        v = qkv_ref[0, :, 2 * D + h * Dh:2 * D + (h + 1) * Dh].astype(MM_DTYPE)
        s = jax.lax.dot_general(q, k, (((1,), (1,)), ((), ())),
                                preferred_element_type=jnp.float32)
        s = s + neg
        s = s - jnp.max(s, axis=-1, keepdims=True)
        p = jnp.exp(s)
        p = p * pl.reciprocal(jnp.sum(p, axis=-1, keepdims=True), approx=True)
        o_h = jnp.dot(p.astype(MM_DTYPE), v, preferred_element_type=jnp.float32)
        acc = acc + jnp.dot(o_h.astype(MM_DTYPE), wo_ref[h * Dh:(h + 1) * Dh, :],
                            preferred_element_type=jnp.float32)
    o_ref[0] = acc                                 # single lane-dense (T, D) store


def pallas_attention(qkv, res, maskf, wo, bo, H):
    # qkv: (B, T, 3D) straight from the QKV projection (no HBM transpose);
    # res: (B, T, D) residual; maskf: (B, 1, T) with 1.0 at padded key frames.
    B, T, D3 = qkv.shape
    D = D3 // 3
    Dh = D // H
    return pl.pallas_call(
        partial(_attn_kernel, scale=1.0 / math.sqrt(Dh), H=H, Dh=Dh, D=D),
        out_shape=jax.ShapeDtypeStruct((B, T, D), jnp.float32),
        grid=(B,),
        in_specs=[pl.BlockSpec((1, T, D3), lambda b: (b, 0, 0)),
                  pl.BlockSpec((1, 1, T), lambda b: (b, 0, 0)),
                  pl.BlockSpec((D, D), lambda b: (0, 0)),
                  pl.BlockSpec((1, D), lambda b: (0, 0)),
                  pl.BlockSpec((1, T, D), lambda b: (b, 0, 0))],
        out_specs=pl.BlockSpec((1, T, D), lambda b: (b, 0, 0)),
        compiler_params=pltpu.CompilerParams(
            dimension_semantics=("parallel",), vmem_limit_bytes=VMEM_LIMIT),
    )(qkv, maskf, wo, bo.reshape(1, D), res)


# ----------------------------- model (glue + kernels) ----------------------

def _im2col_nhwc(x, kh=3, kw=3, stride=2):
    # x: (B, H, W, C) NHWC -> patches (B*Ho*Wo, kh*kw*C) in (tap, channel) order.
    B, H, W, C = x.shape
    Ho = (H - kh) // stride + 1
    Wo = (W - kw) // stride + 1
    cols = []
    for i in range(kh):
        for j in range(kw):
            cols.append(x[:, i:i + stride * Ho:stride, j:j + stride * Wo:stride, :])
    p = jnp.stack(cols, axis=3)                 # (B, Ho, Wo, kh*kw, C)
    return p.reshape(B * Ho * Wo, kh * kw * C), Ho, Wo


def conv2d_relu(x, wmat, b):
    # x: (B, H, W, C_in) NHWC; wmat: (9*C_in, C_out) bf16 (prepared); stride 2, no pad
    # TODO(synk): patches are materialized in HBM; streaming im2col via per-tap
    # index_maps on the K grid axis is a further optimization not implemented here.
    B = x.shape[0]
    C_out = wmat.shape[1]
    patches, Ho, Wo = _im2col_nhwc(x)
    y = pallas_linear(patches, wmat, b, act="relu")
    return y.reshape(B, Ho, Wo, C_out)


def subsampling_convs(p, mel, lengths):
    # Conv2dSubsampling8: 3 x (Conv2d k=3 s=2 + ReLU), kept NHWC throughout.
    x = mel[..., None]                          # (B, T, F, 1)
    x = conv2d_relu(x, p["conv1_w"], p["conv1_b"])
    x = conv2d_relu(x, p["conv2_w"], p["conv2_b"])
    x = conv2d_relu(x, p["conv3_w"], p["conv3_b"])
    B, Tn, Fn, C = x.shape
    sub_len = lengths
    for _ in range(3):
        sub_len = (sub_len - 1) // 2
    return x.reshape(B, Tn, Fn * C), sub_len


def sinusoidal_pe(T, d):
    pos = jnp.arange(T, dtype=jnp.float32)[:, None]
    i = jnp.arange(0, d, 2, dtype=jnp.float32)[None, :]
    angle = pos / jnp.power(10000.0, i / d)
    pe = jnp.zeros((T, d), jnp.float32)
    pe = pe.at[:, 0::2].set(jnp.sin(angle))
    pe = pe.at[:, 1::2].set(jnp.cos(angle))
    return pe


def mhsa_forward(lp, x2, B, T, maskf, nhead):
    D = x2.shape[-1]
    # fused LN + combined QKV projection -> (B*T, 3D); consumed head-sliced in-kernel
    qkv = pallas_linear(x2, lp["w_qkv"], lp["b_qkv"],
                        ln=(lp["mha_ln_g"], lp["mha_ln_b"]))
    out = pallas_attention(qkv.reshape(B, T, 3 * D), x2.reshape(B, T, D),
                           maskf, lp["wo"], lp["bo"], nhead)
    return out.reshape(B * T, D)


def conv_module_forward(lp, x2, B, T, maskcol, K):
    D = x2.shape[-1]
    y = pallas_glu_ln(x2, lp["pw1_w"], lp["pw1_b"],
                      lp["conv_ln_g"], lp["conv_ln_b"], maskcol)      # (B*T, D), masked
    y = pallas_dwconv_bn_silu(y.reshape(B, T, D), lp["dw_w"], lp["dw_b"],
                              lp["bn_scale"], lp["bn_shift"], K)
    return pallas_linear(y.reshape(B * T, D), lp["pw2_w"], lp["pw2_b"],
                         residual=x2, res_scale=1.0)


def conformer_block(lp, x2, B, T, maskf, maskcol, nhead, K):
    # macaron FF1 (half-step): LN fused into matmul1, 0.5*residual fused into matmul2
    h = pallas_linear(x2, lp["ff1_w1"], lp["ff1_b1"], act="silu",
                      ln=(lp["ff1_ln_g"], lp["ff1_ln_b"]))
    x2 = pallas_linear(h, lp["ff1_w2"], lp["ff1_b2"], residual=x2, res_scale=0.5)
    # MHSA (pre-LN fused into QKV, Wo + bias + residual fused into the attention kernel)
    x2 = mhsa_forward(lp, x2, B, T, maskf, nhead)
    # convolution module (pre-LN fused into GLU, residual fused into pw2)
    x2 = conv_module_forward(lp, x2, B, T, maskcol, K)
    # macaron FF2 (half-step)
    h = pallas_linear(x2, lp["ff2_w1"], lp["ff2_b1"], act="silu",
                      ln=(lp["ff2_ln_g"], lp["ff2_ln_b"]))
    x2 = pallas_linear(h, lp["ff2_w2"], lp["ff2_b2"], residual=x2, res_scale=0.5)
    return x2


def conformer_ctc_forward(params, cfg, mel_inputs, mel_input_lengths, vocab_size):
    xc, sub_len = subsampling_convs(params["sub"], mel_inputs, mel_input_lengths)
    B, T_sub, KF = xc.shape
    D = params["sub"]["out_w"].shape[1]

    # pad the time axis ONCE so B*T is 8-aligned for every downstream kernel
    T = _round_up(T_sub, 8)
    if T != T_sub:
        xc = jnp.pad(xc, ((0, 0), (0, T - T_sub), (0, 0)))

    # subsampling output projection with the PE add fused as the residual input
    pe = jnp.broadcast_to(sinusoidal_pe(T, D)[None], (B, T, D)).reshape(B * T, D)
    x2 = pallas_linear(xc.reshape(B * T, KF), params["sub"]["out_w"],
                       params["sub"]["out_b"], residual=pe, res_scale=1.0)

    valid = (jnp.arange(T)[None, :] < sub_len[:, None]).astype(jnp.float32)   # (B, T)
    maskf = (1.0 - valid).reshape(B, 1, T)            # 1.0 => padded key frame
    maskcol = valid.reshape(B * T, 1)                 # 1.0 => valid frame

    for lp in params["layers"]:
        x2 = conformer_block(lp, x2, B, T, maskf, maskcol,
                             cfg["nhead"], cfg["conv_kernel"])

    # final LayerNorm fused into the output projection (vocab pre-padded to 128 lanes)
    logits = pallas_linear(x2, params["fc_out_w"], params["fc_out_b"],
                           ln=(params["final_ln_g"], params["final_ln_b"]))
    logits = logits.reshape(B, T, -1)[:, :T_sub, :vocab_size]
    loss = None  # TODO(synk): torch.nn.CTCLoss not implemented; inference path (text_targets=None) returns loss=None as in the reference.
    return logits, loss, sub_len


# ----------------------------- parameter init / prep ------------------------------

def init_params(key, cfg, vocab_size):
    d = cfg["d_model"]
    nm = cfg["n_mels"]
    K = cfg["conv_kernel"]
    ff = cfg["ff_ratio"] * d
    keys = iter(jax.random.split(key, 256))

    def w(shape, scale=0.02):
        return scale * jax.random.normal(next(keys), shape, jnp.float32)

    zeros = lambda s: jnp.zeros(s, jnp.float32)
    ones = lambda s: jnp.ones(s, jnp.float32)

    f = nm
    for _ in range(3):
        f = (f - 1) // 2

    params = {
        "sub": {
            "conv1_w": w((d, 1, 3, 3)), "conv1_b": zeros((d,)),
            "conv2_w": w((d, d, 3, 3)), "conv2_b": zeros((d,)),
            "conv3_w": w((d, d, 3, 3)), "conv3_b": zeros((d,)),
            "out_w": w((d * f, d)), "out_b": zeros((d,)),
        },
        "layers": [],
        "final_ln_g": ones((d,)), "final_ln_b": zeros((d,)),
        "fc_out_w": w((d, vocab_size)), "fc_out_b": zeros((vocab_size,)),
    }
    for _ in range(cfg["num_layers"]):
        params["layers"].append({
            "ff1_ln_g": ones((d,)), "ff1_ln_b": zeros((d,)),
            "ff1_w1": w((d, ff)), "ff1_b1": zeros((ff,)),
            "ff1_w2": w((ff, d)), "ff1_b2": zeros((d,)),
            "mha_ln_g": ones((d,)), "mha_ln_b": zeros((d,)),
            "w_qkv": w((d, 3 * d)), "b_qkv": zeros((3 * d,)),
            "wo": w((d, d)), "bo": zeros((d,)),
            "conv_ln_g": ones((d,)), "conv_ln_b": zeros((d,)),
            "pw1_wa": w((d, d)), "pw1_ba": zeros((d,)),
            "pw1_wg": w((d, d)), "pw1_bg": zeros((d,)),
            "dw_w": w((K, d)), "dw_b": zeros((d,)),
            "bn_g": ones((d,)), "bn_b": zeros((d,)),
            "bn_mean": zeros((d,)), "bn_var": ones((d,)),
            "pw2_w": w((d, d)), "pw2_b": zeros((d,)),
            "ff2_ln_g": ones((d,)), "ff2_ln_b": zeros((d,)),
            "ff2_w1": w((d, ff)), "ff2_b1": zeros((ff,)),
            "ff2_w2": w((ff, d)), "ff2_b2": zeros((d,)),
        })
    return params


def prepare_params(params, cfg):
    """One-time host-side prep: bf16 matmul weights, concatenated GLU weight,
    NHWC conv weights as (9*Cin, Cout) matrices, BN folded, vocab padded to 128."""
    bf16 = lambda x: x.astype(MM_DTYPE)

    def conv_w(w):   # (Cout, Cin, 3, 3) -> (9*Cin, Cout), rows in (tap, cin) order
        return bf16(jnp.transpose(w, (2, 3, 1, 0)).reshape(-1, w.shape[0]))

    sub = params["sub"]
    p = {
        "sub": {
            "conv1_w": conv_w(sub["conv1_w"]), "conv1_b": sub["conv1_b"],
            "conv2_w": conv_w(sub["conv2_w"]), "conv2_b": sub["conv2_b"],
            "conv3_w": conv_w(sub["conv3_w"]), "conv3_b": sub["conv3_b"],
            # NOTE: out_w rows follow the NHWC (freq-major, channel-minor) flatten;
            # porting PyTorch weights would need a (C,F)->(F,C) row permutation here.
            "out_w": bf16(sub["out_w"]), "out_b": sub["out_b"],
        },
        "layers": [],
        "final_ln_g": params["final_ln_g"], "final_ln_b": params["final_ln_b"],
    }
    for lp in params["layers"]:
        bn_scale = lp["bn_g"] / jnp.sqrt(lp["bn_var"] + LN_EPS)
        p["layers"].append({
            "ff1_ln_g": lp["ff1_ln_g"], "ff1_ln_b": lp["ff1_ln_b"],
            "ff1_w1": bf16(lp["ff1_w1"]), "ff1_b1": lp["ff1_b1"],
            "ff1_w2": bf16(lp["ff1_w2"]), "ff1_b2": lp["ff1_b2"],
            "mha_ln_g": lp["mha_ln_g"], "mha_ln_b": lp["mha_ln_b"],
            "w_qkv": bf16(lp["w_qkv"]), "b_qkv": lp["b_qkv"],
            "wo": bf16(lp["wo"]), "bo": lp["bo"],
            "conv_ln_g": lp["conv_ln_g"], "conv_ln_b": lp["conv_ln_b"],
            "pw1_w": bf16(jnp.concatenate([lp["pw1_wa"], lp["pw1_wg"]], axis=1)),
            "pw1_b": jnp.concatenate([lp["pw1_ba"], lp["pw1_bg"]]),
            "dw_w": lp["dw_w"], "dw_b": lp["dw_b"],
            "bn_scale": bn_scale,
            "bn_shift": lp["bn_b"] - lp["bn_mean"] * bn_scale,
            "pw2_w": bf16(lp["pw2_w"]), "pw2_b": lp["pw2_b"],
            "ff2_ln_g": lp["ff2_ln_g"], "ff2_ln_b": lp["ff2_ln_b"],
            "ff2_w1": bf16(lp["ff2_w1"]), "ff2_b1": lp["ff2_b1"],
            "ff2_w2": bf16(lp["ff2_w2"]), "ff2_b2": lp["ff2_b2"],
        })
    V = params["fc_out_w"].shape[1]
    Vp = _round_up(V, 128)
    p["fc_out_w"] = bf16(jnp.pad(params["fc_out_w"], ((0, 0), (0, Vp - V))))
    p["fc_out_b"] = jnp.pad(params["fc_out_b"], (0, Vp - V))
    return p


# ----------------------------- main -----------------------------------------

if __name__ == "__main__":
    cfg = dict(n_mels=32, d_model=32, num_layers=2, nhead=4, ff_ratio=4,
               conv_kernel=7, subsampling_factor=8)
    vocab_size = 40

    key = jax.random.PRNGKey(0)
    kp, kx = jax.random.split(key)
    params = prepare_params(init_params(kp, cfg, vocab_size), cfg)

    B, T = 2, 64
    mel_inputs = jax.random.normal(kx, (B, T, cfg["n_mels"]), jnp.float32)
    mel_input_lengths = jnp.array([64, 48], dtype=jnp.int32)

    fwd = jax.jit(lambda p, m, l: conformer_ctc_forward(p, cfg, m, l, vocab_size))
    logits, loss, sub_len = fwd(params, mel_inputs, mel_input_lengths)
    jax.block_until_ready(logits)
    jax.block_until_ready(sub_len)
    assert logits.shape == (B, 7, vocab_size), logits.shape
    assert loss is None
    assert bool(jnp.isfinite(logits).all())
    print("KERNEL_OK")
</pallas_src>

<mosaic_0001>
module attributes {stable_mosaic.version = 11 : i64} {
  func.func @_linear_kernel(%arg0: i32, %arg1: i32, %arg2: i32, %arg3: memref<512x9xf32, #tpu.memory_space<vmem>>, %arg4: memref<9x32xbf16, #tpu.memory_space<vmem>>, %arg5: memref<1x32xf32, #tpu.memory_space<vmem>>, %arg6: memref<512x32xf32, #tpu.memory_space<vmem>>) attributes {dimension_semantics = [#tpu.dimension_semantics<parallel>, #tpu.dimension_semantics<parallel>, #tpu.dimension_semantics<arbitrary>], iteration_bounds = array<i64: 2, 1, 1>, scalar_prefetch = 0 : i64, scratch_operands = 0 : i64, tpu.core_type = #tpu.core_type<tc>, window_params = [{transform_indices = @transform_0, window_bounds = array<i64: 512, 9>}, {transform_indices = @transform_1, window_bounds = array<i64: 9, 32>}, {transform_indices = @transform_2, window_bounds = array<i64: 1, 32>}, {transform_indices = @transform_3, window_bounds = array<i64: 512, 32>}]} {
    %c0 = arith.constant 0 : index
    %c0_0 = arith.constant 0 : index
    %0 = vector.load %arg3[%c0, %c0_0] : memref<512x9xf32, #tpu.memory_space<vmem>>, vector<512x9xf32>
    %1 = arith.truncf %0 : vector<512x9xf32> to vector<512x9xbf16>
    %c0_1 = arith.constant 0 : index
    %c0_2 = arith.constant 0 : index
    %2 = vector.load %arg4[%c0_1, %c0_2] : memref<9x32xbf16, #tpu.memory_space<vmem>>, vector<9x32xbf16>
    %cst = arith.constant dense<0.000000e+00> : vector<512x32xf32>
    %3 = tpu.matmul %1, %2, %cst {dimension_numbers = #tpu.dot_dimension_numbers<[1], [0], [0], [1], [0, 0, 1, 1], [], []>} : vector<512x9xbf16>, vector<9x32xbf16>, vector<512x32xf32> -> vector<512x32xf32>
    %c0_3 = arith.constant 0 : index
    %c0_4 = arith.constant 0 : index
    %4 = vector.load %arg5[%c0_3, %c0_4] : memref<1x32xf32, #tpu.memory_space<vmem>>, vector<1x32xf32>
    %5 = vector.broadcast %4 : vector<1x32xf32> to vector<512x32xf32>
    %6 = arith.addf %3, %5 : vector<512x32xf32>
    %cst_5 = arith.constant 0.000000e+00 : f32
    %7 = vector.broadcast %cst_5 : f32 to vector<512x32xf32>
    %8 = arith.maximumf %6, %7 : vector<512x32xf32>
    %c0_6 = arith.constant 0 : index
    %c0_7 = arith.constant 0 : index
    %9 = vector.load %arg6[%c0_6, %c0_7] : memref<512x32xf32, #tpu.memory_space<vmem>>, vector<512x32xf32>
    tpu.vector_store %arg6[%c0_6, %c0_7], %8 {strides = array<i32>} : memref<512x32xf32, #tpu.memory_space<vmem>>, vector<512x32xf32>,
    return
  }
  func.func @transform_0(%arg0: i32, %arg1: i32, %arg2: i32) -> (i32, i32) {
    %c0_i32 = arith.constant 0 : i32
    return %arg0, %arg2 : i32, i32
  }
  func.func @transform_1(%arg0: i32, %arg1: i32, %arg2: i32) -> (i32, i32) {
    %c0_i32 = arith.constant 0 : i32
    return %arg2, %arg1 : i32, i32
  }
  func.func @transform_2(%arg0: i32, %arg1: i32, %arg2: i32) -> (i32, i32) {
    %c0_i32 = arith.constant 0 : i32
    %c0_i32_0 = arith.constant 0 : i32
    return %c0_i32, %arg1 : i32, i32
  }
  func.func @transform_3(%arg0: i32, %arg1: i32, %arg2: i32) -> (i32, i32) {
    %c0_i32 = arith.constant 0 : i32
    return %arg0, %arg1 : i32, i32
  }
}

module attributes {stable_mosaic.version = 11 : i64} {
  func.func @_linear_kernel(%arg0: i32, %arg1: i32, %arg2: i32, %arg3: memref<216x288xf32, #tpu.memory_space<vmem>>, %arg4: memref<288x32xbf16, #tpu.memory_space<vmem>>, %arg5: memref<1x32xf32, #tpu.memory_space<vmem>>, %arg6: memref<216x32xf32, #tpu.memory_space<vmem>>) attributes {dimension_semantics = [#tpu.dimension_semantics<parallel>, #tpu.dimension_semantics<parallel>, #tpu.dimension_semantics<arbitrary>], iteration_bounds = array<i64: 1, 1, 1>, scalar_prefetch = 0 : i64, scratch_operands = 0 : i64, tpu.core_type = #tpu.core_type<tc>, window_params = [{transform_indices = @transform_0, window_bounds = array<i64: 216, 288>}, {transform_indices = @transform_1, window_bounds = array<i64: 288, 32>}, {transform_indices = @transform_2, window_bounds = array<i64: 1, 32>}, {transform_indices = @transform_3, window_bounds = array<i64: 216, 32>}]} {
    %c0 = arith.constant 0 : index
    %c0_0 = arith.constant 0 : index
    %0 = vector.load %arg3[%c0, %c0_0] : memref<216x288xf32, #tpu.memory_space<vmem>>, vector<216x288xf32>
    %1 = arith.truncf %0 : vector<216x288xf32> to vector<216x288xbf16>
    %c0_1 = arith.constant 0 : index
    %c0_2 = arith.constant 0 : index
    %2 = vector.load %arg4[%c0_1, %c0_2] : memref<288x32xbf16, #tpu.memory_space<vmem>>, vector<288x32xbf16>
    %cst = arith.constant dense<0.000000e+00> : vector<216x32xf32>
    %3 = tpu.matmul %1, %2, %cst {dimension_numbers = #tpu.dot_dimension_numbers<[1], [0], [0], [1], [0, 0, 1, 1], [], []>} : vector<216x288xbf16>, vector<288x32xbf16>, vector<216x32xf32> -> vector<216x32xf32>
    %c0_3 = arith.constant 0 : index
    %c0_4 = arith.constant 0 : index
    %4 = vector.load %arg5[%c0_3, %c0_4] : memref<1x32xf32, #tpu.memory_space<vmem>>, vector<1x32xf32>
    %5 = vector.broadcast %4 : vector<1x32xf32> to vector<216x32xf32>
    %6 = arith.addf %3, %5 : vector<216x32xf32>
    %cst_5 = arith.constant 0.000000e+00 : f32
    %7 = vector.broadcast %cst_5 : f32 to vector<216x32xf32>
    %8 = arith.maximumf %6, %7 : vector<216x32xf32>
    %c0_6 = arith.constant 0 : index
    %c0_7 = arith.constant 0 : index
    %9 = vector.load %arg6[%c0_6, %c0_7] : memref<216x32xf32, #tpu.memory_space<vmem>>, vector<216x32xf32>
    tpu.vector_store %arg6[%c0_6, %c0_7], %8 {strides = array<i32>} : memref<216x32xf32, #tpu.memory_space<vmem>>, vector<216x32xf32>,
    return
  }
  func.func @transform_0(%arg0: i32, %arg1: i32, %arg2: i32) -> (i32, i32) {
    %c0_i32 = arith.constant 0 : i32
    return %arg0, %arg2 : i32, i32
  }
  func.func @transform_1(%arg0: i32, %arg1: i32, %arg2: i32) -> (i32, i32) {
    %c0_i32 = arith.constant 0 : i32
    return %arg2, %arg1 : i32, i32
  }
  func.func @transform_2(%arg0: i32, %arg1: i32, %arg2: i32) -> (i32, i32) {
    %c0_i32 = arith.constant 0 : i32
    %c0_i32_0 = arith.constant 0 : i32
    return %c0_i32, %arg1 : i32, i32
  }
  func.func @transform_3(%arg0: i32, %arg1: i32, %arg2: i32) -> (i32, i32) {
    %c0_i32 = arith.constant 0 : i32
    return %arg0, %arg1 : i32, i32
  }
}

module attributes {stable_mosaic.version = 11 : i64} {
  func.func @_linear_kernel(%arg0: i32, %arg1: i32, %arg2: i32, %arg3: memref<48x288xf32, #tpu.memory_space<vmem>>, %arg4: memref<288x32xbf16, #tpu.memory_space<vmem>>, %arg5: memref<1x32xf32, #tpu.memory_space<vmem>>, %arg6: memref<48x32xf32, #tpu.memory_space<vmem>>) attributes {dimension_semantics = [#tpu.dimension_semantics<parallel>, #tpu.dimension_semantics<parallel>, #tpu.dimension_semantics<arbitrary>], iteration_bounds = array<i64: 1, 1, 1>, scalar_prefetch = 0 : i64, scratch_operands = 0 : i64, tpu.core_type = #tpu.core_type<tc>, window_params = [{transform_indices = @transform_0, window_bounds = array<i64: 48, 288>}, {transform_indices = @transform_1, window_bounds = array<i64: 288, 32>}, {transform_indices = @transform_2, window_bounds = array<i64: 1, 32>}, {transform_indices = @transform_3, window_bounds = array<i64: 48, 32>}]} {
    %c0 = arith.constant 0 : index
    %c0_0 = arith.constant 0 : index
    %0 = vector.load %arg3[%c0, %c0_0] : memref<48x288xf32, #tpu.memory_space<vmem>>, vector<48x288xf32>
    %1 = arith.truncf %0 : vector<48x288xf32> to vector<48x288xbf16>
    %c0_1 = arith.constant 0 : index
    %c0_2 = arith.constant 0 : index
    %2 = vector.load %arg4[%c0_1, %c0_2] : memref<288x32xbf16, #tpu.memory_space<vmem>>, vector<288x32xbf16>
    %cst = arith.constant dense<0.000000e+00> : vector<48x32xf32>
    %3 = tpu.matmul %1, %2, %cst {dimension_numbers = #tpu.dot_dimension_numbers<[1], [0], [0], [1], [0, 0, 1, 1], [], []>} : vector<48x288xbf16>, vector<288x32xbf16>, vector<48x32xf32> -> vector<48x32xf32>
    %c0_3 = arith.constant 0 : index
    %c0_4 = arith.constant 0 : index
    %4 = vector.load %arg5[%c0_3, %c0_4] : memref<1x32xf32, #tpu.memory_space<vmem>>, vector<1x32xf32>
    %5 = vector.broadcast %4 : vector<1x32xf32> to vector<48x32xf32>
    %6 = arith.addf %3, %5 : vector<48x32xf32>
    %cst_5 = arith.constant 0.000000e+00 : f32
    %7 = vector.broadcast %cst_5 : f32 to vector<48x32xf32>
    %8 = arith.maximumf %6, %7 : vector<48x32xf32>
    %c0_6 = arith.constant 0 : index
    %c0_7 = arith.constant 0 : index
    %9 = vector.load %arg6[%c0_6, %c0_7] : memref<48x32xf32, #tpu.memory_space<vmem>>, vector<48x32xf32>
    tpu.vector_store %arg6[%c0_6, %c0_7], %8 {strides = array<i32>} : memref<48x32xf32, #tpu.memory_space<vmem>>, vector<48x32xf32>,
    return
  }
  func.func @transform_0(%arg0: i32, %arg1: i32, %arg2: i32) -> (i32, i32) {
    %c0_i32 = arith.constant 0 : i32
    return %arg0, %arg2 : i32, i32
  }
  func.func @transform_1(%arg0: i32, %arg1: i32, %arg2: i32) -> (i32, i32) {
    %c0_i32 = arith.constant 0 : i32
    return %arg2, %arg1 : i32, i32
  }
  func.func @transform_2(%arg0: i32, %arg1: i32, %arg2: i32) -> (i32, i32) {
    %c0_i32 = arith.constant 0 : i32
    %c0_i32_0 = arith.constant 0 : i32
    return %c0_i32, %arg1 : i32, i32
  }
  func.func @transform_3(%arg0: i32, %arg1: i32, %arg2: i32) -> (i32, i32) {
    %c0_i32 = arith.constant 0 : i32
    return %arg0, %arg1 : i32, i32
  }
}

module attributes {stable_mosaic.version = 11 : i64} {
  func.func @_linear_kernel(%arg0: i32, %arg1: i32, %arg2: i32, %arg3: memref<16x96xf32, #tpu.memory_space<vmem>>, %arg4: memref<96x32xbf16, #tpu.memory_space<vmem>>, %arg5: memref<1x32xf32, #tpu.memory_space<vmem>>, %arg6: memref<16x32xf32, #tpu.memory_space<vmem>>, %arg7: memref<16x32xf32, #tpu.memory_space<vmem>>) attributes {dimension_semantics = [#tpu.dimension_semantics<parallel>, #tpu.dimension_semantics<parallel>, #tpu.dimension_semantics<arbitrary>], iteration_bounds = array<i64: 1, 1, 1>, scalar_prefetch = 0 : i64, scratch_operands = 0 : i64, tpu.core_type = #tpu.core_type<tc>, window_params = [{transform_indices = @transform_0, window_bounds = array<i64: 16, 96>}, {transform_indices = @transform_1, window_bounds = array<i64: 96, 32>}, {transform_indices = @transform_2, window_bounds = array<i64: 1, 32>}, {transform_indices = @transform_3, window_bounds = array<i64: 16, 32>}, {transform_indices = @transform_4, window_bounds = array<i64: 16, 32>}]} {
    %c0 = arith.constant 0 : index
    %c0_0 = arith.constant 0 : index
    %0 = vector.load %arg3[%c0, %c0_0] : memref<16x96xf32, #tpu.memory_space<vmem>>, vector<16x96xf32>
    %1 = arith.truncf %0 : vector<16x96xf32> to vector<16x96xbf16>
    %c0_1 = arith.constant 0 : index
    %c0_2 = arith.constant 0 : index
    %2 = vector.load %arg4[%c0_1, %c0_2] : memref<96x32xbf16, #tpu.memory_space<vmem>>, vector<96x32xbf16>
    %cst = arith.constant dense<0.000000e+00> : vector<16x32xf32>
    %3 = tpu.matmul %1, %2, %cst {dimension_numbers = #tpu.dot_dimension_numbers<[1], [0], [0], [1], [0, 0, 1, 1], [], []>} : vector<16x96xbf16>, vector<96x32xbf16>, vector<16x32xf32> -> vector<16x32xf32>
    %c0_3 = arith.constant 0 : index
    %c0_4 = arith.constant 0 : index
    %4 = vector.load %arg5[%c0_3, %c0_4] : memref<1x32xf32, #tpu.memory_space<vmem>>, vector<1x32xf32>
    %5 = vector.broadcast %4 : vector<1x32xf32> to vector<16x32xf32>
    %6 = arith.addf %3, %5 : vector<16x32xf32>
    %c0_5 = arith.constant 0 : index
    %c0_6 = arith.constant 0 : index
    %7 = vector.load %arg6[%c0_5, %c0_6] : memref<16x32xf32, #tpu.memory_space<vmem>>, vector<16x32xf32>
    %cst_7 = arith.constant 1.000000e+00 : f32
    %8 = vector.broadcast %cst_7 : f32 to vector<16x32xf32>
    %9 = arith.mulf %8, %6 : vector<16x32xf32>
    %10 = arith.addf %7, %9 : vector<16x32xf32>
    %c0_8 = arith.constant 0 : index
    %c0_9 = arith.constant 0 : index
    %11 = vector.load %arg7[%c0_8, %c0_9] : memref<16x32xf32, #tpu.memory_space<vmem>>, vector<16x32xf32>
    tpu.vector_store %arg7[%c0_8, %c0_9], %10 {strides = array<i32>} : memref<16x32xf32, #tpu.memory_space<vmem>>, vector<16x32xf32>,
    return
  }
  func.func @transform_0(%arg0: i32, %arg1: i32, %arg2: i32) -> (i32, i32) {
    %c0_i32 = arith.constant 0 : i32
    return %arg0, %arg2 : i32, i32
  }
  func.func @transform_1(%arg0: i32, %arg1: i32, %arg2: i32) -> (i32, i32) {
    %c0_i32 = arith.constant 0 : i32
    return %arg2, %arg1 : i32, i32
  }
  func.func @transform_2(%arg0: i32, %arg1: i32, %arg2: i32) -> (i32, i32) {
    %c0_i32 = arith.constant 0 : i32
    %c0_i32_0 = arith.constant 0 : i32
    return %c0_i32, %arg1 : i32, i32
  }
  func.func @transform_3(%arg0: i32, %arg1: i32, %arg2: i32) -> (i32, i32) {
    %c0_i32 = arith.constant 0 : i32
    return %arg0, %arg1 : i32, i32
  }
  func.func @transform_4(%arg0: i32, %arg1: i32, %arg2: i32) -> (i32, i32) {
    %c0_i32 = arith.constant 0 : i32
    return %arg0, %arg1 : i32, i32
  }
}

module attributes {stable_mosaic.version = 11 : i64} {
  func.func @_linear_kernel(%arg0: i32, %arg1: i32, %arg2: i32, %arg3: memref<16x32xf32, #tpu.memory_space<vmem>>, %arg4: memref<32x128xbf16, #tpu.memory_space<vmem>>, %arg5: memref<1x128xf32, #tpu.memory_space<vmem>>, %arg6: memref<1x32xf32, #tpu.memory_space<vmem>>, %arg7: memref<1x32xf32, #tpu.memory_space<vmem>>, %arg8: memref<16x128xf32, #tpu.memory_space<vmem>>) attributes {dimension_semantics = [#tpu.dimension_semantics<parallel>, #tpu.dimension_semantics<parallel>, #tpu.dimension_semantics<arbitrary>], iteration_bounds = array<i64: 1, 1, 1>, scalar_prefetch = 0 : i64, scratch_operands = 0 : i64, tpu.core_type = #tpu.core_type<tc>, window_params = [{transform_indices = @transform_0, window_bounds = array<i64: 16, 32>}, {transform_indices = @transform_1, window_bounds = array<i64: 32, 128>}, {transform_indices = @transform_2, window_bounds = array<i64: 1, 128>}, {transform_indices = @transform_3, window_bounds = array<i64: 1, 32>}, {transform_indices = @transform_4, window_bounds = array<i64: 1, 32>}, {transform_indices = @transform_5, window_bounds = array<i64: 16, 128>}]} {
    %c0 = arith.constant 0 : index
    %c0_0 = arith.constant 0 : index
    %0 = vector.load %arg3[%c0, %c0_0] : memref<16x32xf32, #tpu.memory_space<vmem>>, vector<16x32xf32>
    %c0_1 = arith.constant 0 : index
    %c0_2 = arith.constant 0 : index
    %1 = vector.load %arg6[%c0_1, %c0_2] : memref<1x32xf32, #tpu.memory_space<vmem>>, vector<1x32xf32>
    %c0_3 = arith.constant 0 : index
    %c0_4 = arith.constant 0 : index
    %2 = vector.load %arg7[%c0_3, %c0_4] : memref<1x32xf32, #tpu.memory_space<vmem>>, vector<1x32xf32>
    %cst = arith.constant dense<0.000000e+00> : vector<16xf32>
    %3 = vector.multi_reduction <add>, %0, %cst [1] : vector<16x32xf32> to vector<16xf32>
    %4 = vector.shape_cast %3 : vector<16xf32> to vector<16x1xf32>
    %cst_5 = arith.constant 3.200000e+01 : f32
    %5 = vector.broadcast %cst_5 : f32 to vector<16x1xf32>
    %6 = arith.divf %4, %5 : vector<16x1xf32>
    %7 = vector.broadcast %6 : vector<16x1xf32> to vector<16x32xf32>
    %8 = arith.subf %0, %7 : vector<16x32xf32>
    %9 = arith.mulf %8, %8 : vector<16x32xf32>
    %cst_6 = arith.constant dense<0.000000e+00> : vector<16xf32>
    %10 = vector.multi_reduction <add>, %9, %cst_6 [1] : vector<16x32xf32> to vector<16xf32>
    %11 = vector.shape_cast %10 : vector<16xf32> to vector<16x1xf32>
    %cst_7 = arith.constant 3.200000e+01 : f32
    %12 = vector.broadcast %cst_7 : f32 to vector<16x1xf32>
    %13 = arith.divf %11, %12 : vector<16x1xf32>
    %14 = vector.broadcast %6 : vector<16x1xf32> to vector<16x32xf32>
    %15 = arith.subf %0, %14 : vector<16x32xf32>
    %cst_8 = arith.constant 9.99999974E-6 : f32
    %16 = vector.broadcast %cst_8 : f32 to vector<16x1xf32>
    %17 = arith.addf %13, %16 : vector<16x1xf32>
    %18 = math.rsqrt %17 : vector<16x1xf32>
    %19 = vector.broadcast %18 : vector<16x1xf32> to vector<16x32xf32>
    %20 = arith.mulf %15, %19 : vector<16x32xf32>
    %21 = vector.broadcast %1 : vector<1x32xf32> to vector<16x32xf32>
    %22 = arith.mulf %20, %21 : vector<16x32xf32>
    %23 = vector.broadcast %2 : vector<1x32xf32> to vector<16x32xf32>
    %24 = arith.addf %22, %23 : vector<16x32xf32>
    %25 = arith.truncf %24 : vector<16x32xf32> to vector<16x32xbf16>
    %c0_9 = arith.constant 0 : index
    %c0_10 = arith.constant 0 : index
    %26 = vector.load %arg4[%c0_9, %c0_10] : memref<32x128xbf16, #tpu.memory_space<vmem>>, vector<32x128xbf16>
    %cst_11 = arith.constant dense<0.000000e+00> : vector<16x128xf32>
    %27 = tpu.matmul %25, %26, %cst_11 {dimension_numbers = #tpu.dot_dimension_numbers<[1], [0], [0], [1], [0, 0, 1, 1], [], []>} : vector<16x32xbf16>, vector<32x128xbf16>, vector<16x128xf32> -> vector<16x128xf32>
    %c0_12 = arith.constant 0 : index
    %c0_13 = arith.constant 0 : index
    %28 = vector.load %arg5[%c0_12, %c0_13] : memref<1x128xf32, #tpu.memory_space<vmem>>, vector<1x128xf32>
    %29 = vector.broadcast %28 : vector<1x128xf32> to vector<16x128xf32>
    %30 = arith.addf %27, %29 : vector<16x128xf32>
    %cst_14 = arith.constant 0.000000e+00 : f32
    %31 = vector.broadcast %cst_14 : f32 to vector<16x128xf32>
    %32 = arith.subf %31, %30 : vector<16x128xf32>
    %33 = math.exp %32 : vector<16x128xf32>
    %cst_15 = arith.constant 1.000000e+00 : f32
    %34 = vector.broadcast %cst_15 : f32 to vector<16x128xf32>
    %35 = arith.addf %34, %33 : vector<16x128xf32>
    %36 = tpu.reciprocal %35 {approx = true} : vector<16x128xf32> -> vector<16x128xf32>
    %37 = arith.mulf %30, %36 : vector<16x128xf32>
    %c0_16 = arith.constant 0 : index
    %c0_17 = arith.constant 0 : index
    %38 = vector.load %arg8[%c0_16, %c0_17] : memref<16x128xf32, #tpu.memory_space<vmem>>, vector<16x128xf32>
    tpu.vector_store %arg8[%c0_16, %c0_17], %37 {strides = array<i32>} : memref<16x128xf32, #tpu.memory_space<vmem>>, vector<16x128xf32>,
    return
  }
  func.func @transform_0(%arg0: i32, %arg1: i32, %arg2: i32) -> (i32, i32) {
    %c0_i32 = arith.constant 0 : i32
    return %arg0, %arg2 : i32, i32
  }
  func.func @transform_1(%arg0: i32, %arg1: i32, %arg2: i32) -> (i32, i32) {
    %c0_i32 = arith.constant 0 : i32
    return %arg2, %arg1 : i32, i32
  }
  func.func @transform_2(%arg0: i32, %arg1: i32, %arg2: i32) -> (i32, i32) {
    %c0_i32 = arith.constant 0 : i32
    %c0_i32_0 = arith.constant 0 : i32
    return %c0_i32, %arg1 : i32, i32
  }
  func.func @transform_3(%arg0: i32, %arg1: i32, %arg2: i32) -> (i32, i32) {
    %c0_i32 = arith.constant 0 : i32
    %c0_i32_0 = arith.constant 0 : i32
    return %c0_i32, %arg2 : i32, i32
  }
  func.func @transform_4(%arg0: i32, %arg1: i32, %arg2: i32) -> (i32, i32) {
    %c0_i32 = arith.constant 0 : i32
    %c0_i32_0 = arith.constant 0 : i32
    return %c0_i32, %arg2 : i32, i32
  }
  func.func @transform_5(%arg0: i32, %arg1: i32, %arg2: i32) -> (i32, i32) {
    %c0_i32 = arith.constant 0 : i32
    return %arg0, %arg1 : i32, i32
  }
}

module attributes {stable_mosaic.version = 11 : i64} {
  func.func @_linear_kernel(%arg0: i32, %arg1: i32, %arg2: i32, %arg3: memref<16x32xf32, #tpu.memory_space<vmem>>, %arg4: memref<32x96xbf16, #tpu.memory_space<vmem>>, %arg5: memref<1x96xf32, #tpu.memory_space<vmem>>, %arg6: memref<1x32xf32, #tpu.memory_space<vmem>>, %arg7: memref<1x32xf32, #tpu.memory_space<vmem>>, %arg8: memref<16x96xf32, #tpu.memory_space<vmem>>) attributes {dimension_semantics = [#tpu.dimension_semantics<parallel>, #tpu.dimension_semantics<parallel>, #tpu.dimension_semantics<arbitrary>], iteration_bounds = array<i64: 1, 1, 1>, scalar_prefetch = 0 : i64, scratch_operands = 0 : i64, tpu.core_type = #tpu.core_type<tc>, window_params = [{transform_indices = @transform_0, window_bounds = array<i64: 16, 32>}, {transform_indices = @transform_1, window_bounds = array<i64: 32, 96>}, {transform_indices = @transform_2, window_bounds = array<i64: 1, 96>}, {transform_indices = @transform_3, window_bounds = array<i64: 1, 32>}, {transform_indices = @transform_4, window_bounds = array<i64: 1, 32>}, {transform_indices = @transform_5, window_bounds = array<i64: 16, 96>}]} {
    %c0 = arith.constant 0 : index
    %c0_0 = arith.constant 0 : index
    %0 = vector.load %arg3[%c0, %c0_0] : memref<16x32xf32, #tpu.memory_space<vmem>>, vector<16x32xf32>
    %c0_1 = arith.constant 0 : index
    %c0_2 = arith.constant 0 : index
    %1 = vector.load %arg6[%c0_1, %c0_2] : memref<1x32xf32, #tpu.memory_space<vmem>>, vector<1x32xf32>
    %c0_3 = arith.constant 0 : index
    %c0_4 = arith.constant 0 : index
    %2 = vector.load %arg7[%c0_3, %c0_4] : memref<1x32xf32, #tpu.memory_space<vmem>>, vector<1x32xf32>
    %cst = arith.constant dense<0.000000e+00> : vector<16xf32>
    %3 = vector.multi_reduction <add>, %0, %cst [1] : vector<16x32xf32> to vector<16xf32>
    %4 = vector.shape_cast %3 : vector<16xf32> to vector<16x1xf32>
    %cst_5 = arith.constant 3.200000e+01 : f32
    %5 = vector.broadcast %cst_5 : f32 to vector<16x1xf32>
    %6 = arith.divf %4, %5 : vector<16x1xf32>
    %7 = vector.broadcast %6 : vector<16x1xf32> to vector<16x32xf32>
    %8 = arith.subf %0, %7 : vector<16x32xf32>
    %9 = arith.mulf %8, %8 : vector<16x32xf32>
    %cst_6 = arith.constant dense<0.000000e+00> : vector<16xf32>
    %10 = vector.multi_reduction <add>, %9, %cst_6 [1] : vector<16x32xf32> to vector<16xf32>
    %11 = vector.shape_cast %10 : vector<16xf32> to vector<16x1xf32>
    %cst_7 = arith.constant 3.200000e+01 : f32
    %12 = vector.broadcast %cst_7 : f32 to vector<16x1xf32>
    %13 = arith.divf %11, %12 : vector<16x1xf32>
    %14 = vector.broadcast %6 : vector<16x1xf32> to vector<16x32xf32>
    %15 = arith.subf %0, %14 : vector<16x32xf32>
    %cst_8 = arith.constant 9.99999974E-6 : f32
    %16 = vector.broadcast %cst_8 : f32 to vector<16x1xf32>
    %17 = arith.addf %13, %16 : vector<16x1xf32>
    %18 = math.rsqrt %17 : vector<16x1xf32>
    %19 = vector.broadcast %18 : vector<16x1xf32> to vector<16x32xf32>
    %20 = arith.mulf %15, %19 : vector<16x32xf32>
    %21 = vector.broadcast %1 : vector<1x32xf32> to vector<16x32xf32>
    %22 = arith.mulf %20, %21 : vector<16x32xf32>
    %23 = vector.broadcast %2 : vector<1x32xf32> to vector<16x32xf32>
    %24 = arith.addf %22, %23 : vector<16x32xf32>
    %25 = arith.truncf %24 : vector<16x32xf32> to vector<16x32xbf16>
    %c0_9 = arith.constant 0 : index
    %c0_10 = arith.constant 0 : index
    %26 = vector.load %arg4[%c0_9, %c0_10] : memref<32x96xbf16, #tpu.memory_space<vmem>>, vector<32x96xbf16>
    %cst_11 = arith.constant dense<0.000000e+00> : vector<16x96xf32>
    %27 = tpu.matmul %25, %26, %cst_11 {dimension_numbers = #tpu.dot_dimension_numbers<[1], [0], [0], [1], [0, 0, 1, 1], [], []>} : vector<16x32xbf16>, vector<32x96xbf16>, vector<16x96xf32> -> vector<16x96xf32>
    %c0_12 = arith.constant 0 : index
    %c0_13 = arith.constant 0 : index
    %28 = vector.load %arg5[%c0_12, %c0_13] : memref<1x96xf32, #tpu.memory_space<vmem>>, vector<1x96xf32>
    %29 = vector.broadcast %28 : vector<1x96xf32> to vector<16x96xf32>
    %30 = arith.addf %27, %29 : vector<16x96xf32>
    %c0_14 = arith.constant 0 : index
    %c0_15 = arith.constant 0 : index
    %31 = vector.load %arg8[%c0_14, %c0_15] : memref<16x96xf32, #tpu.memory_space<vmem>>, vector<16x96xf32>
    tpu.vector_store %arg8[%c0_14, %c0_15], %30 {strides = array<i32>} : memref<16x96xf32, #tpu.memory_space<vmem>>, vector<16x96xf32>,
    return
  }
  func.func @transform_0(%arg0: i32, %arg1: i32, %arg2: i32) -> (i32, i32) {
    %c0_i32 = arith.constant 0 : i32
    return %arg0, %arg2 : i32, i32
  }
  func.func @transform_1(%arg0: i32, %arg1: i32, %arg2: i32) -> (i32, i32) {
    %c0_i32 = arith.constant 0 : i32
    return %arg2, %arg1 : i32, i32
  }
  func.func @transform_2(%arg0: i32, %arg1: i32, %arg2: i32) -> (i32, i32) {
    %c0_i32 = arith.constant 0 : i32
    %c0_i32_0 = arith.constant 0 : i32
    return %c0_i32, %arg1 : i32, i32
  }
  func.func @transform_3(%arg0: i32, %arg1: i32, %arg2: i32) -> (i32, i32) {
    %c0_i32 = arith.constant 0 : i32
    %c0_i32_0 = arith.constant 0 : i32
    return %c0_i32, %arg2 : i32, i32
  }
  func.func @transform_4(%arg0: i32, %arg1: i32, %arg2: i32) -> (i32, i32) {
    %c0_i32 = arith.constant 0 : i32
    %c0_i32_0 = arith.constant 0 : i32
    return %c0_i32, %arg2 : i32, i32
  }
  func.func @transform_5(%arg0: i32, %arg1: i32, %arg2: i32) -> (i32, i32) {
    %c0_i32 = arith.constant 0 : i32
    return %arg0, %arg1 : i32, i32
  }
}

module attributes {stable_mosaic.version = 11 : i64} {
  func.func @_linear_kernel(%arg0: i32, %arg1: i32, %arg2: i32, %arg3: memref<16x128xf32, #tpu.memory_space<vmem>>, %arg4: memref<128x32xbf16, #tpu.memory_space<vmem>>, %arg5: memref<1x32xf32, #tpu.memory_space<vmem>>, %arg6: memref<16x32xf32, #tpu.memory_space<vmem>>, %arg7: memref<16x32xf32, #tpu.memory_space<vmem>>) attributes {dimension_semantics = [#tpu.dimension_semantics<parallel>, #tpu.dimension_semantics<parallel>, #tpu.dimension_semantics<arbitrary>], iteration_bounds = array<i64: 1, 1, 1>, scalar_prefetch = 0 : i64, scratch_operands = 0 : i64, tpu.core_type = #tpu.core_type<tc>, window_params = [{transform_indices = @transform_0, window_bounds = array<i64: 16, 128>}, {transform_indices = @transform_1, window_bounds = array<i64: 128, 32>}, {transform_indices = @transform_2, window_bounds = array<i64: 1, 32>}, {transform_indices = @transform_3, window_bounds = array<i64: 16, 32>}, {transform_indices = @transform_4, window_bounds = array<i64: 16, 32>}]} {
    %c0 = arith.constant 0 : index
    %c0_0 = arith.constant 0 : index
    %0 = vector.load %arg3[%c0, %c0_0] : memref<16x128xf32, #tpu.memory_space<vmem>>, vector<16x128xf32>
    %1 = arith.truncf %0 : vector<16x128xf32> to vector<16x128xbf16>
    %c0_1 = arith.constant 0 : index
    %c0_2 = arith.constant 0 : index
    %2 = vector.load %arg4[%c0_1, %c0_2] : memref<128x32xbf16, #tpu.memory_space<vmem>>, vector<128x32xbf16>
    %cst = arith.constant dense<0.000000e+00> : vector<16x32xf32>
    %3 = tpu.matmul %1, %2, %cst {dimension_numbers = #tpu.dot_dimension_numbers<[1], [0], [0], [1], [0, 0, 1, 1], [], []>} : vector<16x128xbf16>, vector<128x32xbf16>, vector<16x32xf32> -> vector<16x32xf32>
    %c0_3 = arith.constant 0 : index
    %c0_4 = arith.constant 0 : index
    %4 = vector.load %arg5[%c0_3, %c0_4] : memref<1x32xf32, #tpu.memory_space<vmem>>, vector<1x32xf32>
    %5 = vector.broadcast %4 : vector<1x32xf32> to vector<16x32xf32>
    %6 = arith.addf %3, %5 : vector<16x32xf32>
    %c0_5 = arith.constant 0 : index
    %c0_6 = arith.constant 0 : index
    %7 = vector.load %arg6[%c0_5, %c0_6] : memref<16x32xf32, #tpu.memory_space<vmem>>, vector<16x32xf32>
    %cst_7 = arith.constant 5.000000e-01 : f32
    %8 = vector.broadcast %cst_7 : f32 to vector<16x32xf32>
    %9 = arith.mulf %8, %6 : vector<16x32xf32>
    %10 = arith.addf %7, %9 : vector<16x32xf32>
    %c0_8 = arith.constant 0 : index
    %c0_9 = arith.constant 0 : index
    %11 = vector.load %arg7[%c0_8, %c0_9] : memref<16x32xf32, #tpu.memory_space<vmem>>, vector<16x32xf32>
    tpu.vector_store %arg7[%c0_8, %c0_9], %10 {strides = array<i32>} : memref<16x32xf32, #tpu.memory_space<vmem>>, vector<16x32xf32>,
    return
  }
  func.func @transform_0(%arg0: i32, %arg1: i32, %arg2: i32) -> (i32, i32) {
    %c0_i32 = arith.constant 0 : i32
    return %arg0, %arg2 : i32, i32
  }
  func.func @transform_1(%arg0: i32, %arg1: i32, %arg2: i32) -> (i32, i32) {
    %c0_i32 = arith.constant 0 : i32
    return %arg2, %arg1 : i32, i32
  }
  func.func @transform_2(%arg0: i32, %arg1: i32, %arg2: i32) -> (i32, i32) {
    %c0_i32 = arith.constant 0 : i32
    %c0_i32_0 = arith.constant 0 : i32
    return %c0_i32, %arg1 : i32, i32
  }
  func.func @transform_3(%arg0: i32, %arg1: i32, %arg2: i32) -> (i32, i32) {
    %c0_i32 = arith.constant 0 : i32
    return %arg0, %arg1 : i32, i32
  }
  func.func @transform_4(%arg0: i32, %arg1: i32, %arg2: i32) -> (i32, i32) {
    %c0_i32 = arith.constant 0 : i32
    return %arg0, %arg1 : i32, i32
  }
}

module attributes {stable_mosaic.version = 11 : i64} {
  func.func @_attn_kernel(%arg0: i32, %arg1: memref<1x8x96xf32, #tpu.memory_space<vmem>>, %arg2: memref<1x1x8xf32, #tpu.memory_space<vmem>>, %arg3: memref<32x32xbf16, #tpu.memory_space<vmem>>, %arg4: memref<1x32xf32, #tpu.memory_space<vmem>>, %arg5: memref<1x8x32xf32, #tpu.memory_space<vmem>>, %arg6: memref<1x8x32xf32, #tpu.memory_space<vmem>>) attributes {dimension_semantics = [#tpu.dimension_semantics<parallel>], iteration_bounds = array<i64: 2>, scalar_prefetch = 0 : i64, scratch_operands = 0 : i64, tpu.core_type = #tpu.core_type<tc>, window_params = [{transform_indices = @transform_0, window_bounds = array<i64: 1, 8, 96>}, {transform_indices = @transform_1, window_bounds = array<i64: 1, 1, 8>}, {pipeline_mode = #tpu.pipeline_mode<synchronous>, transform_indices = @transform_2, window_bounds = array<i64: 32, 32>}, {pipeline_mode = #tpu.pipeline_mode<synchronous>, transform_indices = @transform_3, window_bounds = array<i64: 1, 32>}, {transform_indices = @transform_4, window_bounds = array<i64: 1, 8, 32>}, {transform_indices = @transform_5, window_bounds = array<i64: 1, 8, 32>}]} {
    %c0 = arith.constant 0 : index
    %c0_0 = arith.constant 0 : index
    %c0_1 = arith.constant 0 : index
    %0 = vector.load %arg2[%c0, %c0_0, %c0_1] : memref<1x1x8xf32, #tpu.memory_space<vmem>>, vector<1x1x8xf32>
    %1 = vector.shape_cast %0 : vector<1x1x8xf32> to vector<1x8xf32>
    %cst = arith.constant -1.000000e+09 : f32
    %2 = vector.broadcast %cst : f32 to vector<1x8xf32>
    %3 = arith.mulf %1, %2 : vector<1x8xf32>
    %c0_2 = arith.constant 0 : index
    %c0_3 = arith.constant 0 : index
    %c0_4 = arith.constant 0 : index
    %4 = vector.load %arg5[%c0_2, %c0_3, %c0_4] : memref<1x8x32xf32, #tpu.memory_space<vmem>>, vector<1x8x32xf32>
    %5 = vector.shape_cast %4 : vector<1x8x32xf32> to vector<8x32xf32>
    %c0_5 = arith.constant 0 : index
    %c0_6 = arith.constant 0 : index
    %6 = vector.load %arg4[%c0_5, %c0_6] : memref<1x32xf32, #tpu.memory_space<vmem>>, vector<1x32xf32>
    %7 = vector.broadcast %6 : vector<1x32xf32> to vector<8x32xf32>
    %8 = arith.addf %5, %7 : vector<8x32xf32>
    %c0_7 = arith.constant 0 : index
    %c0_8 = arith.constant 0 : index
    %c0_9 = arith.constant 0 : index
    %9 = vector.load %arg1[%c0_7, %c0_8, %c0_9] : memref<1x8x96xf32, #tpu.memory_space<vmem>>, vector<1x8x8xf32>
    %10 = vector.shape_cast %9 : vector<1x8x8xf32> to vector<8x8xf32>
    %cst_10 = arith.constant 0.353553385 : f32
    %11 = vector.broadcast %cst_10 : f32 to vector<8x8xf32>
    %12 = arith.mulf %10, %11 : vector<8x8xf32>
    %13 = arith.truncf %12 : vector<8x8xf32> to vector<8x8xbf16>
    %c0_11 = arith.constant 0 : index
    %c0_12 = arith.constant 0 : index
    %c32 = arith.constant 32 : index
    %14 = vector.load %arg1[%c0_11, %c0_12, %c32] : memref<1x8x96xf32, #tpu.memory_space<vmem>>, vector<1x8x8xf32>
    %15 = vector.shape_cast %14 : vector<1x8x8xf32> to vector<8x8xf32>
    %16 = arith.truncf %15 : vector<8x8xf32> to vector<8x8xbf16>
    %c0_13 = arith.constant 0 : index
    %c0_14 = arith.constant 0 : index
    %c64 = arith.constant 64 : index
    %17 = vector.load %arg1[%c0_13, %c0_14, %c64] : memref<1x8x96xf32, #tpu.memory_space<vmem>>, vector<1x8x8xf32>
    %18 = vector.shape_cast %17 : vector<1x8x8xf32> to vector<8x8xf32>
    %19 = arith.truncf %18 : vector<8x8xf32> to vector<8x8xbf16>
    %cst_15 = arith.constant dense<0.000000e+00> : vector<8x8xf32>
    %20 = tpu.matmul %13, %16, %cst_15 {dimension_numbers = #tpu.dot_dimension_numbers<[1], [1], [0], [0], [0, 0, 1, 0], [], []>} : vector<8x8xbf16>, vector<8x8xbf16>, vector<8x8xf32> -> vector<8x8xf32>
    %21 = vector.broadcast %3 : vector<1x8xf32> to vector<8x8xf32>
    %22 = arith.addf %20, %21 : vector<8x8xf32>
    %cst_16 = arith.constant dense<0xFF800000> : vector<8xf32>
    %23 = vector.multi_reduction <maximumf>, %22, %cst_16 [1] : vector<8x8xf32> to vector<8xf32>
    %24 = vector.shape_cast %23 : vector<8xf32> to vector<8x1xf32>
    %25 = vector.broadcast %24 : vector<8x1xf32> to vector<8x8xf32>
    %26 = arith.subf %22, %25 : vector<8x8xf32>
    %27 = math.exp %26 : vector<8x8xf32>
    %cst_17 = arith.constant dense<0.000000e+00> : vector<8xf32>
    %28 = vector.multi_reduction <add>, %27, %cst_17 [1] : vector<8x8xf32> to vector<8xf32>
    %29 = vector.shape_cast %28 : vector<8xf32> to vector<8x1xf32>
    %30 = tpu.reciprocal %29 {approx = true} : vector<8x1xf32> -> vector<8x1xf32>
    %31 = vector.broadcast %30 : vector<8x1xf32> to vector<8x8xf32>
    %32 = arith.mulf %27, %31 : vector<8x8xf32>
    %33 = arith.truncf %32 : vector<8x8xf32> to vector<8x8xbf16>
    %cst_18 = arith.constant dense<0.000000e+00> : vector<8x8xf32>
    %34 = tpu.matmul %33, %19, %cst_18 {dimension_numbers = #tpu.dot_dimension_numbers<[1], [0], [0], [1], [0, 0, 1, 1], [], []>} : vector<8x8xbf16>, vector<8x8xbf16>, vector<8x8xf32> -> vector<8x8xf32>
    %35 = arith.truncf %34 : vector<8x8xf32> to vector<8x8xbf16>
    %c0_19 = arith.constant 0 : index
    %c0_20 = arith.constant 0 : index
    %36 = vector.load %arg3[%c0_19, %c0_20] : memref<32x32xbf16, #tpu.memory_space<vmem>>, vector<8x32xbf16>
    %cst_21 = arith.constant dense<0.000000e+00> : vector<8x32xf32>
    %37 = tpu.matmul %35, %36, %cst_21 {dimension_numbers = #tpu.dot_dimension_numbers<[1], [0], [0], [1], [0, 0, 1, 1], [], []>} : vector<8x8xbf16>, vector<8x32xbf16>, vector<8x32xf32> -> vector<8x32xf32>
    %38 = arith.addf %8, %37 : vector<8x32xf32>
    %c0_22 = arith.constant 0 : index
    %c0_23 = arith.constant 0 : index
    %c8 = arith.constant 8 : index
    %39 = vector.load %arg1[%c0_22, %c0_23, %c8] : memref<1x8x96xf32, #tpu.memory_space<vmem>>, vector<1x8x8xf32>
    %40 = vector.shape_cast %39 : vector<1x8x8xf32> to vector<8x8xf32>
    %cst_24 = arith.constant 0.353553385 : f32
    %41 = vector.broadcast %cst_24 : f32 to vector<8x8xf32>
    %42 = arith.mulf %40, %41 : vector<8x8xf32>
    %43 = arith.truncf %42 : vector<8x8xf32> to vector<8x8xbf16>
    %c0_25 = arith.constant 0 : index
    %c0_26 = arith.constant 0 : index
    %c40 = arith.constant 40 : index
    %44 = vector.load %arg1[%c0_25, %c0_26, %c40] : memref<1x8x96xf32, #tpu.memory_space<vmem>>, vector<1x8x8xf32>
    %45 = vector.shape_cast %44 : vector<1x8x8xf32> to vector<8x8xf32>
    %46 = arith.truncf %45 : vector<8x8xf32> to vector<8x8xbf16>
    %c0_27 = arith.constant 0 : index
    %c0_28 = arith.constant 0 : index
    %c72 = arith.constant 72 : index
    %47 = vector.load %arg1[%c0_27, %c0_28, %c72] : memref<1x8x96xf32, #tpu.memory_space<vmem>>, vector<1x8x8xf32>
    %48 = vector.shape_cast %47 : vector<1x8x8xf32> to vector<8x8xf32>
    %49 = arith.truncf %48 : vector<8x8xf32> to vector<8x8xbf16>
    %cst_29 = arith.constant dense<0.000000e+00> : vector<8x8xf32>
    %50 = tpu.matmul %43, %46, %cst_29 {dimension_numbers = #tpu.dot_dimension_numbers<[1], [1], [0], [0], [0, 0, 1, 0], [], []>} : vector<8x8xbf16>, vector<8x8xbf16>, vector<8x8xf32> -> vector<8x8xf32>
    %51 = vector.broadcast %3 : vector<1x8xf32> to vector<8x8xf32>
    %52 = arith.addf %50, %51 : vector<8x8xf32>
    %cst_30 = arith.constant dense<0xFF800000> : vector<8xf32>
    %53 = vector.multi_reduction <maximumf>, %52, %cst_30 [1] : vector<8x8xf32> to vector<8xf32>
    %54 = vector.shape_cast %53 : vector<8xf32> to vector<8x1xf32>
    %55 = vector.broadcast %54 : vector<8x1xf32> to vector<8x8xf32>
    %56 = arith.subf %52, %55 : vector<8x8xf32>
    %57 = math.exp %56 : vector<8x8xf32>
    %cst_31 = arith.constant dense<0.000000e+00> : vector<8xf32>
    %58 = vector.multi_reduction <add>, %57, %cst_31 [1] : vector<8x8xf32> to vector<8xf32>
    %59 = vector.shape_cast %58 : vector<8xf32> to vector<8x1xf32>
    %60 = tpu.reciprocal %59 {approx = true} : vector<8x1xf32> -> vector<8x1xf32>
    %61 = vector.broadcast %60 : vector<8x1xf32> to vector<8x8xf32>
    %62 = arith.mulf %57, %61 : vector<8x8xf32>
    %63 = arith.truncf %62 : vector<8x8xf32> to vector<8x8xbf16>
    %cst_32 = arith.constant dense<0.000000e+00> : vector<8x8xf32>
    %64 = tpu.matmul %63, %49, %cst_32 {dimension_numbers = #tpu.dot_dimension_numbers<[1], [0], [0], [1], [0, 0, 1, 1], [], []>} : vector<8x8xbf16>, vector<8x8xbf16>, vector<8x8xf32> -> vector<8x8xf32>
    %65 = arith.truncf %64 : vector<8x8xf32> to vector<8x8xbf16>
    %c8_33 = arith.constant 8 : index
    %c0_34 = arith.constant 0 : index
    %66 = vector.load %arg3[%c8_33, %c0_34] : memref<32x32xbf16, #tpu.memory_space<vmem>>, vector<8x32xbf16>
    %cst_35 = arith.constant dense<0.000000e+00> : vector<8x32xf32>
    %67 = tpu.matmul %65, %66, %cst_35 {dimension_numbers = #tpu.dot_dimension_numbers<[1], [0], [0], [1], [0, 0, 1, 1], [], []>} : vector<8x8xbf16>, vector<8x32xbf16>, vector<8x32xf32> -> vector<8x32xf32>
    %68 = arith.addf %38, %67 : vector<8x32xf32>
    %c0_36 = arith.constant 0 : index
    %c0_37 = arith.constant 0 : index
    %c16 = arith.constant 16 : index
    %69 = vector.load %arg1[%c0_36, %c0_37, %c16] : memref<1x8x96xf32, #tpu.memory_space<vmem>>, vector<1x8x8xf32>
    %70 = vector.shape_cast %69 : vector<1x8x8xf32> to vector<8x8xf32>
    %cst_38 = arith.constant 0.353553385 : f32
    %71 = vector.broadcast %cst_38 : f32 to vector<8x8xf32>
    %72 = arith.mulf %70, %71 : vector<8x8xf32>
    %73 = arith.truncf %72 : vector<8x8xf32> to vector<8x8xbf16>
    %c0_39 = arith.constant 0 : index
    %c0_40 = arith.constant 0 : index
    %c48 = arith.constant 48 : index
    %74 = vector.load %arg1[%c0_39, %c0_40, %c48] : memref<1x8x96xf32, #tpu.memory_space<vmem>>, vector<1x8x8xf32>
    %75 = vector.shape_cast %74 : vector<1x8x8xf32> to vector<8x8xf32>
    %76 = arith.truncf %75 : vector<8x8xf32> to vector<8x8xbf16>
    %c0_41 = arith.constant 0 : index
    %c0_42 = arith.constant 0 : index
    %c80 = arith.constant 80 : index
    %77 = vector.load %arg1[%c0_41, %c0_42, %c80] : memref<1x8x96xf32, #tpu.memory_space<vmem>>, vector<1x8x8xf32>
    %78 = vector.shape_cast %77 : vector<1x8x8xf32> to vector<8x8xf32>
    %79 = arith.truncf %78 : vector<8x8xf32> to vector<8x8xbf16>
    %cst_43 = arith.constant dense<0.000000e+00> : vector<8x8xf32>
    %80 = tpu.matmul %73, %76, %cst_43 {dimension_numbers = #tpu.dot_dimension_numbers<[1], [1], [0], [0], [0, 0, 1, 0], [], []>} : vector<8x8xbf16>, vector<8x8xbf16>, vector<8x8xf32> -> vector<8x8xf32>
    %81 = vector.broadcast %3 : vector<1x8xf32> to vector<8x8xf32>
    %82 = arith.addf %80, %81 : vector<8x8xf32>
    %cst_44 = arith.constant dense<0xFF800000> : vector<8xf32>
    %83 = vector.multi_reduction <maximumf>, %82, %cst_44 [1] : vector<8x8xf32> to vector<8xf32>
    %84 = vector.shape_cast %83 : vector<8xf32> to vector<8x1xf32>
    %85 = vector.broadcast %84 : vector<8x1xf32> to vector<8x8xf32>
    %86 = arith.subf %82, %85 : vector<8x8xf32>
    %87 = math.exp %86 : vector<8x8xf32>
    %cst_45 = arith.constant dense<0.000000e+00> : vector<8xf32>
    %88 = vector.multi_reduction <add>, %87, %cst_45 [1] : vector<8x8xf32> to vector<8xf32>
    %89 = vector.shape_cast %88 : vector<8xf32> to vector<8x1xf32>
    %90 = tpu.reciprocal %89 {approx = true} : vector<8x1xf32> -> vector<8x1xf32>
    %91 = vector.broadcast %90 : vector<8x1xf32> to vector<8x8xf32>
    %92 = arith.mulf %87, %91 : vector<8x8xf32>
    %93 = arith.truncf %92 : vector<8x8xf32> to vector<8x8xbf16>
    %cst_46 = arith.constant dense<0.000000e+00> : vector<8x8xf32>
    %94 = tpu.matmul %93, %79, %cst_46 {dimension_numbers = #tpu.dot_dimension_numbers<[1], [0], [0], [1], [0, 0, 1, 1], [], []>} : vector<8x8xbf16>, vector<8x8xbf16>, vector<8x8xf32> -> vector<8x8xf32>
    %95 = arith.truncf %94 : vector<8x8xf32> to vector<8x8xbf16>
    %c16_47 = arith.constant 16 : index
    %c0_48 = arith.constant 0 : index
    %96 = vector.load %arg3[%c16_47, %c0_48] : memref<32x32xbf16, #tpu.memory_space<vmem>>, vector<8x32xbf16>
    %cst_49 = arith.constant dense<0.000000e+00> : vector<8x32xf32>
    %97 = tpu.matmul %95, %96, %cst_49 {dimension_numbers = #tpu.dot_dimension_numbers<[1], [0], [0], [1], [0, 0, 1, 1], [], []>} : vector<8x8xbf16>, vector<8x32xbf16>, vector<8x32xf32> -> vector<8x32xf32>
    %98 = arith.addf %68, %97 : vector<8x32xf32>
    %c0_50 = arith.constant 0 : index
    %c0_51 = arith.constant 0 : index
    %c24 = arith.constant 24 : index
    %99 = vector.load %arg1[%c0_50, %c0_51, %c24] : memref<1x8x96xf32, #tpu.memory_space<vmem>>, vector<1x8x8xf32>
    %100 = vector.shape_cast %99 : vector<1x8x8xf32> to vector<8x8xf32>
    %cst_52 = arith.constant 0.353553385 : f32
    %101 = vector.broadcast %cst_52 : f32 to vector<8x8xf32>
    %102 = arith.mulf %100, %101 : vector<8x8xf32>
    %103 = arith.truncf %102 : vector<8x8xf32> to vector<8x8xbf16>
    %c0_53 = arith.constant 0 : index
    %c0_54 = arith.constant 0 : index
    %c56 = arith.constant 56 : index
    %104 = vector.load %arg1[%c0_53, %c0_54, %c56] : memref<1x8x96xf32, #tpu.memory_space<vmem>>, vector<1x8x8xf32>
    %105 = vector.shape_cast %104 : vector<1x8x8xf32> to vector<8x8xf32>
    %106 = arith.truncf %105 : vector<8x8xf32> to vector<8x8xbf16>
    %c0_55 = arith.constant 0 : index
    %c0_56 = arith.constant 0 : index
    %c88 = arith.constant 88 : index
    %107 = vector.load %arg1[%c0_55, %c0_56, %c88] : memref<1x8x96xf32, #tpu.memory_space<vmem>>, vector<1x8x8xf32>
    %108 = vector.shape_cast %107 : vector<1x8x8xf32> to vector<8x8xf32>
    %109 = arith.truncf %108 : vector<8x8xf32> to vector<8x8xbf16>
    %cst_57 = arith.constant dense<0.000000e+00> : vector<8x8xf32>
    %110 = tpu.matmul %103, %106, %cst_57 {dimension_numbers = #tpu.dot_dimension_numbers<[1], [1], [0], [0], [0, 0, 1, 0], [], []>} : vector<8x8xbf16>, vector<8x8xbf16>, vector<8x8xf32> -> vector<8x8xf32>
    %111 = vector.broadcast %3 : vector<1x8xf32> to vector<8x8xf32>
    %112 = arith.addf %110, %111 : vector<8x8xf32>
    %cst_58 = arith.constant dense<0xFF800000> : vector<8xf32>
    %113 = vector.multi_reduction <maximumf>, %112, %cst_58 [1] : vector<8x8xf32> to vector<8xf32>
    %114 = vector.shape_cast %113 : vector<8xf32> to vector<8x1xf32>
    %115 = vector.broadcast %114 : vector<8x1xf32> to vector<8x8xf32>
    %116 = arith.subf %112, %115 : vector<8x8xf32>
    %117 = math.exp %116 : vector<8x8xf32>
    %cst_59 = arith.constant dense<0.000000e+00> : vector<8xf32>
    %118 = vector.multi_reduction <add>, %117, %cst_59 [1] : vector<8x8xf32> to vector<8xf32>
    %119 = vector.shape_cast %118 : vector<8xf32> to vector<8x1xf32>
    %120 = tpu.reciprocal %119 {approx = true} : vector<8x1xf32> -> vector<8x1xf32>
    %121 = vector.broadcast %120 : vector<8x1xf32> to vector<8x8xf32>
    %122 = arith.mulf %117, %121 : vector<8x8xf32>
    %123 = arith.truncf %122 : vector<8x8xf32> to vector<8x8xbf16>
    %cst_60 = arith.constant dense<0.000000e+00> : vector<8x8xf32>
    %124 = tpu.matmul %123, %109, %cst_60 {dimension_numbers = #tpu.dot_dimension_numbers<[1], [0], [0], [1], [0, 0, 1, 1], [], []>} : vector<8x8xbf16>, vector<8x8xbf16>, vector<8x8xf32> -> vector<8x8xf32>
    %125 = arith.truncf %124 : vector<8x8xf32> to vector<8x8xbf16>
    %c24_61 = arith.constant 24 : index
    %c0_62 = arith.constant 0 : index
    %126 = vector.load %arg3[%c24_61, %c0_62] : memref<32x32xbf16, #tpu.memory_space<vmem>>, vector<8x32xbf16>
    %cst_63 = arith.constant dense<0.000000e+00> : vector<8x32xf32>
    %127 = tpu.matmul %125, %126, %cst_63 {dimension_numbers = #tpu.dot_dimension_numbers<[1], [0], [0], [1], [0, 0, 1, 1], [], []>} : vector<8x8xbf16>, vector<8x32xbf16>, vector<8x32xf32> -> vector<8x32xf32>
    %128 = arith.addf %98, %127 : vector<8x32xf32>
    %c0_64 = arith.constant 0 : index
    %c0_65 = arith.constant 0 : index
    %c0_66 = arith.constant 0 : index
    %129 = vector.load %arg6[%c0_64, %c0_65, %c0_66] : memref<1x8x32xf32, #tpu.memory_space<vmem>>, vector<1x8x32xf32>
    %130 = vector.shape_cast %129 : vector<1x8x32xf32> to vector<8x32xf32>
    %131 = vector.shape_cast %128 : vector<8x32xf32> to vector<1x8x32xf32>
    tpu.vector_store %arg6[%c0_64, %c0_65, %c0_66], %131 {strides = array<i32>} : memref<1x8x32xf32, #tpu.memory_space<vmem>>, vector<1x8x32xf32>,
    return
  }
  func.func @transform_0(%arg0: i32) -> (i32, i32, i32) {
    %c0_i32 = arith.constant 0 : i32
    %c0_i32_0 = arith.constant 0 : i32
    %c0_i32_1 = arith.constant 0 : i32
    return %arg0, %c0_i32, %c0_i32_0 : i32, i32, i32
  }
  func.func @transform_1(%arg0: i32) -> (i32, i32, i32) {
    %c0_i32 = arith.constant 0 : i32
    %c0_i32_0 = arith.constant 0 : i32
    %c0_i32_1 = arith.constant 0 : i32
    return %arg0, %c0_i32, %c0_i32_0 : i32, i32, i32
  }
  func.func @transform_2(%arg0: i32) -> (i32, i32) {
    %c0_i32 = arith.constant 0 : i32
    %c0_i32_0 = arith.constant 0 : i32
    %c0_i32_1 = arith.constant 0 : i32
    return %c0_i32, %c0_i32_0 : i32, i32
  }
  func.func @transform_3(%arg0: i32) -> (i32, i32) {
    %c0_i32 = arith.constant 0 : i32
    %c0_i32_0 = arith.constant 0 : i32
    %c0_i32_1 = arith.constant 0 : i32
    return %c0_i32, %c0_i32_0 : i32, i32
  }
  func.func @transform_4(%arg0: i32) -> (i32, i32, i32) {
    %c0_i32 = arith.constant 0 : i32
    %c0_i32_0 = arith.constant 0 : i32
    %c0_i32_1 = arith.constant 0 : i32
    return %arg0, %c0_i32, %c0_i32_0 : i32, i32, i32
  }
  func.func @transform_5(%arg0: i32) -> (i32, i32, i32) {
    %c0_i32 = arith.constant 0 : i32
    %c0_i32_0 = arith.constant 0 : i32
    %c0_i32_1 = arith.constant 0 : i32
    return %arg0, %c0_i32, %c0_i32_0 : i32, i32, i32
  }
}

module attributes {stable_mosaic.version = 11 : i64} {
  func.func @_dwconv_kernel(%arg0: i32, %arg1: memref<1x14x32xf32, #tpu.memory_space<vmem>>, %arg2: memref<7x32xf32, #tpu.memory_space<vmem>>, %arg3: memref<1x32xf32, #tpu.memory_space<vmem>>, %arg4: memref<1x32xf32, #tpu.memory_space<vmem>>, %arg5: memref<1x32xf32, #tpu.memory_space<vmem>>, %arg6: memref<1x8x32xf32, #tpu.memory_space<vmem>>) attributes {dimension_semantics = [#tpu.dimension_semantics<parallel>], iteration_bounds = array<i64: 2>, scalar_prefetch = 0 : i64, scratch_operands = 0 : i64, tpu.core_type = #tpu.core_type<tc>, window_params = [{transform_indices = @transform_0, window_bounds = array<i64: 1, 14, 32>}, {pipeline_mode = #tpu.pipeline_mode<synchronous>, transform_indices = @transform_1, window_bounds = array<i64: 7, 32>}, {pipeline_mode = #tpu.pipeline_mode<synchronous>, transform_indices = @transform_2, window_bounds = array<i64: 1, 32>}, {pipeline_mode = #tpu.pipeline_mode<synchronous>, transform_indices = @transform_3, window_bounds = array<i64: 1, 32>}, {pipeline_mode = #tpu.pipeline_mode<synchronous>, transform_indices = @transform_4, window_bounds = array<i64: 1, 32>}, {transform_indices = @transform_5, window_bounds = array<i64: 1, 8, 32>}]} {
    %c0 = arith.constant 0 : index
    %c0_0 = arith.constant 0 : index
    %c0_1 = arith.constant 0 : index
    %0 = vector.load %arg1[%c0, %c0_0, %c0_1] : memref<1x14x32xf32, #tpu.memory_space<vmem>>, vector<1x14x32xf32>
    %1 = vector.shape_cast %0 : vector<1x14x32xf32> to vector<14x32xf32>
    %c0_2 = arith.constant 0 : index
    %c0_3 = arith.constant 0 : index
    %2 = vector.load %arg2[%c0_2, %c0_3] : memref<7x32xf32, #tpu.memory_space<vmem>>, vector<7x32xf32>
    %3 = vector.extract_strided_slice %1 {offsets = [0, 0], sizes = [8, 32], strides = [1, 1]} : vector<14x32xf32> to vector<8x32xf32>
    %4 = vector.extract_strided_slice %2 {offsets = [0, 0], sizes = [1, 32], strides = [1, 1]} : vector<7x32xf32> to vector<1x32xf32>
    %5 = vector.broadcast %4 : vector<1x32xf32> to vector<8x32xf32>
    %6 = arith.mulf %3, %5 : vector<8x32xf32>
    %7 = vector.extract_strided_slice %1 {offsets = [1, 0], sizes = [8, 32], strides = [1, 1]} : vector<14x32xf32> to vector<8x32xf32>
    %8 = vector.extract_strided_slice %2 {offsets = [1, 0], sizes = [1, 32], strides = [1, 1]} : vector<7x32xf32> to vector<1x32xf32>
    %9 = vector.broadcast %8 : vector<1x32xf32> to vector<8x32xf32>
    %10 = arith.mulf %7, %9 : vector<8x32xf32>
    %11 = arith.addf %6, %10 : vector<8x32xf32>
    %12 = vector.extract_strided_slice %1 {offsets = [2, 0], sizes = [8, 32], strides = [1, 1]} : vector<14x32xf32> to vector<8x32xf32>
    %13 = vector.extract_strided_slice %2 {offsets = [2, 0], sizes = [1, 32], strides = [1, 1]} : vector<7x32xf32> to vector<1x32xf32>
    %14 = vector.broadcast %13 : vector<1x32xf32> to vector<8x32xf32>
    %15 = arith.mulf %12, %14 : vector<8x32xf32>
    %16 = arith.addf %11, %15 : vector<8x32xf32>
    %17 = vector.extract_strided_slice %1 {offsets = [3, 0], sizes = [8, 32], strides = [1, 1]} : vector<14x32xf32> to vector<8x32xf32>
    %18 = vector.extract_strided_slice %2 {offsets = [3, 0], sizes = [1, 32], strides = [1, 1]} : vector<7x32xf32> to vector<1x32xf32>
    %19 = vector.broadcast %18 : vector<1x32xf32> to vector<8x32xf32>
    %20 = arith.mulf %17, %19 : vector<8x32xf32>
    %21 = arith.addf %16, %20 : vector<8x32xf32>
    %22 = vector.extract_strided_slice %1 {offsets = [4, 0], sizes = [8, 32], strides = [1, 1]} : vector<14x32xf32> to vector<8x32xf32>
    %23 = vector.extract_strided_slice %2 {offsets = [4, 0], sizes = [1, 32], strides = [1, 1]} : vector<7x32xf32> to vector<1x32xf32>
    %24 = vector.broadcast %23 : vector<1x32xf32> to vector<8x32xf32>
    %25 = arith.mulf %22, %24 : vector<8x32xf32>
    %26 = arith.addf %21, %25 : vector<8x32xf32>
    %27 = vector.extract_strided_slice %1 {offsets = [5, 0], sizes = [8, 32], strides = [1, 1]} : vector<14x32xf32> to vector<8x32xf32>
    %28 = vector.extract_strided_slice %2 {offsets = [5, 0], sizes = [1, 32], strides = [1, 1]} : vector<7x32xf32> to vector<1x32xf32>
    %29 = vector.broadcast %28 : vector<1x32xf32> to vector<8x32xf32>
    %30 = arith.mulf %27, %29 : vector<8x32xf32>
    %31 = arith.addf %26, %30 : vector<8x32xf32>
    %32 = vector.extract_strided_slice %1 {offsets = [6, 0], sizes = [8, 32], strides = [1, 1]} : vector<14x32xf32> to vector<8x32xf32>
    %33 = vector.extract_strided_slice %2 {offsets = [6, 0], sizes = [1, 32], strides = [1, 1]} : vector<7x32xf32> to vector<1x32xf32>
    %34 = vector.broadcast %33 : vector<1x32xf32> to vector<8x32xf32>
    %35 = arith.mulf %32, %34 : vector<8x32xf32>
    %36 = arith.addf %31, %35 : vector<8x32xf32>
    %c0_4 = arith.constant 0 : index
    %c0_5 = arith.constant 0 : index
    %37 = vector.load %arg3[%c0_4, %c0_5] : memref<1x32xf32, #tpu.memory_space<vmem>>, vector<1x32xf32>
    %38 = vector.broadcast %37 : vector<1x32xf32> to vector<8x32xf32>
    %39 = arith.addf %36, %38 : vector<8x32xf32>
    %c0_6 = arith.constant 0 : index
    %c0_7 = arith.constant 0 : index
    %40 = vector.load %arg4[%c0_6, %c0_7] : memref<1x32xf32, #tpu.memory_space<vmem>>, vector<1x32xf32>
    %41 = vector.broadcast %40 : vector<1x32xf32> to vector<8x32xf32>
    %42 = arith.mulf %39, %41 : vector<8x32xf32>
    %c0_8 = arith.constant 0 : index
    %c0_9 = arith.constant 0 : index
    %43 = vector.load %arg5[%c0_8, %c0_9] : memref<1x32xf32, #tpu.memory_space<vmem>>, vector<1x32xf32>
    %44 = vector.broadcast %43 : vector<1x32xf32> to vector<8x32xf32>
    %45 = arith.addf %42, %44 : vector<8x32xf32>
    %cst = arith.constant 0.000000e+00 : f32
    %46 = vector.broadcast %cst : f32 to vector<8x32xf32>
    %47 = arith.subf %46, %45 : vector<8x32xf32>
    %48 = math.exp %47 : vector<8x32xf32>
    %cst_10 = arith.constant 1.000000e+00 : f32
    %49 = vector.broadcast %cst_10 : f32 to vector<8x32xf32>
    %50 = arith.addf %49, %48 : vector<8x32xf32>
    %51 = tpu.reciprocal %50 {approx = true} : vector<8x32xf32> -> vector<8x32xf32>
    %52 = arith.mulf %45, %51 : vector<8x32xf32>
    %c0_11 = arith.constant 0 : index
    %c0_12 = arith.constant 0 : index
    %c0_13 = arith.constant 0 : index
    %53 = vector.load %arg6[%c0_11, %c0_12, %c0_13] : memref<1x8x32xf32, #tpu.memory_space<vmem>>, vector<1x8x32xf32>
    %54 = vector.shape_cast %53 : vector<1x8x32xf32> to vector<8x32xf32>
    %55 = vector.shape_cast %52 : vector<8x32xf32> to vector<1x8x32xf32>
    tpu.vector_store %arg6[%c0_11, %c0_12, %c0_13], %55 {strides = array<i32>} : memref<1x8x32xf32, #tpu.memory_space<vmem>>, vector<1x8x32xf32>,
    return
  }
  func.func @transform_0(%arg0: i32) -> (i32, i32, i32) {
    %c0_i32 = arith.constant 0 : i32
    %c0_i32_0 = arith.constant 0 : i32
    %c0_i32_1 = arith.constant 0 : i32
    return %arg0, %c0_i32, %c0_i32_0 : i32, i32, i32
  }
  func.func @transform_1(%arg0: i32) -> (i32, i32) {
    %c0_i32 = arith.constant 0 : i32
    %c0_i32_0 = arith.constant 0 : i32
    %c0_i32_1 = arith.constant 0 : i32
    return %c0_i32, %c0_i32_0 : i32, i32
  }
  func.func @transform_2(%arg0: i32) -> (i32, i32) {
    %c0_i32 = arith.constant 0 : i32
    %c0_i32_0 = arith.constant 0 : i32
    %c0_i32_1 = arith.constant 0 : i32
    return %c0_i32, %c0_i32_0 : i32, i32
  }
  func.func @transform_3(%arg0: i32) -> (i32, i32) {
    %c0_i32 = arith.constant 0 : i32
    %c0_i32_0 = arith.constant 0 : i32
    %c0_i32_1 = arith.constant 0 : i32
    return %c0_i32, %c0_i32_0 : i32, i32
  }
  func.func @transform_4(%arg0: i32) -> (i32, i32) {
    %c0_i32 = arith.constant 0 : i32
    %c0_i32_0 = arith.constant 0 : i32
    %c0_i32_1 = arith.constant 0 : i32
    return %c0_i32, %c0_i32_0 : i32, i32
  }
  func.func @transform_5(%arg0: i32) -> (i32, i32, i32) {
    %c0_i32 = arith.constant 0 : i32
    %c0_i32_0 = arith.constant 0 : i32
    %c0_i32_1 = arith.constant 0 : i32
    return %arg0, %c0_i32, %c0_i32_0 : i32, i32, i32
  }
}

module attributes {stable_mosaic.version = 11 : i64} {
  func.func @_glu_ln_kernel(%arg0: i32, %arg1: memref<16x32xf32, #tpu.memory_space<vmem>>, %arg2: memref<32x64xbf16, #tpu.memory_space<vmem>>, %arg3: memref<1x64xf32, #tpu.memory_space<vmem>>, %arg4: memref<1x32xf32, #tpu.memory_space<vmem>>, %arg5: memref<1x32xf32, #tpu.memory_space<vmem>>, %arg6: memref<16x1xf32, #tpu.memory_space<vmem>>, %arg7: memref<16x32xf32, #tpu.memory_space<vmem>>) attributes {dimension_semantics = [#tpu.dimension_semantics<parallel>], iteration_bounds = array<i64: 1>, scalar_prefetch = 0 : i64, scratch_operands = 0 : i64, tpu.core_type = #tpu.core_type<tc>, window_params = [{transform_indices = @transform_0, window_bounds = array<i64: 16, 32>}, {pipeline_mode = #tpu.pipeline_mode<synchronous>, transform_indices = @transform_1, window_bounds = array<i64: 32, 64>}, {pipeline_mode = #tpu.pipeline_mode<synchronous>, transform_indices = @transform_2, window_bounds = array<i64: 1, 64>}, {pipeline_mode = #tpu.pipeline_mode<synchronous>, transform_indices = @transform_3, window_bounds = array<i64: 1, 32>}, {pipeline_mode = #tpu.pipeline_mode<synchronous>, transform_indices = @transform_4, window_bounds = array<i64: 1, 32>}, {transform_indices = @transform_5, window_bounds = array<i64: 16, 1>}, {transform_indices = @transform_6, window_bounds = array<i64: 16, 32>}]} {
    %c0 = arith.constant 0 : index
    %c0_0 = arith.constant 0 : index
    %0 = vector.load %arg1[%c0, %c0_0] : memref<16x32xf32, #tpu.memory_space<vmem>>, vector<16x32xf32>
    %c0_1 = arith.constant 0 : index
    %c0_2 = arith.constant 0 : index
    %1 = vector.load %arg4[%c0_1, %c0_2] : memref<1x32xf32, #tpu.memory_space<vmem>>, vector<1x32xf32>
    %c0_3 = arith.constant 0 : index
    %c0_4 = arith.constant 0 : index
    %2 = vector.load %arg5[%c0_3, %c0_4] : memref<1x32xf32, #tpu.memory_space<vmem>>, vector<1x32xf32>
    %cst = arith.constant dense<0.000000e+00> : vector<16xf32>
    %3 = vector.multi_reduction <add>, %0, %cst [1] : vector<16x32xf32> to vector<16xf32>
    %4 = vector.shape_cast %3 : vector<16xf32> to vector<16x1xf32>
    %cst_5 = arith.constant 3.200000e+01 : f32
    %5 = vector.broadcast %cst_5 : f32 to vector<16x1xf32>
    %6 = arith.divf %4, %5 : vector<16x1xf32>
    %7 = vector.broadcast %6 : vector<16x1xf32> to vector<16x32xf32>
    %8 = arith.subf %0, %7 : vector<16x32xf32>
    %9 = arith.mulf %8, %8 : vector<16x32xf32>
    %cst_6 = arith.constant dense<0.000000e+00> : vector<16xf32>
    %10 = vector.multi_reduction <add>, %9, %cst_6 [1] : vector<16x32xf32> to vector<16xf32>
    %11 = vector.shape_cast %10 : vector<16xf32> to vector<16x1xf32>
    %cst_7 = arith.constant 3.200000e+01 : f32
    %12 = vector.broadcast %cst_7 : f32 to vector<16x1xf32>
    %13 = arith.divf %11, %12 : vector<16x1xf32>
    %14 = vector.broadcast %6 : vector<16x1xf32> to vector<16x32xf32>
    %15 = arith.subf %0, %14 : vector<16x32xf32>
    %cst_8 = arith.constant 9.99999974E-6 : f32
    %16 = vector.broadcast %cst_8 : f32 to vector<16x1xf32>
    %17 = arith.addf %13, %16 : vector<16x1xf32>
    %18 = math.rsqrt %17 : vector<16x1xf32>
    %19 = vector.broadcast %18 : vector<16x1xf32> to vector<16x32xf32>
    %20 = arith.mulf %15, %19 : vector<16x32xf32>
    %21 = vector.broadcast %1 : vector<1x32xf32> to vector<16x32xf32>
    %22 = arith.mulf %20, %21 : vector<16x32xf32>
    %23 = vector.broadcast %2 : vector<1x32xf32> to vector<16x32xf32>
    %24 = arith.addf %22, %23 : vector<16x32xf32>
    %25 = arith.truncf %24 : vector<16x32xf32> to vector<16x32xbf16>
    %c0_9 = arith.constant 0 : index
    %c0_10 = arith.constant 0 : index
    %26 = vector.load %arg2[%c0_9, %c0_10] : memref<32x64xbf16, #tpu.memory_space<vmem>>, vector<32x64xbf16>
    %cst_11 = arith.constant dense<0.000000e+00> : vector<16x64xf32>
    %27 = tpu.matmul %25, %26, %cst_11 {dimension_numbers = #tpu.dot_dimension_numbers<[1], [0], [0], [1], [0, 0, 1, 1], [], []>} : vector<16x32xbf16>, vector<32x64xbf16>, vector<16x64xf32> -> vector<16x64xf32>
    %c0_12 = arith.constant 0 : index
    %c0_13 = arith.constant 0 : index
    %28 = vector.load %arg3[%c0_12, %c0_13] : memref<1x64xf32, #tpu.memory_space<vmem>>, vector<1x64xf32>
    %29 = vector.broadcast %28 : vector<1x64xf32> to vector<16x64xf32>
    %30 = arith.addf %27, %29 : vector<16x64xf32>
    %31 = vector.extract_strided_slice %30 {offsets = [0, 0], sizes = [16, 32], strides = [1, 1]} : vector<16x64xf32> to vector<16x32xf32>
    %32 = vector.extract_strided_slice %30 {offsets = [0, 32], sizes = [16, 32], strides = [1, 1]} : vector<16x64xf32> to vector<16x32xf32>
    %cst_14 = arith.constant 0.000000e+00 : f32
    %33 = vector.broadcast %cst_14 : f32 to vector<16x32xf32>
    %34 = arith.subf %33, %32 : vector<16x32xf32>
    %35 = math.exp %34 : vector<16x32xf32>
    %cst_15 = arith.constant 1.000000e+00 : f32
    %36 = vector.broadcast %cst_15 : f32 to vector<16x32xf32>
    %37 = arith.addf %36, %35 : vector<16x32xf32>
    %38 = tpu.reciprocal %37 {approx = true} : vector<16x32xf32> -> vector<16x32xf32>
    %39 = arith.mulf %31, %38 : vector<16x32xf32>
    %c0_16 = arith.constant 0 : index
    %c0_17 = arith.constant 0 : index
    %40 = vector.load %arg6[%c0_16, %c0_17] : memref<16x1xf32, #tpu.memory_space<vmem>>, vector<16x1xf32>
    %41 = vector.broadcast %40 : vector<16x1xf32> to vector<16x32xf32>
    %42 = arith.mulf %39, %41 : vector<16x32xf32>
    %c0_18 = arith.constant 0 : index
    %c0_19 = arith.constant 0 : index
    %43 = vector.load %arg7[%c0_18, %c0_19] : memref<16x32xf32, #tpu.memory_space<vmem>>, vector<16x32xf32>
    tpu.vector_store %arg7[%c0_18, %c0_19], %42 {strides = array<i32>} : memref<16x32xf32, #tpu.memory_space<vmem>>, vector<16x32xf32>,
    return
  }
  func.func @transform_0(%arg0: i32) -> (i32, i32) {
    %c0_i32 = arith.constant 0 : i32
    %c0_i32_0 = arith.constant 0 : i32
    return %arg0, %c0_i32 : i32, i32
  }
  func.func @transform_1(%arg0: i32) -> (i32, i32) {
    %c0_i32 = arith.constant 0 : i32
    %c0_i32_0 = arith.constant 0 : i32
    %c0_i32_1 = arith.constant 0 : i32
    return %c0_i32, %c0_i32_0 : i32, i32
  }
  func.func @transform_2(%arg0: i32) -> (i32, i32) {
    %c0_i32 = arith.constant 0 : i32
    %c0_i32_0 = arith.constant 0 : i32
    %c0_i32_1 = arith.constant 0 : i32
    return %c0_i32, %c0_i32_0 : i32, i32
  }
  func.func @transform_3(%arg0: i32) -> (i32, i32) {
    %c0_i32 = arith.constant 0 : i32
    %c0_i32_0 = arith.constant 0 : i32
    %c0_i32_1 = arith.constant 0 : i32
    return %c0_i32, %c0_i32_0 : i32, i32
  }
  func.func @transform_4(%arg0: i32) -> (i32, i32) {
    %c0_i32 = arith.constant 0 : i32
    %c0_i32_0 = arith.constant 0 : i32
    %c0_i32_1 = arith.constant 0 : i32
    return %c0_i32, %c0_i32_0 : i32, i32
  }
  func.func @transform_5(%arg0: i32) -> (i32, i32) {
    %c0_i32 = arith.constant 0 : i32
    %c0_i32_0 = arith.constant 0 : i32
    return %arg0, %c0_i32 : i32, i32
  }
  func.func @transform_6(%arg0: i32) -> (i32, i32) {
    %c0_i32 = arith.constant 0 : i32
    %c0_i32_0 = arith.constant 0 : i32
    return %arg0, %c0_i32 : i32, i32
  }
}

module attributes {stable_mosaic.version = 11 : i64} {
  func.func @_linear_kernel(%arg0: i32, %arg1: i32, %arg2: i32, %arg3: memref<16x32xf32, #tpu.memory_space<vmem>>, %arg4: memref<32x32xbf16, #tpu.memory_space<vmem>>, %arg5: memref<1x32xf32, #tpu.memory_space<vmem>>, %arg6: memref<16x32xf32, #tpu.memory_space<vmem>>, %arg7: memref<16x32xf32, #tpu.memory_space<vmem>>) attributes {dimension_semantics = [#tpu.dimension_semantics<parallel>, #tpu.dimension_semantics<parallel>, #tpu.dimension_semantics<arbitrary>], iteration_bounds = array<i64: 1, 1, 1>, scalar_prefetch = 0 : i64, scratch_operands = 0 : i64, tpu.core_type = #tpu.core_type<tc>, window_params = [{transform_indices = @transform_0, window_bounds = array<i64: 16, 32>}, {transform_indices = @transform_1, window_bounds = array<i64: 32, 32>}, {transform_indices = @transform_2, window_bounds = array<i64: 1, 32>}, {transform_indices = @transform_3, window_bounds = array<i64: 16, 32>}, {transform_indices = @transform_4, window_bounds = array<i64: 16, 32>}]} {
    %c0 = arith.constant 0 : index
    %c0_0 = arith.constant 0 : index
    %0 = vector.load %arg3[%c0, %c0_0] : memref<16x32xf32, #tpu.memory_space<vmem>>, vector<16x32xf32>
    %1 = arith.truncf %0 : vector<16x32xf32> to vector<16x32xbf16>
    %c0_1 = arith.constant 0 : index
    %c0_2 = arith.constant 0 : index
    %2 = vector.load %arg4[%c0_1, %c0_2] : memref<32x32xbf16, #tpu.memory_space<vmem>>, vector<32x32xbf16>
    %cst = arith.constant dense<0.000000e+00> : vector<16x32xf32>
    %3 = tpu.matmul %1, %2, %cst {dimension_numbers = #tpu.dot_dimension_numbers<[1], [0], [0], [1], [0, 0, 1, 1], [], []>} : vector<16x32xbf16>, vector<32x32xbf16>, vector<16x32xf32> -> vector<16x32xf32>
    %c0_3 = arith.constant 0 : index
    %c0_4 = arith.constant 0 : index
    %4 = vector.load %arg5[%c0_3, %c0_4] : memref<1x32xf32, #tpu.memory_space<vmem>>, vector<1x32xf32>
    %5 = vector.broadcast %4 : vector<1x32xf32> to vector<16x32xf32>
    %6 = arith.addf %3, %5 : vector<16x32xf32>
    %c0_5 = arith.constant 0 : index
    %c0_6 = arith.constant 0 : index
    %7 = vector.load %arg6[%c0_5, %c0_6] : memref<16x32xf32, #tpu.memory_space<vmem>>, vector<16x32xf32>
    %cst_7 = arith.constant 1.000000e+00 : f32
    %8 = vector.broadcast %cst_7 : f32 to vector<16x32xf32>
    %9 = arith.mulf %8, %6 : vector<16x32xf32>
    %10 = arith.addf %7, %9 : vector<16x32xf32>
    %c0_8 = arith.constant 0 : index
    %c0_9 = arith.constant 0 : index
    %11 = vector.load %arg7[%c0_8, %c0_9] : memref<16x32xf32, #tpu.memory_space<vmem>>, vector<16x32xf32>
    tpu.vector_store %arg7[%c0_8, %c0_9], %10 {strides = array<i32>} : memref<16x32xf32, #tpu.memory_space<vmem>>, vector<16x32xf32>,
    return
  }
  func.func @transform_0(%arg0: i32, %arg1: i32, %arg2: i32) -> (i32, i32) {
    %c0_i32 = arith.constant 0 : i32
    return %arg0, %arg2 : i32, i32
  }
  func.func @transform_1(%arg0: i32, %arg1: i32, %arg2: i32) -> (i32, i32) {
    %c0_i32 = arith.constant 0 : i32
    return %arg2, %arg1 : i32, i32
  }
  func.func @transform_2(%arg0: i32, %arg1: i32, %arg2: i32) -> (i32, i32) {
    %c0_i32 = arith.constant 0 : i32
    %c0_i32_0 = arith.constant 0 : i32
    return %c0_i32, %arg1 : i32, i32
  }
  func.func @transform_3(%arg0: i32, %arg1: i32, %arg2: i32) -> (i32, i32) {
    %c0_i32 = arith.constant 0 : i32
    return %arg0, %arg1 : i32, i32
  }
  func.func @transform_4(%arg0: i32, %arg1: i32, %arg2: i32) -> (i32, i32) {
    %c0_i32 = arith.constant 0 : i32
    return %arg0, %arg1 : i32, i32
  }
}

module attributes {stable_mosaic.version = 11 : i64} {
  func.func @_linear_kernel(%arg0: i32, %arg1: i32, %arg2: i32, %arg3: memref<16x32xf32, #tpu.memory_space<vmem>>, %arg4: memref<32x96xbf16, #tpu.memory_space<vmem>>, %arg5: memref<1x96xf32, #tpu.memory_space<vmem>>, %arg6: memref<1x32xf32, #tpu.memory_space<vmem>>, %arg7: memref<1x32xf32, #tpu.memory_space<vmem>>, %arg8: memref<16x96xf32, #tpu.memory_space<vmem>>) attributes {dimension_semantics = [#tpu.dimension_semantics<parallel>, #tpu.dimension_semantics<parallel>, #tpu.dimension_semantics<arbitrary>], iteration_bounds = array<i64: 1, 1, 1>, scalar_prefetch = 0 : i64, scratch_operands = 0 : i64, tpu.core_type = #tpu.core_type<tc>, window_params = [{transform_indices = @transform_0, window_bounds = array<i64: 16, 32>}, {transform_indices = @transform_1, window_bounds = array<i64: 32, 96>}, {transform_indices = @transform_2, window_bounds = array<i64: 1, 96>}, {transform_indices = @transform_3, window_bounds = array<i64: 1, 32>}, {transform_indices = @transform_4, window_bounds = array<i64: 1, 32>}, {transform_indices = @transform_5, window_bounds = array<i64: 16, 96>}]} {
    %c0 = arith.constant 0 : index
    %c0_0 = arith.constant 0 : index
    %0 = vector.load %arg3[%c0, %c0_0] : memref<16x32xf32, #tpu.memory_space<vmem>>, vector<16x32xf32>
    %c0_1 = arith.constant 0 : index
    %c0_2 = arith.constant 0 : index
    %1 = vector.load %arg6[%c0_1, %c0_2] : memref<1x32xf32, #tpu.memory_space<vmem>>, vector<1x32xf32>
    %c0_3 = arith.constant 0 : index
    %c0_4 = arith.constant 0 : index
    %2 = vector.load %arg7[%c0_3, %c0_4] : memref<1x32xf32, #tpu.memory_space<vmem>>, vector<1x32xf32>
    %cst = arith.constant dense<0.000000e+00> : vector<16xf32>
    %3 = vector.multi_reduction <add>, %0, %cst [1] : vector<16x32xf32> to vector<16xf32>
    %4 = vector.shape_cast %3 : vector<16xf32> to vector<16x1xf32>
    %cst_5 = arith.constant 3.200000e+01 : f32
    %5 = vector.broadcast %cst_5 : f32 to vector<16x1xf32>
    %6 = arith.divf %4, %5 : vector<16x1xf32>
    %7 = vector.broadcast %6 : vector<16x1xf32> to vector<16x32xf32>
    %8 = arith.subf %0, %7 : vector<16x32xf32>
    %9 = arith.mulf %8, %8 : vector<16x32xf32>
    %cst_6 = arith.constant dense<0.000000e+00> : vector<16xf32>
    %10 = vector.multi_reduction <add>, %9, %cst_6 [1] : vector<16x32xf32> to vector<16xf32>
    %11 = vector.shape_cast %10 : vector<16xf32> to vector<16x1xf32>
    %cst_7 = arith.constant 3.200000e+01 : f32
    %12 = vector.broadcast %cst_7 : f32 to vector<16x1xf32>
    %13 = arith.divf %11, %12 : vector<16x1xf32>
    %14 = vector.broadcast %6 : vector<16x1xf32> to vector<16x32xf32>
    %15 = arith.subf %0, %14 : vector<16x32xf32>
    %cst_8 = arith.constant 9.99999974E-6 : f32
    %16 = vector.broadcast %cst_8 : f32 to vector<16x1xf32>
    %17 = arith.addf %13, %16 : vector<16x1xf32>
    %18 = math.rsqrt %17 : vector<16x1xf32>
    %19 = vector.broadcast %18 : vector<16x1xf32> to vector<16x32xf32>
    %20 = arith.mulf %15, %19 : vector<16x32xf32>
    %21 = vector.broadcast %1 : vector<1x32xf32> to vector<16x32xf32>
    %22 = arith.mulf %20, %21 : vector<16x32xf32>
    %23 = vector.broadcast %2 : vector<1x32xf32> to vector<16x32xf32>
    %24 = arith.addf %22, %23 : vector<16x32xf32>
    %25 = arith.truncf %24 : vector<16x32xf32> to vector<16x32xbf16>
    %c0_9 = arith.constant 0 : index
    %c0_10 = arith.constant 0 : index
    %26 = vector.load %arg4[%c0_9, %c0_10] : memref<32x96xbf16, #tpu.memory_space<vmem>>, vector<32x96xbf16>
    %cst_11 = arith.constant dense<0.000000e+00> : vector<16x96xf32>
    %27 = tpu.matmul %25, %26, %cst_11 {dimension_numbers = #tpu.dot_dimension_numbers<[1], [0], [0], [1], [0, 0, 1, 1], [], []>} : vector<16x32xbf16>, vector<32x96xbf16>, vector<16x96xf32> -> vector<16x96xf32>
    %c0_12 = arith.constant 0 : index
    %c0_13 = arith.constant 0 : index
    %28 = vector.load %arg5[%c0_12, %c0_13] : memref<1x96xf32, #tpu.memory_space<vmem>>, vector<1x96xf32>
    %29 = vector.broadcast %28 : vector<1x96xf32> to vector<16x96xf32>
    %30 = arith.addf %27, %29 : vector<16x96xf32>
    %c0_14 = arith.constant 0 : index
    %c0_15 = arith.constant 0 : index
    %31 = vector.load %arg8[%c0_14, %c0_15] : memref<16x96xf32, #tpu.memory_space<vmem>>, vector<16x96xf32>
    tpu.vector_store %arg8[%c0_14, %c0_15], %30 {strides = array<i32>} : memref<16x96xf32, #tpu.memory_space<vmem>>, vector<16x96xf32>,
    return
  }
  func.func @transform_0(%arg0: i32, %arg1: i32, %arg2: i32) -> (i32, i32) {
    %c0_i32 = arith.constant 0 : i32
    return %arg0, %arg2 : i32, i32
  }
  func.func @transform_1(%arg0: i32, %arg1: i32, %arg2: i32) -> (i32, i32) {
    %c0_i32 = arith.constant 0 : i32
    return %arg2, %arg1 : i32, i32
  }
  func.func @transform_2(%arg0: i32, %arg1: i32, %arg2: i32) -> (i32, i32) {
    %c0_i32 = arith.constant 0 : i32
    %c0_i32_0 = arith.constant 0 : i32
    return %c0_i32, %arg1 : i32, i32
  }
  func.func @transform_3(%arg0: i32, %arg1: i32, %arg2: i32) -> (i32, i32) {
    %c0_i32 = arith.constant 0 : i32
    %c0_i32_0 = arith.constant 0 : i32
    return %c0_i32, %arg2 : i32, i32
  }
  func.func @transform_4(%arg0: i32, %arg1: i32, %arg2: i32) -> (i32, i32) {
    %c0_i32 = arith.constant 0 : i32
    %c0_i32_0 = arith.constant 0 : i32
    return %c0_i32, %arg2 : i32, i32
  }
  func.func @transform_5(%arg0: i32, %arg1: i32, %arg2: i32) -> (i32, i32) {
    %c0_i32 = arith.constant 0 : i32
    return %arg0, %arg1 : i32, i32
  }
}

module attributes {stable_mosaic.version = 11 : i64} {
  func.func @_attn_kernel(%arg0: i32, %arg1: memref<1x8x96xf32, #tpu.memory_space<vmem>>, %arg2: memref<1x1x8xf32, #tpu.memory_space<vmem>>, %arg3: memref<32x32xbf16, #tpu.memory_space<vmem>>, %arg4: memref<1x32xf32, #tpu.memory_space<vmem>>, %arg5: memref<1x8x32xf32, #tpu.memory_space<vmem>>, %arg6: memref<1x8x32xf32, #tpu.memory_space<vmem>>) attributes {dimension_semantics = [#tpu.dimension_semantics<parallel>], iteration_bounds = array<i64: 2>, scalar_prefetch = 0 : i64, scratch_operands = 0 : i64, tpu.core_type = #tpu.core_type<tc>, window_params = [{transform_indices = @transform_0, window_bounds = array<i64: 1, 8, 96>}, {transform_indices = @transform_1, window_bounds = array<i64: 1, 1, 8>}, {pipeline_mode = #tpu.pipeline_mode<synchronous>, transform_indices = @transform_2, window_bounds = array<i64: 32, 32>}, {pipeline_mode = #tpu.pipeline_mode<synchronous>, transform_indices = @transform_3, window_bounds = array<i64: 1, 32>}, {transform_indices = @transform_4, window_bounds = array<i64: 1, 8, 32>}, {transform_indices = @transform_5, window_bounds = array<i64: 1, 8, 32>}]} {
    %c0 = arith.constant 0 : index
    %c0_0 = arith.constant 0 : index
    %c0_1 = arith.constant 0 : index
    %0 = vector.load %arg2[%c0, %c0_0, %c0_1] : memref<1x1x8xf32, #tpu.memory_space<vmem>>, vector<1x1x8xf32>
    %1 = vector.shape_cast %0 : vector<1x1x8xf32> to vector<1x8xf32>
    %cst = arith.constant -1.000000e+09 : f32
    %2 = vector.broadcast %cst : f32 to vector<1x8xf32>
    %3 = arith.mulf %1, %2 : vector<1x8xf32>
    %c0_2 = arith.constant 0 : index
    %c0_3 = arith.constant 0 : index
    %c0_4 = arith.constant 0 : index
    %4 = vector.load %arg5[%c0_2, %c0_3, %c0_4] : memref<1x8x32xf32, #tpu.memory_space<vmem>>, vector<1x8x32xf32>
    %5 = vector.shape_cast %4 : vector<1x8x32xf32> to vector<8x32xf32>
    %c0_5 = arith.constant 0 : index
    %c0_6 = arith.constant 0 : index
    %6 = vector.load %arg4[%c0_5, %c0_6] : memref<1x32xf32, #tpu.memory_space<vmem>>, vector<1x32xf32>
    %7 = vector.broadcast %6 : vector<1x32xf32> to vector<8x32xf32>
    %8 = arith.addf %5, %7 : vector<8x32xf32>
    %c0_7 = arith.constant 0 : index
    %c0_8 = arith.constant 0 : index
    %c0_9 = arith.constant 0 : index
    %9 = vector.load %arg1[%c0_7, %c0_8, %c0_9] : memref<1x8x96xf32, #tpu.memory_space<vmem>>, vector<1x8x8xf32>
    %10 = vector.shape_cast %9 : vector<1x8x8xf32> to vector<8x8xf32>
    %cst_10 = arith.constant 0.353553385 : f32
    %11 = vector.broadcast %cst_10 : f32 to vector<8x8xf32>
    %12 = arith.mulf %10, %11 : vector<8x8xf32>
    %13 = arith.truncf %12 : vector<8x8xf32> to vector<8x8xbf16>
    %c0_11 = arith.constant 0 : index
    %c0_12 = arith.constant 0 : index
    %c32 = arith.constant 32 : index
    %14 = vector.load %arg1[%c0_11, %c0_12, %c32] : memref<1x8x96xf32, #tpu.memory_space<vmem>>, vector<1x8x8xf32>
    %15 = vector.shape_cast %14 : vector<1x8x8xf32> to vector<8x8xf32>
    %16 = arith.truncf %15 : vector<8x8xf32> to vector<8x8xbf16>
    %c0_13 = arith.constant 0 : index
    %c0_14 = arith.constant 0 : index
    %c64 = arith.constant 64 : index
    %17 = vector.load %arg1[%c0_13, %c0_14, %c64] : memref<1x8x96xf32, #tpu.memory_space<vmem>>, vector<1x8x8xf32>
    %18 = vector.shape_cast %17 : vector<1x8x8xf32> to vector<8x8xf32>
    %19 = arith.truncf %18 : vector<8x8xf32> to vector<8x8xbf16>
    %cst_15 = arith.constant dense<0.000000e+00> : vector<8x8xf32>
    %20 = tpu.matmul %13, %16, %cst_15 {dimension_numbers = #tpu.dot_dimension_numbers<[1], [1], [0], [0], [0, 0, 1, 0], [], []>} : vector<8x8xbf16>, vector<8x8xbf16>, vector<8x8xf32> -> vector<8x8xf32>
    %21 = vector.broadcast %3 : vector<1x8xf32> to vector<8x8xf32>
    %22 = arith.addf %20, %21 : vector<8x8xf32>
    %cst_16 = arith.constant dense<0xFF800000> : vector<8xf32>
    %23 = vector.multi_reduction <maximumf>, %22, %cst_16 [1] : vector<8x8xf32> to vector<8xf32>
    %24 = vector.shape_cast %23 : vector<8xf32> to vector<8x1xf32>
    %25 = vector.broadcast %24 : vector<8x1xf32> to vector<8x8xf32>
    %26 = arith.subf %22, %25 : vector<8x8xf32>
    %27 = math.exp %26 : vector<8x8xf32>
    %cst_17 = arith.constant dense<0.000000e+00> : vector<8xf32>
    %28 = vector.multi_reduction <add>, %27, %cst_17 [1] : vector<8x8xf32> to vector<8xf32>
    %29 = vector.shape_cast %28 : vector<8xf32> to vector<8x1xf32>
    %30 = tpu.reciprocal %29 {approx = true} : vector<8x1xf32> -> vector<8x1xf32>
    %31 = vector.broadcast %30 : vector<8x1xf32> to vector<8x8xf32>
    %32 = arith.mulf %27, %31 : vector<8x8xf32>
    %33 = arith.truncf %32 : vector<8x8xf32> to vector<8x8xbf16>
    %cst_18 = arith.constant dense<0.000000e+00> : vector<8x8xf32>
    %34 = tpu.matmul %33, %19, %cst_18 {dimension_numbers = #tpu.dot_dimension_numbers<[1], [0], [0], [1], [0, 0, 1, 1], [], []>} : vector<8x8xbf16>, vector<8x8xbf16>, vector<8x8xf32> -> vector<8x8xf32>
    %35 = arith.truncf %34 : vector<8x8xf32> to vector<8x8xbf16>
    %c0_19 = arith.constant 0 : index
    %c0_20 = arith.constant 0 : index
    %36 = vector.load %arg3[%c0_19, %c0_20] : memref<32x32xbf16, #tpu.memory_space<vmem>>, vector<8x32xbf16>
    %cst_21 = arith.constant dense<0.000000e+00> : vector<8x32xf32>
    %37 = tpu.matmul %35, %36, %cst_21 {dimension_numbers = #tpu.dot_dimension_numbers<[1], [0], [0], [1], [0, 0, 1, 1], [], []>} : vector<8x8xbf16>, vector<8x32xbf16>, vector<8x32xf32> -> vector<8x32xf32>
    %38 = arith.addf %8, %37 : vector<8x32xf32>
    %c0_22 = arith.constant 0 : index
    %c0_23 = arith.constant 0 : index
    %c8 = arith.constant 8 : index
    %39 = vector.load %arg1[%c0_22, %c0_23, %c8] : memref<1x8x96xf32, #tpu.memory_space<vmem>>, vector<1x8x8xf32>
    %40 = vector.shape_cast %39 : vector<1x8x8xf32> to vector<8x8xf32>
    %cst_24 = arith.constant 0.353553385 : f32
    %41 = vector.broadcast %cst_24 : f32 to vector<8x8xf32>
    %42 = arith.mulf %40, %41 : vector<8x8xf32>
    %43 = arith.truncf %42 : vector<8x8xf32> to vector<8x8xbf16>
    %c0_25 = arith.constant 0 : index
    %c0_26 = arith.constant 0 : index
    %c40 = arith.constant 40 : index
    %44 = vector.load %arg1[%c0_25, %c0_26, %c40] : memref<1x8x96xf32, #tpu.memory_space<vmem>>, vector<1x8x8xf32>
    %45 = vector.shape_cast %44 : vector<1x8x8xf32> to vector<8x8xf32>
    %46 = arith.truncf %45 : vector<8x8xf32> to vector<8x8xbf16>
    %c0_27 = arith.constant 0 : index
    %c0_28 = arith.constant 0 : index
    %c72 = arith.constant 72 : index
    %47 = vector.load %arg1[%c0_27, %c0_28, %c72] : memref<1x8x96xf32, #tpu.memory_space<vmem>>, vector<1x8x8xf32>
    %48 = vector.shape_cast %47 : vector<1x8x8xf32> to vector<8x8xf32>
    %49 = arith.truncf %48 : vector<8x8xf32> to vector<8x8xbf16>
    %cst_29 = arith.constant dense<0.000000e+00> : vector<8x8xf32>
    %50 = tpu.matmul %43, %46, %cst_29 {dimension_numbers = #tpu.dot_dimension_numbers<[1], [1], [0], [0], [0, 0, 1, 0], [], []>} : vector<8x8xbf16>, vector<8x8xbf16>, vector<8x8xf32> -> vector<8x8xf32>
    %51 = vector.broadcast %3 : vector<1x8xf32> to vector<8x8xf32>
    %52 = arith.addf %50, %51 : vector<8x8xf32>
    %cst_30 = arith.constant dense<0xFF800000> : vector<8xf32>
    %53 = vector.multi_reduction <maximumf>, %52, %cst_30 [1] : vector<8x8xf32> to vector<8xf32>
    %54 = vector.shape_cast %53 : vector<8xf32> to vector<8x1xf32>
    %55 = vector.broadcast %54 : vector<8x1xf32> to vector<8x8xf32>
    %56 = arith.subf %52, %55 : vector<8x8xf32>
    %57 = math.exp %56 : vector<8x8xf32>
    %cst_31 = arith.constant dense<0.000000e+00> : vector<8xf32>
    %58 = vector.multi_reduction <add>, %57, %cst_31 [1] : vector<8x8xf32> to vector<8xf32>
    %59 = vector.shape_cast %58 : vector<8xf32> to vector<8x1xf32>
    %60 = tpu.reciprocal %59 {approx = true} : vector<8x1xf32> -> vector<8x1xf32>
    %61 = vector.broadcast %60 : vector<8x1xf32> to vector<8x8xf32>
    %62 = arith.mulf %57, %61 : vector<8x8xf32>
    %63 = arith.truncf %62 : vector<8x8xf32> to vector<8x8xbf16>
    %cst_32 = arith.constant dense<0.000000e+00> : vector<8x8xf32>
    %64 = tpu.matmul %63, %49, %cst_32 {dimension_numbers = #tpu.dot_dimension_numbers<[1], [0], [0], [1], [0, 0, 1, 1], [], []>} : vector<8x8xbf16>, vector<8x8xbf16>, vector<8x8xf32> -> vector<8x8xf32>
    %65 = arith.truncf %64 : vector<8x8xf32> to vector<8x8xbf16>
    %c8_33 = arith.constant 8 : index
    %c0_34 = arith.constant 0 : index
    %66 = vector.load %arg3[%c8_33, %c0_34] : memref<32x32xbf16, #tpu.memory_space<vmem>>, vector<8x32xbf16>
    %cst_35 = arith.constant dense<0.000000e+00> : vector<8x32xf32>
    %67 = tpu.matmul %65, %66, %cst_35 {dimension_numbers = #tpu.dot_dimension_numbers<[1], [0], [0], [1], [0, 0, 1, 1], [], []>} : vector<8x8xbf16>, vector<8x32xbf16>, vector<8x32xf32> -> vector<8x32xf32>
    %68 = arith.addf %38, %67 : vector<8x32xf32>
    %c0_36 = arith.constant 0 : index
    %c0_37 = arith.constant 0 : index
    %c16 = arith.constant 16 : index
    %69 = vector.load %arg1[%c0_36, %c0_37, %c16] : memref<1x8x96xf32, #tpu.memory_space<vmem>>, vector<1x8x8xf32>
    %70 = vector.shape_cast %69 : vector<1x8x8xf32> to vector<8x8xf32>
    %cst_38 = arith.constant 0.353553385 : f32
    %71 = vector.broadcast %cst_38 : f32 to vector<8x8xf32>
    %72 = arith.mulf %70, %71 : vector<8x8xf32>
    %73 = arith.truncf %72 : vector<8x8xf32> to vector<8x8xbf16>
    %c0_39 = arith.constant 0 : index
    %c0_40 = arith.constant 0 : index
    %c48 = arith.constant 48 : index
    %74 = vector.load %arg1[%c0_39, %c0_40, %c48] : memref<1x8x96xf32, #tpu.memory_space<vmem>>, vector<1x8x8xf32>
    %75 = vector.shape_cast %74 : vector<1x8x8xf32> to vector<8x8xf32>
    %76 = arith.truncf %75 : vector<8x8xf32> to vector<8x8xbf16>
    %c0_41 = arith.constant 0 : index
    %c0_42 = arith.constant 0 : index
    %c80 = arith.constant 80 : index
    %77 = vector.load %arg1[%c0_41, %c0_42, %c80] : memref<1x8x96xf32, #tpu.memory_space<vmem>>, vector<1x8x8xf32>
    %78 = vector.shape_cast %77 : vector<1x8x8xf32> to vector<8x8xf32>
    %79 = arith.truncf %78 : vector<8x8xf32> to vector<8x8xbf16>
    %cst_43 = arith.constant dense<0.000000e+00> : vector<8x8xf32>
    %80 = tpu.matmul %73, %76, %cst_43 {dimension_numbers = #tpu.dot_dimension_numbers<[1], [1], [0], [0], [0, 0, 1, 0], [], []>} : vector<8x8xbf16>, vector<8x8xbf16>, vector<8x8xf32> -> vector<8x8xf32>
    %81 = vector.broadcast %3 : vector<1x8xf32> to vector<8x8xf32>
    %82 = arith.addf %80, %81 : vector<8x8xf32>
    %cst_44 = arith.constant dense<0xFF800000> : vector<8xf32>
    %83 = vector.multi_reduction <maximumf>, %82, %cst_44 [1] : vector<8x8xf32> to vector<8xf32>
    %84 = vector.shape_cast %83 : vector<8xf32> to vector<8x1xf32>
    %85 = vector.broadcast %84 : vector<8x1xf32> to vector<8x8xf32>
    %86 = arith.subf %82, %85 : vector<8x8xf32>
    %87 = math.exp %86 : vector<8x8xf32>
    %cst_45 = arith.constant dense<0.000000e+00> : vector<8xf32>
    %88 = vector.multi_reduction <add>, %87, %cst_45 [1] : vector<8x8xf32> to vector<8xf32>
    %89 = vector.shape_cast %88 : vector<8xf32> to vector<8x1xf32>
    %90 = tpu.reciprocal %89 {approx = true} : vector<8x1xf32> -> vector<8x1xf32>
    %91 = vector.broadcast %90 : vector<8x1xf32> to vector<8x8xf32>
    %92 = arith.mulf %87, %91 : vector<8x8xf32>
    %93 = arith.truncf %92 : vector<8x8xf32> to vector<8x8xbf16>
    %cst_46 = arith.constant dense<0.000000e+00> : vector<8x8xf32>
    %94 = tpu.matmul %93, %79, %cst_46 {dimension_numbers = #tpu.dot_dimension_numbers<[1], [0], [0], [1], [0, 0, 1, 1], [], []>} : vector<8x8xbf16>, vector<8x8xbf16>, vector<8x8xf32> -> vector<8x8xf32>
    %95 = arith.truncf %94 : vector<8x8xf32> to vector<8x8xbf16>
    %c16_47 = arith.constant 16 : index
    %c0_48 = arith.constant 0 : index
    %96 = vector.load %arg3[%c16_47, %c0_48] : memref<32x32xbf16, #tpu.memory_space<vmem>>, vector<8x32xbf16>
    %cst_49 = arith.constant dense<0.000000e+00> : vector<8x32xf32>
    %97 = tpu.matmul %95, %96, %cst_49 {dimension_numbers = #tpu.dot_dimension_numbers<[1], [0], [0], [1], [0, 0, 1, 1], [], []>} : vector<8x8xbf16>, vector<8x32xbf16>, vector<8x32xf32> -> vector<8x32xf32>
    %98 = arith.addf %68, %97 : vector<8x32xf32>
    %c0_50 = arith.constant 0 : index
    %c0_51 = arith.constant 0 : index
    %c24 = arith.constant 24 : index
    %99 = vector.load %arg1[%c0_50, %c0_51, %c24] : memref<1x8x96xf32, #tpu.memory_space<vmem>>, vector<1x8x8xf32>
    %100 = vector.shape_cast %99 : vector<1x8x8xf32> to vector<8x8xf32>
    %cst_52 = arith.constant 0.353553385 : f32
    %101 = vector.broadcast %cst_52 : f32 to vector<8x8xf32>
    %102 = arith.mulf %100, %101 : vector<8x8xf32>
    %103 = arith.truncf %102 : vector<8x8xf32> to vector<8x8xbf16>
    %c0_53 = arith.constant 0 : index
    %c0_54 = arith.constant 0 : index
    %c56 = arith.constant 56 : index
    %104 = vector.load %arg1[%c0_53, %c0_54, %c56] : memref<1x8x96xf32, #tpu.memory_space<vmem>>, vector<1x8x8xf32>
    %105 = vector.shape_cast %104 : vector<1x8x8xf32> to vector<8x8xf32>
    %106 = arith.truncf %105 : vector<8x8xf32> to vector<8x8xbf16>
    %c0_55 = arith.constant 0 : index
    %c0_56 = arith.constant 0 : index
    %c88 = arith.constant 88 : index
    %107 = vector.load %arg1[%c0_55, %c0_56, %c88] : memref<1x8x96xf32, #tpu.memory_space<vmem>>, vector<1x8x8xf32>
    %108 = vector.shape_cast %107 : vector<1x8x8xf32> to vector<8x8xf32>
    %109 = arith.truncf %108 : vector<8x8xf32> to vector<8x8xbf16>
    %cst_57 = arith.constant dense<0.000000e+00> : vector<8x8xf32>
    %110 = tpu.matmul %103, %106, %cst_57 {dimension_numbers = #tpu.dot_dimension_numbers<[1], [1], [0], [0], [0, 0, 1, 0], [], []>} : vector<8x8xbf16>, vector<8x8xbf16>, vector<8x8xf32> -> vector<8x8xf32>
    %111 = vector.broadcast %3 : vector<1x8xf32> to vector<8x8xf32>
    %112 = arith.addf %110, %111 : vector<8x8xf32>
    %cst_58 = arith.constant dense<0xFF800000> : vector<8xf32>
    %113 = vector.multi_reduction <maximumf>, %112, %cst_58 [1] : vector<8x8xf32> to vector<8xf32>
    %114 = vector.shape_cast %113 : vector<8xf32> to vector<8x1xf32>
    %115 = vector.broadcast %114 : vector<8x1xf32> to vector<8x8xf32>
    %116 = arith.subf %112, %115 : vector<8x8xf32>
    %117 = math.exp %116 : vector<8x8xf32>
    %cst_59 = arith.constant dense<0.000000e+00> : vector<8xf32>
    %118 = vector.multi_reduction <add>, %117, %cst_59 [1] : vector<8x8xf32> to vector<8xf32>
    %119 = vector.shape_cast %118 : vector<8xf32> to vector<8x1xf32>
    %120 = tpu.reciprocal %119 {approx = true} : vector<8x1xf32> -> vector<8x1xf32>
    %121 = vector.broadcast %120 : vector<8x1xf32> to vector<8x8xf32>
    %122 = arith.mulf %117, %121 : vector<8x8xf32>
    %123 = arith.truncf %122 : vector<8x8xf32> to vector<8x8xbf16>
    %cst_60 = arith.constant dense<0.000000e+00> : vector<8x8xf32>
    %124 = tpu.matmul %123, %109, %cst_60 {dimension_numbers = #tpu.dot_dimension_numbers<[1], [0], [0], [1], [0, 0, 1, 1], [], []>} : vector<8x8xbf16>, vector<8x8xbf16>, vector<8x8xf32> -> vector<8x8xf32>
    %125 = arith.truncf %124 : vector<8x8xf32> to vector<8x8xbf16>
    %c24_61 = arith.constant 24 : index
    %c0_62 = arith.constant 0 : index
    %126 = vector.load %arg3[%c24_61, %c0_62] : memref<32x32xbf16, #tpu.memory_space<vmem>>, vector<8x32xbf16>
    %cst_63 = arith.constant dense<0.000000e+00> : vector<8x32xf32>
    %127 = tpu.matmul %125, %126, %cst_63 {dimension_numbers = #tpu.dot_dimension_numbers<[1], [0], [0], [1], [0, 0, 1, 1], [], []>} : vector<8x8xbf16>, vector<8x32xbf16>, vector<8x32xf32> -> vector<8x32xf32>
    %128 = arith.addf %98, %127 : vector<8x32xf32>
    %c0_64 = arith.constant 0 : index
    %c0_65 = arith.constant 0 : index
    %c0_66 = arith.constant 0 : index
    %129 = vector.load %arg6[%c0_64, %c0_65, %c0_66] : memref<1x8x32xf32, #tpu.memory_space<vmem>>, vector<1x8x32xf32>
    %130 = vector.shape_cast %129 : vector<1x8x32xf32> to vector<8x32xf32>
    %131 = vector.shape_cast %128 : vector<8x32xf32> to vector<1x8x32xf32>
    tpu.vector_store %arg6[%c0_64, %c0_65, %c0_66], %131 {strides = array<i32>} : memref<1x8x32xf32, #tpu.memory_space<vmem>>, vector<1x8x32xf32>,
    return
  }
  func.func @transform_0(%arg0: i32) -> (i32, i32, i32) {
    %c0_i32 = arith.constant 0 : i32
    %c0_i32_0 = arith.constant 0 : i32
    %c0_i32_1 = arith.constant 0 : i32
    return %arg0, %c0_i32, %c0_i32_0 : i32, i32, i32
  }
  func.func @transform_1(%arg0: i32) -> (i32, i32, i32) {
    %c0_i32 = arith.constant 0 : i32
    %c0_i32_0 = arith.constant 0 : i32
    %c0_i32_1 = arith.constant 0 : i32
    return %arg0, %c0_i32, %c0_i32_0 : i32, i32, i32
  }
  func.func @transform_2(%arg0: i32) -> (i32, i32) {
    %c0_i32 = arith.constant 0 : i32
    %c0_i32_0 = arith.constant 0 : i32
    %c0_i32_1 = arith.constant 0 : i32
    return %c0_i32, %c0_i32_0 : i32, i32
  }
  func.func @transform_3(%arg0: i32) -> (i32, i32) {
    %c0_i32 = arith.constant 0 : i32
    %c0_i32_0 = arith.constant 0 : i32
    %c0_i32_1 = arith.constant 0 : i32
    return %c0_i32, %c0_i32_0 : i32, i32
  }
  func.func @transform_4(%arg0: i32) -> (i32, i32, i32) {
    %c0_i32 = arith.constant 0 : i32
    %c0_i32_0 = arith.constant 0 : i32
    %c0_i32_1 = arith.constant 0 : i32
    return %arg0, %c0_i32, %c0_i32_0 : i32, i32, i32
  }
  func.func @transform_5(%arg0: i32) -> (i32, i32, i32) {
    %c0_i32 = arith.constant 0 : i32
    %c0_i32_0 = arith.constant 0 : i32
    %c0_i32_1 = arith.constant 0 : i32
    return %arg0, %c0_i32, %c0_i32_0 : i32, i32, i32
  }
}

module attributes {stable_mosaic.version = 11 : i64} {
  func.func @_linear_kernel(%arg0: i32, %arg1: i32, %arg2: i32, %arg3: memref<16x32xf32, #tpu.memory_space<vmem>>, %arg4: memref<32x128xbf16, #tpu.memory_space<vmem>>, %arg5: memref<1x128xf32, #tpu.memory_space<vmem>>, %arg6: memref<1x32xf32, #tpu.memory_space<vmem>>, %arg7: memref<1x32xf32, #tpu.memory_space<vmem>>, %arg8: memref<16x128xf32, #tpu.memory_space<vmem>>) attributes {dimension_semantics = [#tpu.dimension_semantics<parallel>, #tpu.dimension_semantics<parallel>, #tpu.dimension_semantics<arbitrary>], iteration_bounds = array<i64: 1, 1, 1>, scalar_prefetch = 0 : i64, scratch_operands = 0 : i64, tpu.core_type = #tpu.core_type<tc>, window_params = [{transform_indices = @transform_0, window_bounds = array<i64: 16, 32>}, {transform_indices = @transform_1, window_bounds = array<i64: 32, 128>}, {transform_indices = @transform_2, window_bounds = array<i64: 1, 128>}, {transform_indices = @transform_3, window_bounds = array<i64: 1, 32>}, {transform_indices = @transform_4, window_bounds = array<i64: 1, 32>}, {transform_indices = @transform_5, window_bounds = array<i64: 16, 128>}]} {
    %c0 = arith.constant 0 : index
    %c0_0 = arith.constant 0 : index
    %0 = vector.load %arg3[%c0, %c0_0] : memref<16x32xf32, #tpu.memory_space<vmem>>, vector<16x32xf32>
    %c0_1 = arith.constant 0 : index
    %c0_2 = arith.constant 0 : index
    %1 = vector.load %arg6[%c0_1, %c0_2] : memref<1x32xf32, #tpu.memory_space<vmem>>, vector<1x32xf32>
    %c0_3 = arith.constant 0 : index
    %c0_4 = arith.constant 0 : index
    %2 = vector.load %arg7[%c0_3, %c0_4] : memref<1x32xf32, #tpu.memory_space<vmem>>, vector<1x32xf32>
    %cst = arith.constant dense<0.000000e+00> : vector<16xf32>
    %3 = vector.multi_reduction <add>, %0, %cst [1] : vector<16x32xf32> to vector<16xf32>
    %4 = vector.shape_cast %3 : vector<16xf32> to vector<16x1xf32>
    %cst_5 = arith.constant 3.200000e+01 : f32
    %5 = vector.broadcast %cst_5 : f32 to vector<16x1xf32>
    %6 = arith.divf %4, %5 : vector<16x1xf32>
    %7 = vector.broadcast %6 : vector<16x1xf32> to vector<16x32xf32>
    %8 = arith.subf %0, %7 : vector<16x32xf32>
    %9 = arith.mulf %8, %8 : vector<16x32xf32>
    %cst_6 = arith.constant dense<0.000000e+00> : vector<16xf32>
    %10 = vector.multi_reduction <add>, %9, %cst_6 [1] : vector<16x32xf32> to vector<16xf32>
    %11 = vector.shape_cast %10 : vector<16xf32> to vector<16x1xf32>
    %cst_7 = arith.constant 3.200000e+01 : f32
    %12 = vector.broadcast %cst_7 : f32 to vector<16x1xf32>
    %13 = arith.divf %11, %12 : vector<16x1xf32>
    %14 = vector.broadcast %6 : vector<16x1xf32> to vector<16x32xf32>
    %15 = arith.subf %0, %14 : vector<16x32xf32>
    %cst_8 = arith.constant 9.99999974E-6 : f32
    %16 = vector.broadcast %cst_8 : f32 to vector<16x1xf32>
    %17 = arith.addf %13, %16 : vector<16x1xf32>
    %18 = math.rsqrt %17 : vector<16x1xf32>
    %19 = vector.broadcast %18 : vector<16x1xf32> to vector<16x32xf32>
    %20 = arith.mulf %15, %19 : vector<16x32xf32>
    %21 = vector.broadcast %1 : vector<1x32xf32> to vector<16x32xf32>
    %22 = arith.mulf %20, %21 : vector<16x32xf32>
    %23 = vector.broadcast %2 : vector<1x32xf32> to vector<16x32xf32>
    %24 = arith.addf %22, %23 : vector<16x32xf32>
    %25 = arith.truncf %24 : vector<16x32xf32> to vector<16x32xbf16>
    %c0_9 = arith.constant 0 : index
    %c0_10 = arith.constant 0 : index
    %26 = vector.load %arg4[%c0_9, %c0_10] : memref<32x128xbf16, #tpu.memory_space<vmem>>, vector<32x128xbf16>
    %cst_11 = arith.constant dense<0.000000e+00> : vector<16x128xf32>
    %27 = tpu.matmul %25, %26, %cst_11 {dimension_numbers = #tpu.dot_dimension_numbers<[1], [0], [0], [1], [0, 0, 1, 1], [], []>} : vector<16x32xbf16>, vector<32x128xbf16>, vector<16x128xf32> -> vector<16x128xf32>
    %c0_12 = arith.constant 0 : index
    %c0_13 = arith.constant 0 : index
    %28 = vector.load %arg5[%c0_12, %c0_13] : memref<1x128xf32, #tpu.memory_space<vmem>>, vector<1x128xf32>
    %29 = vector.broadcast %28 : vector<1x128xf32> to vector<16x128xf32>
    %30 = arith.addf %27, %29 : vector<16x128xf32>
    %cst_14 = arith.constant 0.000000e+00 : f32
    %31 = vector.broadcast %cst_14 : f32 to vector<16x128xf32>
    %32 = arith.subf %31, %30 : vector<16x128xf32>
    %33 = math.exp %32 : vector<16x128xf32>
    %cst_15 = arith.constant 1.000000e+00 : f32
    %34 = vector.broadcast %cst_15 : f32 to vector<16x128xf32>
    %35 = arith.addf %34, %33 : vector<16x128xf32>
    %36 = tpu.reciprocal %35 {approx = true} : vector<16x128xf32> -> vector<16x128xf32>
    %37 = arith.mulf %30, %36 : vector<16x128xf32>
    %c0_16 = arith.constant 0 : index
    %c0_17 = arith.constant 0 : index
    %38 = vector.load %arg8[%c0_16, %c0_17] : memref<16x128xf32, #tpu.memory_space<vmem>>, vector<16x128xf32>
    tpu.vector_store %arg8[%c0_16, %c0_17], %37 {strides = array<i32>} : memref<16x128xf32, #tpu.memory_space<vmem>>, vector<16x128xf32>,
    return
  }
  func.func @transform_0(%arg0: i32, %arg1: i32, %arg2: i32) -> (i32, i32) {
    %c0_i32 = arith.constant 0 : i32
    return %arg0, %arg2 : i32, i32
  }
  func.func @transform_1(%arg0: i32, %arg1: i32, %arg2: i32) -> (i32, i32) {
    %c0_i32 = arith.constant 0 : i32
    return %arg2, %arg1 : i32, i32
  }
  func.func @transform_2(%arg0: i32, %arg1: i32, %arg2: i32) -> (i32, i32) {
    %c0_i32 = arith.constant 0 : i32
    %c0_i32_0 = arith.constant 0 : i32
    return %c0_i32, %arg1 : i32, i32
  }
  func.func @transform_3(%arg0: i32, %arg1: i32, %arg2: i32) -> (i32, i32) {
    %c0_i32 = arith.constant 0 : i32
    %c0_i32_0 = arith.constant 0 : i32
    return %c0_i32, %arg2 : i32, i32
  }
  func.func @transform_4(%arg0: i32, %arg1: i32, %arg2: i32) -> (i32, i32) {
    %c0_i32 = arith.constant 0 : i32
    %c0_i32_0 = arith.constant 0 : i32
    return %c0_i32, %arg2 : i32, i32
  }
  func.func @transform_5(%arg0: i32, %arg1: i32, %arg2: i32) -> (i32, i32) {
    %c0_i32 = arith.constant 0 : i32
    return %arg0, %arg1 : i32, i32
  }
}

module attributes {stable_mosaic.version = 11 : i64} {
  func.func @_glu_ln_kernel(%arg0: i32, %arg1: memref<16x32xf32, #tpu.memory_space<vmem>>, %arg2: memref<32x64xbf16, #tpu.memory_space<vmem>>, %arg3: memref<1x64xf32, #tpu.memory_space<vmem>>, %arg4: memref<1x32xf32, #tpu.memory_space<vmem>>, %arg5: memref<1x32xf32, #tpu.memory_space<vmem>>, %arg6: memref<16x1xf32, #tpu.memory_space<vmem>>, %arg7: memref<16x32xf32, #tpu.memory_space<vmem>>) attributes {dimension_semantics = [#tpu.dimension_semantics<parallel>], iteration_bounds = array<i64: 1>, scalar_prefetch = 0 : i64, scratch_operands = 0 : i64, tpu.core_type = #tpu.core_type<tc>, window_params = [{transform_indices = @transform_0, window_bounds = array<i64: 16, 32>}, {pipeline_mode = #tpu.pipeline_mode<synchronous>, transform_indices = @transform_1, window_bounds = array<i64: 32, 64>}, {pipeline_mode = #tpu.pipeline_mode<synchronous>, transform_indices = @transform_2, window_bounds = array<i64: 1, 64>}, {pipeline_mode = #tpu.pipeline_mode<synchronous>, transform_indices = @transform_3, window_bounds = array<i64: 1, 32>}, {pipeline_mode = #tpu.pipeline_mode<synchronous>, transform_indices = @transform_4, window_bounds = array<i64: 1, 32>}, {transform_indices = @transform_5, window_bounds = array<i64: 16, 1>}, {transform_indices = @transform_6, window_bounds = array<i64: 16, 32>}]} {
    %c0 = arith.constant 0 : index
    %c0_0 = arith.constant 0 : index
    %0 = vector.load %arg1[%c0, %c0_0] : memref<16x32xf32, #tpu.memory_space<vmem>>, vector<16x32xf32>
    %c0_1 = arith.constant 0 : index
    %c0_2 = arith.constant 0 : index
    %1 = vector.load %arg4[%c0_1, %c0_2] : memref<1x32xf32, #tpu.memory_space<vmem>>, vector<1x32xf32>
    %c0_3 = arith.constant 0 : index
    %c0_4 = arith.constant 0 : index
    %2 = vector.load %arg5[%c0_3, %c0_4] : memref<1x32xf32, #tpu.memory_space<vmem>>, vector<1x32xf32>
    %cst = arith.constant dense<0.000000e+00> : vector<16xf32>
    %3 = vector.multi_reduction <add>, %0, %cst [1] : vector<16x32xf32> to vector<16xf32>
    %4 = vector.shape_cast %3 : vector<16xf32> to vector<16x1xf32>
    %cst_5 = arith.constant 3.200000e+01 : f32
    %5 = vector.broadcast %cst_5 : f32 to vector<16x1xf32>
    %6 = arith.divf %4, %5 : vector<16x1xf32>
    %7 = vector.broadcast %6 : vector<16x1xf32> to vector<16x32xf32>
    %8 = arith.subf %0, %7 : vector<16x32xf32>
    %9 = arith.mulf %8, %8 : vector<16x32xf32>
    %cst_6 = arith.constant dense<0.000000e+00> : vector<16xf32>
    %10 = vector.multi_reduction <add>, %9, %cst_6 [1] : vector<16x32xf32> to vector<16xf32>
    %11 = vector.shape_cast %10 : vector<16xf32> to vector<16x1xf32>
    %cst_7 = arith.constant 3.200000e+01 : f32
    %12 = vector.broadcast %cst_7 : f32 to vector<16x1xf32>
    %13 = arith.divf %11, %12 : vector<16x1xf32>
    %14 = vector.broadcast %6 : vector<16x1xf32> to vector<16x32xf32>
    %15 = arith.subf %0, %14 : vector<16x32xf32>
    %cst_8 = arith.constant 9.99999974E-6 : f32
    %16 = vector.broadcast %cst_8 : f32 to vector<16x1xf32>
    %17 = arith.addf %13, %16 : vector<16x1xf32>
    %18 = math.rsqrt %17 : vector<16x1xf32>
    %19 = vector.broadcast %18 : vector<16x1xf32> to vector<16x32xf32>
    %20 = arith.mulf %15, %19 : vector<16x32xf32>
    %21 = vector.broadcast %1 : vector<1x32xf32> to vector<16x32xf32>
    %22 = arith.mulf %20, %21 : vector<16x32xf32>
    %23 = vector.broadcast %2 : vector<1x32xf32> to vector<16x32xf32>
    %24 = arith.addf %22, %23 : vector<16x32xf32>
    %25 = arith.truncf %24 : vector<16x32xf32> to vector<16x32xbf16>
    %c0_9 = arith.constant 0 : index
    %c0_10 = arith.constant 0 : index
    %26 = vector.load %arg2[%c0_9, %c0_10] : memref<32x64xbf16, #tpu.memory_space<vmem>>, vector<32x64xbf16>
    %cst_11 = arith.constant dense<0.000000e+00> : vector<16x64xf32>
    %27 = tpu.matmul %25, %26, %cst_11 {dimension_numbers = #tpu.dot_dimension_numbers<[1], [0], [0], [1], [0, 0, 1, 1], [], []>} : vector<16x32xbf16>, vector<32x64xbf16>, vector<16x64xf32> -> vector<16x64xf32>
    %c0_12 = arith.constant 0 : index
    %c0_13 = arith.constant 0 : index
    %28 = vector.load %arg3[%c0_12, %c0_13] : memref<1x64xf32, #tpu.memory_space<vmem>>, vector<1x64xf32>
    %29 = vector.broadcast %28 : vector<1x64xf32> to vector<16x64xf32>
    %30 = arith.addf %27, %29 : vector<16x64xf32>
    %31 = vector.extract_strided_slice %30 {offsets = [0, 0], sizes = [16, 32], strides = [1, 1]} : vector<16x64xf32> to vector<16x32xf32>
    %32 = vector.extract_strided_slice %30 {offsets = [0, 32], sizes = [16, 32], strides = [1, 1]} : vector<16x64xf32> to vector<16x32xf32>
    %cst_14 = arith.constant 0.000000e+00 : f32
    %33 = vector.broadcast %cst_14 : f32 to vector<16x32xf32>
    %34 = arith.subf %33, %32 : vector<16x32xf32>
    %35 = math.exp %34 : vector<16x32xf32>
    %cst_15 = arith.constant 1.000000e+00 : f32
    %36 = vector.broadcast %cst_15 : f32 to vector<16x32xf32>
    %37 = arith.addf %36, %35 : vector<16x32xf32>
    %38 = tpu.reciprocal %37 {approx = true} : vector<16x32xf32> -> vector<16x32xf32>
    %39 = arith.mulf %31, %38 : vector<16x32xf32>
    %c0_16 = arith.constant 0 : index
    %c0_17 = arith.constant 0 : index
    %40 = vector.load %arg6[%c0_16, %c0_17] : memref<16x1xf32, #tpu.memory_space<vmem>>, vector<16x1xf32>
    %41 = vector.broadcast %40 : vector<16x1xf32> to vector<16x32xf32>
    %42 = arith.mulf %39, %41 : vector<16x32xf32>
    %c0_18 = arith.constant 0 : index
    %c0_19 = arith.constant 0 : index
    %43 = vector.load %arg7[%c0_18, %c0_19] : memref<16x32xf32, #tpu.memory_space<vmem>>, vector<16x32xf32>
    tpu.vector_store %arg7[%c0_18, %c0_19], %42 {strides = array<i32>} : memref<16x32xf32, #tpu.memory_space<vmem>>, vector<16x32xf32>,
    return
  }
  func.func @transform_0(%arg0: i32) -> (i32, i32) {
    %c0_i32 = arith.constant 0 : i32
    %c0_i32_0 = arith.constant 0 : i32
    return %arg0, %c0_i32 : i32, i32
  }
  func.func @transform_1(%arg0: i32) -> (i32, i32) {
    %c0_i32 = arith.constant 0 : i32
    %c0_i32_0 = arith.constant 0 : i32
    %c0_i32_1 = arith.constant 0 : i32
    return %c0_i32, %c0_i32_0 : i32, i32
  }
  func.func @transform_2(%arg0: i32) -> (i32, i32) {
    %c0_i32 = arith.constant 0 : i32
    %c0_i32_0 = arith.constant 0 : i32
    %c0_i32_1 = arith.constant 0 : i32
    return %c0_i32, %c0_i32_0 : i32, i32
  }
  func.func @transform_3(%arg0: i32) -> (i32, i32) {
    %c0_i32 = arith.constant 0 : i32
    %c0_i32_0 = arith.constant 0 : i32
    %c0_i32_1 = arith.constant 0 : i32
    return %c0_i32, %c0_i32_0 : i32, i32
  }
  func.func @transform_4(%arg0: i32) -> (i32, i32) {
    %c0_i32 = arith.constant 0 : i32
    %c0_i32_0 = arith.constant 0 : i32
    %c0_i32_1 = arith.constant 0 : i32
    return %c0_i32, %c0_i32_0 : i32, i32
  }
  func.func @transform_5(%arg0: i32) -> (i32, i32) {
    %c0_i32 = arith.constant 0 : i32
    %c0_i32_0 = arith.constant 0 : i32
    return %arg0, %c0_i32 : i32, i32
  }
  func.func @transform_6(%arg0: i32) -> (i32, i32) {
    %c0_i32 = arith.constant 0 : i32
    %c0_i32_0 = arith.constant 0 : i32
    return %arg0, %c0_i32 : i32, i32
  }
}

module attributes {stable_mosaic.version = 11 : i64} {
  func.func @_linear_kernel(%arg0: i32, %arg1: i32, %arg2: i32, %arg3: memref<16x32xf32, #tpu.memory_space<vmem>>, %arg4: memref<32x128xbf16, #tpu.memory_space<vmem>>, %arg5: memref<1x128xf32, #tpu.memory_space<vmem>>, %arg6: memref<1x32xf32, #tpu.memory_space<vmem>>, %arg7: memref<1x32xf32, #tpu.memory_space<vmem>>, %arg8: memref<16x128xf32, #tpu.memory_space<vmem>>) attributes {dimension_semantics = [#tpu.dimension_semantics<parallel>, #tpu.dimension_semantics<parallel>, #tpu.dimension_semantics<arbitrary>], iteration_bounds = array<i64: 1, 1, 1>, scalar_prefetch = 0 : i64, scratch_operands = 0 : i64, tpu.core_type = #tpu.core_type<tc>, window_params = [{transform_indices = @transform_0, window_bounds = array<i64: 16, 32>}, {transform_indices = @transform_1, window_bounds = array<i64: 32, 128>}, {transform_indices = @transform_2, window_bounds = array<i64: 1, 128>}, {transform_indices = @transform_3, window_bounds = array<i64: 1, 32>}, {transform_indices = @transform_4, window_bounds = array<i64: 1, 32>}, {transform_indices = @transform_5, window_bounds = array<i64: 16, 128>}]} {
    %c0 = arith.constant 0 : index
    %c0_0 = arith.constant 0 : index
    %0 = vector.load %arg3[%c0, %c0_0] : memref<16x32xf32, #tpu.memory_space<vmem>>, vector<16x32xf32>
    %c0_1 = arith.constant 0 : index
    %c0_2 = arith.constant 0 : index
    %1 = vector.load %arg6[%c0_1, %c0_2] : memref<1x32xf32, #tpu.memory_space<vmem>>, vector<1x32xf32>
    %c0_3 = arith.constant 0 : index
    %c0_4 = arith.constant 0 : index
    %2 = vector.load %arg7[%c0_3, %c0_4] : memref<1x32xf32, #tpu.memory_space<vmem>>, vector<1x32xf32>
    %cst = arith.constant dense<0.000000e+00> : vector<16xf32>
    %3 = vector.multi_reduction <add>, %0, %cst [1] : vector<16x32xf32> to vector<16xf32>
    %4 = vector.shape_cast %3 : vector<16xf32> to vector<16x1xf32>
    %cst_5 = arith.constant 3.200000e+01 : f32
    %5 = vector.broadcast %cst_5 : f32 to vector<16x1xf32>
    %6 = arith.divf %4, %5 : vector<16x1xf32>
    %7 = vector.broadcast %6 : vector<16x1xf32> to vector<16x32xf32>
    %8 = arith.subf %0, %7 : vector<16x32xf32>
    %9 = arith.mulf %8, %8 : vector<16x32xf32>
    %cst_6 = arith.constant dense<0.000000e+00> : vector<16xf32>
    %10 = vector.multi_reduction <add>, %9, %cst_6 [1] : vector<16x32xf32> to vector<16xf32>
    %11 = vector.shape_cast %10 : vector<16xf32> to vector<16x1xf32>
    %cst_7 = arith.constant 3.200000e+01 : f32
    %12 = vector.broadcast %cst_7 : f32 to vector<16x1xf32>
    %13 = arith.divf %11, %12 : vector<16x1xf32>
    %14 = vector.broadcast %6 : vector<16x1xf32> to vector<16x32xf32>
    %15 = arith.subf %0, %14 : vector<16x32xf32>
    %cst_8 = arith.constant 9.99999974E-6 : f32
    %16 = vector.broadcast %cst_8 : f32 to vector<16x1xf32>
    %17 = arith.addf %13, %16 : vector<16x1xf32>
    %18 = math.rsqrt %17 : vector<16x1xf32>
    %19 = vector.broadcast %18 : vector<16x1xf32> to vector<16x32xf32>
    %20 = arith.mulf %15, %19 : vector<16x32xf32>
    %21 = vector.broadcast %1 : vector<1x32xf32> to vector<16x32xf32>
    %22 = arith.mulf %20, %21 : vector<16x32xf32>
    %23 = vector.broadcast %2 : vector<1x32xf32> to vector<16x32xf32>
    %24 = arith.addf %22, %23 : vector<16x32xf32>
    %25 = arith.truncf %24 : vector<16x32xf32> to vector<16x32xbf16>
    %c0_9 = arith.constant 0 : index
    %c0_10 = arith.constant 0 : index
    %26 = vector.load %arg4[%c0_9, %c0_10] : memref<32x128xbf16, #tpu.memory_space<vmem>>, vector<32x128xbf16>
    %cst_11 = arith.constant dense<0.000000e+00> : vector<16x128xf32>
    %27 = tpu.matmul %25, %26, %cst_11 {dimension_numbers = #tpu.dot_dimension_numbers<[1], [0], [0], [1], [0, 0, 1, 1], [], []>} : vector<16x32xbf16>, vector<32x128xbf16>, vector<16x128xf32> -> vector<16x128xf32>
    %c0_12 = arith.constant 0 : index
    %c0_13 = arith.constant 0 : index
    %28 = vector.load %arg5[%c0_12, %c0_13] : memref<1x128xf32, #tpu.memory_space<vmem>>, vector<1x128xf32>
    %29 = vector.broadcast %28 : vector<1x128xf32> to vector<16x128xf32>
    %30 = arith.addf %27, %29 : vector<16x128xf32>
    %c0_14 = arith.constant 0 : index
    %c0_15 = arith.constant 0 : index
    %31 = vector.load %arg8[%c0_14, %c0_15] : memref<16x128xf32, #tpu.memory_space<vmem>>, vector<16x128xf32>
    tpu.vector_store %arg8[%c0_14, %c0_15], %30 {strides = array<i32>} : memref<16x128xf32, #tpu.memory_space<vmem>>, vector<16x128xf32>,
    return
  }
  func.func @transform_0(%arg0: i32, %arg1: i32, %arg2: i32) -> (i32, i32) {
    %c0_i32 = arith.constant 0 : i32
    return %arg0, %arg2 : i32, i32
  }
  func.func @transform_1(%arg0: i32, %arg1: i32, %arg2: i32) -> (i32, i32) {
    %c0_i32 = arith.constant 0 : i32
    return %arg2, %arg1 : i32, i32
  }
  func.func @transform_2(%arg0: i32, %arg1: i32, %arg2: i32) -> (i32, i32) {
    %c0_i32 = arith.constant 0 : i32
    %c0_i32_0 = arith.constant 0 : i32
    return %c0_i32, %arg1 : i32, i32
  }
  func.func @transform_3(%arg0: i32, %arg1: i32, %arg2: i32) -> (i32, i32) {
    %c0_i32 = arith.constant 0 : i32
    %c0_i32_0 = arith.constant 0 : i32
    return %c0_i32, %arg2 : i32, i32
  }
  func.func @transform_4(%arg0: i32, %arg1: i32, %arg2: i32) -> (i32, i32) {
    %c0_i32 = arith.constant 0 : i32
    %c0_i32_0 = arith.constant 0 : i32
    return %c0_i32, %arg2 : i32, i32
  }
  func.func @transform_5(%arg0: i32, %arg1: i32, %arg2: i32) -> (i32, i32) {
    %c0_i32 = arith.constant 0 : i32
    return %arg0, %arg1 : i32, i32
  }
}

</mosaic_0001>

<bundles_post_ra>
// kernel: _lambda_.23
= control target key start
LH: loop header
LB: loop body
LE: loop exit
PB: predicated region body
PF: predicated region fallthrough
CT: control target
= control target key end

     0   :  { %s1222_s12 = smov 0   ;;  %s1224_s13 = smov 0   ;;  %s1562_s0 = inlined_call_operand.vmem [shape: f32[1024,9], index: 0, kind: input, shape index: {}]   ;;  %s1563_s1 = inlined_call_operand.vmem [shape: bf16[9,32], index: 1, kind: input, shape index: {}]   ;;  %s1564_s2 = inlined_call_operand.vmem [shape: f32[1,32], index: 2, kind: input, shape index: {}]   ;;  %s1565_s3 = inlined_call_operand.vmem [shape: f32[1024,32], index: 3, kind: output, shape index: {}]  }
   0x1   :  { %s1226_s14 = smov 0  }
   0x2 LB: > { %s32_s15 = sadd.s32 1, %s1195_s13  ;;  %p1009_p0 = scmp.ge.s32.totalorder %s1199_s14, 1  ;;  %s1199_s14 = sphi %s1226_s14, %s13_s14   ;;  %s1195_s13 = sphi %s1224_s13, %s1567_s13   ;;  %s1191_s12 = sphi %s1222_s12, %s1566_s12  }
   0x3   : > { %p34_p1 = scmp.ge.s32.totalorder %s32_s15, 2  ;;  %p188_p2 = scmp.lt.s32.totalorder %s1199_s14, 3 }
   0x5   : > { %s1569_s15 = smov (%p34_p1, %s32_s15), 0  ;;  %p189_p3 = pnand %p1009_p0, %p188_p2 }
   0x6   : > { %s1010_s18 = sshll.u32 (!%p189_p3), %s1191_s12, 6 }
   0x7   : > { %192 = sbr.rel (%p189_p3) target bundleno = 281 (0x119), region = 32  ;;  %p230_p4 = scmp.lt.s32.totalorder (!%p189_p3), %s1010_s18, 127 }
   0xc   : > { %v1176_v0 = vld [vmem:[%s1563_s1] sm:$0x1f]   ;;  %vm467_vm0 = vcmask 1043456   ;;  %vm468_vm1 = vcmask 1044480   ;;  %v1201_v1 = vmov 65535   ;;  %s1571_s18 = smov (!%p230_p4, %s1010_s18), 127 }
   0xd   : > { %v469_v2 = vsel %vm467_vm0, 4294967295, %v1201_v1  ;;  %s1011_s19 = sshll.u32 %s1571_s18, 3  ;;  %vm370_vm2 = vcmask 72704   ;;  %vm827_vm3 = vcmask 261120  }
   0xe   : > { %v470_v3 = vsel %vm468_vm1, %v469_v2, 0  ;;  %s1251_s22 = scalar_lea.vmem %s1562_s0, %s1011_s19  ;;  %s1360_s27 = scalar_lea.vmem %s1565_s3, %s1011_s19 }
   0xf   : > { %v472_v4 = vand.u32 %v1176_v0, %v470_v3  ;;  %v260_v5 = vld [vmem:[%s1251_s22] sm:$0xff]  ;;  %v261_v6 = vld [vmem:[%s1251_s22 + $0x8] sm:$0xff]  ;;  %v262_v10 = vld [vmem:[%s1251_s22 + $0x10] sm:$0xff] }
  0x10   : > { %v292_v7 = vld [vmem:[%s1251_s22 + $0x100] sm:$0xff]  ;;  %v324_v8 = vpack.c.bf16 %v261_v6, %v260_v5  ;;  %v293_v9 = vld [vmem:[%s1251_s22 + $0x108] sm:$0xff]  ;;  %v263_v11 = vld [vmem:[%s1251_s22 + $0x18] sm:$0xff] }
  0x11   : > { %1083 = vmatprep.subr.bf16.mxu0 %v472_v4  ;;  %1149 = vmatprep.subr.bf16.mxu1 %v472_v4  ;;  %v340_v12 = vpack.c.bf16 %v293_v9, %v292_v7  ;;  %v325_v13 = vpack.c.bf16 %v263_v11, %v262_v10  ;;  %v294_v14 = vld [vmem:[%s1251_s22 + $0x110] sm:$0xff]  ;;  %v295_v15 = vld [vmem:[%s1251_s22 + $0x118] sm:$0xff]  ;;  %v264_v16 = vld [vmem:[%s1251_s22 + $0x20] sm:$0xff] }
  0x12   : > { %1084 = vmatpush3.bf16.msra.mxu0 %v472_v4  ;;  %1150 = vmatpush3.bf16.msra.mxu1 %v472_v4  ;;  %v341_v17 = vpack.c.bf16 %v295_v15, %v294_v14  ;;  %v265_v18 = vld [vmem:[%s1251_s22 + $0x28] sm:$0xff]  ;;  %v296_v19 = vld [vmem:[%s1251_s22 + $0x120] sm:$0xff]  ;;  %v266_v23 = vld [vmem:[%s1251_s22 + $0x30] sm:$0xff] }
  0x13   : > { %1085 = vmatprep.mubr.msk.bf16.mxu0 %vm370_vm2, %v324_v8  ;;  %v297_v20 = vld [vmem:[%s1251_s22 + $0x128] sm:$0xff]  ;;  %1117 = vmatprep.mubr.msk.bf16.mxu1 %vm370_vm2, %v340_v12  ;;  %v326_v21 = vpack.c.bf16 %v265_v18, %v264_v16  ;;  %v267_v24 = vld [vmem:[%s1251_s22 + $0x38] sm:$0xff]  ;;  %v298_v25 = vld [vmem:[%s1251_s22 + $0x130] sm:$0xff] }
  0x14   : > { %v342_v22 = vpack.c.bf16 %v297_v20, %v296_v19  ;;  %v299_v26 = vld [vmem:[%s1251_s22 + $0x138] sm:$0xff]  ;;  %v268_v27 = vld [vmem:[%s1251_s22 + $0x40] sm:$0xff]  ;;  %v269_v28 = vld [vmem:[%s1251_s22 + $0x48] sm:$0xff]  ;;  %v327_v31 = vpack.c.bf16 %v267_v24, %v266_v23 }
  0x15   : > { %1086 = vmatmul.mubr.msk.bf16.vlgmr.msra.gmra.mxu0 %vm370_vm2, %v325_v13  ;;  %1118 = vmatmul.mubr.msk.bf16.vlgmr.msra.gmra.mxu1 %vm370_vm2, %v341_v17  ;;  %v300_v29 = vld [vmem:[%s1251_s22 + $0x140] sm:$0xff]  ;;  %v301_v30 = vld [vmem:[%s1251_s22 + $0x148] sm:$0xff]  ;;  %v343_v32 = vpack.c.bf16 %v299_v26, %v298_v25  ;;  %v328_v33 = vpack.c.bf16 %v269_v28, %v268_v27  ;;  %v270_v35 = vld [vmem:[%s1251_s22 + $0x50] sm:$0xff] }
  0x16   : > { %1089 = vmatprep.mubr.msk.bf16.mxu0 %vm370_vm2, %v326_v21  ;;  %1121 = vmatprep.mubr.msk.bf16.mxu1 %vm370_vm2, %v342_v22  ;;  %v344_v34 = vpack.c.bf16 %v301_v30, %v300_v29  ;;  %v271_v36 = vld [vmem:[%s1251_s22 + $0x58] sm:$0xff]  ;;  %v302_v37 = vld [vmem:[%s1251_s22 + $0x150] sm:$0xff]  ;;  %v272_v39 = vld [vmem:[%s1251_s22 + $0x60] sm:$0xff] }
  0x17   : > { %v303_v38 = vld [vmem:[%s1251_s22 + $0x158] sm:$0xff]  ;;  %v273_v40 = vld [vmem:[%s1251_s22 + $0x68] sm:$0xff]  ;;  %v304_v41 = vld [vmem:[%s1251_s22 + $0x160] sm:$0xff]  ;;  %v329_v43 = vpack.c.bf16 %v271_v36, %v270_v35 }
  0x18   : > { %v305_v42 = vld [vmem:[%s1251_s22 + $0x168] sm:$0xff]  ;;  %v345_v44 = vpack.c.bf16 %v303_v38, %v302_v37  ;;  %v330_v45 = vpack.c.bf16 %v273_v40, %v272_v39  ;;  %v274_v47 = vld [vmem:[%s1251_s22 + $0x70] sm:$0xff]  ;;  %v275_v48 = vld [vmem:[%s1251_s22 + $0x78] sm:$0xff] }
  0x19   : > { %v346_v46 = vpack.c.bf16 %v305_v42, %v304_v41  ;;  %v306_v49 = vld [vmem:[%s1251_s22 + $0x170] sm:$0xff]  ;;  %v307_v50 = vld [vmem:[%s1251_s22 + $0x178] sm:$0xff]  ;;  %v276_v51 = vld [vmem:[%s1251_s22 + $0x80] sm:$0xff]  ;;  %v331_v55 = vpack.c.bf16 %v275_v48, %v274_v47 }
  0x1a   : > { %v277_v52 = vld [vmem:[%s1251_s22 + $0x88] sm:$0xff]  ;;  %v308_v53 = vld [vmem:[%s1251_s22 + $0x180] sm:$0xff]  ;;  %v347_v56 = vpack.c.bf16 %v307_v50, %v306_v49  ;;  %v278_v59 = vld [vmem:[%s1251_s22 + $0x90] sm:$0xff] }
  0x1b   : > { %v309_v54 = vld [vmem:[%s1251_s22 + $0x188] sm:$0xff]  ;;  %v332_v57 = vpack.c.bf16 %v277_v52, %v276_v51  ;;  %v279_v60 = vld [vmem:[%s1251_s22 + $0x98] sm:$0xff]  ;;  %v310_v61 = vld [vmem:[%s1251_s22 + $0x190] sm:$0xff] }
  0x1c   : > { %v348_v58 = vpack.c.bf16 %v309_v54, %v308_v53  ;;  %v311_v62 = vld [vmem:[%s1251_s22 + $0x198] sm:$0xff]  ;;  %v280_v63 = vld [vmem:[%s1251_s22 + $0xa0] sm:$0xff]  ;;  %v281_v0 = vld [vmem:[%s1251_s22 + $0xa8] sm:$0xff]  ;;  %v333_v3 = vpack.c.bf16 %v279_v60, %v278_v59 }
  0x1d   : > { %1090 = vmatmul.mubr.msk.bf16.gmra.mxu0 %vm370_vm2, %v327_v31  ;;  %1122 = vmatmul.mubr.msk.bf16.gmra.mxu1 %vm370_vm2, %v343_v32  ;;  %v312_v1 = vld [vmem:[%s1251_s22 + $0x1a0] sm:$0xff]  ;;  %v313_v2 = vld [vmem:[%s1251_s22 + $0x1a8] sm:$0xff]  ;;  %v349_v4 = vpack.c.bf16 %v311_v62, %v310_v61  ;;  %v334_v5 = vpack.c.bf16 %v281_v0, %v280_v63  ;;  %v282_v7 = vld [vmem:[%s1251_s22 + $0xb0] sm:$0xff] }
  0x1e   : > { %1093 = vmatprep.mubr.msk.bf16.mxu0 %vm370_vm2, %v328_v33  ;;  %1125 = vmatprep.mubr.msk.bf16.mxu1 %vm370_vm2, %v344_v34  ;;  %v350_v6 = vpack.c.bf16 %v313_v2, %v312_v1  ;;  %v283_v8 = vld [vmem:[%s1251_s22 + $0xb8] sm:$0xff]  ;;  %v314_v9 = vld [vmem:[%s1251_s22 + $0x1b0] sm:$0xff]  ;;  %v284_v11 = vld [vmem:[%s1251_s22 + $0xc0] sm:$0xff] }
  0x1f   : > { %v315_v10 = vld [vmem:[%s1251_s22 + $0x1b8] sm:$0xff]  ;;  %v285_v12 = vld [vmem:[%s1251_s22 + $0xc8] sm:$0xff]  ;;  %v316_v13 = vld [vmem:[%s1251_s22 + $0x1c0] sm:$0xff]  ;;  %v335_v15 = vpack.c.bf16 %v283_v8, %v282_v7 }
  0x20   : > { %v317_v14 = vld [vmem:[%s1251_s22 + $0x1c8] sm:$0xff]  ;;  %v351_v16 = vpack.c.bf16 %v315_v10, %v314_v9  ;;  %v336_v17 = vpack.c.bf16 %v285_v12, %v284_v11  ;;  %v286_v19 = vld [vmem:[%s1251_s22 + $0xd0] sm:$0xff]  ;;  %v287_v20 = vld [vmem:[%s1251_s22 + $0xd8] sm:$0xff] }
  0x21   : > { %v352_v18 = vpack.c.bf16 %v317_v14, %v316_v13  ;;  %v318_v21 = vld [vmem:[%s1251_s22 + $0x1d0] sm:$0xff]  ;;  %v319_v22 = vld [vmem:[%s1251_s22 + $0x1d8] sm:$0xff]  ;;  %v288_v23 = vld [vmem:[%s1251_s22 + $0xe0] sm:$0xff]  ;;  %v337_v27 = vpack.c.bf16 %v287_v20, %v286_v19 }
  0x22   : > { %v289_v24 = vld [vmem:[%s1251_s22 + $0xe8] sm:$0xff]  ;;  %v320_v25 = vld [vmem:[%s1251_s22 + $0x1e0] sm:$0xff]  ;;  %v353_v28 = vpack.c.bf16 %v319_v22, %v318_v21  ;;  %v290_v31 = vld [vmem:[%s1251_s22 + $0xf0] sm:$0xff] }
  0x23   : > { %v321_v26 = vld [vmem:[%s1251_s22 + $0x1e8] sm:$0xff]  ;;  %v338_v29 = vpack.c.bf16 %v289_v24, %v288_v23  ;;  %v291_v32 = vld [vmem:[%s1251_s22 + $0xf8] sm:$0xff]  ;;  %v322_v33 = vld [vmem:[%s1251_s22 + $0x1f0] sm:$0xff] }
  0x24   : > { %v354_v30 = vpack.c.bf16 %v321_v26, %v320_v25  ;;  %v323_v34 = vld [vmem:[%s1251_s22 + $0x1f8] sm:$0xff]  ;;  %v339_v35 = vpack.c.bf16 %v291_v32, %v290_v31  ;;  %v1352_v37 = vld [vmem:[%s1564_s2] ss:$0 sm:$0xff] }
  0x25   : > { %1094 = vmatmul.mubr.msk.bf16.gmra.mxu0 %vm370_vm2, %v329_v43  ;;  %1126 = vmatmul.mubr.msk.bf16.gmra.mxu1 %vm370_vm2, %v345_v44  ;;  %v355_v36 = vpack.c.bf16 %v323_v34, %v322_v33 }
  0x26   : > { %1097 = vmatprep.mubr.msk.bf16.mxu0 %vm370_vm2, %v330_v45  ;;  %1129 = vmatprep.mubr.msk.bf16.mxu1 %vm370_vm2, %v346_v46 }
  0x2d   : > { %1098 = vmatmul.mubr.msk.bf16.gmra.mxu0 %vm370_vm2, %v331_v55  ;;  %1130 = vmatmul.mubr.msk.bf16.gmra.mxu1 %vm370_vm2, %v347_v56 }
  0x2e   : > { %1101 = vmatprep.mubr.msk.bf16.mxu0 %vm370_vm2, %v332_v57  ;;  %1133 = vmatprep.mubr.msk.bf16.mxu1 %vm370_vm2, %v348_v58 }
  0x35   : > { %1102 = vmatmul.mubr.msk.bf16.gmra.mxu0 %vm370_vm2, %v333_v3  ;;  %1134 = vmatmul.mubr.msk.bf16.gmra.mxu1 %vm370_vm2, %v349_v4 }
  0x36   : > { %1105 = vmatprep.mubr.msk.bf16.mxu0 %vm370_vm2, %v334_v5  ;;  %1137 = vmatprep.mubr.msk.bf16.mxu1 %vm370_vm2, %v350_v6 }
  0x3d   : > { %1106 = vmatmul.mubr.msk.bf16.gmra.mxu0 %vm370_vm2, %v335_v15  ;;  %1138 = vmatmul.mubr.msk.bf16.gmra.mxu1 %vm370_vm2, %v351_v16 }
  0x3e   : > { %1109 = vmatprep.mubr.msk.bf16.mxu0 %vm370_vm2, %v336_v17  ;;  %1141 = vmatprep.mubr.msk.bf16.mxu1 %vm370_vm2, %v352_v18 }
  0x45   : > { %1110 = vmatmul.mubr.msk.bf16.gmra.mxu0 %vm370_vm2, %v337_v27  ;;  %1142 = vmatmul.mubr.msk.bf16.gmra.mxu1 %vm370_vm2, %v353_v28 }
  0x46   : > { %1113 = vmatprep.mubr.msk.bf16.mxu0 %vm370_vm2, %v338_v29  ;;  %1145 = vmatprep.mubr.msk.bf16.mxu1 %vm370_vm2, %v354_v30 }
  0x4d   : > { %1114 = vmatmul.mubr.msk.bf16.gmra.mxu0 %vm370_vm2, %v339_v35  ;;  %1146 = vmatmul.mubr.msk.bf16.gmra.mxu1 %vm370_vm2, %v355_v36 }
  0xd5   : > { %v1087_v38 = vpop.f32.mrf.mxu0  ;;  %v1119_v40 = vpop.f32.mrf.mxu1 }
  0xd6   : > { %v517_v39 = vadd.f32 %v1087_v38, %v1352_v37  ;;  %v645_v41 = vadd.f32 %v1119_v40, %v1352_v37 }
  0xd7   : > { %v508_v42 = vpop.f32.mrf.mxu0  ;;  %v636_v45 = vpop.f32.mrf.mxu1 }
  0xd8   : > { %v765_v43 = vmax.f32 %v517_v39, 0.0  ;;  %v509_v44 = vadd.f32 %v1352_v37, %v508_v42  ;;  %v797_v46 = vmax.f32 %v645_v41, 0.0  ;;  %v637_v47 = vadd.f32 %v1352_v37, %v636_v45 }
  0xd9   : > { %v1088_v48 = vpop.f32.mrf.mxu0  ;;  %v1120_v51 = vpop.f32.mrf.mxu1 }
  0xda   : > { %830 = vst.msk [vmem:[%s1360_s27 + $0x10] sm:$0xff] %vm827_vm3, %v765_v43  ;;  %v763_v49 = vmax.f32 %v509_v44, 0.0  ;;  %v520_v50 = vadd.f32 %v1088_v48, %v1352_v37  ;;  %862 = vst.msk [vmem:[%s1360_s27 + $0x110] sm:$0xff] %vm827_vm3, %v797_v46  ;;  %v795_v52 = vmax.f32 %v637_v47, 0.0  ;;  %v648_v53 = vadd.f32 %v1120_v51, %v1352_v37 }
  0xdb   : > { %v511_v54 = vpop.f32.mrf.mxu0  ;;  %v639_v57 = vpop.f32.mrf.mxu1 }
  0xdc   : > { %828 = vst.msk [vmem:[%s1360_s27] sm:$0xff] %vm827_vm3, %v763_v49  ;;  %v766_v55 = vmax.f32 %v520_v50, 0.0  ;;  %v512_v56 = vadd.f32 %v1352_v37, %v511_v54  ;;  %860 = vst.msk [vmem:[%s1360_s27 + $0x100] sm:$0xff] %vm827_vm3, %v795_v52  ;;  %v798_v58 = vmax.f32 %v648_v53, 0.0  ;;  %v640_v59 = vadd.f32 %v1352_v37, %v639_v57 }
  0xdd   : > { %v1091_v60 = vpop.f32.mrf.mxu0  ;;  %v1123_v63 = vpop.f32.mrf.mxu1 }
  0xde   : > { %831 = vst.msk [vmem:[%s1360_s27 + $0x18] sm:$0xff] %vm827_vm3, %v766_v55  ;;  %v764_v61 = vmax.f32 %v512_v56, 0.0  ;;  %v533_v62 = vadd.f32 %v1091_v60, %v1352_v37  ;;  %863 = vst.msk [vmem:[%s1360_s27 + $0x118] sm:$0xff] %vm827_vm3, %v798_v58  ;;  %v796_v0 = vmax.f32 %v640_v59, 0.0  ;;  %v661_v1 = vadd.f32 %v1123_v63, %v1352_v37 }
  0xdf   : > { %v524_v2 = vpop.f32.mrf.mxu0  ;;  %v652_v5 = vpop.f32.mrf.mxu1 }
  0xe0   : > { %829 = vst.msk [vmem:[%s1360_s27 + $0x8] sm:$0xff] %vm827_vm3, %v764_v61  ;;  %v769_v3 = vmax.f32 %v533_v62, 0.0  ;;  %v525_v4 = vadd.f32 %v1352_v37, %v524_v2  ;;  %861 = vst.msk [vmem:[%s1360_s27 + $0x108] sm:$0xff] %vm827_vm3, %v796_v0  ;;  %v801_v6 = vmax.f32 %v661_v1, 0.0  ;;  %v653_v7 = vadd.f32 %v1352_v37, %v652_v5 }
  0xe1   : > { %v1092_v8 = vpop.f32.mrf.mxu0  ;;  %v1124_v11 = vpop.f32.mrf.mxu1 }
  0xe2   : > { %834 = vst.msk [vmem:[%s1360_s27 + $0x30] sm:$0xff] %vm827_vm3, %v769_v3  ;;  %v767_v9 = vmax.f32 %v525_v4, 0.0  ;;  %v536_v10 = vadd.f32 %v1092_v8, %v1352_v37  ;;  %866 = vst.msk [vmem:[%s1360_s27 + $0x130] sm:$0xff] %vm827_vm3, %v801_v6  ;;  %v799_v12 = vmax.f32 %v653_v7, 0.0  ;;  %v664_v13 = vadd.f32 %v1124_v11, %v1352_v37 }
  0xe3   : > { %v527_v14 = vpop.f32.mrf.mxu0  ;;  %v655_v17 = vpop.f32.mrf.mxu1 }
  0xe4   : > { %832 = vst.msk [vmem:[%s1360_s27 + $0x20] sm:$0xff] %vm827_vm3, %v767_v9  ;;  %v770_v15 = vmax.f32 %v536_v10, 0.0  ;;  %v528_v16 = vadd.f32 %v1352_v37, %v527_v14  ;;  %864 = vst.msk [vmem:[%s1360_s27 + $0x120] sm:$0xff] %vm827_vm3, %v799_v12  ;;  %v802_v18 = vmax.f32 %v664_v13, 0.0  ;;  %v656_v19 = vadd.f32 %v1352_v37, %v655_v17 }
  0xe5   : > { %v1095_v20 = vpop.f32.mrf.mxu0  ;;  %v1127_v23 = vpop.f32.mrf.mxu1 }
  0xe6   : > { %835 = vst.msk [vmem:[%s1360_s27 + $0x38] sm:$0xff] %vm827_vm3, %v770_v15  ;;  %v768_v21 = vmax.f32 %v528_v16, 0.0  ;;  %v549_v22 = vadd.f32 %v1095_v20, %v1352_v37  ;;  %867 = vst.msk [vmem:[%s1360_s27 + $0x138] sm:$0xff] %vm827_vm3, %v802_v18  ;;  %v800_v24 = vmax.f32 %v656_v19, 0.0  ;;  %v677_v25 = vadd.f32 %v1127_v23, %v1352_v37 }
  0xe7   : > { %v540_v26 = vpop.f32.mrf.mxu0  ;;  %v668_v29 = vpop.f32.mrf.mxu1 }
  0xe8   : > { %833 = vst.msk [vmem:[%s1360_s27 + $0x28] sm:$0xff] %vm827_vm3, %v768_v21  ;;  %v773_v27 = vmax.f32 %v549_v22, 0.0  ;;  %v541_v28 = vadd.f32 %v1352_v37, %v540_v26  ;;  %865 = vst.msk [vmem:[%s1360_s27 + $0x128] sm:$0xff] %vm827_vm3, %v800_v24  ;;  %v805_v30 = vmax.f32 %v677_v25, 0.0  ;;  %v669_v31 = vadd.f32 %v1352_v37, %v668_v29 }
  0xe9   : > { %v1096_v32 = vpop.f32.mrf.mxu0  ;;  %v1128_v35 = vpop.f32.mrf.mxu1 }
  0xea   : > { %838 = vst.msk [vmem:[%s1360_s27 + $0x50] sm:$0xff] %vm827_vm3, %v773_v27  ;;  %v771_v33 = vmax.f32 %v541_v28, 0.0  ;;  %v552_v34 = vadd.f32 %v1096_v32, %v1352_v37  ;;  %870 = vst.msk [vmem:[%s1360_s27 + $0x150] sm:$0xff] %vm827_vm3, %v805_v30  ;;  %v803_v36 = vmax.f32 %v669_v31, 0.0  ;;  %v680_v38 = vadd.f32 %v1128_v35, %v1352_v37 }
  0xeb   : > { %v543_v39 = vpop.f32.mrf.mxu0  ;;  %v671_v42 = vpop.f32.mrf.mxu1 }
  0xec   : > { %836 = vst.msk [vmem:[%s1360_s27 + $0x40] sm:$0xff] %vm827_vm3, %v771_v33  ;;  %v774_v40 = vmax.f32 %v552_v34, 0.0  ;;  %v544_v41 = vadd.f32 %v1352_v37, %v543_v39  ;;  %868 = vst.msk [vmem:[%s1360_s27 + $0x140] sm:$0xff] %vm827_vm3, %v803_v36  ;;  %v806_v43 = vmax.f32 %v680_v38, 0.0  ;;  %v672_v44 = vadd.f32 %v1352_v37, %v671_v42 }
  0xed   : > { %v1099_v45 = vpop.f32.mrf.mxu0  ;;  %v1131_v48 = vpop.f32.mrf.mxu1 }
  0xee   : > { %839 = vst.msk [vmem:[%s1360_s27 + $0x58] sm:$0xff] %vm827_vm3, %v774_v40  ;;  %v772_v46 = vmax.f32 %v544_v41, 0.0  ;;  %v565_v47 = vadd.f32 %v1099_v45, %v1352_v37  ;;  %871 = vst.msk [vmem:[%s1360_s27 + $0x158] sm:$0xff] %vm827_vm3, %v806_v43  ;;  %v804_v49 = vmax.f32 %v672_v44, 0.0  ;;  %v693_v50 = vadd.f32 %v1131_v48, %v1352_v37 }
  0xef   : > { %v556_v51 = vpop.f32.mrf.mxu0  ;;  %v684_v54 = vpop.f32.mrf.mxu1 }
  0xf0   : > { %837 = vst.msk [vmem:[%s1360_s27 + $0x48] sm:$0xff] %vm827_vm3, %v772_v46  ;;  %v777_v52 = vmax.f32 %v565_v47, 0.0  ;;  %v557_v53 = vadd.f32 %v1352_v37, %v556_v51  ;;  %869 = vst.msk [vmem:[%s1360_s27 + $0x148] sm:$0xff] %vm827_vm3, %v804_v49  ;;  %v809_v55 = vmax.f32 %v693_v50, 0.0  ;;  %v685_v56 = vadd.f32 %v1352_v37, %v684_v54 }
  0xf1   : > { %v1100_v57 = vpop.f32.mrf.mxu0  ;;  %v1132_v60 = vpop.f32.mrf.mxu1 }
  0xf2   : > { %842 = vst.msk [vmem:[%s1360_s27 + $0x70] sm:$0xff] %vm827_vm3, %v777_v52  ;;  %v775_v58 = vmax.f32 %v557_v53, 0.0  ;;  %v568_v59 = vadd.f32 %v1100_v57, %v1352_v37  ;;  %874 = vst.msk [vmem:[%s1360_s27 + $0x170] sm:$0xff] %vm827_vm3, %v809_v55  ;;  %v807_v61 = vmax.f32 %v685_v56, 0.0  ;;  %v696_v62 = vadd.f32 %v1132_v60, %v1352_v37 }
  0xf3   : > { %v559_v63 = vpop.f32.mrf.mxu0  ;;  %v687_v2 = vpop.f32.mrf.mxu1 }
  0xf4   : > { %840 = vst.msk [vmem:[%s1360_s27 + $0x60] sm:$0xff] %vm827_vm3, %v775_v58  ;;  %v778_v0 = vmax.f32 %v568_v59, 0.0  ;;  %v560_v1 = vadd.f32 %v1352_v37, %v559_v63  ;;  %872 = vst.msk [vmem:[%s1360_s27 + $0x160] sm:$0xff] %vm827_vm3, %v807_v61  ;;  %v810_v3 = vmax.f32 %v696_v62, 0.0  ;;  %v688_v4 = vadd.f32 %v1352_v37, %v687_v2 }
  0xf5   : > { %v1103_v5 = vpop.f32.mrf.mxu0  ;;  %v1135_v8 = vpop.f32.mrf.mxu1 }
  0xf6   : > { %843 = vst.msk [vmem:[%s1360_s27 + $0x78] sm:$0xff] %vm827_vm3, %v778_v0  ;;  %v776_v6 = vmax.f32 %v560_v1, 0.0  ;;  %v581_v7 = vadd.f32 %v1103_v5, %v1352_v37  ;;  %875 = vst.msk [vmem:[%s1360_s27 + $0x178] sm:$0xff] %vm827_vm3, %v810_v3  ;;  %v808_v9 = vmax.f32 %v688_v4, 0.0  ;;  %v709_v10 = vadd.f32 %v1135_v8, %v1352_v37 }
  0xf7   : > { %v572_v11 = vpop.f32.mrf.mxu0  ;;  %v700_v14 = vpop.f32.mrf.mxu1 }
  0xf8   : > { %841 = vst.msk [vmem:[%s1360_s27 + $0x68] sm:$0xff] %vm827_vm3, %v776_v6  ;;  %v781_v12 = vmax.f32 %v581_v7, 0.0  ;;  %v573_v13 = vadd.f32 %v1352_v37, %v572_v11  ;;  %873 = vst.msk [vmem:[%s1360_s27 + $0x168] sm:$0xff] %vm827_vm3, %v808_v9  ;;  %v813_v15 = vmax.f32 %v709_v10, 0.0  ;;  %v701_v16 = vadd.f32 %v1352_v37, %v700_v14 }
  0xf9   : > { %v1104_v17 = vpop.f32.mrf.mxu0  ;;  %v1136_v20 = vpop.f32.mrf.mxu1 }
  0xfa   : > { %846 = vst.msk [vmem:[%s1360_s27 + $0x90] sm:$0xff] %vm827_vm3, %v781_v12  ;;  %v779_v18 = vmax.f32 %v573_v13, 0.0  ;;  %v584_v19 = vadd.f32 %v1104_v17, %v1352_v37  ;;  %878 = vst.msk [vmem:[%s1360_s27 + $0x190] sm:$0xff] %vm827_vm3, %v813_v15  ;;  %v811_v21 = vmax.f32 %v701_v16, 0.0  ;;  %v712_v22 = vadd.f32 %v1136_v20, %v1352_v37 }
  0xfb   : > { %v575_v23 = vpop.f32.mrf.mxu0  ;;  %v703_v26 = vpop.f32.mrf.mxu1 }
  0xfc   : > { %844 = vst.msk [vmem:[%s1360_s27 + $0x80] sm:$0xff] %vm827_vm3, %v779_v18  ;;  %v782_v24 = vmax.f32 %v584_v19, 0.0  ;;  %v576_v25 = vadd.f32 %v1352_v37, %v575_v23  ;;  %876 = vst.msk [vmem:[%s1360_s27 + $0x180] sm:$0xff] %vm827_vm3, %v811_v21  ;;  %v814_v27 = vmax.f32 %v712_v22, 0.0  ;;  %v704_v28 = vadd.f32 %v1352_v37, %v703_v26 }
  0xfd   : > { %v1107_v29 = vpop.f32.mrf.mxu0  ;;  %v1139_v32 = vpop.f32.mrf.mxu1 }
  0xfe   : > { %847 = vst.msk [vmem:[%s1360_s27 + $0x98] sm:$0xff] %vm827_vm3, %v782_v24  ;;  %v780_v30 = vmax.f32 %v576_v25, 0.0  ;;  %v597_v31 = vadd.f32 %v1107_v29, %v1352_v37  ;;  %879 = vst.msk [vmem:[%s1360_s27 + $0x198] sm:$0xff] %vm827_vm3, %v814_v27  ;;  %v812_v33 = vmax.f32 %v704_v28, 0.0  ;;  %v725_v34 = vadd.f32 %v1139_v32, %v1352_v37 }
  0xff   : > { %v588_v35 = vpop.f32.mrf.mxu0  ;;  %v716_v39 = vpop.f32.mrf.mxu1 }
 0x100   : > { %845 = vst.msk [vmem:[%s1360_s27 + $0x88] sm:$0xff] %vm827_vm3, %v780_v30  ;;  %v785_v36 = vmax.f32 %v597_v31, 0.0  ;;  %v589_v38 = vadd.f32 %v1352_v37, %v588_v35  ;;  %877 = vst.msk [vmem:[%s1360_s27 + $0x188] sm:$0xff] %vm827_vm3, %v812_v33  ;;  %v817_v40 = vmax.f32 %v725_v34, 0.0  ;;  %v717_v41 = vadd.f32 %v1352_v37, %v716_v39 }
 0x101   : > { %v1108_v42 = vpop.f32.mrf.mxu0  ;;  %v1140_v45 = vpop.f32.mrf.mxu1 }
 0x102   : > { %850 = vst.msk [vmem:[%s1360_s27 + $0xb0] sm:$0xff] %vm827_vm3, %v785_v36  ;;  %v783_v43 = vmax.f32 %v589_v38, 0.0  ;;  %v600_v44 = vadd.f32 %v1108_v42, %v1352_v37  ;;  %882 = vst.msk [vmem:[%s1360_s27 + $0x1b0] sm:$0xff] %vm827_vm3, %v817_v40  ;;  %v815_v46 = vmax.f32 %v717_v41, 0.0  ;;  %v728_v47 = vadd.f32 %v1140_v45, %v1352_v37 }
 0x103   : > { %v591_v48 = vpop.f32.mrf.mxu0  ;;  %v719_v51 = vpop.f32.mrf.mxu1 }
 0x104   : > { %848 = vst.msk [vmem:[%s1360_s27 + $0xa0] sm:$0xff] %vm827_vm3, %v783_v43  ;;  %v786_v49 = vmax.f32 %v600_v44, 0.0  ;;  %v592_v50 = vadd.f32 %v1352_v37, %v591_v48  ;;  %880 = vst.msk [vmem:[%s1360_s27 + $0x1a0] sm:$0xff] %vm827_vm3, %v815_v46  ;;  %v818_v52 = vmax.f32 %v728_v47, 0.0  ;;  %v720_v53 = vadd.f32 %v1352_v37, %v719_v51 }
 0x105   : > { %v1111_v54 = vpop.f32.mrf.mxu0  ;;  %v1143_v57 = vpop.f32.mrf.mxu1 }
 0x106   : > { %851 = vst.msk [vmem:[%s1360_s27 + $0xb8] sm:$0xff] %vm827_vm3, %v786_v49  ;;  %v784_v55 = vmax.f32 %v592_v50, 0.0  ;;  %v613_v56 = vadd.f32 %v1111_v54, %v1352_v37  ;;  %883 = vst.msk [vmem:[%s1360_s27 + $0x1b8] sm:$0xff] %vm827_vm3, %v818_v52  ;;  %v816_v58 = vmax.f32 %v720_v53, 0.0  ;;  %v741_v59 = vadd.f32 %v1143_v57, %v1352_v37 }
 0x107   : > { %v604_v60 = vpop.f32.mrf.mxu0  ;;  %v732_v63 = vpop.f32.mrf.mxu1 }
 0x108   : > { %849 = vst.msk [vmem:[%s1360_s27 + $0xa8] sm:$0xff] %vm827_vm3, %v784_v55  ;;  %v789_v61 = vmax.f32 %v613_v56, 0.0  ;;  %v605_v62 = vadd.f32 %v1352_v37, %v604_v60  ;;  %881 = vst.msk [vmem:[%s1360_s27 + $0x1a8] sm:$0xff] %vm827_vm3, %v816_v58  ;;  %v821_v0 = vmax.f32 %v741_v59, 0.0  ;;  %v733_v1 = vadd.f32 %v1352_v37, %v732_v63 }
 0x109   : > { %v1112_v2 = vpop.f32.mrf.mxu0  ;;  %v1144_v5 = vpop.f32.mrf.mxu1 }
 0x10a   : > { %854 = vst.msk [vmem:[%s1360_s27 + $0xd0] sm:$0xff] %vm827_vm3, %v789_v61  ;;  %v787_v3 = vmax.f32 %v605_v62, 0.0  ;;  %v616_v4 = vadd.f32 %v1112_v2, %v1352_v37  ;;  %886 = vst.msk [vmem:[%s1360_s27 + $0x1d0] sm:$0xff] %vm827_vm3, %v821_v0  ;;  %v819_v6 = vmax.f32 %v733_v1, 0.0  ;;  %v744_v7 = vadd.f32 %v1144_v5, %v1352_v37 }
 0x10b   : > { %v607_v8 = vpop.f32.mrf.mxu0  ;;  %v735_v11 = vpop.f32.mrf.mxu1 }
 0x10c   : > { %852 = vst.msk [vmem:[%s1360_s27 + $0xc0] sm:$0xff] %vm827_vm3, %v787_v3  ;;  %v790_v9 = vmax.f32 %v616_v4, 0.0  ;;  %v608_v10 = vadd.f32 %v1352_v37, %v607_v8  ;;  %884 = vst.msk [vmem:[%s1360_s27 + $0x1c0] sm:$0xff] %vm827_vm3, %v819_v6  ;;  %v822_v12 = vmax.f32 %v744_v7, 0.0  ;;  %v736_v13 = vadd.f32 %v1352_v37, %v735_v11 }
 0x10d   : > { %v1115_v14 = vpop.f32.mrf.mxu0  ;;  %v1147_v17 = vpop.f32.mrf.mxu1 }
 0x10e   : > { %855 = vst.msk [vmem:[%s1360_s27 + $0xd8] sm:$0xff] %vm827_vm3, %v790_v9  ;;  %v788_v15 = vmax.f32 %v608_v10, 0.0  ;;  %v629_v16 = vadd.f32 %v1115_v14, %v1352_v37  ;;  %887 = vst.msk [vmem:[%s1360_s27 + $0x1d8] sm:$0xff] %vm827_vm3, %v822_v12  ;;  %v820_v18 = vmax.f32 %v736_v13, 0.0  ;;  %v757_v19 = vadd.f32 %v1147_v17, %v1352_v37 }
 0x10f   : > { %v620_v20 = vpop.f32.mrf.mxu0  ;;  %v748_v23 = vpop.f32.mrf.mxu1 }
 0x110   : > { %853 = vst.msk [vmem:[%s1360_s27 + $0xc8] sm:$0xff] %vm827_vm3, %v788_v15  ;;  %v793_v21 = vmax.f32 %v629_v16, 0.0  ;;  %v621_v22 = vadd.f32 %v1352_v37, %v620_v20  ;;  %885 = vst.msk [vmem:[%s1360_s27 + $0x1c8] sm:$0xff] %vm827_vm3, %v820_v18  ;;  %v825_v24 = vmax.f32 %v757_v19, 0.0  ;;  %v749_v25 = vadd.f32 %v1352_v37, %v748_v23 }
 0x111   : > { %v1116_v26 = vpop.f32.mrf.mxu0  ;;  %v1148_v29 = vpop.f32.mrf.mxu1 }
 0x112   : > { %858 = vst.msk [vmem:[%s1360_s27 + $0xf0] sm:$0xff] %vm827_vm3, %v793_v21  ;;  %v791_v27 = vmax.f32 %v621_v22, 0.0  ;;  %v632_v28 = vadd.f32 %v1116_v26, %v1352_v37  ;;  %890 = vst.msk [vmem:[%s1360_s27 + $0x1f0] sm:$0xff] %vm827_vm3, %v825_v24  ;;  %v823_v30 = vmax.f32 %v749_v25, 0.0  ;;  %v760_v31 = vadd.f32 %v1148_v29, %v1352_v37 }
 0x113   : > { %v623_v32 = vpop.f32.mrf.mxu0  ;;  %v751_v35 = vpop.f32.mrf.mxu1 }
 0x114   : > { %856 = vst.msk [vmem:[%s1360_s27 + $0xe0] sm:$0xff] %vm827_vm3, %v791_v27  ;;  %v794_v33 = vmax.f32 %v632_v28, 0.0  ;;  %v624_v34 = vadd.f32 %v1352_v37, %v623_v32  ;;  %888 = vst.msk [vmem:[%s1360_s27 + $0x1e0] sm:$0xff] %vm827_vm3, %v823_v30  ;;  %v826_v36 = vmax.f32 %v760_v31, 0.0  ;;  %v752_v38 = vadd.f32 %v1352_v37, %v751_v35 }
 0x116   : > { %859 = vst.msk [vmem:[%s1360_s27 + $0xf8] sm:$0xff] %vm827_vm3, %v794_v33  ;;  %v792_v39 = vmax.f32 %v624_v34, 0.0  ;;  %891 = vst.msk [vmem:[%s1360_s27 + $0x1f8] sm:$0xff] %vm827_vm3, %v826_v36  ;;  %v824_v40 = vmax.f32 %v752_v38, 0.0 }
 0x118   : > { %857 = vst.msk [vmem:[%s1360_s27 + $0xe8] sm:$0xff] %vm827_vm3, %v792_v39  ;;  %889 = vst.msk [vmem:[%s1360_s27 + $0x1e8] sm:$0xff] %vm827_vm3, %v824_v40 }
 0x119 PF: > { %s13_s14 = sadd.s32 1, %s1199_s14   ;;  %s1566_s12 = smov %s1195_s13 }
 0x11a   : > { %p10_p5 = scmp.ge.s32.totalorder %s13_s14, 4   ;;  %s1567_s13 = smov %s1569_s15 }
 0x11c   :  { %12 = sbr.rel (!%p10_p5) target bundleno = 2 (0x2), region = 68 }

// kernel: _lambda_.24
= control target key start
LH: loop header
LB: loop body
LE: loop exit
PB: predicated region body
PF: predicated region fallthrough
CT: control target
= control target key end

     0   :  { %vm289_vm0 = vcmask 261120   ;;  %s1403_s1 = inlined_call_operand.vmem [shape: bf16[288,32], index: 1, kind: input, shape index: {}]   ;;  %s1404_s0 = inlined_call_operand.vmem [shape: f32[216,288], index: 0, kind: input, shape index: {}]   ;;  %s1405_s2 = inlined_call_operand.vmem [shape: f32[1,32], index: 2, kind: input, shape index: {}]   ;;  %s1406_s3 = inlined_call_operand.vmem [shape: f32[216,32], index: 3, kind: output, shape index: {}]  }
   0x1   :  { %v875_v0 = vld [vmem:[%s1403_s1 + $0x78] sm:$0xff]   ;;  %v877_v2 = vld [vmem:[%s1403_s1 + $0x70] sm:$0xff]   ;;  %v879_v4 = vld [vmem:[%s1403_s1 + $0x68] sm:$0xff]  }
   0x2   :  { %v876_v1 = vld [vmem:[%s1403_s1 + $0x38] sm:$0xff]   ;;  %711 = vmatprep.subr.bf16.mxu0 %v875_v0  ;;  %859 = vmatprep.subr.bf16.mxu1 %v875_v0  ;;  %v878_v3 = vld [vmem:[%s1403_s1 + $0x30] sm:$0xff]   ;;  %v880_v5 = vld [vmem:[%s1403_s1 + $0x28] sm:$0xff]  }
   0x3   :  { %712 = vmatpush3.bf16.msra.mxu0 %v876_v1  ;;  %867 = vmatpush3.bf16.msra.mxu1 %v876_v1  ;;  %v881_v6 = vld [vmem:[%s1403_s1 + $0x60] sm:$0xff]   ;;  %v883_v8 = vld [vmem:[%s1403_s1 + $0x58] sm:$0xff]   ;;  %v885_v10 = vld [vmem:[%s1403_s1 + $0x50] sm:$0xff]  }
   0x4   :  { %713 = vmatprep.subr.bf16.mxu0 %v877_v2  ;;  %860 = vmatprep.subr.bf16.mxu1 %v877_v2  ;;  %v882_v7 = vld [vmem:[%s1403_s1 + $0x20] sm:$0xff]   ;;  %v884_v9 = vld [vmem:[%s1403_s1 + $0x18] sm:$0xff]   ;;  %v16_v11 = vld [vmem:[%s1404_s0 + $0x8] sm:$0xff] }
   0x5   :  { %v19_v12 = vld [vmem:[%s1404_s0 + $0x20] sm:$0xff]  ;;  %v82_v13 = vld [vmem:[%s1404_s0 + $0x218] sm:$0xff]  ;;  %v85_v15 = vld [vmem:[%s1404_s0 + $0x230] sm:$0xff] }
   0x6   :  { %v97_v14 = vpack.c.bf16 %v19_v12, %v16_v11  ;;  %v130_v16 = vpack.c.bf16 %v85_v15, %v82_v13  ;;  %v886_v17 = vld [vmem:[%s1403_s1 + $0x10] sm:$0xff]   ;;  %v887_v18 = vld [vmem:[%s1403_s1 + $0x48] sm:$0xff]   ;;  %v889_v20 = vld [vmem:[%s1403_s1 + $0x40] sm:$0xff]  }
   0x7   :  { %714 = vmatpush3.bf16.msra.mxu0 %v878_v3  ;;  %868 = vmatpush3.bf16.msra.mxu1 %v878_v3  ;;  %v888_v19 = vld [vmem:[%s1403_s1 + $0x8] sm:$0xff]   ;;  %v890_v21 = vld [vmem:[%s1403_s1] sm:$0xff]   ;;  %v18_v23 = vld [vmem:[%s1404_s0 + $0x18] sm:$0xff] }
   0x8   :  { %715 = vmatprep.subr.bf16.mxu0 %v879_v4  ;;  %861 = vmatprep.subr.bf16.mxu1 %v879_v4  ;;  %v15_v22 = vld [vmem:[%s1404_s0] sm:$0xff]  ;;  %v81_v24 = vld [vmem:[%s1404_s0 + $0x210] sm:$0xff]  ;;  %v84_v25 = vld [vmem:[%s1404_s0 + $0x228] sm:$0xff] }
   0x9   :  { %364 = vmatprep.mubr.bf16.mxu0 %v97_v14  ;;  %452 = vmatprep.mubr.bf16.mxu1 %v130_v16  ;;  %v22_v26 = vld [vmem:[%s1404_s0 + $0x38] sm:$0xff]  ;;  %v25_v27 = vld [vmem:[%s1404_s0 + $0x50] sm:$0xff]  ;;  %v88_v28 = vld [vmem:[%s1404_s0 + $0x248] sm:$0xff]  ;;  %v96_v31 = vpack.c.bf16 %v18_v23, %v15_v22  ;;  %v129_v32 = vpack.c.bf16 %v84_v25, %v81_v24 }
   0xa   :  { %v91_v29 = vld [vmem:[%s1404_s0 + $0x260] sm:$0xff]  ;;  %v891_v30 = vld [vmem:[%s1403_s1 + $0x88] sm:$0xff]   ;;  %v100_v33 = vpack.c.bf16 %v25_v27, %v22_v26  ;;  %v21_v36 = vld [vmem:[%s1404_s0 + $0x30] sm:$0xff] }
   0xb   :  { %716 = vmatpush3.bf16.msra.mxu0 %v880_v5  ;;  %869 = vmatpush3.bf16.msra.mxu1 %v880_v5  ;;  %v133_v34 = vpack.c.bf16 %v91_v29, %v88_v28  ;;  %v892_v35 = vld [vmem:[%s1403_s1 + $0x80] sm:$0xff]   ;;  %v24_v37 = vld [vmem:[%s1404_s0 + $0x48] sm:$0xff]  ;;  %v90_v39 = vld [vmem:[%s1404_s0 + $0x258] sm:$0xff] }
   0xc   :  { %717 = vmatprep.subr.bf16.mxu0 %v881_v6  ;;  %862 = vmatprep.subr.bf16.mxu1 %v881_v6  ;;  %v87_v38 = vld [vmem:[%s1404_s0 + $0x240] sm:$0xff]  ;;  %v28_v40 = vld [vmem:[%s1404_s0 + $0x68] sm:$0xff]  ;;  %v94_v42 = vld [vmem:[%s1404_s0 + $0x278] sm:$0xff]  ;;  %v99_v43 = vpack.c.bf16 %v24_v37, %v21_v36 }
   0xd   :  { %v31_v41 = vld [vmem:[%s1404_s0 + $0x80] sm:$0xff]  ;;  %v132_v44 = vpack.c.bf16 %v90_v39, %v87_v38  ;;  %v136_v46 = vpack.c.bf16 %v94_v42, %v94_v42  ;;  %v30_v48 = vld [vmem:[%s1404_s0 + $0x78] sm:$0xff]  ;;  %v93_v49 = vld [vmem:[%s1404_s0 + $0x270] sm:$0xff] }
   0xe   :  { %v103_v45 = vpack.c.bf16 %v31_v41, %v28_v40  ;;  %v27_v47 = vld [vmem:[%s1404_s0 + $0x60] sm:$0xff]  ;;  %v34_v50 = vld [vmem:[%s1404_s0 + $0x98] sm:$0xff]  ;;  %v37_v51 = vld [vmem:[%s1404_s0 + $0xb0] sm:$0xff]  ;;  %v135_v55 = vpack.c.bf16 %v93_v49, %v93_v49 }
   0xf   :  { %718 = vmatpush3.bf16.msra.mxu0 %v882_v7  ;;  %870 = vmatpush3.bf16.msra.mxu1 %v882_v7  ;;  %v17_v52 = vld [vmem:[%s1404_s0 + $0x10] sm:$0xff]  ;;  %v20_v53 = vld [vmem:[%s1404_s0 + $0x28] sm:$0xff]  ;;  %v102_v54 = vpack.c.bf16 %v30_v48, %v27_v47  ;;  %v106_v56 = vpack.c.bf16 %v37_v51, %v34_v50  ;;  %v23_v60 = vld [vmem:[%s1404_s0 + $0x40] sm:$0xff] }
  0x10   :  { %719 = vmatprep.subr.bf16.mxu0 %v883_v8  ;;  %863 = vmatprep.subr.bf16.mxu1 %v883_v8  ;;  %v98_v57 = vpack.c.bf16 %v20_v53, %v17_v52  ;;  %v33_v58 = vld [vmem:[%s1404_s0 + $0x90] sm:$0xff]  ;;  %v36_v59 = vld [vmem:[%s1404_s0 + $0xa8] sm:$0xff]  ;;  %v26_v61 = vld [vmem:[%s1404_s0 + $0x58] sm:$0xff] }
  0x11   :  { %v40_v62 = vld [vmem:[%s1404_s0 + $0xc8] sm:$0xff]  ;;  %v43_v63 = vld [vmem:[%s1404_s0 + $0xe0] sm:$0xff]  ;;  %v29_v0 = vld [vmem:[%s1404_s0 + $0x70] sm:$0xff]  ;;  %v105_v2 = vpack.c.bf16 %v36_v59, %v33_v58  ;;  %v101_v3 = vpack.c.bf16 %v26_v61, %v23_v60 }
  0x12   :  { %v32_v1 = vld [vmem:[%s1404_s0 + $0x88] sm:$0xff]  ;;  %v109_v4 = vpack.c.bf16 %v43_v63, %v40_v62  ;;  %v39_v6 = vld [vmem:[%s1404_s0 + $0xc0] sm:$0xff]  ;;  %v42_v7 = vld [vmem:[%s1404_s0 + $0xd8] sm:$0xff] }
  0x13   :  { %720 = vmatpush3.bf16.msra.mxu0 %v884_v9  ;;  %871 = vmatpush3.bf16.msra.mxu1 %v884_v9  ;;  %v104_v5 = vpack.c.bf16 %v32_v1, %v29_v0  ;;  %v35_v8 = vld [vmem:[%s1404_s0 + $0xa0] sm:$0xff]  ;;  %v38_v9 = vld [vmem:[%s1404_s0 + $0xb8] sm:$0xff]  ;;  %v49_v11 = vld [vmem:[%s1404_s0 + $0x110] sm:$0xff]  ;;  %v108_v14 = vpack.c.bf16 %v42_v7, %v39_v6 }
  0x14   :  { %721 = vmatprep.subr.bf16.mxu0 %v885_v10  ;;  %864 = vmatprep.subr.bf16.mxu1 %v885_v10  ;;  %v46_v10 = vld [vmem:[%s1404_s0 + $0xf8] sm:$0xff]  ;;  %v41_v12 = vld [vmem:[%s1404_s0 + $0xd0] sm:$0xff]  ;;  %v44_v13 = vld [vmem:[%s1404_s0 + $0xe8] sm:$0xff]  ;;  %v107_v15 = vpack.c.bf16 %v38_v9, %v35_v8 }
  0x15   :  { %v112_v16 = vpack.c.bf16 %v49_v11, %v46_v10  ;;  %v52_v22 = vld [vmem:[%s1404_s0 + $0x128] sm:$0xff]  ;;  %v55_v23 = vld [vmem:[%s1404_s0 + $0x140] sm:$0xff]  ;;  %v53_v24 = vld [vmem:[%s1404_s0 + $0x130] sm:$0xff] }
  0x16   :  { %v56_v25 = vld [vmem:[%s1404_s0 + $0x148] sm:$0xff]  ;;  %v115_v28 = vpack.c.bf16 %v55_v23, %v52_v22  ;;  %v65_v36 = vld [vmem:[%s1404_s0 + $0x190] sm:$0xff]  ;;  %v67_v47 = vld [vmem:[%s1404_s0 + $0x1a0] sm:$0xff] }
  0x17   :  { %722 = vmatpush3.bf16.msra.mxu0 %v886_v17  ;;  %872 = vmatpush3.bf16.msra.mxu1 %v886_v17  ;;  %v110_v17 = vpack.c.bf16 %v44_v13, %v41_v12  ;;  %v116_v29 = vpack.c.bf16 %v56_v25, %v53_v24  ;;  %v68_v37 = vld [vmem:[%s1404_s0 + $0x1a8] sm:$0xff]  ;;  %v57_v42 = vld [vmem:[%s1404_s0 + $0x150] sm:$0xff]  ;;  %v70_v58 = vld [vmem:[%s1404_s0 + $0x1b8] sm:$0xff] }
  0x18   :  { %723 = vmatprep.subr.bf16.mxu0 %v887_v18  ;;  %865 = vmatprep.subr.bf16.mxu1 %v887_v18  ;;  %v45_v18 = vld [vmem:[%s1404_s0 + $0xf0] sm:$0xff]  ;;  %v122_v41 = vpack.c.bf16 %v68_v37, %v65_v36  ;;  %v80_v49 = vld [vmem:[%s1404_s0 + $0x208] sm:$0xff]  ;;  %v79_v6 = vld [vmem:[%s1404_s0 + $0x200] sm:$0xff] }
  0x19   :  { %v77_v48 = vld [vmem:[%s1404_s0 + $0x1f0] sm:$0xff]  ;;  %v92_v61 = vld [vmem:[%s1404_s0 + $0x268] sm:$0xff]  ;;  %v75_v10 = vld [vmem:[%s1404_s0 + $0x1e0] sm:$0xff] }
  0x1a   :  { %v128_v53 = vpack.c.bf16 %v80_v49, %v77_v48  ;;  %v73_v59 = vld [vmem:[%s1404_s0 + $0x1d0] sm:$0xff]  ;;  %v78_v11 = vld [vmem:[%s1404_s0 + $0x1f8] sm:$0xff] }
  0x1b   :  { %724 = vmatpush3.bf16.msra.mxu0 %v888_v19  ;;  %873 = vmatpush3.bf16.msra.mxu1 %v888_v19  ;;  %v48_v19 = vld [vmem:[%s1404_s0 + $0x108] sm:$0xff]  ;;  %v89_v60 = vld [vmem:[%s1404_s0 + $0x250] sm:$0xff]  ;;  %v124_v0 = vpack.c.bf16 %v73_v59, %v70_v58  ;;  %v126_v12 = vpack.c.bf16 %v78_v11, %v75_v10 }
  0x1c   :  { %725 = vmatprep.subr.bf16.mxu0 %v889_v20  ;;  %866 = vmatprep.subr.bf16.mxu1 %v889_v20  ;;  %v47_v20 = vld [vmem:[%s1404_s0 + $0x100] sm:$0xff]  ;;  %v111_v26 = vpack.c.bf16 %v48_v19, %v45_v18  ;;  %v134_v1 = vpack.c.bf16 %v92_v61, %v89_v60 }
  0x1f   :  { %726 = vmatpush3.bf16.msra.mxu0 %v890_v21  ;;  %874 = vmatpush3.bf16.msra.mxu1 %v890_v21  ;;  %v50_v21 = vld [vmem:[%s1404_s0 + $0x118] sm:$0xff] }
  0x20   :  { %827 = vmatprep.subr.bf16.mxu1 %v891_v30  ;;  %v113_v27 = vpack.c.bf16 %v50_v21, %v47_v20 }
  0x22   :  { %365 = vmatmul.mubr.bf16.vlgmr.msra.gmra.mxu0 %v96_v31  ;;  %453 = vmatmul.mubr.bf16.vlgmr.msra.gmra.mxu1 %v129_v32  ;;  %v54_v31 = vld [vmem:[%s1404_s0 + $0x138] sm:$0xff]  ;;  %v59_v32 = vld [vmem:[%s1404_s0 + $0x160] sm:$0xff] }
  0x23   :  { %372 = vmatprep.mubr.bf16.mxu0 %v100_v33  ;;  %460 = vmatprep.mubr.bf16.mxu1 %v133_v34  ;;  %v62_v33 = vld [vmem:[%s1404_s0 + $0x178] sm:$0xff] }
  0x24   :  { %828 = vmatpush3.bf16.msra.mxu1 %v891_v30  ;;  %v51_v30 = vld [vmem:[%s1404_s0 + $0x120] sm:$0xff]  ;;  %v58_v34 = vld [vmem:[%s1404_s0 + $0x158] sm:$0xff]  ;;  %v119_v39 = vpack.c.bf16 %v62_v33, %v59_v32 }
  0x25   :  { %829 = vmatprep.subr.bf16.mxu1 %v892_v35  ;;  %v114_v38 = vpack.c.bf16 %v54_v31, %v51_v30 }
  0x28   :  { %830 = vmatpush3.bf16.msra.mxu1 %v892_v35  ;;  %v61_v35 = vld [vmem:[%s1404_s0 + $0x170] sm:$0xff] }
  0x29   :  { %v118_v40 = vpack.c.bf16 %v61_v35, %v58_v34 }
  0x2a   :  { %373 = vmatmul.mubr.bf16.gmra.mxu0 %v99_v43  ;;  %461 = vmatmul.mubr.bf16.gmra.mxu1 %v132_v44  ;;  %v60_v43 = vld [vmem:[%s1404_s0 + $0x168] sm:$0xff]  ;;  %v71_v44 = vld [vmem:[%s1404_s0 + $0x1c0] sm:$0xff] }
  0x2b   :  { %380 = vmatprep.mubr.bf16.mxu0 %v103_v45  ;;  %468 = vmatprep.mubr.bf16.mxu1 %v136_v46  ;;  %v74_v45 = vld [vmem:[%s1404_s0 + $0x1d8] sm:$0xff]  ;;  %v64_v46 = vld [vmem:[%s1404_s0 + $0x188] sm:$0xff]  ;;  %v117_v50 = vpack.c.bf16 %v60_v43, %v57_v42 }
  0x2c   :  { %v125_v51 = vpack.c.bf16 %v74_v45, %v71_v44  ;;  %v121_v52 = vpack.c.bf16 %v67_v47, %v64_v46 }
  0x32   :  { %381 = vmatmul.mubr.bf16.gmra.mxu0 %v102_v54  ;;  %469 = vmatmul.mubr.bf16.gmra.mxu1 %v135_v55  ;;  %v63_v54 = vld [vmem:[%s1404_s0 + $0x180] sm:$0xff]  ;;  %v66_v55 = vld [vmem:[%s1404_s0 + $0x198] sm:$0xff] }
  0x33   :  { %388 = vmatprep.mubr.bf16.mxu0 %v106_v56  ;;  %831 = vmatprep.mubr.msk.bf16.mxu1 %vm289_vm0, %v98_v57  ;;  %v83_v56 = vld [vmem:[%s1404_s0 + $0x220] sm:$0xff]  ;;  %v86_v57 = vld [vmem:[%s1404_s0 + $0x238] sm:$0xff]  ;;  %v120_v62 = vpack.c.bf16 %v66_v55, %v63_v54 }
  0x34   :  { %v131_v63 = vpack.c.bf16 %v86_v57, %v83_v56 }
  0x3a   :  { %389 = vmatmul.mubr.bf16.gmra.mxu0 %v105_v2  ;;  %832 = vmatmul.mubr.msk.bf16.vlgmr.msra.gmra.mxu1 %vm289_vm0, %v101_v3  ;;  %v69_v2 = vld [vmem:[%s1404_s0 + $0x1b0] sm:$0xff]  ;;  %v72_v3 = vld [vmem:[%s1404_s0 + $0x1c8] sm:$0xff] }
  0x3b   :  { %396 = vmatprep.mubr.bf16.mxu0 %v109_v4  ;;  %835 = vmatprep.mubr.msk.bf16.mxu1 %vm289_vm0, %v104_v5  ;;  %v95_v4 = vld [vmem:[%s1404_s0 + $0x280] sm:$0xff]  ;;  %v76_v5 = vld [vmem:[%s1404_s0 + $0x1e8] sm:$0xff]  ;;  %v123_v7 = vpack.c.bf16 %v72_v3, %v69_v2 }
  0x3c   :  { %v137_v8 = vpack.c.bf16 %v95_v4, %v95_v4  ;;  %v127_v9 = vpack.c.bf16 %v79_v6, %v76_v5 }
  0x42   :  { %397 = vmatmul.mubr.bf16.gmra.mxu0 %v108_v14  ;;  %836 = vmatmul.mubr.msk.bf16.gmra.mxu1 %vm289_vm0, %v107_v15 }
  0x43   :  { %404 = vmatprep.mubr.bf16.mxu0 %v112_v16  ;;  %839 = vmatprep.mubr.msk.bf16.mxu1 %vm289_vm0, %v110_v17 }
  0x4a   :  { %405 = vmatmul.mubr.bf16.gmra.mxu0 %v111_v26  ;;  %840 = vmatmul.mubr.msk.bf16.gmra.mxu1 %vm289_vm0, %v113_v27 }
  0x4b   :  { %412 = vmatprep.mubr.bf16.mxu0 %v115_v28  ;;  %843 = vmatprep.mubr.msk.bf16.mxu1 %vm289_vm0, %v116_v29 }
  0x52   :  { %413 = vmatmul.mubr.bf16.gmra.mxu0 %v114_v38  ;;  %844 = vmatmul.mubr.msk.bf16.gmra.mxu1 %vm289_vm0, %v119_v39  ;;  %v1247_v39 = vld [vmem:[%s1405_s2] ss:$0 sm:$0xff] }
  0x53   :  { %420 = vmatprep.mubr.bf16.mxu0 %v118_v40  ;;  %847 = vmatprep.mubr.msk.bf16.mxu1 %vm289_vm0, %v122_v41 }
  0x5a   :  { %421 = vmatmul.mubr.bf16.gmra.mxu0 %v117_v50  ;;  %848 = vmatmul.mubr.msk.bf16.gmra.mxu1 %vm289_vm0, %v125_v51 }
  0x5b   :  { %428 = vmatprep.mubr.bf16.mxu0 %v121_v52  ;;  %851 = vmatprep.mubr.msk.bf16.mxu1 %vm289_vm0, %v128_v53 }
  0x62   :  { %429 = vmatmul.mubr.bf16.gmra.mxu0 %v120_v62  ;;  %852 = vmatmul.mubr.msk.bf16.gmra.mxu1 %vm289_vm0, %v131_v63 }
  0x63   :  { %436 = vmatprep.mubr.bf16.mxu0 %v124_v0  ;;  %855 = vmatprep.mubr.msk.bf16.mxu1 %vm289_vm0, %v134_v1 }
  0x6a   :  { %437 = vmatmul.mubr.bf16.gmra.mxu0 %v123_v7  ;;  %856 = vmatmul.mubr.msk.bf16.gmra.mxu1 %vm289_vm0, %v137_v8 }
  0x6b   :  { %444 = vmatprep.mubr.bf16.mxu0 %v127_v9 }
  0x72   :  { %445 = vmatmul.mubr.bf16.gmra.mxu0 %v126_v12 }
  0xe2   :  { %v727_v13 = vpop.f32.mrf.mxu0  ;;  %v1224_v14 = vpop.f32.mrf.mxu1 }
  0xe4   :  { %v728_v15 = vpop.f32.mrf.mxu0  ;;  %v1226_v16 = vpop.f32.mrf.mxu1 }
  0xe5   :  { %v729_v36 = vadd.f32 %v728_v15, %v727_v13 }
  0xe6   :  { %v730_v17 = vpop.f32.mrf.mxu0  ;;  %v1228_v18 = vpop.f32.mrf.mxu1 }
  0xe7   :  { %v367_v46 = vadd.f32 %v729_v36, %v1247_v39 }
  0xe8   :  { %v731_v19 = vpop.f32.mrf.mxu0  ;;  %v1230_v20 = vpop.f32.mrf.mxu1 }
  0xe9   :  { %v732_v44 = vadd.f32 %v731_v19, %v730_v17 }
  0xea   :  { %v733_v21 = vpop.f32.mrf.mxu0  ;;  %v1232_v22 = vpop.f32.mrf.mxu1 }
  0xeb   :  { %v370_v58 = vadd.f32 %v732_v44, %v1247_v39 }
  0xec   :  { %v734_v23 = vpop.f32.mrf.mxu0  ;;  %v1234_v24 = vpop.f32.mrf.mxu1 }
  0xed   :  { %v735_v33 = vadd.f32 %v734_v23, %v733_v21 }
  0xee   :  { %v736_v25 = vpop.f32.mrf.mxu0  ;;  %v1236_v26 = vpop.f32.mrf.mxu1 }
  0xef   :  { %v375_v41 = vadd.f32 %v735_v33, %v1247_v39 }
  0xf0   :  { %v737_v27 = vpop.f32.mrf.mxu0  ;;  %v1238_v28 = vpop.f32.mrf.mxu1 }
  0xf1   :  { %v738_v40 = vadd.f32 %v737_v27, %v736_v25 }
  0xf2   :  { %v739_v29 = vpop.f32.mrf.mxu0  ;;  %v1240_v30 = vpop.f32.mrf.mxu1 }
  0xf3   :  { %v378_v52 = vadd.f32 %v738_v40, %v1247_v39 }
  0xf4   :  { %v740_v31 = vpop.f32.mrf.mxu0  ;;  %v1242_v32 = vpop.f32.mrf.mxu1 }
  0xf5   :  { %v741_v55 = vadd.f32 %v740_v31, %v739_v29 }
  0xf6   :  { %v742_v34 = vpop.f32.mrf.mxu0  ;;  %v808_v35 = vpop.f32.mrf.mxu1 }
  0xf7   :  { %v383_v6 = vadd.f32 %v741_v55, %v1247_v39 }
  0xf8   :  { %v743_v37 = vpop.f32.mrf.mxu0  ;;  %v809_v38 = vpop.f32.mrf.mxu1 }
  0xf9   :  { %v744_v3 = vadd.f32 %v743_v37, %v742_v34 }
  0xfa   :  { %v745_v42 = vpop.f32.mrf.mxu0  ;;  %v833_v43 = vpop.f32.mrf.mxu1 }
  0xfb   :  { %v519_v45 = vadd.f32 %v833_v43, %v375_v41  ;;  %v386_v21 = vadd.f32 %v744_v3, %v1247_v39 }
  0xfc   :  { %v746_v47 = vpop.f32.mrf.mxu0  ;;  %v510_v48 = vpop.f32.mrf.mxu1 }
  0xfd   :  { %v622_v49 = vmax.f32 %v519_v45, 0.0  ;;  %v747_v50 = vadd.f32 %v746_v47, %v745_v42  ;;  %v511_v51 = vadd.f32 %v510_v48, %v367_v46 }
  0xfe   :  { %v748_v53 = vpop.f32.mrf.mxu0  ;;  %v834_v54 = vpop.f32.mrf.mxu1 }
  0xff   :  { %649 = vst.msk [vmem:[%s1406_s3 + $0x10] sm:$0xff] %vm289_vm0, %v622_v49  ;;  %v620_v56 = vmax.f32 %v511_v51, 0.0  ;;  %v522_v57 = vadd.f32 %v834_v54, %v378_v52  ;;  %v391_v0 = vadd.f32 %v747_v50, %v1247_v39 }
 0x100   :  { %v749_v59 = vpop.f32.mrf.mxu0  ;;  %v513_v60 = vpop.f32.mrf.mxu1 }
 0x101   :  { %647 = vst.msk [vmem:[%s1406_s3] sm:$0xff] %vm289_vm0, %v620_v56  ;;  %v623_v61 = vmax.f32 %v522_v57, 0.0  ;;  %v750_v62 = vadd.f32 %v749_v59, %v748_v53  ;;  %v514_v63 = vadd.f32 %v513_v60, %v370_v58 }
 0x102   :  { %v751_v1 = vpop.f32.mrf.mxu0  ;;  %v837_v2 = vpop.f32.mrf.mxu1 }
 0x103   :  { %650 = vst.msk [vmem:[%s1406_s3 + $0x18] sm:$0xff] %vm289_vm0, %v623_v61  ;;  %v621_v4 = vmax.f32 %v514_v63, 0.0  ;;  %v535_v5 = vadd.f32 %v837_v2, %v391_v0  ;;  %v394_v11 = vadd.f32 %v750_v62, %v1247_v39 }
 0x104   :  { %v752_v7 = vpop.f32.mrf.mxu0  ;;  %v526_v8 = vpop.f32.mrf.mxu1 }
 0x105   :  { %648 = vst.msk [vmem:[%s1406_s3 + $0x8] sm:$0xff] %vm289_vm0, %v621_v4  ;;  %v626_v9 = vmax.f32 %v535_v5, 0.0  ;;  %v527_v10 = vadd.f32 %v526_v8, %v383_v6  ;;  %v753_v15 = vadd.f32 %v752_v7, %v751_v1 }
 0x106   :  { %v754_v12 = vpop.f32.mrf.mxu0  ;;  %v838_v13 = vpop.f32.mrf.mxu1 }
 0x107   :  { %653 = vst.msk [vmem:[%s1406_s3 + $0x30] sm:$0xff] %vm289_vm0, %v626_v9  ;;  %v624_v17 = vmax.f32 %v527_v10, 0.0  ;;  %v538_v19 = vadd.f32 %v838_v13, %v394_v11  ;;  %v399_v36 = vadd.f32 %v753_v15, %v1247_v39  ;;  %v795_v11 = vadd.f32 %v1226_v16, %v1224_v14 }
 0x108   :  { %v755_v23 = vpop.f32.mrf.mxu0  ;;  %v529_v25 = vpop.f32.mrf.mxu1 }
 0x109   :  { %651 = vst.msk [vmem:[%s1406_s3 + $0x20] sm:$0xff] %vm289_vm0, %v624_v17  ;;  %v627_v27 = vmax.f32 %v538_v19, 0.0  ;;  %v530_v29 = vadd.f32 %v529_v25, %v386_v21  ;;  %v756_v34 = vadd.f32 %v755_v23, %v754_v12  ;;  %v798_v23 = vadd.f32 %v1230_v20, %v1228_v18 }
 0x10a   :  { %v757_v31 = vpop.f32.mrf.mxu0  ;;  %v841_v33 = vpop.f32.mrf.mxu1  ;;  %v807_v20 = vadd.f32 %v1242_v32, %v1240_v30 }
 0x10b   :  { %654 = vst.msk [vmem:[%s1406_s3 + $0x38] sm:$0xff] %vm289_vm0, %v627_v27  ;;  %v625_v35 = vmax.f32 %v530_v29, 0.0  ;;  %v402_v46 = vadd.f32 %v756_v34, %v1247_v39  ;;  %v455_v29 = vadd.f32 %v795_v11, %v1247_v39  ;;  %v458_v18 = vadd.f32 %v798_v23, %v1247_v39 }
 0x10c   :  { %v758_v37 = vpop.f32.mrf.mxu0  ;;  %v542_v38 = vpop.f32.mrf.mxu1 }
 0x10d   :  { %652 = vst.msk [vmem:[%s1406_s3 + $0x28] sm:$0xff] %vm289_vm0, %v625_v35  ;;  %v759_v40 = vadd.f32 %v758_v37, %v757_v31  ;;  %v543_v41 = vadd.f32 %v542_v38, %v399_v36 }
 0x10e   :  { %v760_v42 = vpop.f32.mrf.mxu0  ;;  %v842_v43 = vpop.f32.mrf.mxu1 }
 0x10f   :  { %v407_v44 = vadd.f32 %v759_v40, %v1247_v39  ;;  %v628_v45 = vmax.f32 %v543_v41, 0.0 }
 0x110   :  { %v761_v47 = vpop.f32.mrf.mxu0  ;;  %v545_v48 = vpop.f32.mrf.mxu1 }
 0x111   :  { %v551_v49 = vadd.f32 %v841_v33, %v407_v44  ;;  %655 = vst.msk [vmem:[%s1406_s3 + $0x40] sm:$0xff] %vm289_vm0, %v628_v45  ;;  %v762_v50 = vadd.f32 %v761_v47, %v760_v42  ;;  %v546_v51 = vadd.f32 %v545_v48, %v402_v46 }
 0x112   :  { %v763_v52 = vpop.f32.mrf.mxu0  ;;  %v845_v53 = vpop.f32.mrf.mxu1 }
 0x113   :  { %v630_v54 = vmax.f32 %v551_v49, 0.0  ;;  %v410_v55 = vadd.f32 %v762_v50, %v1247_v39  ;;  %v629_v56 = vmax.f32 %v546_v51, 0.0  ;;  %v471_v50 = vadd.f32 %v807_v20, %v1247_v39 }
 0x114   :  { %v764_v57 = vpop.f32.mrf.mxu0  ;;  %v558_v58 = vpop.f32.mrf.mxu1 }
 0x115   :  { %657 = vst.msk [vmem:[%s1406_s3 + $0x50] sm:$0xff] %vm289_vm0, %v630_v54  ;;  %v554_v59 = vadd.f32 %v842_v43, %v410_v55  ;;  %656 = vst.msk [vmem:[%s1406_s3 + $0x48] sm:$0xff] %vm289_vm0, %v629_v56  ;;  %v765_v60 = vadd.f32 %v764_v57, %v763_v52  ;;  %v801_v43 = vadd.f32 %v1234_v24, %v1232_v22 }
 0x116   :  { %v766_v61 = vpop.f32.mrf.mxu0  ;;  %v846_v62 = vpop.f32.mrf.mxu1  ;;  %v804_v54 = vadd.f32 %v1238_v28, %v1236_v26 }
 0x117   :  { %v631_v63 = vmax.f32 %v554_v59, 0.0  ;;  %v415_v0 = vadd.f32 %v765_v60, %v1247_v39 }
 0x118   :  { %v767_v1 = vpop.f32.mrf.mxu0  ;;  %v561_v2 = vpop.f32.mrf.mxu1 }
 0x119   :  { %658 = vst.msk [vmem:[%s1406_s3 + $0x58] sm:$0xff] %vm289_vm0, %v631_v63  ;;  %v559_v3 = vadd.f32 %v558_v58, %v415_v0  ;;  %v768_v4 = vadd.f32 %v767_v1, %v766_v61 }
 0x11a   :  { %v769_v5 = vpop.f32.mrf.mxu0  ;;  %v1310_v6 = vpop.f32.mrf.mxu1 }
 0x11b   :  { %v632_v7 = vmax.f32 %v559_v3, 0.0  ;;  %v418_v8 = vadd.f32 %v768_v4, %v1247_v39  ;;  %v466_v3 = vadd.f32 %v804_v54, %v1247_v39 }
 0x11c   :  { %v770_v9 = vpop.f32.mrf.mxu0  ;;  %v574_v10 = vpop.f32.mrf.mxu1 }
 0x11d   :  { %659 = vst.msk [vmem:[%s1406_s3 + $0x60] sm:$0xff] %vm289_vm0, %v632_v7  ;;  %v562_v12 = vadd.f32 %v561_v2, %v418_v8  ;;  %v771_v13 = vadd.f32 %v770_v9, %v769_v5 }
 0x11e   :  { %v772_v15 = vpop.f32.mrf.mxu0  ;;  %v1319_v17 = vpop.f32.mrf.mxu1 }
 0x11f   :  { %v633_v19 = vmax.f32 %v562_v12, 0.0  ;;  %v423_v21 = vadd.f32 %v771_v13, %v1247_v39 }
 0x120   :  { %v773_v25 = vpop.f32.mrf.mxu0  ;;  %v577_v27 = vpop.f32.mrf.mxu1 }
 0x121   :  { %660 = vst.msk [vmem:[%s1406_s3 + $0x68] sm:$0xff] %vm289_vm0, %v633_v19  ;;  %v567_v14 = vadd.f32 %v845_v53, %v423_v21  ;;  %v774_v16 = vadd.f32 %v773_v25, %v772_v15  ;;  %v463_v53 = vadd.f32 %v801_v43, %v1247_v39 }
 0x122   :  { %v775_v31 = vpop.f32.mrf.mxu0  ;;  %v853_v33 = vpop.f32.mrf.mxu1 }
 0x123   :  { %v634_v34 = vmax.f32 %v567_v14, 0.0  ;;  %v426_v35 = vadd.f32 %v774_v16, %v1247_v39  ;;  %v599_v36 = vadd.f32 %v853_v33, %v455_v29 }
 0x124   :  { %v776_v37 = vpop.f32.mrf.mxu0  ;;  %v1330_v38 = vpop.f32.mrf.mxu1 }
 0x125   :  { %661 = vst.msk [vmem:[%s1406_s3 + $0x70] sm:$0xff] %vm289_vm0, %v634_v34  ;;  %v570_v40 = vadd.f32 %v846_v62, %v426_v35  ;;  %v642_v41 = vmax.f32 %v599_v36, 0.0  ;;  %v777_v42 = vadd.f32 %v776_v37, %v775_v31 }
 0x126   :  { %v778_v44 = vpop.f32.mrf.mxu0  ;;  %v854_v45 = vpop.f32.mrf.mxu1 }
 0x127   :  { %v635_v46 = vmax.f32 %v570_v40, 0.0  ;;  %669 = vst.msk [vmem:[%s1406_s3 + $0xb0] sm:$0xff] %vm289_vm0, %v642_v41  ;;  %v431_v30 = vadd.f32 %v777_v42, %v1247_v39  ;;  %v602_v32 = vadd.f32 %v854_v45, %v458_v18 }
 0x128   :  { %v779_v47 = vpop.f32.mrf.mxu0  ;;  %v593_v48 = vpop.f32.mrf.mxu1 }
 0x129   :  { %662 = vst.msk [vmem:[%s1406_s3 + $0x78] sm:$0xff] %vm289_vm0, %v635_v46  ;;  %v575_v49 = vadd.f32 %v574_v10, %v431_v30  ;;  %v643_v22 = vmax.f32 %v602_v32, 0.0  ;;  %v780_v24 = vadd.f32 %v779_v47, %v778_v44 }
 0x12a   :  { %v781_v51 = vpop.f32.mrf.mxu0  ;;  %v857_v52 = vpop.f32.mrf.mxu1 }
 0x12b   :  { %v636_v55 = vmax.f32 %v575_v49, 0.0  ;;  %670 = vst.msk [vmem:[%s1406_s3 + $0xb8] sm:$0xff] %vm289_vm0, %v643_v22  ;;  %v434_v56 = vadd.f32 %v780_v24, %v1247_v39  ;;  %v615_v57 = vadd.f32 %v857_v52, %v471_v50 }
 0x12c   :  { %v782_v58 = vpop.f32.mrf.mxu0  ;;  %v606_v59 = vpop.f32.mrf.mxu1 }
 0x12d   :  { %663 = vst.msk [vmem:[%s1406_s3 + $0x80] sm:$0xff] %vm289_vm0, %v636_v55  ;;  %v578_v60 = vadd.f32 %v577_v27, %v434_v56  ;;  %v646_v61 = vmax.f32 %v615_v57, 0.0  ;;  %v783_v62 = vadd.f32 %v782_v58, %v781_v51  ;;  %v607_v26 = vadd.f32 %v606_v59, %v463_v53 }
 0x12e   :  { %v784_v28 = vpop.f32.mrf.mxu0  ;;  %v858_v63 = vpop.f32.mrf.mxu1 }
 0x12f   :  { %v637_v0 = vmax.f32 %v578_v60, 0.0  ;;  %673 = vst.msk [vmem:[%s1406_s3 + $0xd0] sm:$0xff] %vm289_vm0, %v646_v61  ;;  %v439_v1 = vadd.f32 %v783_v62, %v1247_v39  ;;  %v644_v2 = vmax.f32 %v607_v26, 0.0 }
 0x130   :  { %v785_v4 = vpop.f32.mrf.mxu0  ;;  %v609_v5 = vpop.f32.mrf.mxu1 }
 0x131   :  { %664 = vst.msk [vmem:[%s1406_s3 + $0x88] sm:$0xff] %vm289_vm0, %v637_v0  ;;  %v583_v7 = vadd.f32 %v1310_v6, %v439_v1  ;;  %671 = vst.msk [vmem:[%s1406_s3 + $0xc0] sm:$0xff] %vm289_vm0, %v644_v2  ;;  %v786_v8 = vadd.f32 %v785_v4, %v784_v28  ;;  %v610_v9 = vadd.f32 %v609_v5, %v466_v3 }
 0x132   :  { %v787_v10 = vpop.f32.mrf.mxu0 }
 0x133   :  { %v638_v11 = vmax.f32 %v583_v7, 0.0  ;;  %v442_v12 = vadd.f32 %v786_v8, %v1247_v39  ;;  %v645_v13 = vmax.f32 %v610_v9, 0.0 }
 0x134   :  { %v788_v15 = vpop.f32.mrf.mxu0 }
 0x135   :  { %665 = vst.msk [vmem:[%s1406_s3 + $0x90] sm:$0xff] %vm289_vm0, %v638_v11  ;;  %v586_v6 = vadd.f32 %v1319_v17, %v442_v12  ;;  %672 = vst.msk [vmem:[%s1406_s3 + $0xc8] sm:$0xff] %vm289_vm0, %v645_v13  ;;  %v789_v19 = vadd.f32 %v788_v15, %v787_v10 }
 0x136   :  { %v790_v21 = vpop.f32.mrf.mxu0 }
 0x137   :  { %v639_v23 = vmax.f32 %v586_v6, 0.0  ;;  %v447_v25 = vadd.f32 %v789_v19, %v1247_v39 }
 0x138   :  { %v791_v27 = vpop.f32.mrf.mxu0 }
 0x139   :  { %666 = vst.msk [vmem:[%s1406_s3 + $0x98] sm:$0xff] %vm289_vm0, %v639_v23  ;;  %v591_v14 = vadd.f32 %v1330_v38, %v447_v25  ;;  %v792_v16 = vadd.f32 %v791_v27, %v790_v21 }
 0x13b   :  { %v640_v17 = vmax.f32 %v591_v14, 0.0  ;;  %v450_v29 = vadd.f32 %v792_v16, %v1247_v39 }
 0x13d   :  { %667 = vst.msk [vmem:[%s1406_s3 + $0xa0] sm:$0xff] %vm289_vm0, %v640_v17  ;;  %v594_v31 = vadd.f32 %v593_v48, %v450_v29 }
 0x13f   :  { %v641_v33 = vmax.f32 %v594_v31, 0.0 }
 0x141   :  { %668 = vst.msk [vmem:[%s1406_s3 + $0xa8] sm:$0xff] %vm289_vm0, %v641_v33 }

// kernel: _lambda_.25
= control target key start
LH: loop header
LB: loop body
LE: loop exit
PB: predicated region body
PF: predicated region fallthrough
CT: control target
= control target key end

     0   :  { %8 = vsyncpa [#allocation3], 0  ;;  %s466_s12 = smov [#allocation2]   ;;  %s630_s0 = inlined_call_operand.vmem [shape: f32[48,288], index: 0, kind: input, shape index: {}]   ;;  %s631_s1 = inlined_call_operand.vmem [shape: bf16[288,32], index: 1, kind: input, shape index: {}]   ;;  %s632_s2 = inlined_call_operand.hbm [shape: f32[1,32], index: 2, kind: input, shape index: {}]   ;;  %s633_s3 = inlined_call_operand.vmem [shape: f32[48,32], index: 3, kind: output, shape index: {}]  }
   0x1   :  { %s19_s13 = sshll.u32 %s466_s12, 4  ;;  %s20_s13 = int_to_ptr.vmem [resolvable:$true] %s19_s13 }
   0x2   :  { %s452_s14 = scalar_lea.vmem %s20_s13, 16  ;;  %s456_s15 = scalar_lea.vmem %s20_s13, 32 }
   0x3   :  { %p453_p0 = scmp.ne.s32.totalorder %s20_s13, %s452_s14  ;;  %p457_p1 = scmp.lt.s32.totalorder %s20_s13, %s20_s13 }
   0x4   :  { %p458_p2 = scmp.lt.s32.totalorder %s456_s15, %s452_s14 }
   0x6   :  { %p459_p3 = por %p458_p2, %p457_p1 }
   0x8   :  { %p460_p4 = pnand %p459_p3, %p453_p0 }
   0xa   :  { %463 = shalt.err (!%p460_p4)
}
   0xb   :  { %22 = dma.hbm_to_vmem [thread:$0]  %s632_s2, 16, %s20_s13, [#allocation3]  }
   0xc   :  { %464 = dma.done.wait [#allocation3], 16  }
   0xd   :  { %465 = vsyncadd [#allocation3], 4294967280  ;;  %v467_v0 = vmov 0.0   ;;  %vm468_vm0 = vmmov 0   ;;  %v426_v1 = vld [vmem:[%s631_s1 + $0x78] sm:$0xff]   ;;  %v428_v3 = vld [vmem:[%s631_s1 + $0x70] sm:$0xff]  }
   0xe   :  { %407 = vmatprep.subr.bf16.mxu1 %v467_v0  ;;  %411 = vmatprep.mubr.msk.bf16.mxu1 %vm468_vm0, %v467_v0  ;;  %v427_v2 = vld [vmem:[%s631_s1 + $0x38] sm:$0xff]   ;;  %v429_v4 = vld [vmem:[%s631_s1 + $0x30] sm:$0xff]   ;;  %v430_v5 = vld [vmem:[%s631_s1 + $0x68] sm:$0xff]   ;;  %vm205_vm1 = vcmask 261120  }
   0xf   :  { %368 = vmatprep.subr.bf16.mxu0 %v426_v1  ;;  %v431_v6 = vld [vmem:[%s631_s1 + $0x28] sm:$0xff]   ;;  %v432_v7 = vld [vmem:[%s631_s1 + $0x60] sm:$0xff]   ;;  %v434_v9 = vld [vmem:[%s631_s1 + $0x58] sm:$0xff]  }
  0x10   :  { %369 = vmatpush3.bf16.msra.mxu0 %v427_v2  ;;  %v433_v8 = vld [vmem:[%s631_s1 + $0x20] sm:$0xff]   ;;  %v440_v10 = vld [vmem:[%s631_s1 + $0x88] sm:$0xff]   ;;  %v435_v11 = vld [vmem:[%s631_s1 + $0x18] sm:$0xff]  }
  0x11   :  { %370 = vmatprep.subr.bf16.mxu0 %v428_v3  ;;  %v436_v12 = vld [vmem:[%s631_s1 + $0x50] sm:$0xff]   ;;  %408 = vmatpush3.bf16.msra.mxu1 %v440_v10  ;;  %v443_v13 = vld [vmem:[%s631_s1 + $0x80] sm:$0xff]   ;;  %v28_v14 = vld [vmem:[%s630_s0 + $0x8] sm:$0xff] }
  0x12   :  { %409 = vmatprep.subr.bf16.mxu1 %v467_v0  ;;  %v31_v15 = vld [vmem:[%s630_s0 + $0x20] sm:$0xff]  ;;  %v437_v16 = vld [vmem:[%s631_s1 + $0x10] sm:$0xff]   ;;  %v32_v19 = vld [vmem:[%s630_s0 + $0x28] sm:$0xff] }
  0x13   :  { %v46_v17 = vpack.c.bf16 %v31_v15, %v28_v14  ;;  %v29_v18 = vld [vmem:[%s630_s0 + $0x10] sm:$0xff]  ;;  %v438_v20 = vld [vmem:[%s631_s1 + $0x48] sm:$0xff]   ;;  %v441_v23 = vld [vmem:[%s631_s1 + $0x40] sm:$0xff]  }
  0x14   :  { %371 = vmatpush3.bf16.msra.mxu0 %v429_v4  ;;  %v47_v21 = vpack.c.bf16 %v32_v19, %v29_v18  ;;  %v439_v22 = vld [vmem:[%s631_s1 + $0x8] sm:$0xff]   ;;  %v35_v24 = vld [vmem:[%s630_s0 + $0x40] sm:$0xff]  ;;  %v38_v25 = vld [vmem:[%s630_s0 + $0x58] sm:$0xff] }
  0x15   :  { %372 = vmatprep.subr.bf16.mxu0 %v430_v5  ;;  %410 = vmatpush3.bf16.msra.mxu1 %v443_v13  ;;  %v442_v26 = vld [vmem:[%s631_s1] sm:$0xff]   ;;  %v30_v28 = vld [vmem:[%s630_s0 + $0x18] sm:$0xff]  ;;  %v50_v29 = vpack.c.bf16 %v38_v25, %v35_v24  ;;  %v37_v31 = vld [vmem:[%s630_s0 + $0x50] sm:$0xff] }
  0x16   :  { %247 = vmatprep.mubr.bf16.mxu0 %v46_v17  ;;  %v27_v27 = vld [vmem:[%s630_s0] sm:$0xff]  ;;  %v34_v30 = vld [vmem:[%s630_s0 + $0x38] sm:$0xff]  ;;  %v41_v34 = vld [vmem:[%s630_s0 + $0x70] sm:$0xff] }
  0x17   :  { %v45_v32 = vpack.c.bf16 %v30_v28, %v27_v27  ;;  %v49_v33 = vpack.c.bf16 %v37_v31, %v34_v30  ;;  %v44_v35 = vld [vmem:[%s630_s0 + $0x88] sm:$0xff]  ;;  %v33_v36 = vld [vmem:[%s630_s0 + $0x30] sm:$0xff]  ;;  %v43_v40 = vld [vmem:[%s630_s0 + $0x80] sm:$0xff] }
  0x18   :  { %373 = vmatpush3.bf16.msra.mxu0 %v431_v6  ;;  %412 = vmatmul.mubr.msk.bf16.vlgmr.msra.gmra.mxu1 %vm205_vm1, %v47_v21  ;;  %v36_v37 = vld [vmem:[%s630_s0 + $0x48] sm:$0xff]  ;;  %v53_v38 = vpack.c.bf16 %v44_v35, %v41_v34  ;;  %v39_v43 = vld [vmem:[%s630_s0 + $0x60] sm:$0xff]  ;;  %v42_v44 = vld [vmem:[%s630_s0 + $0x78] sm:$0xff] }
  0x19   :  { %374 = vmatprep.subr.bf16.mxu0 %v432_v7  ;;  %415 = vmatprep.mubr.msk.bf16.mxu1 %vm468_vm0, %v467_v0  ;;  %v40_v39 = vld [vmem:[%s630_s0 + $0x68] sm:$0xff]  ;;  %v48_v41 = vpack.c.bf16 %v36_v37, %v33_v36  ;;  %v51_v45 = vpack.c.bf16 %v42_v44, %v39_v43  ;;  %v346_v54 = vld [vmem:[#allocation2] ss:$0 sm:$0xff] }
  0x1a   :  { %v52_v42 = vpack.c.bf16 %v43_v40, %v40_v39 }
  0x1c   :  { %375 = vmatpush3.bf16.msra.mxu0 %v433_v8 }
  0x1d   :  { %376 = vmatprep.subr.bf16.mxu0 %v434_v9 }
  0x20   :  { %377 = vmatpush3.bf16.msra.mxu0 %v435_v11  ;;  %416 = vmatmul.mubr.msk.bf16.gmra.mxu1 %vm205_vm1, %v50_v29 }
  0x21   :  { %378 = vmatprep.subr.bf16.mxu0 %v436_v12  ;;  %419 = vmatprep.mubr.msk.bf16.mxu1 %vm468_vm0, %v467_v0 }
  0x24   :  { %379 = vmatpush3.bf16.msra.mxu0 %v437_v16 }
  0x25   :  { %380 = vmatprep.subr.bf16.mxu0 %v438_v20 }
  0x28   :  { %381 = vmatpush3.bf16.msra.mxu0 %v439_v22  ;;  %420 = vmatmul.mubr.msk.bf16.gmra.mxu1 %vm205_vm1, %v53_v38 }
  0x29   :  { %382 = vmatprep.subr.bf16.mxu0 %v441_v23 }
  0x2c   :  { %383 = vmatpush3.bf16.msra.mxu0 %v442_v26 }
  0x2f   :  { %248 = vmatmul.mubr.bf16.vlgmr.msra.gmra.mxu0 %v45_v32 }
  0x30   :  { %255 = vmatprep.mubr.bf16.mxu0 %v49_v33 }
  0x37   :  { %256 = vmatmul.mubr.bf16.gmra.mxu0 %v48_v41 }
  0x38   :  { %263 = vmatprep.mubr.bf16.mxu0 %v52_v42 }
  0x3f   :  { %264 = vmatmul.mubr.bf16.gmra.mxu0 %v51_v45 }
  0xd8   :  { %v306_v46 = vpop.f32.mrf.mxu1 }
  0xda   :  { %v413_v47 = vpop.f32.mrf.mxu1 }
  0xdc   :  { %v309_v48 = vpop.f32.mrf.mxu1 }
  0xde   :  { %v414_v49 = vpop.f32.mrf.mxu1 }
  0xe0   :  { %v314_v50 = vpop.f32.mrf.mxu1 }
  0xe2   :  { %v417_v51 = vpop.f32.mrf.mxu1 }
  0xe4   :  { %v317_v53 = vpop.f32.mrf.mxu1 }
  0xe6   :  { %v418_v57 = vpop.f32.mrf.mxu1 }
  0xe8   :  { %v322_v60 = vpop.f32.mrf.mxu1 }
  0xea   :  { %v421_v0 = vpop.f32.mrf.mxu1 }
  0xec   :  { %v325_v4 = vpop.f32.mrf.mxu1 }
  0xee   :  { %v422_v8 = vpop.f32.mrf.mxu1 }
  0xef   :  { %v384_v52 = vpop.f32.mrf.mxu0 }
  0xf1   :  { %v385_v55 = vpop.f32.mrf.mxu0 }
  0xf2   :  { %v386_v56 = vadd.f32 %v385_v55, %v384_v52 }
  0xf3   :  { %v387_v58 = vpop.f32.mrf.mxu0 }
  0xf4   :  { %v250_v59 = vadd.f32 %v386_v56, %v346_v54 }
  0xf5   :  { %v388_v61 = vpop.f32.mrf.mxu0 }
  0xf6   :  { %v307_v62 = vadd.f32 %v306_v46, %v250_v59  ;;  %v389_v63 = vadd.f32 %v388_v61, %v387_v58 }
  0xf7   :  { %v390_v1 = vpop.f32.mrf.mxu0 }
  0xf8   :  { %v329_v2 = vmax.f32 %v307_v62, 0.0  ;;  %v253_v3 = vadd.f32 %v389_v63, %v346_v54 }
  0xf9   :  { %v391_v5 = vpop.f32.mrf.mxu0 }
  0xfa   :  { %335 = vst.msk [vmem:[%s633_s3] sm:$0xff] %vm205_vm1, %v329_v2  ;;  %v310_v6 = vadd.f32 %v309_v48, %v253_v3  ;;  %v392_v7 = vadd.f32 %v391_v5, %v390_v1 }
  0xfb   :  { %v393_v9 = vpop.f32.mrf.mxu0 }
  0xfc   :  { %v330_v10 = vmax.f32 %v310_v6, 0.0  ;;  %v258_v11 = vadd.f32 %v392_v7, %v346_v54 }
  0xfd   :  { %v394_v12 = vpop.f32.mrf.mxu0 }
  0xfe   :  { %336 = vst.msk [vmem:[%s633_s3 + $0x8] sm:$0xff] %vm205_vm1, %v330_v10  ;;  %v315_v13 = vadd.f32 %v314_v50, %v258_v11  ;;  %v395_v14 = vadd.f32 %v394_v12, %v393_v9 }
  0xff   :  { %v396_v15 = vpop.f32.mrf.mxu0 }
 0x100   :  { %v331_v16 = vmax.f32 %v315_v13, 0.0  ;;  %v261_v17 = vadd.f32 %v395_v14, %v346_v54 }
 0x101   :  { %v397_v18 = vpop.f32.mrf.mxu0 }
 0x102   :  { %337 = vst.msk [vmem:[%s633_s3 + $0x10] sm:$0xff] %vm205_vm1, %v331_v16  ;;  %v318_v19 = vadd.f32 %v317_v53, %v261_v17  ;;  %v398_v20 = vadd.f32 %v397_v18, %v396_v15 }
 0x103   :  { %v399_v21 = vpop.f32.mrf.mxu0 }
 0x104   :  { %v332_v22 = vmax.f32 %v318_v19, 0.0  ;;  %v266_v23 = vadd.f32 %v398_v20, %v346_v54 }
 0x105   :  { %v400_v24 = vpop.f32.mrf.mxu0 }
 0x106   :  { %338 = vst.msk [vmem:[%s633_s3 + $0x18] sm:$0xff] %vm205_vm1, %v332_v22  ;;  %v323_v25 = vadd.f32 %v322_v60, %v266_v23  ;;  %v401_v26 = vadd.f32 %v400_v24, %v399_v21 }
 0x108   :  { %v333_v27 = vmax.f32 %v323_v25, 0.0  ;;  %v269_v28 = vadd.f32 %v401_v26, %v346_v54 }
 0x10a   :  { %339 = vst.msk [vmem:[%s633_s3 + $0x20] sm:$0xff] %vm205_vm1, %v333_v27  ;;  %v326_v29 = vadd.f32 %v325_v4, %v269_v28 }
 0x10c   :  { %v334_v30 = vmax.f32 %v326_v29, 0.0 }
 0x10e   :  { %340 = vst.msk [vmem:[%s633_s3 + $0x28] sm:$0xff] %vm205_vm1, %v334_v30 }
 0x10f   :  { %345 = vsyncpa [#allocation3], 1 }

// kernel: _lambda_.26
= control target key start
LH: loop header
LB: loop body
LE: loop exit
PB: predicated region body
PF: predicated region fallthrough
CT: control target
= control target key end

     0   :  { %v171_v0 = vmov 0.0   ;;  %vm172_vm0 = vmmov 0   ;;  %vm76_vm1 = vcmask 785408   ;;  %vm125_vm2 = vcmask 261120   ;;  %s237_s1 = inlined_call_operand.vmem [shape: bf16[96,32], index: 1, kind: input, shape index: {}]   ;;  %s238_s0 = inlined_call_operand.vmem [shape: f32[16,96], index: 0, kind: input, shape index: {}]   ;;  %s239_s2 = inlined_call_operand.vmem [shape: f32[1,32], index: 2, kind: input, shape index: {}]   ;;  %s240_s3 = inlined_call_operand.vmem [shape: f32[16,32], index: 3, kind: input, shape index: {}]   ;;  %s241_s4 = inlined_call_operand.vmem [shape: f32[16,32], index: 4, kind: output, shape index: {}]  }
   0x1   :  { %147 = vmatprep.subr.bf16.mxu0 %v171_v0  ;;  %v165_v1 = vld [vmem:[%s237_s1 + $0x28] sm:$0xff]   ;;  %159 = vmatprep.mubr.msk.bf16.mxu0 %vm172_vm0, %v171_v0  ;;  %v166_v2 = vld [vmem:[%s237_s1 + $0x20] sm:$0xff]   ;;  %v167_v3 = vld [vmem:[%s237_s1 + $0x18] sm:$0xff]  }
   0x2   :  { %148 = vmatpush3.bf16.msra.mxu0 %v165_v1  ;;  %v168_v4 = vld [vmem:[%s237_s1 + $0x10] sm:$0xff]   ;;  %v169_v5 = vld [vmem:[%s237_s1 + $0x8] sm:$0xff]   ;;  %v170_v6 = vld [vmem:[%s237_s1] sm:$0xff]  }
   0x3   :  { %149 = vmatprep.subr.bf16.mxu0 %v171_v0  ;;  %v18_v7 = vld [vmem:[%s238_s0] sm:$0xff]  ;;  %v19_v8 = vld [vmem:[%s238_s0 + $0x8] sm:$0xff] }
   0x4   :  { %v20_v9 = vpack.c.bf16 %v19_v8, %v18_v7  ;;  %v132_v10 = vld [vmem:[%s239_s2] ss:$0 sm:$0xff]  ;;  %v122_v17 = vld [vmem:[%s240_s3 + $0x8] sm:$0xff] }
   0x5   :  { %v121_v12 = vld [vmem:[%s240_s3] sm:$0xff] }
   0x6   :  { %150 = vmatpush3.bf16.msra.mxu0 %v166_v2 }
   0x7   :  { %151 = vmatprep.subr.bf16.mxu0 %v171_v0 }
   0xa   :  { %152 = vmatpush3.bf16.msra.mxu0 %v167_v3 }
   0xb   :  { %153 = vmatprep.subr.bf16.mxu0 %v171_v0 }
   0xe   :  { %154 = vmatpush3.bf16.msra.mxu0 %v168_v4 }
   0xf   :  { %155 = vmatprep.subr.bf16.mxu0 %v171_v0 }
  0x12   :  { %156 = vmatpush3.bf16.msra.mxu0 %v169_v5 }
  0x13   :  { %157 = vmatprep.subr.bf16.mxu0 %v171_v0 }
  0x16   :  { %158 = vmatpush3.bf16.msra.mxu0 %v170_v6 }
  0x19   :  { %160 = vmatmul.mubr.msk.bf16.vlgmr.msra.gmra.mxu0 %vm76_vm1, %v20_v9 }
  0xd9   :  { %v114_v11 = vpop.f32.mrf.mxu0 }
  0xda   :  { %v115_v13 = vadd.f32 %v132_v10, %v114_v11 }
  0xdb   :  { %v161_v14 = vpop.f32.mrf.mxu0 }
  0xdc   :  { %v123_v15 = vadd.f32 %v121_v12, %v115_v13 }
  0xdd   :  { %v117_v16 = vpop.f32.mrf.mxu0 }
  0xde   :  { %126 = vst.msk [vmem:[%s241_s4] sm:$0xff] %vm125_vm2, %v123_v15  ;;  %v118_v18 = vadd.f32 %v132_v10, %v117_v16 }
  0xdf   :  { %v162_v19 = vpop.f32.mrf.mxu0 }
  0xe0   :  { %v124_v20 = vadd.f32 %v122_v17, %v118_v18 }
  0xe2   :  { %127 = vst.msk [vmem:[%s241_s4 + $0x8] sm:$0xff] %vm125_vm2, %v124_v20 }

// kernel: _lambda_.29
= control target key start
LH: loop header
LB: loop body
LE: loop exit
PB: predicated region body
PF: predicated region fallthrough
CT: control target
= control target key end

     0   :  { %vm25_vm0 = vcmask 261120   ;;  %v169_v14 = vmov 0.0   ;;  %vm170_vm1 = vmmov 0   ;;  %vm137_vm2 = vcmask 785408   ;;  %s233_s0 = inlined_call_operand.vmem [shape: f32[16,32], index: 0, kind: input, shape index: {}]   ;;  %s234_s1 = inlined_call_operand.vmem [shape: bf16[32,96], index: 1, kind: input, shape index: {}]   ;;  %s235_s3 = inlined_call_operand.vmem [shape: f32[1,32], index: 3, kind: input, shape index: {}]   ;;  %s236_s4 = inlined_call_operand.vmem [shape: f32[1,32], index: 4, kind: input, shape index: {}]   ;;  %s237_s2 = inlined_call_operand.vmem [shape: f32[1,96], index: 2, kind: input, shape index: {}]   ;;  %s238_s5 = inlined_call_operand.vmem [shape: f32[16,96], index: 5, kind: output, shape index: {}]  }
   0x1   :  { %v21_v0 = vld [vmem:[%s233_s0] sm:$0xff]  ;;  %v22_v1 = vld [vmem:[%s233_s0 + $0x8] sm:$0xff]  ;;  %153 = vmatprep.subr.bf16.mxu0 %v169_v14  ;;  %157 = vmatprep.mubr.msk.bf16.mxu0 %vm170_vm1, %v169_v14 }
   0x2   :  { %v26_v2 = vsel %vm25_vm0, %v21_v0, 0.0  ;;  %v29_v3 = vsel %vm25_vm0, %v22_v1, 0.0  ;;  %v163_v15 = vld [vmem:[%s234_s1 + $0x8] sm:$0xff]   ;;  %v164_v16 = vld [vmem:[%s234_s1] sm:$0xff]  }
   0x3   :  { %27 = vadd.xlane.f32.xlu0 %v26_v2  ;;  %154 = vmatpush3.bf16.msra.mxu0 %v163_v15  ;;  %v144_v25 = vld [vmem:[%s235_s3] ss:$0 sm:$0xff] }
   0x4   :  { %155 = vmatprep.subr.bf16.mxu0 %v169_v14  ;;  %v145_v29 = vld [vmem:[%s236_s4] ss:$0 sm:$0xff] }
   0x5   :  { %v146_v34 = vld [vmem:[%s237_s2] ss:$0 sm:$0xff] }
   0x7   :  { %30 = vadd.xlane.f32.xlu0 %v29_v3  ;;  %156 = vmatpush3.bf16.msra.mxu0 %v164_v16 }
  0x8c   :  { %v28_v4 = vpop.xlane.xlu0 %27 }
  0x8d   :  { %v33_v5 = vmul.f32 0.03125, %v28_v4 }
  0x8f   :  { %v35_v6 = vsub.f32 %v21_v0, %v33_v5 }
  0x90   :  { %v31_v7 = vpop.xlane.xlu0 %30 }
  0x91   :  { %v34_v8 = vmul.f32 0.03125, %v31_v7  ;;  %v37_v9 = vmul.f32 %v35_v6, %v35_v6 }
  0x93   :  { %v36_v10 = vsub.f32 %v22_v1, %v34_v8  ;;  %v39_v11 = vsel %vm25_vm0, %v37_v9, 0.0 }
  0x94   :  { %40 = vadd.xlane.f32.xlu1 %v39_v11 }
  0x95   :  { %v38_v12 = vmul.f32 %v36_v10, %v36_v10 }
  0x97   :  { %v42_v13 = vsel %vm25_vm0, %v38_v12, 0.0 }
  0x98   :  { %43 = vadd.xlane.f32.xlu1 %v42_v13 }
 0x11d   :  { %v41_v17 = vpop.xlane.xlu1 %40 }
 0x11e   :  { %v45_v18 = vmul.f32 0.03125, %v41_v17 }
 0x120   :  { %v47_v19 = vadd.f32 1e-05, %v45_v18 }
 0x121   :  { %v44_v20 = vpop.xlane.xlu1 %43 }
 0x122   :  { %165 = vrsqrt.f32 %v47_v19  ;;  %v46_v21 = vmul.f32 0.03125, %v44_v20 }
 0x124   :  { %v48_v22 = vadd.f32 1e-05, %v46_v21 }
 0x126   :  { %167 = vrsqrt.f32 %v48_v22 }
 0x12f   :  { %v166_v23 = vpop.eup %165 }
 0x130   :  { %v51_v24 = vmul.f32 %v166_v23, %v35_v6 }
 0x132   :  { %v59_v28 = vmul.f32 %v144_v25, %v51_v24 }
 0x133   :  { %v168_v26 = vpop.eup %167 }
 0x134   :  { %v52_v27 = vmul.f32 %v168_v26, %v36_v10  ;;  %v67_v31 = vadd.f32 %v145_v29, %v59_v28 }
 0x136   :  { %v60_v30 = vmul.f32 %v144_v25, %v52_v27 }
 0x138   :  { %v68_v32 = vadd.f32 %v145_v29, %v60_v30 }
 0x13a   :  { %v69_v33 = vpack.c.bf16 %v68_v32, %v67_v31 }
 0x13c   :  { %158 = vmatmul.mubr.msk.bf16.vlgmr.msra.gmra.mxu0 %vm25_vm0, %v69_v33 }
 0x1fc   :  { %v130_v35 = vpop.f32.mrf.mxu0 }
 0x1fd   :  { %v131_v36 = vadd.f32 %v146_v34, %v130_v35 }
 0x1fe   :  { %v159_v37 = vpop.f32.mrf.mxu0 }
 0x1ff   :  { %138 = vst.msk [vmem:[%s238_s5] sm:$0xff] %vm137_vm2, %v131_v36 }
 0x200   :  { %v133_v38 = vpop.f32.mrf.mxu0 }
 0x201   :  { %v134_v39 = vadd.f32 %v146_v34, %v133_v38 }
 0x202   :  { %v160_v40 = vpop.f32.mrf.mxu0 }
 0x203   :  { %139 = vst.msk [vmem:[%s238_s5 + $0x8] sm:$0xff] %vm137_vm2, %v134_v39 }

// kernel: _lambda_.27
= control target key start
LH: loop header
LB: loop body
LE: loop exit
PB: predicated region body
PF: predicated region fallthrough
CT: control target
= control target key end

     0   :  { %vm25_vm0 = vcmask 261120   ;;  %v188_v14 = vmov 0.0   ;;  %vm189_vm1 = vmmov 0   ;;  %s252_s0 = inlined_call_operand.vmem [shape: f32[16,32], index: 0, kind: input, shape index: {}]   ;;  %s253_s1 = inlined_call_operand.vmem [shape: bf16[32,128], index: 1, kind: input, shape index: {}]   ;;  %s254_s3 = inlined_call_operand.vmem [shape: f32[1,32], index: 3, kind: input, shape index: {}]   ;;  %s255_s4 = inlined_call_operand.vmem [shape: f32[1,32], index: 4, kind: input, shape index: {}]   ;;  %s256_s2 = inlined_call_operand.vmem [shape: f32[1,128], index: 2, kind: input, shape index: {}]   ;;  %s257_s5 = inlined_call_operand.vmem [shape: f32[16,128], index: 5, kind: output, shape index: {}]  }
   0x1   :  { %v21_v0 = vld [vmem:[%s252_s0] sm:$0xff]  ;;  %v22_v1 = vld [vmem:[%s252_s0 + $0x8] sm:$0xff]  ;;  %164 = vmatprep.subr.bf16.mxu0 %v188_v14  ;;  %168 = vmatprep.mubr.msk.bf16.mxu0 %vm189_vm1, %v188_v14 }
   0x2   :  { %v26_v2 = vsel %vm25_vm0, %v21_v0, 0.0  ;;  %v29_v3 = vsel %vm25_vm0, %v22_v1, 0.0  ;;  %v174_v15 = vld [vmem:[%s253_s1 + $0x8] sm:$0xff]   ;;  %v175_v16 = vld [vmem:[%s253_s1] sm:$0xff]  }
   0x3   :  { %27 = vadd.xlane.f32.xlu0 %v26_v2  ;;  %165 = vmatpush3.bf16.msra.mxu0 %v174_v15  ;;  %v155_v25 = vld [vmem:[%s254_s3] ss:$0 sm:$0xff] }
   0x4   :  { %166 = vmatprep.subr.bf16.mxu0 %v188_v14  ;;  %v156_v29 = vld [vmem:[%s255_s4] ss:$0 sm:$0xff] }
   0x5   :  { %v157_v34 = vld [vmem:[%s256_s2] ss:$0 sm:$0xff] }
   0x7   :  { %30 = vadd.xlane.f32.xlu0 %v29_v3  ;;  %167 = vmatpush3.bf16.msra.mxu0 %v175_v16 }
  0x8c   :  { %v28_v4 = vpop.xlane.xlu0 %27 }
  0x8d   :  { %v33_v5 = vmul.f32 0.03125, %v28_v4 }
  0x8f   :  { %v35_v6 = vsub.f32 %v21_v0, %v33_v5 }
  0x90   :  { %v31_v7 = vpop.xlane.xlu0 %30 }
  0x91   :  { %v34_v8 = vmul.f32 0.03125, %v31_v7  ;;  %v37_v9 = vmul.f32 %v35_v6, %v35_v6 }
  0x93   :  { %v36_v10 = vsub.f32 %v22_v1, %v34_v8  ;;  %v39_v11 = vsel %vm25_vm0, %v37_v9, 0.0 }
  0x94   :  { %40 = vadd.xlane.f32.xlu1 %v39_v11 }
  0x95   :  { %v38_v12 = vmul.f32 %v36_v10, %v36_v10 }
  0x97   :  { %v42_v13 = vsel %vm25_vm0, %v38_v12, 0.0 }
  0x98   :  { %43 = vadd.xlane.f32.xlu1 %v42_v13 }
 0x11d   :  { %v41_v17 = vpop.xlane.xlu1 %40 }
 0x11e   :  { %v45_v18 = vmul.f32 0.03125, %v41_v17 }
 0x120   :  { %v47_v19 = vadd.f32 1e-05, %v45_v18 }
 0x121   :  { %v44_v20 = vpop.xlane.xlu1 %43 }
 0x122   :  { %176 = vrsqrt.f32 %v47_v19  ;;  %v46_v21 = vmul.f32 0.03125, %v44_v20 }
 0x124   :  { %v48_v22 = vadd.f32 1e-05, %v46_v21 }
 0x126   :  { %178 = vrsqrt.f32 %v48_v22 }
 0x12f   :  { %v177_v23 = vpop.eup %176 }
 0x130   :  { %v51_v24 = vmul.f32 %v177_v23, %v35_v6 }
 0x132   :  { %v59_v28 = vmul.f32 %v155_v25, %v51_v24 }
 0x133   :  { %v179_v26 = vpop.eup %178 }
 0x134   :  { %v52_v27 = vmul.f32 %v179_v26, %v36_v10  ;;  %v67_v31 = vadd.f32 %v156_v29, %v59_v28 }
 0x136   :  { %v60_v30 = vmul.f32 %v155_v25, %v52_v27 }
 0x138   :  { %v68_v32 = vadd.f32 %v156_v29, %v60_v30 }
 0x13a   :  { %v69_v33 = vpack.c.bf16 %v68_v32, %v67_v31 }
 0x13c   :  { %169 = vmatmul.mubr.msk.bf16.vlgmr.msra.gmra.mxu0 %vm25_vm0, %v69_v33 }
 0x1fc   :  { %v130_v35 = vpop.f32.mrf.mxu0 }
 0x1fd   :  { %v131_v36 = vadd.f32 %v157_v34, %v130_v35 }
 0x1fe   :  { %v170_v37 = vpop.f32.mrf.mxu0 }
 0x1ff   :  { %v137_v38 = vsub.f32 0.0, %v131_v36 }
 0x200   :  { %v133_v39 = vpop.f32.mrf.mxu0 }
 0x201   :  { %v139_v40 = vmul.f32 1.442695, %v137_v38  ;;  %v134_v41 = vadd.f32 %v157_v34, %v133_v39 }
 0x202   :  { %v171_v42 = vpop.f32.mrf.mxu0 }
 0x203   :  { %180 = vpow2.f32 %v139_v40  ;;  %v138_v43 = vsub.f32 0.0, %v134_v41 }
 0x205   :  { %v141_v44 = vmul.f32 1.442695, %v138_v43 }
 0x207   :  { %182 = vpow2.f32 %v141_v44 }
 0x210   :  { %v181_v45 = vpop.eup %180 }
 0x211   :  { %v143_v46 = vadd.f32 1.0, %v181_v45 }
 0x213   :  { %184 = vrcp.f32 %v143_v46 }
 0x214   :  { %v183_v47 = vpop.eup %182 }
 0x215   :  { %v144_v48 = vadd.f32 1.0, %v183_v47 }
 0x217   :  { %186 = vrcp.f32 %v144_v48 }
 0x220   :  { %v185_v49 = vpop.eup %184 }
 0x221   :  { %v147_v50 = vmul.f32 %v185_v49, %v131_v36 }
 0x223   :  { %149 = vst [vmem:[%s257_s5] sm:$0xff] %v147_v50 }
 0x224   :  { %v187_v51 = vpop.eup %186 }
 0x225   :  { %v148_v52 = vmul.f32 %v187_v51, %v134_v41 }
 0x227   :  { %150 = vst [vmem:[%s257_s5 + $0x8] sm:$0xff] %v148_v52 }

// kernel: _lambda_.28
= control target key start
LH: loop header
LB: loop body
LE: loop exit
PB: predicated region body
PF: predicated region fallthrough
CT: control target
= control target key end

     0   :  { %9 = vsyncpa [#allocation3], 0  ;;  %s230_s15 = smov [#allocation2]   ;;  %s303_s0 = inlined_call_operand.vmem [shape: f32[16,128], index: 0, kind: input, shape index: {}]   ;;  %s304_s1 = inlined_call_operand.vmem [shape: bf16[128,32], index: 1, kind: input, shape index: {}]   ;;  %s305_s2 = inlined_call_operand.hbm [shape: f32[1,32], index: 2, kind: input, shape index: {}]   ;;  %s306_s3 = inlined_call_operand.vmem [shape: f32[16,32], index: 3, kind: input, shape index: {}]   ;;  %s307_s4 = inlined_call_operand.vmem [shape: f32[16,32], index: 4, kind: output, shape index: {}]  }
   0x1   :  { %s20_s16 = sshll.u32 %s230_s15, 4  ;;  %s21_s16 = int_to_ptr.vmem [resolvable:$true] %s20_s16 }
   0x2   :  { %s216_s17 = scalar_lea.vmem %s21_s16, 16  ;;  %s220_s18 = scalar_lea.vmem %s21_s16, 32 }
   0x3   :  { %p217_p0 = scmp.ne.s32.totalorder %s21_s16, %s216_s17  ;;  %p221_p1 = scmp.lt.s32.totalorder %s21_s16, %s21_s16 }
   0x4   :  { %p222_p2 = scmp.lt.s32.totalorder %s220_s18, %s216_s17 }
   0x6   :  { %p223_p3 = por %p222_p2, %p221_p1 }
   0x8   :  { %p224_p4 = pnand %p223_p3, %p217_p0 }
   0xa   :  { %227 = shalt.err (!%p224_p4)
}
   0xb   :  { %23 = dma.hbm_to_vmem [thread:$0]  %s305_s2, 16, %s21_s16, [#allocation3]  }
   0xc   :  { %228 = dma.done.wait [#allocation3], 16  }
   0xd   :  { %229 = vsyncadd [#allocation3], 4294967280  ;;  %v231_v0 = vmov 0.0   ;;  %vm232_vm0 = vmmov 0   ;;  %v200_v1 = vld [vmem:[%s304_s1 + $0x38] sm:$0xff]   ;;  %v201_v2 = vld [vmem:[%s304_s1 + $0x30] sm:$0xff]  }
   0xe   :  { %177 = vmatprep.subr.bf16.mxu0 %v231_v0  ;;  %193 = vmatprep.mubr.msk.bf16.mxu0 %vm232_vm0, %v231_v0  ;;  %v202_v3 = vld [vmem:[%s304_s1 + $0x28] sm:$0xff]   ;;  %v203_v4 = vld [vmem:[%s304_s1 + $0x20] sm:$0xff]   ;;  %v204_v5 = vld [vmem:[%s304_s1 + $0x18] sm:$0xff]   ;;  %vm151_vm1 = vcmask 261120  }
   0xf   :  { %178 = vmatpush3.bf16.msra.mxu0 %v200_v1  ;;  %v205_v6 = vld [vmem:[%s304_s1 + $0x10] sm:$0xff]   ;;  %v206_v7 = vld [vmem:[%s304_s1 + $0x8] sm:$0xff]   ;;  %v207_v8 = vld [vmem:[%s304_s1] sm:$0xff]  }
  0x10   :  { %179 = vmatprep.subr.bf16.mxu0 %v231_v0  ;;  %v30_v9 = vld [vmem:[%s303_s0] sm:$0xff]  ;;  %v31_v10 = vld [vmem:[%s303_s0 + $0x8] sm:$0xff] }
  0x11   :  { %v32_v11 = vpack.c.bf16 %v31_v10, %v30_v9  ;;  %v159_v12 = vld [vmem:[#allocation2] ss:$0 sm:$0xff]  ;;  %v146_v21 = vld [vmem:[%s306_s3 + $0x8] sm:$0xff] }
  0x12   :  { %v145_v15 = vld [vmem:[%s306_s3] sm:$0xff] }
  0x13   :  { %180 = vmatpush3.bf16.msra.mxu0 %v201_v2 }
  0x14   :  { %181 = vmatprep.subr.bf16.mxu0 %v231_v0 }
  0x17   :  { %182 = vmatpush3.bf16.msra.mxu0 %v202_v3 }
  0x18   :  { %183 = vmatprep.subr.bf16.mxu0 %v231_v0 }
  0x1b   :  { %184 = vmatpush3.bf16.msra.mxu0 %v203_v4 }
  0x1c   :  { %185 = vmatprep.subr.bf16.mxu0 %v231_v0 }
  0x1f   :  { %186 = vmatpush3.bf16.msra.mxu0 %v204_v5 }
  0x20   :  { %187 = vmatprep.subr.bf16.mxu0 %v231_v0 }
  0x23   :  { %188 = vmatpush3.bf16.msra.mxu0 %v205_v6 }
  0x24   :  { %189 = vmatprep.subr.bf16.mxu0 %v231_v0 }
  0x27   :  { %190 = vmatpush3.bf16.msra.mxu0 %v206_v7 }
  0x28   :  { %191 = vmatprep.subr.bf16.mxu0 %v231_v0 }
  0x2b   :  { %192 = vmatpush3.bf16.msra.mxu0 %v207_v8 }
  0x2e   :  { %194 = vmatmul.mubr.bf16.vlgmr.msra.gmra.mxu0 %v32_v11 }
  0xee   :  { %v138_v13 = vpop.f32.mrf.mxu0 }
  0xef   :  { %v139_v14 = vadd.f32 %v159_v12, %v138_v13 }
  0xf0   :  { %v195_v16 = vpop.f32.mrf.mxu0 }
  0xf1   :  { %v147_v17 = vmul.f32 0.5, %v139_v14 }
  0xf2   :  { %v141_v18 = vpop.f32.mrf.mxu0 }
  0xf3   :  { %v149_v19 = vadd.f32 %v147_v17, %v145_v15  ;;  %v142_v20 = vadd.f32 %v159_v12, %v141_v18 }
  0xf4   :  { %v196_v22 = vpop.f32.mrf.mxu0 }
  0xf5   :  { %152 = vst.msk [vmem:[%s307_s4] sm:$0xff] %vm151_vm1, %v149_v19  ;;  %v148_v23 = vmul.f32 0.5, %v142_v20 }
  0xf7   :  { %v150_v24 = vadd.f32 %v148_v23, %v146_v21 }
  0xf9   :  { %153 = vst.msk [vmem:[%s307_s4 + $0x8] sm:$0xff] %vm151_vm1, %v150_v24 }
  0xfa   :  { %158 = vsyncpa [#allocation3], 1 }

// kernel: _lambda_.33
= control target key start
LH: loop header
LB: loop body
LE: loop exit
PB: predicated region body
PF: predicated region fallthrough
CT: control target
= control target key end

     0   :  { %9 = vsyncpa [#allocation3], 0  ;;  %s154_s15 = smov [#allocation2]   ;;  %s209_s0 = inlined_call_operand.vmem [shape: f32[16,32], index: 0, kind: input, shape index: {}]   ;;  %s210_s1 = inlined_call_operand.vmem [shape: bf16[32,32], index: 1, kind: input, shape index: {}]   ;;  %s211_s2 = inlined_call_operand.hbm [shape: f32[1,32], index: 2, kind: input, shape index: {}]   ;;  %s212_s3 = inlined_call_operand.vmem [shape: f32[16,32], index: 3, kind: input, shape index: {}]   ;;  %s213_s4 = inlined_call_operand.vmem [shape: f32[16,32], index: 4, kind: output, shape index: {}]  }
   0x1   :  { %s20_s16 = sshll.u32 %s154_s15, 4  ;;  %s21_s16 = int_to_ptr.vmem [resolvable:$true] %s20_s16 }
   0x2   :  { %s140_s17 = scalar_lea.vmem %s21_s16, 16  ;;  %s144_s18 = scalar_lea.vmem %s21_s16, 32 }
   0x3   :  { %p141_p0 = scmp.ne.s32.totalorder %s21_s16, %s140_s17  ;;  %p145_p1 = scmp.lt.s32.totalorder %s21_s16, %s21_s16 }
   0x4   :  { %p146_p2 = scmp.lt.s32.totalorder %s144_s18, %s140_s17 }
   0x6   :  { %p147_p3 = por %p146_p2, %p145_p1 }
   0x8   :  { %p148_p4 = pnand %p147_p3, %p141_p0 }
   0xa   :  { %151 = shalt.err (!%p148_p4)
}
   0xb   :  { %23 = dma.hbm_to_vmem [thread:$0]  %s211_s2, 16, %s21_s16, [#allocation3]  }
   0xc   :  { %152 = dma.done.wait [#allocation3], 16  }
   0xd   :  { %153 = vsyncadd [#allocation3], 4294967280  ;;  %v155_v0 = vmov 0.0   ;;  %vm156_vm0 = vmmov 0   ;;  %v130_v1 = vld [vmem:[%s210_s1 + $0x8] sm:$0xff]   ;;  %v131_v2 = vld [vmem:[%s210_s1] sm:$0xff]  }
   0xe   :  { %119 = vmatprep.subr.bf16.mxu0 %v155_v0  ;;  %123 = vmatprep.mubr.msk.bf16.mxu0 %vm156_vm0, %v155_v0  ;;  %v30_v3 = vld [vmem:[%s209_s0] sm:$0xff]  ;;  %v31_v4 = vld [vmem:[%s209_s0 + $0x8] sm:$0xff]  ;;  %vm56_vm1 = vcmask 261120  }
   0xf   :  { %120 = vmatpush3.bf16.msra.mxu0 %v130_v1  ;;  %v32_v5 = vpack.c.bf16 %v31_v4, %v30_v3  ;;  %v112_v6 = vld [vmem:[#allocation2] ss:$0 sm:$0xff]  ;;  %v102_v13 = vld [vmem:[%s212_s3 + $0x8] sm:$0xff] }
  0x10   :  { %121 = vmatprep.subr.bf16.mxu0 %v155_v0  ;;  %v101_v8 = vld [vmem:[%s212_s3] sm:$0xff] }
  0x13   :  { %122 = vmatpush3.bf16.msra.mxu0 %v131_v2 }
  0x16   :  { %124 = vmatmul.mubr.msk.bf16.vlgmr.msra.gmra.mxu0 %vm56_vm1, %v32_v5 }
  0xd6   :  { %v94_v7 = vpop.f32.mrf.mxu0 }
  0xd7   :  { %v95_v9 = vadd.f32 %v112_v6, %v94_v7 }
  0xd8   :  { %v125_v10 = vpop.f32.mrf.mxu0 }
  0xd9   :  { %v103_v11 = vadd.f32 %v101_v8, %v95_v9 }
  0xda   :  { %v97_v12 = vpop.f32.mrf.mxu0 }
  0xdb   :  { %105 = vst.msk [vmem:[%s213_s4] sm:$0xff] %vm56_vm1, %v103_v11  ;;  %v98_v14 = vadd.f32 %v112_v6, %v97_v12 }
  0xdc   :  { %v126_v15 = vpop.f32.mrf.mxu0 }
  0xdd   :  { %v104_v16 = vadd.f32 %v102_v13, %v98_v14 }
  0xdf   :  { %106 = vst.msk [vmem:[%s213_s4 + $0x8] sm:$0xff] %vm56_vm1, %v104_v16 }
  0xe0   :  { %111 = vsyncpa [#allocation3], 1 }

// kernel: _lambda_.32
= control target key start
LH: loop header
LB: loop body
LE: loop exit
PB: predicated region body
PF: predicated region fallthrough
CT: control target
= control target key end

     0   :  { %10 = vsyncpa [#allocation3], 0  ;;  %s747_s0 = inlined_call_operand.vmem [shape: f32[2,14,32], index: 0, kind: input, shape index: {}]   ;;  %s748_s1 = inlined_call_operand.vmem [shape: f32[7,32], index: 1, kind: input, shape index: {}]   ;;  %s749_s2 = inlined_call_operand.hbm [shape: f32[1,32], index: 2, kind: input, shape index: {}]   ;;  %s750_s3 = inlined_call_operand.hbm [shape: f32[1,32], index: 3, kind: input, shape index: {}]   ;;  %s751_s4 = inlined_call_operand.hbm [shape: f32[1,32], index: 4, kind: input, shape index: {}]   ;;  %s752_s5 = inlined_call_operand.vmem [shape: f32[2,8,32], index: 5, kind: output, shape index: {}]  }
   0x1   :  { %11 = vsyncpa [#allocation5], 0  ;;  %s659_s18 = smov 0  }
   0x2 LB: > { %s665_s19 = sadd.s32 4294967295, %s624_s18   ;;  %p471_p0 = scmp.ge.s32.totalorder %s624_s18, 1  ;;  %s624_s18 = sphi %s659_s18, %s17_s18  }
   0x3   : > { %p158_p1 = scmp.lt.s32.totalorder %s624_s18, 3  ;;  %p753_p2 = scmp.eq.s32.totalorder %s665_s19, 0 }
   0x4   : > { %s626_s21 = smov [#allocation4]   ;;  %s627_s23 = smov [#allocation2]  }
   0x5   : > { %p670_p3 = pnand %p471_p0, %p158_p1  ;;  %s185_s22 = sshll.u32 %s626_s21, 4  ;;  %s186_s22 = int_to_ptr.vmem [resolvable:$true] %s185_s22 }
   0x6   : > { %s174_s24 = sshll.u32 %s627_s23, 4  ;;  %s628_s25 = smov [#allocation6]   ;;  %s175_s24 = int_to_ptr.vmem [resolvable:$true] %s174_s24 }
   0x7   : > { %p501_p4 = pneg %p670_p3  ;;  %s196_s26 = sshll.u32 %s628_s25, 4  ;;  %s682_s26 = int_to_ptr.vmem [resolvable:$true] %s196_s26 }
   0x8   : > { %s543_s28 = scalar_lea.vmem %s186_s22, 16  ;;  %s550_s29 = scalar_lea.vmem %s186_s22, 32 }
   0x9   : > { %p678_p5 = pnand %p753_p2, %p501_p4  ;;  %p544_p7 = scmp.ne.s32.totalorder %s186_s22, %s543_s28 }
   0xa   : > { %p551_p10 = scmp.lt.s32.totalorder %s186_s22, %s186_s22  ;;  %p552_p11 = scmp.lt.s32.totalorder %s550_s29, %s543_s28 }
   0xb   : > { %p534_p6 = pneg %p678_p5 }
   0xc   : > { %p553_p12 = por %p552_p11, %p551_p10 }
   0xd   : > { %p546_p8 = pnand %p544_p7, %p534_p6 }
   0xf   : > { %p547_p9 = pneg %p546_p8 }
  0x11   : > { %p554_p13 = pnand %p553_p12, %p547_p9 }
  0x13   : > { %557 = shalt.err (!%p554_p13)
}
  0x14   : > { %507 = dma.hbm_to_vmem [thread:$0]  (!%p678_p5), %s750_s3, 16, %s186_s22, [#allocation5]  }
  0x15   : > { %s569_s7 = scalar_lea.vmem %s175_s24, 16  ;;  %s576_s8 = scalar_lea.vmem %s175_s24, 32 }
  0x16   : > { %p570_p0 = scmp.ne.s32.totalorder %s175_s24, %s569_s7  ;;  %p577_p7 = scmp.lt.s32.totalorder %s175_s24, %s175_s24 }
  0x17   : > { %p578_p8 = scmp.lt.s32.totalorder %s576_s8, %s569_s7 }
  0x18   : > { %p572_p1 = pnand %p570_p0, %p534_p6 }
  0x19   : > { %p579_p2 = por %p578_p8, %p577_p7 }
  0x1a   : > { %p573_p4 = pneg %p572_p1 }
  0x1c   : > { %p580_p10 = pnand %p579_p2, %p573_p4 }
  0x1e   : > { %583 = shalt.err (!%p580_p10)
}
  0x1f   : > { %504 = dma.hbm_to_vmem [thread:$0]  (!%p678_p5), %s749_s2, 16, %s175_s24, [#allocation3]  }
  0x20   : > { %s595_s11 = scalar_lea.vmem %s682_s26, 16  ;;  %s602_s12 = scalar_lea.vmem %s682_s26, 32 }
  0x21   : > { %p596_p9 = scmp.ne.s32.totalorder %s682_s26, %s595_s11  ;;  %p603_p2 = scmp.lt.s32.totalorder %s682_s26, %s682_s26 }
  0x22   : > { %p604_p13 = scmp.lt.s32.totalorder %s602_s12, %s595_s11 }
  0x23   : > { %p598_p11 = pnand %p596_p9, %p534_p6 }
  0x24   : > { %p605_p0 = por %p604_p13, %p603_p2 }
  0x25   : > { %p599_p12 = pneg %p598_p11 }
  0x27   : > { %p606_p1 = pnand %p605_p0, %p599_p12 }
  0x29   : > { %609 = shalt.err (!%p606_p1)
}
  0x2a   : > { %510 = dma.hbm_to_vmem [thread:$0]  (!%p678_p5), %s751_s4, 16, %s682_s26, [#allocation5]  }
  0x2b   : > { %217 = sbr.rel (%p670_p3) target bundleno = 121 (0x79), region = 40  ;;  %p756_p6 = scmp.eq.s32.totalorder (!%p670_p3), %s665_s19, 0 }
  0x30   : > { %615 = dma.done.wait (%p756_p6), [#allocation3], 16   ;;  %p757_p4 = pmov %p756_p6 }
  0x32   : > { %617 = vsyncadd (%p757_p4), [#allocation3], 4294967280  ;;  %p758_p7 = pmov %p757_p4 }
  0x33   : > { %p759_p8 = pmov %p757_p4 }
  0x34   : > { %619 = dma.done.wait (%p758_p7), [#allocation5], 32  }
  0x35   : > { %621 = vsyncadd (%p759_p8), [#allocation5], 4294967264  ;;  %p252_p10 = scmp.lt.s32.totalorder %s665_s19, 1  ;;  %v264_v0 = vlaneseq  ;;  %vm277_vm0 = vcmask 1046528   ;;  %v263_v11 = vld [vmem:[%s748_s1] sm:$0x7f] }
  0x36   : > { %vm291_vm1 = vcmask 1045504   ;;  %vm305_vm2 = vcmask 1044480   ;;  %vm319_vm3 = vcmask 1043456   ;;  %vm333_vm4 = vcmask 1042432   ;;  %v483_v55 = vld [vmem:[#allocation2] ss:$0 sm:$0xff] }
  0x37   : > { %s761_s19 = smov (!%p252_p10, %s665_s19), 1  ;;  %v265_v1 = vshrl.u32 %v264_v0, 7  ;;  %vm347_vm5 = vcmask 1041408   ;;  %v484_v57 = vld [vmem:[#allocation4] ss:$0 sm:$0xff]  ;;  %vm383_vm6 = vcmask 261120  }
  0x38   : > { %s488_s15 = sshll.u32 %s761_s19, 4  ;;  %v485_v59 = vld [vmem:[#allocation6] ss:$0 sm:$0xff]  ;;  %s482_s23 = sshll.u32 %s761_s19, 3 }
  0x39   : > { %v266_v2 = vsub.s32 0, %v265_v1  ;;  %v271_v3 = vsub.s32 1, %v265_v1  ;;  %v285_v4 = vsub.s32 2, %v265_v1  ;;  %v299_v5 = vsub.s32 3, %v265_v1  ;;  %s256_s20 = scalar_lea.vmem %s747_s0, %s488_s15  ;;  %s260_s26 = scalar_lea.vmem %s752_s5, %s482_s23 }
  0x3a   : > { %v313_v6 = vsub.s32 4, %v265_v1  ;;  %v327_v7 = vsub.s32 5, %v265_v1  ;;  %v341_v8 = vsub.s32 6, %v265_v1  ;;  %v261_v9 = vld [vmem:[%s256_s20] sm:$0xff]  ;;  %v262_v10 = vld [vmem:[%s256_s20 + $0x8] sm:$0x3f] }
  0x3b   : > { %v267_v12 = vrot.slane %v263_v11, %v266_v2  ;;  %v272_v13 = vrot.slane %v263_v11, %v271_v3  ;;  %v286_v14 = vrot.slane %v263_v11, %v285_v4  ;;  %v300_v15 = vrot.slane %v263_v11, %v299_v5 }
  0x3c   : > { %v314_v16 = vrot.slane %v263_v11, %v313_v6  ;;  %v328_v17 = vrot.slane %v263_v11, %v327_v7  ;;  %v342_v18 = vrot.slane %v263_v11, %v341_v8 }
  0x3d   : > { %v268_v19 = vmul.f32 %v267_v12, %v261_v9  ;;  %v273_v20 = vmul.f32 %v272_v13, %v261_v9  ;;  %v274_v21 = vmul.f32 %v272_v13, %v262_v10  ;;  %v287_v22 = vmul.f32 %v286_v14, %v261_v9 }
  0x3e   : > { %v288_v23 = vmul.f32 %v286_v14, %v262_v10  ;;  %v301_v24 = vmul.f32 %v300_v15, %v261_v9  ;;  %v302_v25 = vmul.f32 %v300_v15, %v262_v10  ;;  %v315_v26 = vmul.f32 %v314_v16, %v261_v9 }
  0x3f   : > { %v278_v27 = vrot.slane %v273_v20, 1  ;;  %v279_v28 = vrot.slane %v274_v21, 1  ;;  %v292_v29 = vrot.slane %v287_v22, 2  ;;  %v316_v30 = vmul.f32 %v314_v16, %v262_v10 }
  0x40   : > { %v293_v31 = vrot.slane %v288_v23, 2  ;;  %v306_v32 = vrot.slane %v301_v24, 3  ;;  %v307_v33 = vrot.slane %v302_v25, 3  ;;  %v320_v34 = vrot.slane %v315_v26, 4 }
  0x41   : > { %v280_v35 = vsel %vm277_vm0, %v278_v27, %v279_v28  ;;  %v321_v36 = vrot.slane %v316_v30, 4  ;;  %v329_v37 = vmul.f32 %v328_v17, %v261_v9  ;;  %v330_v38 = vmul.f32 %v328_v17, %v262_v10 }
  0x42   : > { %v282_v39 = vadd.f32 %v280_v35, %v268_v19  ;;  %v294_v40 = vsel %vm291_vm1, %v292_v29, %v293_v31  ;;  %v343_v41 = vmul.f32 %v342_v18, %v261_v9  ;;  %v308_v42 = vsel %vm305_vm2, %v306_v32, %v307_v33 }
  0x43   : > { %v334_v43 = vrot.slane %v329_v37, 5  ;;  %v335_v44 = vrot.slane %v330_v38, 5  ;;  %v344_v45 = vmul.f32 %v342_v18, %v262_v10  ;;  %v322_v47 = vsel %vm319_vm3, %v320_v34, %v321_v36 }
  0x44   : > { %v296_v46 = vadd.f32 %v294_v40, %v282_v39  ;;  %v348_v48 = vrot.slane %v343_v41, 6 }
  0x45   : > { %v349_v49 = vrot.slane %v344_v45, 6  ;;  %v336_v51 = vsel %vm333_vm4, %v334_v43, %v335_v44 }
  0x46   : > { %v310_v50 = vadd.f32 %v308_v42, %v296_v46 }
  0x47   : > { %v350_v53 = vsel %vm347_vm5, %v348_v48, %v349_v49 }
  0x48   : > { %v324_v52 = vadd.f32 %v322_v47, %v310_v50 }
  0x4a   : > { %v338_v54 = vadd.f32 %v336_v51, %v324_v52 }
  0x4c   : > { %v352_v56 = vadd.f32 %v350_v53, %v338_v54 }
  0x4e   : > { %v360_v58 = vadd.f32 %v483_v55, %v352_v56 }
  0x50   : > { %v368_v60 = vmul.f32 %v484_v57, %v360_v58 }
  0x52   : > { %v376_v61 = vadd.f32 %v485_v59, %v368_v60 }
  0x54   : > { %v377_v62 = vsub.f32 0.0, %v376_v61 }
  0x56   : > { %v378_v63 = vmul.f32 1.442695, %v377_v62 }
  0x58   : > { %528 = vpow2.f32 %v378_v63 }
  0x65   : > { %v529_v0 = vpop.eup %528 }
  0x66   : > { %v380_v1 = vadd.f32 1.0, %v529_v0 }
  0x68   : > { %530 = vrcp.f32 %v380_v1 }
  0x75   : > { %v531_v2 = vpop.eup %530 }
  0x76   : > { %v382_v3 = vmul.f32 %v531_v2, %v376_v61 }
  0x78   : > { %384 = vst.msk [vmem:[%s260_s26] sm:$0xff] %vm383_vm6, %v382_v3 }
  0x79 PF: > { %s17_s18 = sadd.s32 1, %s624_s18  }
  0x7a   : > { %p14_p3 = scmp.ge.s32.totalorder %s17_s18, 4  }
  0x7c   :  { %16 = sbr.rel (!%p14_p3) target bundleno = 2 (0x2), region = 83 }
  0x81   :  { %404 = vsyncpa [#allocation3], 1 }
  0x82   :  { %406 = vsyncpa [#allocation3 + $0x1], 1 }
  0x83   :  { %407 = vsyncpa [#allocation5], 1 }

// kernel: _lambda_.30
= control target key start
LH: loop header
LB: loop body
LE: loop exit
PB: predicated region body
PF: predicated region fallthrough
CT: control target
= control target key end

     0   :  { %s1194_s18 = smov 0   ;;  %s1331_s0 = inlined_call_operand.vmem [shape: f32[2,8,96], index: 0, kind: input, shape index: {}]   ;;  %s1332_s1 = inlined_call_operand.vmem [shape: f32[2,1,8], index: 1, kind: input, shape index: {}]   ;;  %s1333_s2 = inlined_call_operand.vmem [shape: bf16[32,32], index: 2, kind: input, shape index: {}]   ;;  %s1334_s3 = inlined_call_operand.vmem [shape: f32[1,32], index: 3, kind: input, shape index: {}]   ;;  %s1335_s4 = inlined_call_operand.vmem [shape: f32[2,8,32], index: 4, kind: input, shape index: {}]   ;;  %s1336_s5 = inlined_call_operand.vmem [shape: f32[2,8,32], index: 5, kind: output, shape index: {}]  }
   0x1 LB: > { %s987_s19 = sadd.s32 4294967295, %s1149_s18   ;;  %p991_p0 = scmp.ge.s32.totalorder %s1149_s18, 1  ;;  %s1149_s18 = sphi %s1194_s18, %s15_s18  }
   0x2   : > { %p203_p1 = scmp.lt.s32.totalorder %s1149_s18, 3 }
   0x4   : > { %p204_p2 = pnand %p991_p0, %p203_p1 }
   0x5   : > { %p236_p3 = scmp.lt.s32.totalorder (!%p204_p2), %s987_s19, 1  ;;  %s1153_s24 = smov (!%p204_p2), 96  }
   0x6   : > { %207 = sbr.rel (%p204_p2) target bundleno = 2280 (0x8e8), region = 40  ;;  %s1154_s25 = smov (!%p204_p2), 120  }
   0x7   : > { %s1155_s26 = smov (!%p204_p2), 88   ;;  %s1156_s30 = smov (!%p204_p2), 64  }
   0x8   : > { %s1157_s6 = smov (!%p204_p2), 56   ;;  %s1158_s7 = smov (!%p204_p2), 80  }
   0x9   : > { %s1159_s8 = smov (!%p204_p2), 112   ;;  %s1160_s13 = smov (!%p204_p2), 72  }
   0xa   : > { %s1161_s14 = smov (!%p204_p2), 104   ;;  %s1162_s22 = smov (!%p204_p2), 48  }
   0xb   : > { %v1151_v0 = vmov 0.0   ;;  %vm1152_vm0 = vmmov 0   ;;  %s1338_s19 = smov (!%p236_p3, %s987_s19), 1  ;;  %vm276_vm1 = vcmask 64512   ;;  %v268_v10 = vlaneseq  ;;  %v385_v42 = vld [vmem:[%s1333_s2] sm:$0xf] }
   0xc   : > { %1034 = vmatprep.subr.bf16.mxu0 %v1151_v0  ;;  %1036 = vmatprep.mubr.msk.bf16.mxu0 %vm1152_vm0, %v1151_v0  ;;  %s1211_s20 = sshll.u32 %s1338_s19, 3  ;;  %s242_s29 = scalar_lea.vmem %s1332_s1, %s1338_s19  ;;  %vm340_vm2 = vcmask 1043456   ;;  %v545_v60 = vld [vmem:[%s1333_s2 + $0x4] sm:$0xf]  ;;  %vm911_vm3 = vcmask 261120  }
   0xd   : > { %1040 = vmatprep.subr.bf16.mxu1 %v1151_v0  ;;  %1042 = vmatprep.mubr.msk.bf16.mxu1 %vm1152_vm0, %v1151_v0  ;;  %s239_s23 = scalar_lea.vmem %s1331_s0, %s1211_s20  ;;  %v269_v11 = vshrl.u32 %v268_v10, 7  ;;  %v252_v12 = vld [vmem:[%s242_s29] sm:$0x1]  ;;  %v390_v45 = vsel %vm340_vm2, %v385_v42, 0  ;;  %v550_v61 = vsel %vm340_vm2, %v545_v60, 0  ;;  %s246_s17 = scalar_lea.vmem %s1335_s4, %s1211_s20 }
   0xe   : > { %v263_v1 = vld [vmem:[%s239_s23] sm:$0xff]  ;;  %v253_v13 = vmul.f32 -1e+09, %v252_v12  ;;  %v863_v60 = vld [vmem:[%s1333_s2 + $0xc] sm:$0xf] }
   0xf   : > { %v1217_v2 = vpack.c.bf16 %v263_v1, %v263_v1  ;;  %v264_v3 = vmul.f32 0.35355338, %v263_v1  ;;  %v270_v14 = vsub.s32 0, %v269_v11 }
  0x11   : > { %274 = vrot.lane.b32.xlu0 %v1217_v2, %s1153_s24  ;;  %v1220_v4 = vpack.c.bf16 %v264_v3, %v264_v3  ;;  %v1239_v15 = vrot.slane %v253_v13, %v270_v14 }
  0x13   : > { %434 = vrot.lane.b32.xlu1 %v1220_v4, %s1154_s25  ;;  %s1163_s25 = smov 40  }
  0x15   : > { %436 = vrot.lane.b32.xlu0 %v1217_v2, %s1155_s26 }
  0x83   : > { %v275_v5 = vpop.permute.xlu0 %274 }
  0x84   : > { %v281_v6 = vsel %vm276_vm1, %v275_v5, 0 }
  0x85   : > { %1035 = vmatpush3.bf16.xpose.msra.mxu0 %v281_v6  ;;  %v435_v9 = vpop.permute.xlu1 %434 }
  0x86   : > { %1052 = vmatprep.subr.bf16.mxu0 %v1151_v0 }
  0x87   : > { %v437_v7 = vpop.permute.xlu0 %436 }
  0x88   : > { %v442_v8 = vsel %vm276_vm1, %v437_v7, 0 }
  0x8c   : > { %1037 = vmatmul.mubr.msk.bf16.vlgmr.msra.gmra.mxu0 %vm276_vm1, %v1220_v4 }
  0x8d   : > { %1053 = vmatpush3.bf16.xpose.msra.mxu0 %v442_v8  ;;  %1054 = vmatprep.mubr.msk.bf16.mxu0 %vm1152_vm0, %v1151_v0 }
  0x8e   : > { %1064 = vmatprep.subr.bf16.mxu0 %v1151_v0 }
  0x94   : > { %1055 = vmatmul.mubr.msk.bf16.vlgmr.msra.gmra.mxu0 %vm276_vm1, %v435_v9 }
  0x95   : > { %1066 = vmatprep.mubr.msk.bf16.mxu0 %vm1152_vm0, %v1151_v0  ;;  %1065 = vmatpush3.bf16.msra.mxu0 %v550_v61 }
  0x96   : > { %1076 = vmatprep.subr.bf16.mxu0 %v1151_v0 }
 0x14c   : > { %v317_v16 = vpop.f32.mrf.mxu0 }
 0x14d   : > { %v318_v17 = vadd.f32 %v317_v16, %v1239_v15 }
 0x14e   : > { %v1038_v18 = vpop.f32.mrf.mxu0 }
 0x14f   : > { %v323_v19 = vsel %vm276_vm1, %v318_v17, -inf }
 0x150   : > { %324 = vmax.xlane.f32.xlu1 %v323_v19  ;;  %v320_v20 = vpop.f32.mrf.mxu0 }
 0x152   : > { %v1039_v21 = vpop.f32.mrf.mxu0 }
 0x154   : > { %v478_v22 = vpop.f32.mrf.mxu0 }
 0x155   : > { %v479_v23 = vadd.f32 %v478_v22, %v1239_v15  ;;  %v254_v22 = vld [vmem:[%s246_s17] sm:$0xff] }
 0x156   : > { %v1056_v24 = vpop.f32.mrf.mxu0 }
 0x157   : > { %v484_v25 = vsel %vm276_vm1, %v479_v23, -inf }
 0x158   : > { %485 = vmax.xlane.f32.xlu1 %v484_v25  ;;  %v481_v26 = vpop.f32.mrf.mxu0 }
 0x15a   : > { %v1057_v27 = vpop.f32.mrf.mxu0 }
 0x1d9   : > { %v325_v28 = vpop.xlane.xlu1 %324 }
 0x1da   : > { %v326_v29 = vsub.f32 %v318_v17, %v325_v28 }
 0x1dc   : > { %v327_v30 = vmul.f32 1.442695, %v326_v29 }
 0x1de   : > { %1127 = vpow2.f32 %v327_v30 }
 0x1e1   : > { %v486_v31 = vpop.xlane.xlu1 %485 }
 0x1e2   : > { %v487_v32 = vsub.f32 %v479_v23, %v486_v31  ;;  %v995_v23 = vld [vmem:[%s1334_s3] ss:$0 sm:$0xff] }
 0x1e3   : > { %v262_v24 = vadd.f32 %v995_v23, %v254_v22 }
 0x1e4   : > { %v488_v33 = vmul.f32 1.442695, %v487_v32 }
 0x1e6   : > { %1129 = vpow2.f32 %v488_v33 }
 0x1eb   : > { %v1128_v34 = vpop.eup %1127 }
 0x1ec   : > { %v329_v35 = vsel %vm276_vm1, %v1128_v34, 0.0 }
 0x1ed   : > { %330 = vadd.xlane.f32.xlu0 %v329_v35 }
 0x1f3   : > { %v1130_v36 = vpop.eup %1129 }
 0x1f4   : > { %v490_v37 = vsel %vm276_vm1, %v1130_v36, 0.0 }
 0x1f5   : > { %491 = vadd.xlane.f32.xlu1 %v490_v37 }
 0x203   : > { %335 = vrot.lane.b32.xlu0 %v1217_v2, %s1156_s30  ;;  %s250_s30 = scalar_lea.vmem %s1336_s5, %s1211_s20 }
 0x206   : > { %496 = vrot.lane.b32.xlu1 %v1217_v2, %s1157_s6 }
 0x207   : > { %595 = vrot.lane.b32.xlu0 %v1217_v2, %s1158_s7 }
 0x20b   : > { %593 = vrot.lane.b32.xlu0 %v1220_v4, %s1159_s8 }
 0x276   : > { %v331_v38 = vpop.xlane.xlu0 %330 }
 0x277   : > { %1131 = vrcp.f32 %v331_v38 }
 0x27a   : > { %v336_v39 = vpop.permute.xlu0 %335 }
 0x27b   : > { %v342_v40 = vsel %vm340_vm2, %v336_v39, 0  ;;  %v704_v39 = vld [vmem:[%s1333_s2 + $0x8] sm:$0xf] }
 0x27c   : > { %1041 = vmatpush3.bf16.msra.mxu1 %v342_v40  ;;  %v709_v40 = vsel %vm340_vm2, %v704_v39, 0 }
 0x27d   : > { %1046 = vmatprep.subr.bf16.mxu1 %v1151_v0 }
 0x27e   : > { %v492_v46 = vpop.xlane.xlu1 %491  ;;  %v596_v56 = vpop.permute.xlu0 %595 }
 0x27f   : > { %1133 = vrcp.f32 %v492_v46  ;;  %v601_v57 = vsel %vm276_vm1, %v596_v56, 0 }
 0x282   : > { %v497_v47 = vpop.permute.xlu1 %496  ;;  %v594_v59 = vpop.permute.xlu0 %593 }
 0x283   : > { %v502_v50 = vsel %vm340_vm2, %v497_v47, 0 }
 0x284   : > { %v1132_v41 = vpop.eup %1131 }
 0x285   : > { %v333_v43 = vmul.f32 %v1132_v41, %v1128_v34 }
 0x287   : > { %v334_v44 = vpack.c.bf16 %v333_v43, %v333_v43 }
 0x289   : > { %1043 = vmatmul.mubr.msk.bf16.vlgmr.msra.gmra.mxu1 %vm276_vm1, %v334_v44 }
 0x28a   : > { %1047 = vmatpush3.bf16.msra.mxu1 %v390_v45  ;;  %1048 = vmatprep.mubr.msk.bf16.mxu1 %vm1152_vm0, %v1151_v0 }
 0x28b   : > { %1058 = vmatprep.subr.bf16.mxu1 %v1151_v0 }
 0x28c   : > { %v1134_v51 = vpop.eup %1133 }
 0x28d   : > { %v494_v54 = vmul.f32 %v1134_v51, %v1130_v36 }
 0x28f   : > { %v495_v58 = vpack.c.bf16 %v494_v54, %v494_v54 }
 0x349   : > { %v378_v48 = vpop.f32.mrf.mxu1 }
 0x34a   : > { %v384_v49 = vpack.c.bf16 %v378_v48, %v378_v48 }
 0x34b   : > { %v1044_v52 = vpop.f32.mrf.mxu1 }
 0x34c   : > { %1049 = vmatmul.mubr.msk.bf16.vlgmr.msra.gmra.mxu1 %vm276_vm1, %v384_v49 }
 0x34d   : > { %1059 = vmatpush3.bf16.msra.mxu1 %v502_v50  ;;  %v381_v53 = vpop.f32.mrf.mxu1  ;;  %1060 = vmatprep.mubr.msk.bf16.mxu1 %vm1152_vm0, %v1151_v0 }
 0x34e   : > { %1070 = vmatprep.subr.bf16.mxu1 %v1151_v0 }
 0x34f   : > { %v1045_v55 = vpop.f32.mrf.mxu1 }
 0x354   : > { %1061 = vmatmul.mubr.msk.bf16.vlgmr.msra.gmra.mxu1 %vm276_vm1, %v495_v58 }
 0x355   : > { %1071 = vmatpush3.bf16.xpose.msra.mxu1 %v601_v57  ;;  %1072 = vmatprep.mubr.msk.bf16.mxu1 %vm1152_vm0, %v1151_v0 }
 0x356   : > { %1082 = vmatprep.subr.bf16.mxu1 %v1151_v0 }
 0x35c   : > { %1073 = vmatmul.mubr.msk.bf16.vlgmr.msra.gmra.mxu1 %vm276_vm1, %v594_v59 }
 0x35d   : > { %1084 = vmatprep.mubr.msk.bf16.mxu1 %vm1152_vm0, %v1151_v0  ;;  %1083 = vmatpush3.bf16.msra.mxu1 %v709_v40 }
 0x35e   : > { %1094 = vmatprep.subr.bf16.mxu1 %v1151_v0 }
 0x40c   : > { %v426_v62 = vpop.f32.mrf.mxu1 }
 0x40e   : > { %v1050_v63 = vpop.f32.mrf.mxu1 }
 0x410   : > { %v429_v1 = vpop.f32.mrf.mxu1 }
 0x412   : > { %v1051_v3 = vpop.f32.mrf.mxu1 }
 0x414   : > { %v538_v5 = vpop.f32.mrf.mxu1 }
 0x415   : > { %v544_v6 = vpack.c.bf16 %v538_v5, %v538_v5 }
 0x416   : > { %v1062_v7 = vpop.f32.mrf.mxu1 }
 0x417   : > { %1067 = vmatmul.mubr.msk.bf16.vlgmr.msra.gmra.mxu0 %vm276_vm1, %v544_v6 }
 0x418   : > { %v541_v8 = vpop.f32.mrf.mxu1  ;;  %1078 = vmatprep.mubr.msk.bf16.mxu0 %vm1152_vm0, %v1151_v0 }
 0x41a   : > { %v1063_v9 = vpop.f32.mrf.mxu1 }
 0x41c   : > { %v637_v10 = vpop.f32.mrf.mxu1 }
 0x41d   : > { %v638_v11 = vadd.f32 %v637_v10, %v1239_v15 }
 0x41e   : > { %v1074_v12 = vpop.f32.mrf.mxu1 }
 0x41f   : > { %v643_v13 = vsel %vm276_vm1, %v638_v11, -inf }
 0x420   : > { %644 = vmax.xlane.f32.xlu1 %v643_v13  ;;  %v640_v14 = vpop.f32.mrf.mxu1 }
 0x422   : > { %v1075_v16 = vpop.f32.mrf.mxu1 }
 0x431   : > { %754 = vrot.lane.b32.xlu1 %v1217_v2, %s1160_s13 }
 0x435   : > { %752 = vrot.lane.b32.xlu1 %v1220_v4, %s1161_s14  ;;  %v432_v4 = vadd.f32 %v426_v62, %v262_v24 }
 0x4a9   : > { %v645_v17 = vpop.xlane.xlu1 %644 }
 0x4aa   : > { %v646_v18 = vsub.f32 %v638_v11, %v645_v17 }
 0x4ac   : > { %v647_v19 = vmul.f32 1.442695, %v646_v18 }
 0x4ad   : > { %v755_v34 = vpop.permute.xlu1 %754 }
 0x4ae   : > { %1135 = vpow2.f32 %v647_v19  ;;  %v760_v36 = vsel %vm276_vm1, %v755_v34, 0 }
 0x4b1   : > { %v753_v38 = vpop.permute.xlu1 %752 }
 0x4bb   : > { %v1136_v20 = vpop.eup %1135 }
 0x4bc   : > { %v649_v21 = vsel %vm276_vm1, %v1136_v20, 0.0 }
 0x4bd   : > { %650 = vadd.xlane.f32.xlu0 %v649_v21 }
 0x4d3   : > { %655 = vrot.lane.b32.xlu0 %v1217_v2, %s1162_s22 }
 0x4d7   : > { %v586_v25 = vpop.f32.mrf.mxu0 }
 0x4d8   : > { %v592_v26 = vadd.f32 %v586_v25, %v432_v4 }
 0x4d9   : > { %v1068_v27 = vpop.f32.mrf.mxu0 }
 0x4db   : > { %v589_v28 = vpop.f32.mrf.mxu0 }
 0x4dd   : > { %v1069_v29 = vpop.f32.mrf.mxu0 }
 0x546   : > { %v651_v30 = vpop.xlane.xlu0 %650 }
 0x547   : > { %1137 = vrcp.f32 %v651_v30 }
 0x54a   : > { %v656_v31 = vpop.permute.xlu0 %655 }
 0x54b   : > { %v661_v32 = vsel %vm340_vm2, %v656_v31, 0 }
 0x54c   : > { %1077 = vmatpush3.bf16.msra.mxu0 %v661_v32 }
 0x54d   : > { %1088 = vmatprep.subr.bf16.mxu0 %v1151_v0 }
 0x554   : > { %v1138_v33 = vpop.eup %1137 }
 0x555   : > { %v653_v35 = vmul.f32 %v1138_v33, %v1136_v20 }
 0x557   : > { %v654_v37 = vpack.c.bf16 %v653_v35, %v653_v35 }
 0x559   : > { %1079 = vmatmul.mubr.msk.bf16.vlgmr.msra.gmra.mxu0 %vm276_vm1, %v654_v37 }
 0x55a   : > { %1089 = vmatpush3.bf16.xpose.msra.mxu0 %v760_v36  ;;  %1090 = vmatprep.mubr.msk.bf16.mxu0 %vm1152_vm0, %v1151_v0 }
 0x55b   : > { %1100 = vmatprep.subr.bf16.mxu0 %v1151_v0 }
 0x561   : > { %1091 = vmatmul.mubr.msk.bf16.vlgmr.msra.gmra.mxu0 %vm276_vm1, %v753_v38 }
 0x562   : > { %1102 = vmatprep.mubr.msk.bf16.mxu0 %vm1152_vm0, %v1151_v0 }
 0x619   : > { %v697_v41 = vpop.f32.mrf.mxu0 }
 0x61a   : > { %v703_v42 = vpack.c.bf16 %v697_v41, %v697_v41 }
 0x61b   : > { %v1080_v43 = vpop.f32.mrf.mxu0 }
 0x61c   : > { %1085 = vmatmul.mubr.msk.bf16.vlgmr.msra.gmra.mxu1 %vm276_vm1, %v703_v42 }
 0x61d   : > { %v700_v44 = vpop.f32.mrf.mxu0  ;;  %1096 = vmatprep.mubr.msk.bf16.mxu1 %vm1152_vm0, %v1151_v0 }
 0x61f   : > { %v1081_v45 = vpop.f32.mrf.mxu0 }
 0x621   : > { %v796_v46 = vpop.f32.mrf.mxu0 }
 0x622   : > { %v797_v47 = vadd.f32 %v796_v46, %v1239_v15 }
 0x623   : > { %v1092_v48 = vpop.f32.mrf.mxu0 }
 0x624   : > { %v802_v49 = vsel %vm276_vm1, %v797_v47, -inf }
 0x625   : > { %803 = vmax.xlane.f32.xlu0 %v802_v49  ;;  %v799_v50 = vpop.f32.mrf.mxu0 }
 0x627   : > { %v1093_v51 = vpop.f32.mrf.mxu0 }
 0x63b   : > { %814 = vrot.lane.b32.xlu0 %v1217_v2, %s1163_s25  ;;  %v868_v2 = vsel %vm340_vm2, %v863_v60, 0 }
 0x63c   : > { %1101 = vmatpush3.bf16.msra.mxu0 %v868_v2 }
 0x6ae   : > { %v804_v52 = vpop.xlane.xlu0 %803 }
 0x6af   : > { %v805_v53 = vsub.f32 %v797_v47, %v804_v52 }
 0x6b1   : > { %v806_v54 = vmul.f32 1.442695, %v805_v53 }
 0x6b2   : > { %v815_v56 = vpop.permute.xlu0 %814 }
 0x6b3   : > { %1139 = vpow2.f32 %v806_v54  ;;  %v820_v15 = vsel %vm340_vm2, %v815_v56, 0 }
 0x6b4   : > { %1095 = vmatpush3.bf16.msra.mxu1 %v820_v15 }
 0x6c0   : > { %v1140_v55 = vpop.eup %1139 }
 0x6c1   : > { %v808_v0 = vsel %vm276_vm1, %v1140_v55, 0.0 }
 0x6c2   : > { %809 = vadd.xlane.f32.xlu1 %v808_v0 }
 0x6dc   : > { %v745_v57 = vpop.f32.mrf.mxu1 }
 0x6dd   : > { %v751_v58 = vadd.f32 %v745_v57, %v592_v26 }
 0x6de   : > { %v1086_v59 = vpop.f32.mrf.mxu1 }
 0x6e0   : > { %v748_v61 = vpop.f32.mrf.mxu1 }
 0x6e2   : > { %v1087_v62 = vpop.f32.mrf.mxu1 }
 0x74b   : > { %v810_v63 = vpop.xlane.xlu1 %809 }
 0x74c   : > { %1141 = vrcp.f32 %v810_v63 }
 0x759   : > { %v1142_v1 = vpop.eup %1141 }
 0x75a   : > { %v812_v3 = vmul.f32 %v1142_v1, %v1140_v55 }
 0x75c   : > { %v813_v5 = vpack.c.bf16 %v812_v3, %v812_v3 }
 0x75e   : > { %1097 = vmatmul.mubr.msk.bf16.vlgmr.msra.gmra.mxu1 %vm276_vm1, %v813_v5 }
 0x81e   : > { %v856_v6 = vpop.f32.mrf.mxu1 }
 0x81f   : > { %v862_v7 = vpack.c.bf16 %v856_v6, %v856_v6 }
 0x820   : > { %v1098_v8 = vpop.f32.mrf.mxu1 }
 0x821   : > { %1103 = vmatmul.mubr.msk.bf16.vlgmr.msra.gmra.mxu0 %vm276_vm1, %v862_v7 }
 0x822   : > { %v859_v9 = vpop.f32.mrf.mxu1 }
 0x824   : > { %v1099_v10 = vpop.f32.mrf.mxu1 }
 0x8e1   : > { %v904_v11 = vpop.f32.mrf.mxu0 }
 0x8e2   : > { %v910_v12 = vadd.f32 %v904_v11, %v751_v58 }
 0x8e3   : > { %v1104_v13 = vpop.f32.mrf.mxu0 }
 0x8e4   : > { %912 = vst.msk [vmem:[%s250_s30] sm:$0xff] %vm911_vm3, %v910_v12 }
 0x8e5   : > { %v907_v14 = vpop.f32.mrf.mxu0 }
 0x8e7   : > { %v1105_v16 = vpop.f32.mrf.mxu0 }
 0x8e8 PF: > { %s15_s18 = sadd.s32 1, %s1149_s18  }
 0x8e9   : > { %p12_p4 = scmp.ge.s32.totalorder %s15_s18, 4  }
 0x8eb   :  { %14 = sbr.rel (!%p12_p4) target bundleno = 1 (0x1), region = 76 }

// kernel: _lambda_.31
= control target key start
LH: loop header
LB: loop body
LE: loop exit
PB: predicated region body
PF: predicated region fallthrough
CT: control target
= control target key end

     0   :  { %vm28_vm0 = vcmask 261120   ;;  %v217_v14 = vmov 0.0   ;;  %vm218_vm1 = vmmov 0   ;;  %v219_v34 = vmov 0   ;;  %s296_s0 = inlined_call_operand.vmem [shape: f32[16,32], index: 0, kind: input, shape index: {}]   ;;  %s297_s1 = inlined_call_operand.vmem [shape: bf16[32,64], index: 1, kind: input, shape index: {}]   ;;  %s298_s3 = inlined_call_operand.vmem [shape: f32[1,32], index: 3, kind: input, shape index: {}]   ;;  %s299_s4 = inlined_call_operand.vmem [shape: f32[1,32], index: 4, kind: input, shape index: {}]   ;;  %s300_s5 = inlined_call_operand.vmem [shape: f32[16,1], index: 5, kind: input, shape index: {}]   ;;  %s301_s2 = inlined_call_operand.vmem [shape: f32[1,64], index: 2, kind: input, shape index: {}]   ;;  %s302_s6 = inlined_call_operand.vmem [shape: f32[16,32], index: 6, kind: output, shape index: {}]  }
   0x1   :  { %v24_v0 = vld [vmem:[%s296_s0] sm:$0xff]  ;;  %v25_v1 = vld [vmem:[%s296_s0 + $0x8] sm:$0xff]  ;;  %189 = vmatprep.subr.bf16.mxu0 %v217_v14  ;;  %193 = vmatprep.mubr.msk.bf16.mxu0 %vm218_vm1, %v217_v14 }
   0x2   :  { %v29_v2 = vsel %vm28_vm0, %v24_v0, 0.0  ;;  %v32_v3 = vsel %vm28_vm0, %v25_v1, 0.0  ;;  %v203_v15 = vld [vmem:[%s297_s1 + $0x8] sm:$0xff]   ;;  %v204_v16 = vld [vmem:[%s297_s1] sm:$0xff]   ;;  %202 = vset.pattern.permute.xlu1 %v219_v34  ;;  %201 = vset.pattern.permute.xlu0 %v219_v34 }
   0x3   :  { %30 = vadd.xlane.f32.xlu0 %v29_v2  ;;  %190 = vmatpush3.bf16.msra.mxu0 %v203_v15  ;;  %v180_v25 = vld [vmem:[%s298_s3] ss:$0 sm:$0xff]  ;;  %v161_v35 = vld [vmem:[%s300_s5 + $0x8] sm:$0xff] }
   0x4   :  { %191 = vmatprep.subr.bf16.mxu0 %v217_v14  ;;  %v181_v29 = vld [vmem:[%s299_s4] ss:$0 sm:$0xff] }
   0x5   :  { %v160_v36 = vld [vmem:[%s300_s5] sm:$0xff] }
   0x6   :  { %v182_v37 = vld [vmem:[%s301_s2] ss:$0 sm:$0xff]  ;;  %s220_s2 = smov 96  }
   0x7   :  { %33 = vadd.xlane.f32.xlu0 %v32_v3  ;;  %192 = vmatpush3.bf16.msra.mxu0 %v204_v16 }
  0x1d   :  { %164 = vperm.xlu0 %201, %v160_v36  }
  0x8c   :  { %v31_v4 = vpop.xlane.xlu0 %30 }
  0x8d   :  { %v36_v5 = vmul.f32 0.03125, %v31_v4 }
  0x8f   :  { %v38_v6 = vsub.f32 %v24_v0, %v36_v5 }
  0x90   :  { %v34_v7 = vpop.xlane.xlu0 %33 }
  0x91   :  { %v37_v8 = vmul.f32 0.03125, %v34_v7  ;;  %v40_v9 = vmul.f32 %v38_v6, %v38_v6 }
  0x93   :  { %v39_v10 = vsub.f32 %v25_v1, %v37_v8  ;;  %v42_v11 = vsel %vm28_vm0, %v40_v9, 0.0 }
  0x94   :  { %43 = vadd.xlane.f32.xlu1 %v42_v11 }
  0x95   :  { %v41_v12 = vmul.f32 %v39_v10, %v39_v10 }
  0x97   :  { %v45_v13 = vsel %vm28_vm0, %v41_v12, 0.0 }
  0x98   :  { %46 = vadd.xlane.f32.xlu1 %v45_v13  ;;  %v165_v56 = vpop.permute.xlu0 %164 }
  0xa9   :  { %169 = vperm.xlu1 %202, %v161_v35  }
 0x11d   :  { %v44_v17 = vpop.xlane.xlu1 %43 }
 0x11e   :  { %v48_v18 = vmul.f32 0.03125, %v44_v17 }
 0x120   :  { %v50_v19 = vadd.f32 1e-05, %v48_v18 }
 0x121   :  { %v47_v20 = vpop.xlane.xlu1 %46 }
 0x122   :  { %205 = vrsqrt.f32 %v50_v19  ;;  %v49_v21 = vmul.f32 0.03125, %v47_v20 }
 0x124   :  { %v51_v22 = vadd.f32 1e-05, %v49_v21 }
 0x125   :  { %v170_v54 = vpop.permute.xlu1 %169 }
 0x126   :  { %207 = vrsqrt.f32 %v51_v22 }
 0x12f   :  { %v206_v23 = vpop.eup %205 }
 0x130   :  { %v54_v24 = vmul.f32 %v206_v23, %v38_v6 }
 0x132   :  { %v62_v28 = vmul.f32 %v180_v25, %v54_v24 }
 0x133   :  { %v208_v26 = vpop.eup %207 }
 0x134   :  { %v55_v27 = vmul.f32 %v208_v26, %v39_v10  ;;  %v70_v31 = vadd.f32 %v181_v29, %v62_v28 }
 0x136   :  { %v63_v30 = vmul.f32 %v180_v25, %v55_v27 }
 0x138   :  { %v71_v32 = vadd.f32 %v181_v29, %v63_v30 }
 0x13a   :  { %v72_v33 = vpack.c.bf16 %v71_v32, %v70_v31 }
 0x13c   :  { %194 = vmatmul.mubr.msk.bf16.vlgmr.msra.gmra.mxu0 %vm28_vm0, %v72_v33 }
 0x1fc   :  { %v133_v38 = vpop.f32.mrf.mxu0 }
 0x1fd   :  { %v134_v39 = vadd.f32 %v182_v37, %v133_v38 }
 0x1fe   :  { %v195_v40 = vpop.f32.mrf.mxu0 }
 0x1ff   :  { %v140_v41 = vsub.f32 0.0, %v134_v39 }
 0x200   :  { %v136_v42 = vpop.f32.mrf.mxu0 }
 0x201   :  { %v142_v43 = vmul.f32 1.442695, %v140_v41  ;;  %v137_v44 = vadd.f32 %v182_v37, %v136_v42 }
 0x202   :  { %v196_v45 = vpop.f32.mrf.mxu0 }
 0x203   :  { %209 = vpow2.f32 %v142_v43  ;;  %v141_v46 = vsub.f32 0.0, %v137_v44 }
 0x205   :  { %v144_v47 = vmul.f32 1.442695, %v141_v46 }
 0x207   :  { %211 = vpow2.f32 %v144_v47 }
 0x210   :  { %v210_v48 = vpop.eup %209 }
 0x211   :  { %v146_v49 = vadd.f32 1.0, %v210_v48 }
 0x213   :  { %213 = vrcp.f32 %v146_v49 }
 0x214   :  { %v212_v50 = vpop.eup %211 }
 0x215   :  { %v147_v51 = vadd.f32 1.0, %v212_v50 }
 0x217   :  { %215 = vrcp.f32 %v147_v51 }
 0x220   :  { %v214_v52 = vpop.eup %213 }
 0x221   :  { %152 = vrot.lane.b32.xlu1 %v214_v52, %s220_s2 }
 0x224   :  { %v216_v53 = vpop.eup %215 }
 0x225   :  { %154 = vrot.lane.b32.xlu1 %v216_v53, %s220_s2 }
 0x293   :  { %v153_v55 = vpop.permute.xlu1 %152 }
 0x294   :  { %v158_v57 = vmul.f32 %v153_v55, %v134_v39 }
 0x296   :  { %v172_v58 = vmul.f32 %v165_v56, %v158_v57 }
 0x297   :  { %v155_v59 = vpop.permute.xlu1 %154 }
 0x298   :  { %174 = vst.msk [vmem:[%s302_s6] sm:$0xff] %vm28_vm0, %v172_v58  ;;  %v159_v60 = vmul.f32 %v155_v59, %v137_v44 }
 0x29a   :  { %v173_v61 = vmul.f32 %v170_v54, %v159_v60 }
 0x29c   :  { %175 = vst.msk [vmem:[%s302_s6 + $0x8] sm:$0xff] %vm28_vm0, %v173_v61 }

// kernel: _lambda_.38
= control target key start
LH: loop header
LB: loop body
LE: loop exit
PB: predicated region body
PF: predicated region fallthrough
CT: control target
= control target key end

     0   :  { %10 = vsyncpa [#allocation3], 0  ;;  %s307_s0 = inlined_call_operand.vmem [shape: f32[16,32], index: 0, kind: input, shape index: {}]   ;;  %s308_s1 = inlined_call_operand.vmem [shape: bf16[32,96], index: 1, kind: input, shape index: {}]   ;;  %s309_s2 = inlined_call_operand.vmem [shape: f32[1,96], index: 2, kind: input, shape index: {}]   ;;  %s310_s3 = inlined_call_operand.hbm [shape: f32[1,32], index: 3, kind: input, shape index: {}]   ;;  %s311_s4 = inlined_call_operand.hbm [shape: f32[1,32], index: 4, kind: input, shape index: {}]   ;;  %s312_s5 = inlined_call_operand.vmem [shape: f32[16,96], index: 5, kind: output, shape index: {}]  }
   0x1   :  { %11 = vsyncpa [#allocation5], 0  ;;  %s241_s18 = smov [#allocation2]   ;;  %s242_s20 = smov [#allocation4]  }
   0x2   :  { %s24_s19 = sshll.u32 %s241_s18, 4  ;;  %s34_s21 = sshll.u32 %s242_s20, 4  ;;  %s25_s19 = int_to_ptr.vmem [resolvable:$true] %s24_s19  ;;  %s35_s21 = int_to_ptr.vmem [resolvable:$true] %s34_s21 }
   0x3   :  { %s205_s22 = scalar_lea.vmem %s25_s19, 16  ;;  %s209_s23 = scalar_lea.vmem %s25_s19, 32 }
   0x4   :  { %p206_p0 = scmp.ne.s32.totalorder %s25_s19, %s205_s22  ;;  %p210_p1 = scmp.lt.s32.totalorder %s25_s19, %s25_s19 }
   0x5   :  { %p211_p2 = scmp.lt.s32.totalorder %s209_s23, %s205_s22 }
   0x7   :  { %p212_p3 = por %p211_p2, %p210_p1 }
   0x9   :  { %p213_p4 = pnand %p212_p3, %p206_p0 }
   0xb   :  { %216 = shalt.err (!%p213_p4)
}
   0xc   :  { %27 = dma.hbm_to_vmem [thread:$0]  %s310_s3, 16, %s25_s19, [#allocation3]  }
   0xd   :  { %s225_s26 = scalar_lea.vmem %s35_s21, 16  ;;  %s229_s27 = scalar_lea.vmem %s35_s21, 32 }
   0xe   :  { %p226_p5 = scmp.ne.s32.totalorder %s35_s21, %s225_s26  ;;  %p230_p6 = scmp.lt.s32.totalorder %s35_s21, %s35_s21 }
   0xf   :  { %p231_p7 = scmp.lt.s32.totalorder %s229_s27, %s225_s26 }
  0x11   :  { %p232_p8 = por %p231_p7, %p230_p6 }
  0x13   :  { %p233_p9 = pnand %p232_p8, %p226_p5 }
  0x15   :  { %236 = shalt.err (!%p233_p9)
}
  0x16   :  { %37 = dma.hbm_to_vmem [thread:$0]  %s311_s4, 16, %s35_s21, [#allocation5]  }
  0x17   :  { %237 = dma.done.wait [#allocation3], 16  }
  0x18   :  { %238 = vsyncadd [#allocation3], 4294967280 }
  0x19   :  { %239 = dma.done.wait [#allocation5], 16  }
  0x1a   :  { %240 = vsyncadd [#allocation5], 4294967280  ;;  %vm49_vm0 = vcmask 261120   ;;  %v45_v0 = vld [vmem:[%s307_s0] sm:$0xff]  ;;  %v46_v1 = vld [vmem:[%s307_s0 + $0x8] sm:$0xff]  ;;  %v243_v15 = vmov 0.0  }
  0x1b   :  { %v50_v2 = vsel %vm49_vm0, %v45_v0, 0.0  ;;  %v53_v3 = vsel %vm49_vm0, %v46_v1, 0.0  ;;  %v191_v14 = vld [vmem:[%s308_s1 + $0x8] sm:$0xff]   ;;  %179 = vmatprep.subr.bf16.mxu0 %v243_v15  ;;  %vm244_vm1 = vmmov 0   ;;  %v192_v16 = vld [vmem:[%s308_s1] sm:$0xff]   ;;  %vm161_vm2 = vcmask 785408  }
  0x1c   :  { %51 = vadd.xlane.f32.xlu0 %v50_v2  ;;  %183 = vmatprep.mubr.msk.bf16.mxu0 %vm244_vm1, %v243_v15  ;;  %v170_v25 = vld [vmem:[#allocation2] ss:$0 sm:$0xff]  ;;  %v171_v29 = vld [vmem:[#allocation4] ss:$0 sm:$0xff] }
  0x1d   :  { %180 = vmatpush3.bf16.msra.mxu0 %v191_v14  ;;  %v172_v34 = vld [vmem:[%s309_s2] ss:$0 sm:$0xff] }
  0x1e   :  { %181 = vmatprep.subr.bf16.mxu0 %v243_v15 }
  0x20   :  { %54 = vadd.xlane.f32.xlu0 %v53_v3 }
  0x21   :  { %182 = vmatpush3.bf16.msra.mxu0 %v192_v16 }
  0xa5   :  { %v52_v4 = vpop.xlane.xlu0 %51 }
  0xa6   :  { %v57_v5 = vmul.f32 0.03125, %v52_v4 }
  0xa8   :  { %v59_v6 = vsub.f32 %v45_v0, %v57_v5 }
  0xa9   :  { %v55_v7 = vpop.xlane.xlu0 %54 }
  0xaa   :  { %v58_v8 = vmul.f32 0.03125, %v55_v7  ;;  %v61_v9 = vmul.f32 %v59_v6, %v59_v6 }
  0xac   :  { %v60_v10 = vsub.f32 %v46_v1, %v58_v8  ;;  %v63_v11 = vsel %vm49_vm0, %v61_v9, 0.0 }
  0xad   :  { %64 = vadd.xlane.f32.xlu1 %v63_v11 }
  0xae   :  { %v62_v12 = vmul.f32 %v60_v10, %v60_v10 }
  0xb0   :  { %v66_v13 = vsel %vm49_vm0, %v62_v12, 0.0 }
  0xb1   :  { %67 = vadd.xlane.f32.xlu1 %v66_v13 }
 0x136   :  { %v65_v17 = vpop.xlane.xlu1 %64 }
 0x137   :  { %v69_v18 = vmul.f32 0.03125, %v65_v17 }
 0x139   :  { %v71_v19 = vadd.f32 1e-05, %v69_v18 }
 0x13a   :  { %v68_v20 = vpop.xlane.xlu1 %67 }
 0x13b   :  { %193 = vrsqrt.f32 %v71_v19  ;;  %v70_v21 = vmul.f32 0.03125, %v68_v20 }
 0x13d   :  { %v72_v22 = vadd.f32 1e-05, %v70_v21 }
 0x13f   :  { %195 = vrsqrt.f32 %v72_v22 }
 0x148   :  { %v194_v23 = vpop.eup %193 }
 0x149   :  { %v75_v24 = vmul.f32 %v194_v23, %v59_v6 }
 0x14b   :  { %v83_v28 = vmul.f32 %v170_v25, %v75_v24 }
 0x14c   :  { %v196_v26 = vpop.eup %195 }
 0x14d   :  { %v76_v27 = vmul.f32 %v196_v26, %v60_v10  ;;  %v91_v31 = vadd.f32 %v171_v29, %v83_v28 }
 0x14f   :  { %v84_v30 = vmul.f32 %v170_v25, %v76_v27 }
 0x151   :  { %v92_v32 = vadd.f32 %v171_v29, %v84_v30 }
 0x153   :  { %v93_v33 = vpack.c.bf16 %v92_v32, %v91_v31 }
 0x155   :  { %184 = vmatmul.mubr.msk.bf16.vlgmr.msra.gmra.mxu0 %vm49_vm0, %v93_v33 }
 0x215   :  { %v154_v35 = vpop.f32.mrf.mxu0 }
 0x216   :  { %v155_v36 = vadd.f32 %v172_v34, %v154_v35 }
 0x217   :  { %v185_v37 = vpop.f32.mrf.mxu0 }
 0x218   :  { %162 = vst.msk [vmem:[%s312_s5] sm:$0xff] %vm161_vm2, %v155_v36 }
 0x219   :  { %v157_v38 = vpop.f32.mrf.mxu0 }
 0x21a   :  { %v158_v39 = vadd.f32 %v172_v34, %v157_v38 }
 0x21b   :  { %v186_v40 = vpop.f32.mrf.mxu0 }
 0x21c   :  { %163 = vst.msk [vmem:[%s312_s5 + $0x8] sm:$0xff] %vm161_vm2, %v158_v39 }
 0x21d   :  { %168 = vsyncpa [#allocation3], 1 }
 0x21e   :  { %169 = vsyncpa [#allocation5], 1 }

// kernel: _lambda_.43
= control target key start
LH: loop header
LB: loop body
LE: loop exit
PB: predicated region body
PF: predicated region fallthrough
CT: control target
= control target key end

     0   :  { %10 = vsyncpa [#allocation3], 0  ;;  %s326_s0 = inlined_call_operand.vmem [shape: f32[16,32], index: 0, kind: input, shape index: {}]   ;;  %s327_s1 = inlined_call_operand.vmem [shape: bf16[32,128], index: 1, kind: input, shape index: {}]   ;;  %s328_s2 = inlined_call_operand.vmem [shape: f32[1,128], index: 2, kind: input, shape index: {}]   ;;  %s329_s3 = inlined_call_operand.hbm [shape: f32[1,32], index: 3, kind: input, shape index: {}]   ;;  %s330_s4 = inlined_call_operand.hbm [shape: f32[1,32], index: 4, kind: input, shape index: {}]   ;;  %s331_s5 = inlined_call_operand.vmem [shape: f32[16,128], index: 5, kind: output, shape index: {}]  }
   0x1   :  { %11 = vsyncpa [#allocation5], 0  ;;  %s260_s18 = smov [#allocation2]   ;;  %s261_s20 = smov [#allocation4]  }
   0x2   :  { %s24_s19 = sshll.u32 %s260_s18, 4  ;;  %s34_s21 = sshll.u32 %s261_s20, 4  ;;  %s25_s19 = int_to_ptr.vmem [resolvable:$true] %s24_s19  ;;  %s35_s21 = int_to_ptr.vmem [resolvable:$true] %s34_s21 }
   0x3   :  { %s224_s22 = scalar_lea.vmem %s25_s19, 16  ;;  %s228_s23 = scalar_lea.vmem %s25_s19, 32 }
   0x4   :  { %p225_p0 = scmp.ne.s32.totalorder %s25_s19, %s224_s22  ;;  %p229_p1 = scmp.lt.s32.totalorder %s25_s19, %s25_s19 }
   0x5   :  { %p230_p2 = scmp.lt.s32.totalorder %s228_s23, %s224_s22 }
   0x7   :  { %p231_p3 = por %p230_p2, %p229_p1 }
   0x9   :  { %p232_p4 = pnand %p231_p3, %p225_p0 }
   0xb   :  { %235 = shalt.err (!%p232_p4)
}
   0xc   :  { %27 = dma.hbm_to_vmem [thread:$0]  %s329_s3, 16, %s25_s19, [#allocation3]  }
   0xd   :  { %s244_s26 = scalar_lea.vmem %s35_s21, 16  ;;  %s248_s27 = scalar_lea.vmem %s35_s21, 32 }
   0xe   :  { %p245_p5 = scmp.ne.s32.totalorder %s35_s21, %s244_s26  ;;  %p249_p6 = scmp.lt.s32.totalorder %s35_s21, %s35_s21 }
   0xf   :  { %p250_p7 = scmp.lt.s32.totalorder %s248_s27, %s244_s26 }
  0x11   :  { %p251_p8 = por %p250_p7, %p249_p6 }
  0x13   :  { %p252_p9 = pnand %p251_p8, %p245_p5 }
  0x15   :  { %255 = shalt.err (!%p252_p9)
}
  0x16   :  { %37 = dma.hbm_to_vmem [thread:$0]  %s330_s4, 16, %s35_s21, [#allocation5]  }
  0x17   :  { %256 = dma.done.wait [#allocation3], 16  }
  0x18   :  { %257 = vsyncadd [#allocation3], 4294967280 }
  0x19   :  { %258 = dma.done.wait [#allocation5], 16  }
  0x1a   :  { %259 = vsyncadd [#allocation5], 4294967280  ;;  %vm49_vm0 = vcmask 261120   ;;  %v45_v0 = vld [vmem:[%s326_s0] sm:$0xff]  ;;  %v46_v1 = vld [vmem:[%s326_s0 + $0x8] sm:$0xff]  ;;  %v262_v15 = vmov 0.0  }
  0x1b   :  { %v50_v2 = vsel %vm49_vm0, %v45_v0, 0.0  ;;  %v53_v3 = vsel %vm49_vm0, %v46_v1, 0.0  ;;  %v202_v14 = vld [vmem:[%s327_s1 + $0x8] sm:$0xff]   ;;  %190 = vmatprep.subr.bf16.mxu0 %v262_v15  ;;  %vm263_vm1 = vmmov 0   ;;  %v203_v16 = vld [vmem:[%s327_s1] sm:$0xff]  }
  0x1c   :  { %51 = vadd.xlane.f32.xlu0 %v50_v2  ;;  %194 = vmatprep.mubr.msk.bf16.mxu0 %vm263_vm1, %v262_v15  ;;  %v181_v25 = vld [vmem:[#allocation2] ss:$0 sm:$0xff]  ;;  %v182_v29 = vld [vmem:[#allocation4] ss:$0 sm:$0xff] }
  0x1d   :  { %191 = vmatpush3.bf16.msra.mxu0 %v202_v14  ;;  %v183_v34 = vld [vmem:[%s328_s2] ss:$0 sm:$0xff] }
  0x1e   :  { %192 = vmatprep.subr.bf16.mxu0 %v262_v15 }
  0x20   :  { %54 = vadd.xlane.f32.xlu0 %v53_v3 }
  0x21   :  { %193 = vmatpush3.bf16.msra.mxu0 %v203_v16 }
  0xa5   :  { %v52_v4 = vpop.xlane.xlu0 %51 }
  0xa6   :  { %v57_v5 = vmul.f32 0.03125, %v52_v4 }
  0xa8   :  { %v59_v6 = vsub.f32 %v45_v0, %v57_v5 }
  0xa9   :  { %v55_v7 = vpop.xlane.xlu0 %54 }
  0xaa   :  { %v58_v8 = vmul.f32 0.03125, %v55_v7  ;;  %v61_v9 = vmul.f32 %v59_v6, %v59_v6 }
  0xac   :  { %v60_v10 = vsub.f32 %v46_v1, %v58_v8  ;;  %v63_v11 = vsel %vm49_vm0, %v61_v9, 0.0 }
  0xad   :  { %64 = vadd.xlane.f32.xlu1 %v63_v11 }
  0xae   :  { %v62_v12 = vmul.f32 %v60_v10, %v60_v10 }
  0xb0   :  { %v66_v13 = vsel %vm49_vm0, %v62_v12, 0.0 }
  0xb1   :  { %67 = vadd.xlane.f32.xlu1 %v66_v13 }
 0x136   :  { %v65_v17 = vpop.xlane.xlu1 %64 }
 0x137   :  { %v69_v18 = vmul.f32 0.03125, %v65_v17 }
 0x139   :  { %v71_v19 = vadd.f32 1e-05, %v69_v18 }
 0x13a   :  { %v68_v20 = vpop.xlane.xlu1 %67 }
 0x13b   :  { %204 = vrsqrt.f32 %v71_v19  ;;  %v70_v21 = vmul.f32 0.03125, %v68_v20 }
 0x13d   :  { %v72_v22 = vadd.f32 1e-05, %v70_v21 }
 0x13f   :  { %206 = vrsqrt.f32 %v72_v22 }
 0x148   :  { %v205_v23 = vpop.eup %204 }
 0x149   :  { %v75_v24 = vmul.f32 %v205_v23, %v59_v6 }
 0x14b   :  { %v83_v28 = vmul.f32 %v181_v25, %v75_v24 }
 0x14c   :  { %v207_v26 = vpop.eup %206 }
 0x14d   :  { %v76_v27 = vmul.f32 %v207_v26, %v60_v10  ;;  %v91_v31 = vadd.f32 %v182_v29, %v83_v28 }
 0x14f   :  { %v84_v30 = vmul.f32 %v181_v25, %v76_v27 }
 0x151   :  { %v92_v32 = vadd.f32 %v182_v29, %v84_v30 }
 0x153   :  { %v93_v33 = vpack.c.bf16 %v92_v32, %v91_v31 }
 0x155   :  { %195 = vmatmul.mubr.msk.bf16.vlgmr.msra.gmra.mxu0 %vm49_vm0, %v93_v33 }
 0x215   :  { %v154_v35 = vpop.f32.mrf.mxu0 }
 0x216   :  { %v155_v36 = vadd.f32 %v183_v34, %v154_v35 }
 0x217   :  { %v196_v37 = vpop.f32.mrf.mxu0 }
 0x218   :  { %v161_v38 = vsub.f32 0.0, %v155_v36 }
 0x219   :  { %v157_v39 = vpop.f32.mrf.mxu0 }
 0x21a   :  { %v163_v40 = vmul.f32 1.442695, %v161_v38  ;;  %v158_v41 = vadd.f32 %v183_v34, %v157_v39 }
 0x21b   :  { %v197_v42 = vpop.f32.mrf.mxu0 }
 0x21c   :  { %208 = vpow2.f32 %v163_v40  ;;  %v162_v43 = vsub.f32 0.0, %v158_v41 }
 0x21e   :  { %v165_v44 = vmul.f32 1.442695, %v162_v43 }
 0x220   :  { %210 = vpow2.f32 %v165_v44 }
 0x229   :  { %v209_v45 = vpop.eup %208 }
 0x22a   :  { %v167_v46 = vadd.f32 1.0, %v209_v45 }
 0x22c   :  { %212 = vrcp.f32 %v167_v46 }
 0x22d   :  { %v211_v47 = vpop.eup %210 }
 0x22e   :  { %v168_v48 = vadd.f32 1.0, %v211_v47 }
 0x230   :  { %214 = vrcp.f32 %v168_v48 }
 0x239   :  { %v213_v49 = vpop.eup %212 }
 0x23a   :  { %v171_v50 = vmul.f32 %v213_v49, %v155_v36 }
 0x23c   :  { %173 = vst [vmem:[%s331_s5] sm:$0xff] %v171_v50 }
 0x23d   :  { %v215_v51 = vpop.eup %214 }
 0x23e   :  { %v172_v52 = vmul.f32 %v215_v51, %v158_v41 }
 0x240   :  { %174 = vst [vmem:[%s331_s5 + $0x8] sm:$0xff] %v172_v52 }
 0x241   :  { %179 = vsyncpa [#allocation3], 1 }
 0x242   :  { %180 = vsyncpa [#allocation5], 1 }

// kernel: _lambda_.40
= control target key start
LH: loop header
LB: loop body
LE: loop exit
PB: predicated region body
PF: predicated region fallthrough
CT: control target
= control target key end

     0   :  { %11 = vsyncpa [#allocation3], 0  ;;  %s403_s0 = inlined_call_operand.vmem [shape: f32[16,32], index: 0, kind: input, shape index: {}]   ;;  %s404_s1 = inlined_call_operand.vmem [shape: bf16[32,64], index: 1, kind: input, shape index: {}]   ;;  %s405_s2 = inlined_call_operand.hbm [shape: f32[1,64], index: 2, kind: input, shape index: {}]   ;;  %s406_s3 = inlined_call_operand.hbm [shape: f32[1,32], index: 3, kind: input, shape index: {}]   ;;  %s407_s4 = inlined_call_operand.hbm [shape: f32[1,32], index: 4, kind: input, shape index: {}]   ;;  %s408_s5 = inlined_call_operand.vmem [shape: f32[16,1], index: 5, kind: input, shape index: {}]   ;;  %s409_s6 = inlined_call_operand.vmem [shape: f32[16,32], index: 6, kind: output, shape index: {}]  }
   0x1   :  { %12 = vsyncpa [#allocation5], 0  ;;  %s321_s21 = smov [#allocation4]   ;;  %s322_s23 = smov [#allocation2]  }
   0x2   :  { %s33_s22 = sshll.u32 %s321_s21, 4  ;;  %s23_s24 = sshll.u32 %s322_s23, 4  ;;  %s34_s22 = int_to_ptr.vmem [resolvable:$true] %s33_s22  ;;  %s24_s24 = int_to_ptr.vmem [resolvable:$true] %s23_s24 }
   0x3   :  { %s265_s25 = scalar_lea.vmem %s34_s22, 16  ;;  %s269_s26 = scalar_lea.vmem %s34_s22, 32 }
   0x4   :  { %p266_p0 = scmp.ne.s32.totalorder %s34_s22, %s265_s25  ;;  %p270_p1 = scmp.lt.s32.totalorder %s34_s22, %s34_s22 }
   0x5   :  { %p271_p2 = scmp.lt.s32.totalorder %s269_s26, %s265_s25 }
   0x7   :  { %p272_p3 = por %p271_p2, %p270_p1 }
   0x9   :  { %p273_p4 = pnand %p272_p3, %p266_p0 }
   0xb   :  { %276 = shalt.err (!%p273_p4)
}
   0xc   :  { %36 = dma.hbm_to_vmem [thread:$0]  %s406_s3, 16, %s34_s22, [#allocation5]  }
   0xd   :  { %s285_s29 = scalar_lea.vmem %s24_s24, 16  ;;  %s289_s30 = scalar_lea.vmem %s24_s24, 32 }
   0xe   :  { %p286_p5 = scmp.ne.s32.totalorder %s24_s24, %s285_s29  ;;  %p290_p6 = scmp.lt.s32.totalorder %s24_s24, %s24_s24 }
   0xf   :  { %p291_p7 = scmp.lt.s32.totalorder %s289_s30, %s285_s29 }
  0x11   :  { %p292_p8 = por %p291_p7, %p290_p6 }
  0x13   :  { %p293_p9 = pnand %p292_p8, %p286_p5 }
  0x15   :  { %296 = shalt.err (!%p293_p9)
}
  0x16   :  { %26 = dma.hbm_to_vmem [thread:$0]  %s405_s2, 16, %s24_s24, [#allocation3]  }
  0x17   :  { %s323_s9 = smov [#allocation6]  }
  0x18   :  { %s43_s10 = sshll.u32 %s323_s9, 4  ;;  %s44_s10 = int_to_ptr.vmem [resolvable:$true] %s43_s10 }
  0x19   :  { %s305_s11 = scalar_lea.vmem %s44_s10, 16  ;;  %s309_s12 = scalar_lea.vmem %s44_s10, 32 }
  0x1a   :  { %p306_p10 = scmp.ne.s32.totalorder %s44_s10, %s305_s11  ;;  %p310_p11 = scmp.lt.s32.totalorder %s44_s10, %s44_s10 }
  0x1b   :  { %p311_p12 = scmp.lt.s32.totalorder %s309_s12, %s305_s11 }
  0x1d   :  { %p312_p13 = por %p311_p12, %p310_p11 }
  0x1f   :  { %p313_p0 = pnand %p312_p13, %p306_p10 }
  0x21   :  { %316 = shalt.err (!%p313_p0)
}
  0x22   :  { %46 = dma.hbm_to_vmem [thread:$0]  %s407_s4, 16, %s44_s10, [#allocation5]  }
  0x23   :  { %317 = dma.done.wait [#allocation3], 16  }
  0x24   :  { %318 = vsyncadd [#allocation3], 4294967280 }
  0x25   :  { %319 = dma.done.wait [#allocation5], 32  }
  0x26   :  { %320 = vsyncadd [#allocation5], 4294967264  ;;  %vm63_vm0 = vcmask 261120   ;;  %v59_v0 = vld [vmem:[%s403_s0] sm:$0xff]  ;;  %v60_v1 = vld [vmem:[%s403_s0 + $0x8] sm:$0xff]  ;;  %v324_v15 = vmov 0.0  }
  0x27   :  { %v64_v2 = vsel %vm63_vm0, %v59_v0, 0.0  ;;  %v67_v3 = vsel %vm63_vm0, %v60_v1, 0.0  ;;  %v243_v14 = vld [vmem:[%s404_s1 + $0x8] sm:$0xff]   ;;  %226 = vmatprep.subr.bf16.mxu0 %v324_v15  ;;  %vm325_vm1 = vmmov 0   ;;  %v244_v16 = vld [vmem:[%s404_s1] sm:$0xff]   ;;  %v326_v34 = vmov 0  }
  0x28   :  { %65 = vadd.xlane.f32.xlu0 %v64_v2  ;;  %230 = vmatprep.mubr.msk.bf16.mxu0 %vm325_vm1, %v324_v15  ;;  %v217_v25 = vld [vmem:[#allocation4] ss:$0 sm:$0xff]  ;;  %v218_v29 = vld [vmem:[#allocation6] ss:$0 sm:$0xff]  ;;  %v196_v35 = vld [vmem:[%s408_s5 + $0x8] sm:$0xff] }
  0x29   :  { %227 = vmatpush3.bf16.msra.mxu0 %v243_v14  ;;  %242 = vset.pattern.permute.xlu1 %v326_v34  ;;  %v195_v36 = vld [vmem:[%s408_s5] sm:$0xff]  ;;  %s327_s5 = smov 96  }
  0x2a   :  { %228 = vmatprep.subr.bf16.mxu0 %v324_v15  ;;  %241 = vset.pattern.permute.xlu0 %v326_v34  ;;  %v219_v37 = vld [vmem:[#allocation2] ss:$0 sm:$0xff] }
  0x2c   :  { %68 = vadd.xlane.f32.xlu0 %v67_v3 }
  0x2d   :  { %229 = vmatpush3.bf16.msra.mxu0 %v244_v16 }
  0x42   :  { %199 = vperm.xlu0 %241, %v195_v36  }
  0xb1   :  { %v66_v4 = vpop.xlane.xlu0 %65 }
  0xb2   :  { %v71_v5 = vmul.f32 0.03125, %v66_v4 }
  0xb4   :  { %v73_v6 = vsub.f32 %v59_v0, %v71_v5 }
  0xb5   :  { %v69_v7 = vpop.xlane.xlu0 %68 }
  0xb6   :  { %v72_v8 = vmul.f32 0.03125, %v69_v7  ;;  %v75_v9 = vmul.f32 %v73_v6, %v73_v6 }
  0xb8   :  { %v74_v10 = vsub.f32 %v60_v1, %v72_v8  ;;  %v77_v11 = vsel %vm63_vm0, %v75_v9, 0.0 }
  0xb9   :  { %78 = vadd.xlane.f32.xlu1 %v77_v11 }
  0xba   :  { %v76_v12 = vmul.f32 %v74_v10, %v74_v10 }
  0xbc   :  { %v80_v13 = vsel %vm63_vm0, %v76_v12, 0.0 }
  0xbd   :  { %81 = vadd.xlane.f32.xlu1 %v80_v13  ;;  %v200_v56 = vpop.permute.xlu0 %199 }
  0xce   :  { %204 = vperm.xlu1 %242, %v196_v35  }
 0x142   :  { %v79_v17 = vpop.xlane.xlu1 %78 }
 0x143   :  { %v83_v18 = vmul.f32 0.03125, %v79_v17 }
 0x145   :  { %v85_v19 = vadd.f32 1e-05, %v83_v18 }
 0x146   :  { %v82_v20 = vpop.xlane.xlu1 %81 }
 0x147   :  { %245 = vrsqrt.f32 %v85_v19  ;;  %v84_v21 = vmul.f32 0.03125, %v82_v20 }
 0x149   :  { %v86_v22 = vadd.f32 1e-05, %v84_v21 }
 0x14a   :  { %v205_v54 = vpop.permute.xlu1 %204 }
 0x14b   :  { %247 = vrsqrt.f32 %v86_v22 }
 0x154   :  { %v246_v23 = vpop.eup %245 }
 0x155   :  { %v89_v24 = vmul.f32 %v246_v23, %v73_v6 }
 0x157   :  { %v97_v28 = vmul.f32 %v217_v25, %v89_v24 }
 0x158   :  { %v248_v26 = vpop.eup %247 }
 0x159   :  { %v90_v27 = vmul.f32 %v248_v26, %v74_v10  ;;  %v105_v31 = vadd.f32 %v218_v29, %v97_v28 }
 0x15b   :  { %v98_v30 = vmul.f32 %v217_v25, %v90_v27 }
 0x15d   :  { %v106_v32 = vadd.f32 %v218_v29, %v98_v30 }
 0x15f   :  { %v107_v33 = vpack.c.bf16 %v106_v32, %v105_v31 }
 0x161   :  { %231 = vmatmul.mubr.msk.bf16.vlgmr.msra.gmra.mxu0 %vm63_vm0, %v107_v33 }
 0x221   :  { %v168_v38 = vpop.f32.mrf.mxu0 }
 0x222   :  { %v169_v39 = vadd.f32 %v219_v37, %v168_v38 }
 0x223   :  { %v232_v40 = vpop.f32.mrf.mxu0 }
 0x224   :  { %v175_v41 = vsub.f32 0.0, %v169_v39 }
 0x225   :  { %v171_v42 = vpop.f32.mrf.mxu0 }
 0x226   :  { %v177_v43 = vmul.f32 1.442695, %v175_v41  ;;  %v172_v44 = vadd.f32 %v219_v37, %v171_v42 }
 0x227   :  { %v233_v45 = vpop.f32.mrf.mxu0 }
 0x228   :  { %249 = vpow2.f32 %v177_v43  ;;  %v176_v46 = vsub.f32 0.0, %v172_v44 }
 0x22a   :  { %v179_v47 = vmul.f32 1.442695, %v176_v46 }
 0x22c   :  { %251 = vpow2.f32 %v179_v47 }
 0x235   :  { %v250_v48 = vpop.eup %249 }
 0x236   :  { %v181_v49 = vadd.f32 1.0, %v250_v48 }
 0x238   :  { %253 = vrcp.f32 %v181_v49 }
 0x239   :  { %v252_v50 = vpop.eup %251 }
 0x23a   :  { %v182_v51 = vadd.f32 1.0, %v252_v50 }
 0x23c   :  { %255 = vrcp.f32 %v182_v51 }
 0x245   :  { %v254_v52 = vpop.eup %253 }
 0x246   :  { %187 = vrot.lane.b32.xlu1 %v254_v52, %s327_s5 }
 0x249   :  { %v256_v53 = vpop.eup %255 }
 0x24a   :  { %189 = vrot.lane.b32.xlu1 %v256_v53, %s327_s5 }
 0x2b8   :  { %v188_v55 = vpop.permute.xlu1 %187 }
 0x2b9   :  { %v193_v57 = vmul.f32 %v188_v55, %v169_v39 }
 0x2bb   :  { %v207_v58 = vmul.f32 %v200_v56, %v193_v57 }
 0x2bc   :  { %v190_v59 = vpop.permute.xlu1 %189 }
 0x2bd   :  { %209 = vst.msk [vmem:[%s409_s6] sm:$0xff] %vm63_vm0, %v207_v58  ;;  %v194_v60 = vmul.f32 %v190_v59, %v172_v44 }
 0x2bf   :  { %v208_v61 = vmul.f32 %v205_v54, %v194_v60 }
 0x2c1   :  { %210 = vst.msk [vmem:[%s409_s6 + $0x8] sm:$0xff] %vm63_vm0, %v208_v61 }
 0x2c2   :  { %215 = vsyncpa [#allocation3], 1 }
 0x2c3   :  { %216 = vsyncpa [#allocation5], 1 }

// kernel: _lambda_.39
= control target key start
LH: loop header
LB: loop body
LE: loop exit
PB: predicated region body
PF: predicated region fallthrough
CT: control target
= control target key end

     0   :  { %10 = vsyncpa [#allocation3], 0  ;;  %s1263_s18 = smov 0   ;;  %s1411_s0 = inlined_call_operand.vmem [shape: f32[2,8,96], index: 0, kind: input, shape index: {}]   ;;  %s1412_s1 = inlined_call_operand.vmem [shape: f32[2,1,8], index: 1, kind: input, shape index: {}]   ;;  %s1413_s2 = inlined_call_operand.vmem [shape: bf16[32,32], index: 2, kind: input, shape index: {}]   ;;  %s1414_s3 = inlined_call_operand.hbm [shape: f32[1,32], index: 3, kind: input, shape index: {}]   ;;  %s1415_s4 = inlined_call_operand.vmem [shape: f32[2,8,32], index: 4, kind: input, shape index: {}]   ;;  %s1416_s5 = inlined_call_operand.vmem [shape: f32[2,8,32], index: 5, kind: output, shape index: {}]  }
   0x1 LB: > { %s1012_s19 = sadd.s32 4294967295, %s1217_s18   ;;  %p1014_p0 = scmp.ge.s32.totalorder %s1217_s18, 1  ;;  %s1217_s18 = sphi %s1263_s18, %s16_s18  }
   0x2   : > { %p167_p1 = scmp.lt.s32.totalorder %s1217_s18, 3  ;;  %p1141_p3 = scmp.eq.s32.totalorder %s1012_s19, 0 }
   0x3   : > { %s1219_s21 = smov [#allocation2]  }
   0x4   : > { %p1271_p2 = pnand %p1014_p0, %p167_p1  ;;  %s183_s22 = sshll.u32 %s1219_s21, 4  ;;  %s184_s22 = int_to_ptr.vmem [resolvable:$true] %s183_s22 }
   0x5   : > { %s1192_s23 = scalar_lea.vmem %s184_s22, 16  ;;  %s1199_s24 = scalar_lea.vmem %s184_s22, 32 }
   0x6   : > { %p1137_p4 = pneg %p1271_p2  ;;  %p1193_p7 = scmp.ne.s32.totalorder %s184_s22, %s1192_s23 }
   0x7   : > { %p1200_p10 = scmp.lt.s32.totalorder %s184_s22, %s184_s22  ;;  %p1201_p11 = scmp.lt.s32.totalorder %s1199_s24, %s1192_s23 }
   0x8   : > { %p1138_p5 = pnand %p1141_p3, %p1137_p4 }
   0x9   : > { %p1202_p12 = por %p1201_p11, %p1200_p10 }
   0xa   : > { %p1183_p6 = pneg %p1138_p5 }
   0xc   : > { %p1195_p8 = pnand %p1193_p7, %p1183_p6 }
   0xe   : > { %p1196_p9 = pneg %p1195_p8 }
  0x10   : > { %p1203_p13 = pnand %p1202_p12, %p1196_p9 }
  0x12   : > { %1206 = shalt.err (!%p1203_p13)
}
  0x13   : > { %1140 = dma.hbm_to_vmem [thread:$0]  (!%p1138_p5), %s1414_s3, 16, %s184_s22, [#allocation3]  }
  0x14   : > { %216 = sbr.rel (%p1271_p2) target bundleno = 2297 (0x8f9), region = 40 }
  0x19   : > { %1212 = dma.done.wait (%p1141_p3), [#allocation3], 16  }
  0x1a   : > { %1214 = vsyncadd (%p1141_p3), [#allocation3], 4294967280  ;;  %p249_p0 = scmp.lt.s32.totalorder %s1012_s19, 1  ;;  %v1220_v0 = vmov 0.0   ;;  %vm1221_vm0 = vmmov 0   ;;  %s1222_s6 = smov 96   ;;  %v281_v10 = vlaneseq }
  0x1b   : > { %1061 = vmatprep.subr.bf16.mxu0 %v1220_v0  ;;  %1067 = vmatprep.subr.bf16.mxu1 %v1220_v0  ;;  %s1223_s7 = smov 120   ;;  %s1224_s8 = smov 88   ;;  %vm289_vm1 = vcmask 64512   ;;  %vm353_vm2 = vcmask 1043456   ;;  %v398_v42 = vld [vmem:[%s1413_s2] sm:$0xf] }
  0x1c   : > { %s1419_s19 = smov (!%p249_p0, %s1012_s19), 1  ;;  %1063 = vmatprep.mubr.msk.bf16.mxu0 %vm1221_vm0, %v1220_v0  ;;  %1069 = vmatprep.mubr.msk.bf16.mxu1 %vm1221_vm0, %v1220_v0  ;;  %v282_v11 = vshrl.u32 %v281_v10, 7  ;;  %s1225_s12 = smov 64   ;;  %v403_v45 = vsel %vm353_vm2, %v398_v42, 0  ;;  %v558_v60 = vld [vmem:[%s1413_s2 + $0x4] sm:$0xf] }
  0x1d   : > { %s1294_s27 = sshll.u32 %s1419_s19, 3  ;;  %s255_s11 = scalar_lea.vmem %s1412_s1, %s1419_s19  ;;  %v563_v61 = vsel %vm353_vm2, %v558_v60, 0  ;;  %v876_v60 = vld [vmem:[%s1413_s2 + $0xc] sm:$0xf]  ;;  %vm924_vm3 = vcmask 261120  }
  0x1e   : > { %s252_s30 = scalar_lea.vmem %s1411_s0, %s1294_s27  ;;  %v265_v12 = vld [vmem:[%s255_s11] sm:$0x1]  ;;  %v283_v14 = vsub.s32 0, %v282_v11  ;;  %s1226_s13 = smov 56  }
  0x1f   : > { %v276_v1 = vld [vmem:[%s252_s30] sm:$0xff]  ;;  %v266_v13 = vmul.f32 -1e+09, %v265_v12  ;;  %s1227_s14 = smov 80   ;;  %s1228_s15 = smov 112  }
  0x20   : > { %v1300_v2 = vpack.c.bf16 %v276_v1, %v276_v1  ;;  %v277_v3 = vmul.f32 0.35355338, %v276_v1  ;;  %s1229_s21 = smov 72   ;;  %s1230_s22 = smov 104  }
  0x21   : > { %v1322_v15 = vrot.slane %v266_v13, %v283_v14  ;;  %s259_s25 = scalar_lea.vmem %s1415_s4, %s1294_s27  ;;  %s1231_s26 = smov 48  }
  0x22   : > { %287 = vrot.lane.b32.xlu0 %v1300_v2, %s1222_s6  ;;  %v1303_v4 = vpack.c.bf16 %v277_v3, %v277_v3  ;;  %s1232_s30 = smov 40   ;;  %s263_s10 = scalar_lea.vmem %s1416_s5, %s1294_s27 }
  0x24   : > { %447 = vrot.lane.b32.xlu1 %v1303_v4, %s1223_s7 }
  0x26   : > { %449 = vrot.lane.b32.xlu0 %v1300_v2, %s1224_s8 }
  0x94   : > { %v288_v5 = vpop.permute.xlu0 %287 }
  0x95   : > { %v294_v6 = vsel %vm289_vm1, %v288_v5, 0 }
  0x96   : > { %1062 = vmatpush3.bf16.xpose.msra.mxu0 %v294_v6  ;;  %v448_v9 = vpop.permute.xlu1 %447 }
  0x97   : > { %1079 = vmatprep.subr.bf16.mxu0 %v1220_v0 }
  0x98   : > { %v450_v7 = vpop.permute.xlu0 %449 }
  0x99   : > { %v455_v8 = vsel %vm289_vm1, %v450_v7, 0 }
  0x9d   : > { %1064 = vmatmul.mubr.msk.bf16.vlgmr.msra.gmra.mxu0 %vm289_vm1, %v1303_v4 }
  0x9e   : > { %1080 = vmatpush3.bf16.xpose.msra.mxu0 %v455_v8  ;;  %1081 = vmatprep.mubr.msk.bf16.mxu0 %vm1221_vm0, %v1220_v0 }
  0x9f   : > { %1091 = vmatprep.subr.bf16.mxu0 %v1220_v0 }
  0xa5   : > { %1082 = vmatmul.mubr.msk.bf16.vlgmr.msra.gmra.mxu0 %vm289_vm1, %v448_v9 }
  0xa6   : > { %1093 = vmatprep.mubr.msk.bf16.mxu0 %vm1221_vm0, %v1220_v0  ;;  %1092 = vmatpush3.bf16.msra.mxu0 %v563_v61 }
  0xa7   : > { %1103 = vmatprep.subr.bf16.mxu0 %v1220_v0 }
 0x15d   : > { %v330_v16 = vpop.f32.mrf.mxu0 }
 0x15e   : > { %v331_v17 = vadd.f32 %v330_v16, %v1322_v15 }
 0x15f   : > { %v1065_v18 = vpop.f32.mrf.mxu0 }
 0x160   : > { %v336_v19 = vsel %vm289_vm1, %v331_v17, -inf }
 0x161   : > { %v333_v20 = vpop.f32.mrf.mxu0  ;;  %337 = vmax.xlane.f32.xlu1 %v336_v19 }
 0x163   : > { %v1066_v21 = vpop.f32.mrf.mxu0 }
 0x165   : > { %v491_v22 = vpop.f32.mrf.mxu0 }
 0x166   : > { %v492_v23 = vadd.f32 %v491_v22, %v1322_v15  ;;  %v267_v22 = vld [vmem:[%s259_s25] sm:$0xff] }
 0x167   : > { %v1083_v24 = vpop.f32.mrf.mxu0 }
 0x168   : > { %v497_v25 = vsel %vm289_vm1, %v492_v23, -inf }
 0x169   : > { %498 = vmax.xlane.f32.xlu1 %v497_v25  ;;  %v494_v26 = vpop.f32.mrf.mxu0 }
 0x16b   : > { %v1084_v27 = vpop.f32.mrf.mxu0 }
 0x1ea   : > { %v338_v28 = vpop.xlane.xlu1 %337 }
 0x1eb   : > { %v339_v29 = vsub.f32 %v331_v17, %v338_v28 }
 0x1ed   : > { %v340_v30 = vmul.f32 1.442695, %v339_v29 }
 0x1ef   : > { %1165 = vpow2.f32 %v340_v30 }
 0x1f2   : > { %v499_v31 = vpop.xlane.xlu1 %498 }
 0x1f3   : > { %v500_v32 = vsub.f32 %v492_v23, %v499_v31  ;;  %v1022_v23 = vld [vmem:[#allocation2] ss:$0 sm:$0xff] }
 0x1f4   : > { %v275_v24 = vadd.f32 %v1022_v23, %v267_v22 }
 0x1f5   : > { %v501_v33 = vmul.f32 1.442695, %v500_v32 }
 0x1f7   : > { %1167 = vpow2.f32 %v501_v33 }
 0x1fc   : > { %v1166_v34 = vpop.eup %1165 }
 0x1fd   : > { %v342_v35 = vsel %vm289_vm1, %v1166_v34, 0.0 }
 0x1fe   : > { %343 = vadd.xlane.f32.xlu0 %v342_v35 }
 0x204   : > { %v1168_v36 = vpop.eup %1167 }
 0x205   : > { %v503_v37 = vsel %vm289_vm1, %v1168_v36, 0.0 }
 0x206   : > { %504 = vadd.xlane.f32.xlu1 %v503_v37 }
 0x214   : > { %348 = vrot.lane.b32.xlu0 %v1300_v2, %s1225_s12 }
 0x217   : > { %509 = vrot.lane.b32.xlu1 %v1300_v2, %s1226_s13 }
 0x218   : > { %608 = vrot.lane.b32.xlu0 %v1300_v2, %s1227_s14 }
 0x21c   : > { %606 = vrot.lane.b32.xlu0 %v1303_v4, %s1228_s15 }
 0x287   : > { %v344_v38 = vpop.xlane.xlu0 %343 }
 0x288   : > { %1169 = vrcp.f32 %v344_v38 }
 0x28b   : > { %v349_v39 = vpop.permute.xlu0 %348 }
 0x28c   : > { %v355_v40 = vsel %vm353_vm2, %v349_v39, 0  ;;  %v717_v39 = vld [vmem:[%s1413_s2 + $0x8] sm:$0xf] }
 0x28d   : > { %1068 = vmatpush3.bf16.msra.mxu1 %v355_v40  ;;  %v722_v40 = vsel %vm353_vm2, %v717_v39, 0 }
 0x28e   : > { %1073 = vmatprep.subr.bf16.mxu1 %v1220_v0 }
 0x28f   : > { %v505_v46 = vpop.xlane.xlu1 %504  ;;  %v609_v56 = vpop.permute.xlu0 %608 }
 0x290   : > { %1171 = vrcp.f32 %v505_v46  ;;  %v614_v57 = vsel %vm289_vm1, %v609_v56, 0 }
 0x293   : > { %v510_v47 = vpop.permute.xlu1 %509  ;;  %v607_v59 = vpop.permute.xlu0 %606 }
 0x294   : > { %v515_v50 = vsel %vm353_vm2, %v510_v47, 0 }
 0x295   : > { %v1170_v41 = vpop.eup %1169 }
 0x296   : > { %v346_v43 = vmul.f32 %v1170_v41, %v1166_v34 }
 0x298   : > { %v347_v44 = vpack.c.bf16 %v346_v43, %v346_v43 }
 0x29a   : > { %1070 = vmatmul.mubr.msk.bf16.vlgmr.msra.gmra.mxu1 %vm289_vm1, %v347_v44 }
 0x29b   : > { %1074 = vmatpush3.bf16.msra.mxu1 %v403_v45  ;;  %1075 = vmatprep.mubr.msk.bf16.mxu1 %vm1221_vm0, %v1220_v0 }
 0x29c   : > { %1085 = vmatprep.subr.bf16.mxu1 %v1220_v0 }
 0x29d   : > { %v1172_v51 = vpop.eup %1171 }
 0x29e   : > { %v507_v54 = vmul.f32 %v1172_v51, %v1168_v36 }
 0x2a0   : > { %v508_v58 = vpack.c.bf16 %v507_v54, %v507_v54 }
 0x35a   : > { %v391_v48 = vpop.f32.mrf.mxu1 }
 0x35b   : > { %v397_v49 = vpack.c.bf16 %v391_v48, %v391_v48 }
 0x35c   : > { %v1071_v52 = vpop.f32.mrf.mxu1 }
 0x35d   : > { %1076 = vmatmul.mubr.msk.bf16.vlgmr.msra.gmra.mxu1 %vm289_vm1, %v397_v49 }
 0x35e   : > { %1086 = vmatpush3.bf16.msra.mxu1 %v515_v50  ;;  %v394_v53 = vpop.f32.mrf.mxu1  ;;  %1087 = vmatprep.mubr.msk.bf16.mxu1 %vm1221_vm0, %v1220_v0 }
 0x35f   : > { %1097 = vmatprep.subr.bf16.mxu1 %v1220_v0 }
 0x360   : > { %v1072_v55 = vpop.f32.mrf.mxu1 }
 0x365   : > { %1088 = vmatmul.mubr.msk.bf16.vlgmr.msra.gmra.mxu1 %vm289_vm1, %v508_v58 }
 0x366   : > { %1098 = vmatpush3.bf16.xpose.msra.mxu1 %v614_v57  ;;  %1099 = vmatprep.mubr.msk.bf16.mxu1 %vm1221_vm0, %v1220_v0 }
 0x367   : > { %1109 = vmatprep.subr.bf16.mxu1 %v1220_v0 }
 0x36d   : > { %1100 = vmatmul.mubr.msk.bf16.vlgmr.msra.gmra.mxu1 %vm289_vm1, %v607_v59 }
 0x36e   : > { %1111 = vmatprep.mubr.msk.bf16.mxu1 %vm1221_vm0, %v1220_v0  ;;  %1110 = vmatpush3.bf16.msra.mxu1 %v722_v40 }
 0x36f   : > { %1121 = vmatprep.subr.bf16.mxu1 %v1220_v0 }
 0x41d   : > { %v439_v62 = vpop.f32.mrf.mxu1 }
 0x41e   : > { %v445_v25 = vadd.f32 %v439_v62, %v275_v24 }
 0x41f   : > { %v1077_v63 = vpop.f32.mrf.mxu1 }
 0x421   : > { %v442_v1 = vpop.f32.mrf.mxu1 }
 0x423   : > { %v1078_v3 = vpop.f32.mrf.mxu1 }
 0x425   : > { %v551_v5 = vpop.f32.mrf.mxu1 }
 0x426   : > { %v557_v6 = vpack.c.bf16 %v551_v5, %v551_v5 }
 0x427   : > { %v1089_v7 = vpop.f32.mrf.mxu1 }
 0x428   : > { %1094 = vmatmul.mubr.msk.bf16.vlgmr.msra.gmra.mxu0 %vm289_vm1, %v557_v6 }
 0x429   : > { %v554_v8 = vpop.f32.mrf.mxu1  ;;  %1105 = vmatprep.mubr.msk.bf16.mxu0 %vm1221_vm0, %v1220_v0 }
 0x42b   : > { %v1090_v9 = vpop.f32.mrf.mxu1 }
 0x42d   : > { %v650_v10 = vpop.f32.mrf.mxu1 }
 0x42e   : > { %v651_v11 = vadd.f32 %v650_v10, %v1322_v15 }
 0x42f   : > { %v1101_v12 = vpop.f32.mrf.mxu1 }
 0x430   : > { %v656_v13 = vsel %vm289_vm1, %v651_v11, -inf }
 0x431   : > { %657 = vmax.xlane.f32.xlu1 %v656_v13  ;;  %v653_v14 = vpop.f32.mrf.mxu1 }
 0x433   : > { %v1102_v16 = vpop.f32.mrf.mxu1 }
 0x442   : > { %767 = vrot.lane.b32.xlu1 %v1300_v2, %s1229_s21 }
 0x446   : > { %765 = vrot.lane.b32.xlu1 %v1303_v4, %s1230_s22 }
 0x4ba   : > { %v658_v17 = vpop.xlane.xlu1 %657 }
 0x4bb   : > { %v659_v18 = vsub.f32 %v651_v11, %v658_v17 }
 0x4bd   : > { %v660_v19 = vmul.f32 1.442695, %v659_v18 }
 0x4be   : > { %v768_v34 = vpop.permute.xlu1 %767 }
 0x4bf   : > { %1173 = vpow2.f32 %v660_v19  ;;  %v773_v36 = vsel %vm289_vm1, %v768_v34, 0 }
 0x4c2   : > { %v766_v38 = vpop.permute.xlu1 %765 }
 0x4cc   : > { %v1174_v20 = vpop.eup %1173 }
 0x4cd   : > { %v662_v21 = vsel %vm289_vm1, %v1174_v20, 0.0 }
 0x4ce   : > { %663 = vadd.xlane.f32.xlu0 %v662_v21 }
 0x4e4   : > { %668 = vrot.lane.b32.xlu0 %v1300_v2, %s1231_s26 }
 0x4e8   : > { %v599_v4 = vpop.f32.mrf.mxu0 }
 0x4e9   : > { %v605_v26 = vadd.f32 %v599_v4, %v445_v25 }
 0x4ea   : > { %v1095_v27 = vpop.f32.mrf.mxu0 }
 0x4ec   : > { %v602_v28 = vpop.f32.mrf.mxu0 }
 0x4ee   : > { %v1096_v29 = vpop.f32.mrf.mxu0 }
 0x557   : > { %v664_v30 = vpop.xlane.xlu0 %663 }
 0x558   : > { %1175 = vrcp.f32 %v664_v30 }
 0x55b   : > { %v669_v31 = vpop.permute.xlu0 %668 }
 0x55c   : > { %v674_v32 = vsel %vm353_vm2, %v669_v31, 0 }
 0x55d   : > { %1104 = vmatpush3.bf16.msra.mxu0 %v674_v32 }
 0x55e   : > { %1115 = vmatprep.subr.bf16.mxu0 %v1220_v0 }
 0x565   : > { %v1176_v33 = vpop.eup %1175 }
 0x566   : > { %v666_v35 = vmul.f32 %v1176_v33, %v1174_v20 }
 0x568   : > { %v667_v37 = vpack.c.bf16 %v666_v35, %v666_v35 }
 0x56a   : > { %1106 = vmatmul.mubr.msk.bf16.vlgmr.msra.gmra.mxu0 %vm289_vm1, %v667_v37 }
 0x56b   : > { %1116 = vmatpush3.bf16.xpose.msra.mxu0 %v773_v36  ;;  %1117 = vmatprep.mubr.msk.bf16.mxu0 %vm1221_vm0, %v1220_v0 }
 0x56c   : > { %1127 = vmatprep.subr.bf16.mxu0 %v1220_v0 }
 0x572   : > { %1118 = vmatmul.mubr.msk.bf16.vlgmr.msra.gmra.mxu0 %vm289_vm1, %v766_v38 }
 0x573   : > { %1129 = vmatprep.mubr.msk.bf16.mxu0 %vm1221_vm0, %v1220_v0 }
 0x62a   : > { %v710_v41 = vpop.f32.mrf.mxu0 }
 0x62b   : > { %v716_v42 = vpack.c.bf16 %v710_v41, %v710_v41 }
 0x62c   : > { %v1107_v43 = vpop.f32.mrf.mxu0 }
 0x62d   : > { %1112 = vmatmul.mubr.msk.bf16.vlgmr.msra.gmra.mxu1 %vm289_vm1, %v716_v42 }
 0x62e   : > { %v713_v44 = vpop.f32.mrf.mxu0  ;;  %1123 = vmatprep.mubr.msk.bf16.mxu1 %vm1221_vm0, %v1220_v0 }
 0x630   : > { %v1108_v45 = vpop.f32.mrf.mxu0 }
 0x632   : > { %v809_v46 = vpop.f32.mrf.mxu0 }
 0x633   : > { %v810_v47 = vadd.f32 %v809_v46, %v1322_v15 }
 0x634   : > { %v1119_v48 = vpop.f32.mrf.mxu0 }
 0x635   : > { %v815_v49 = vsel %vm289_vm1, %v810_v47, -inf }
 0x636   : > { %816 = vmax.xlane.f32.xlu0 %v815_v49  ;;  %v812_v50 = vpop.f32.mrf.mxu0 }
 0x638   : > { %v1120_v51 = vpop.f32.mrf.mxu0 }
 0x64c   : > { %827 = vrot.lane.b32.xlu0 %v1300_v2, %s1232_s30  ;;  %v881_v2 = vsel %vm353_vm2, %v876_v60, 0 }
 0x64d   : > { %1128 = vmatpush3.bf16.msra.mxu0 %v881_v2 }
 0x6bf   : > { %v817_v52 = vpop.xlane.xlu0 %816 }
 0x6c0   : > { %v818_v53 = vsub.f32 %v810_v47, %v817_v52 }
 0x6c2   : > { %v819_v54 = vmul.f32 1.442695, %v818_v53 }
 0x6c3   : > { %v828_v56 = vpop.permute.xlu0 %827 }
 0x6c4   : > { %1177 = vpow2.f32 %v819_v54  ;;  %v833_v15 = vsel %vm353_vm2, %v828_v56, 0 }
 0x6c5   : > { %1122 = vmatpush3.bf16.msra.mxu1 %v833_v15 }
 0x6d1   : > { %v1178_v55 = vpop.eup %1177 }
 0x6d2   : > { %v821_v0 = vsel %vm289_vm1, %v1178_v55, 0.0 }
 0x6d3   : > { %822 = vadd.xlane.f32.xlu1 %v821_v0 }
 0x6ed   : > { %v758_v57 = vpop.f32.mrf.mxu1 }
 0x6ee   : > { %v764_v58 = vadd.f32 %v758_v57, %v605_v26 }
 0x6ef   : > { %v1113_v59 = vpop.f32.mrf.mxu1 }
 0x6f1   : > { %v761_v61 = vpop.f32.mrf.mxu1 }
 0x6f3   : > { %v1114_v62 = vpop.f32.mrf.mxu1 }
 0x75c   : > { %v823_v63 = vpop.xlane.xlu1 %822 }
 0x75d   : > { %1179 = vrcp.f32 %v823_v63 }
 0x76a   : > { %v1180_v1 = vpop.eup %1179 }
 0x76b   : > { %v825_v3 = vmul.f32 %v1180_v1, %v1178_v55 }
 0x76d   : > { %v826_v5 = vpack.c.bf16 %v825_v3, %v825_v3 }
 0x76f   : > { %1124 = vmatmul.mubr.msk.bf16.vlgmr.msra.gmra.mxu1 %vm289_vm1, %v826_v5 }
 0x82f   : > { %v869_v6 = vpop.f32.mrf.mxu1 }
 0x830   : > { %v875_v7 = vpack.c.bf16 %v869_v6, %v869_v6 }
 0x831   : > { %v1125_v8 = vpop.f32.mrf.mxu1 }
 0x832   : > { %1130 = vmatmul.mubr.msk.bf16.vlgmr.msra.gmra.mxu0 %vm289_vm1, %v875_v7 }
 0x833   : > { %v872_v9 = vpop.f32.mrf.mxu1 }
 0x835   : > { %v1126_v10 = vpop.f32.mrf.mxu1 }
 0x8f2   : > { %v917_v11 = vpop.f32.mrf.mxu0 }
 0x8f3   : > { %v923_v12 = vadd.f32 %v917_v11, %v764_v58 }
 0x8f4   : > { %v1131_v13 = vpop.f32.mrf.mxu0 }
 0x8f5   : > { %925 = vst.msk [vmem:[%s263_s10] sm:$0xff] %vm924_vm3, %v923_v12 }
 0x8f6   : > { %v920_v14 = vpop.f32.mrf.mxu0 }
 0x8f8   : > { %v1132_v16 = vpop.f32.mrf.mxu0 }
 0x8f9 PF: > { %s16_s18 = sadd.s32 1, %s1217_s18  }
 0x8fa   : > { %p13_p1 = scmp.ge.s32.totalorder %s16_s18, 4  }
 0x8fc   :  { %15 = sbr.rel (!%p13_p1) target bundleno = 1 (0x1), region = 81 }
 0x901   :  { %945 = vsyncpa [#allocation3], 1 }
 0x902   :  { %947 = vsyncpa [#allocation3 + $0x1], 1 }

// kernel: _lambda_.45
= control target key start
LH: loop header
LB: loop body
LE: loop exit
PB: predicated region body
PF: predicated region fallthrough
CT: control target
= control target key end

     0   :  { %10 = vsyncpa [#allocation3], 0  ;;  %s339_s0 = inlined_call_operand.vmem [shape: f32[16,32], index: 0, kind: input, shape index: {}]   ;;  %s340_s1 = inlined_call_operand.vmem [shape: bf16[32,128], index: 1, kind: input, shape index: {}]   ;;  %s341_s2 = inlined_call_operand.hbm [shape: f32[1,128], index: 2, kind: input, shape index: {}]   ;;  %s342_s3 = inlined_call_operand.hbm [shape: f32[1,32], index: 3, kind: input, shape index: {}]   ;;  %s343_s4 = inlined_call_operand.hbm [shape: f32[1,32], index: 4, kind: input, shape index: {}]   ;;  %s344_s5 = inlined_call_operand.vmem [shape: f32[16,128], index: 5, kind: output, shape index: {}]  }
   0x1   :  { %11 = vsyncpa [#allocation5], 0  ;;  %s272_s18 = smov [#allocation4]   ;;  %s273_s20 = smov [#allocation2]  }
   0x2   :  { %s32_s19 = sshll.u32 %s272_s18, 4  ;;  %s22_s21 = sshll.u32 %s273_s20, 4  ;;  %s33_s19 = int_to_ptr.vmem [resolvable:$true] %s32_s19  ;;  %s23_s21 = int_to_ptr.vmem [resolvable:$true] %s22_s21 }
   0x3   :  { %s216_s22 = scalar_lea.vmem %s33_s19, 16  ;;  %s220_s23 = scalar_lea.vmem %s33_s19, 32 }
   0x4   :  { %p217_p0 = scmp.ne.s32.totalorder %s33_s19, %s216_s22  ;;  %p221_p1 = scmp.lt.s32.totalorder %s33_s19, %s33_s19 }
   0x5   :  { %p222_p2 = scmp.lt.s32.totalorder %s220_s23, %s216_s22 }
   0x7   :  { %p223_p3 = por %p222_p2, %p221_p1 }
   0x9   :  { %p224_p4 = pnand %p223_p3, %p217_p0 }
   0xb   :  { %227 = shalt.err (!%p224_p4)
}
   0xc   :  { %35 = dma.hbm_to_vmem [thread:$0]  %s342_s3, 16, %s33_s19, [#allocation5]  }
   0xd   :  { %s236_s26 = scalar_lea.vmem %s23_s21, 16  ;;  %s240_s27 = scalar_lea.vmem %s23_s21, 32 }
   0xe   :  { %p237_p5 = scmp.ne.s32.totalorder %s23_s21, %s236_s26  ;;  %p241_p6 = scmp.lt.s32.totalorder %s23_s21, %s23_s21 }
   0xf   :  { %p242_p7 = scmp.lt.s32.totalorder %s240_s27, %s236_s26 }
  0x11   :  { %p243_p8 = por %p242_p7, %p241_p6 }
  0x13   :  { %p244_p9 = pnand %p243_p8, %p237_p5 }
  0x15   :  { %247 = shalt.err (!%p244_p9)
}
  0x16   :  { %25 = dma.hbm_to_vmem [thread:$0]  %s341_s2, 16, %s23_s21, [#allocation3]  }
  0x17   :  { %s274_s30 = smov [#allocation6]  }
  0x18   :  { %s42_s6 = sshll.u32 %s274_s30, 4  ;;  %s43_s6 = int_to_ptr.vmem [resolvable:$true] %s42_s6 }
  0x19   :  { %s256_s7 = scalar_lea.vmem %s43_s6, 16  ;;  %s260_s8 = scalar_lea.vmem %s43_s6, 32 }
  0x1a   :  { %p257_p10 = scmp.ne.s32.totalorder %s43_s6, %s256_s7  ;;  %p261_p11 = scmp.lt.s32.totalorder %s43_s6, %s43_s6 }
  0x1b   :  { %p262_p12 = scmp.lt.s32.totalorder %s260_s8, %s256_s7 }
  0x1d   :  { %p263_p13 = por %p262_p12, %p261_p11 }
  0x1f   :  { %p264_p0 = pnand %p263_p13, %p257_p10 }
  0x21   :  { %267 = shalt.err (!%p264_p0)
}
  0x22   :  { %45 = dma.hbm_to_vmem [thread:$0]  %s343_s4, 16, %s43_s6, [#allocation5]  }
  0x23   :  { %268 = dma.done.wait [#allocation3], 16  }
  0x24   :  { %269 = vsyncadd [#allocation3], 4294967280 }
  0x25   :  { %270 = dma.done.wait [#allocation5], 32  }
  0x26   :  { %271 = vsyncadd [#allocation5], 4294967264  ;;  %vm60_vm0 = vcmask 261120   ;;  %v56_v0 = vld [vmem:[%s339_s0] sm:$0xff]  ;;  %v57_v1 = vld [vmem:[%s339_s0 + $0x8] sm:$0xff]  ;;  %v275_v15 = vmov 0.0  }
  0x27   :  { %v61_v2 = vsel %vm60_vm0, %v56_v0, 0.0  ;;  %v64_v3 = vsel %vm60_vm0, %v57_v1, 0.0  ;;  %v202_v14 = vld [vmem:[%s340_s1 + $0x8] sm:$0xff]   ;;  %189 = vmatprep.subr.bf16.mxu0 %v275_v15  ;;  %vm276_vm1 = vmmov 0   ;;  %v203_v16 = vld [vmem:[%s340_s1] sm:$0xff]  }
  0x28   :  { %62 = vadd.xlane.f32.xlu0 %v61_v2  ;;  %193 = vmatprep.mubr.msk.bf16.mxu0 %vm276_vm1, %v275_v15  ;;  %v180_v25 = vld [vmem:[#allocation4] ss:$0 sm:$0xff]  ;;  %v181_v29 = vld [vmem:[#allocation6] ss:$0 sm:$0xff]  ;;  %v182_v34 = vld [vmem:[#allocation2] ss:$0 sm:$0xff] }
  0x29   :  { %190 = vmatpush3.bf16.msra.mxu0 %v202_v14 }
  0x2a   :  { %191 = vmatprep.subr.bf16.mxu0 %v275_v15 }
  0x2c   :  { %65 = vadd.xlane.f32.xlu0 %v64_v3 }
  0x2d   :  { %192 = vmatpush3.bf16.msra.mxu0 %v203_v16 }
  0xb1   :  { %v63_v4 = vpop.xlane.xlu0 %62 }
  0xb2   :  { %v68_v5 = vmul.f32 0.03125, %v63_v4 }
  0xb4   :  { %v70_v6 = vsub.f32 %v56_v0, %v68_v5 }
  0xb5   :  { %v66_v7 = vpop.xlane.xlu0 %65 }
  0xb6   :  { %v69_v8 = vmul.f32 0.03125, %v66_v7  ;;  %v72_v9 = vmul.f32 %v70_v6, %v70_v6 }
  0xb8   :  { %v71_v10 = vsub.f32 %v57_v1, %v69_v8  ;;  %v74_v11 = vsel %vm60_vm0, %v72_v9, 0.0 }
  0xb9   :  { %75 = vadd.xlane.f32.xlu1 %v74_v11 }
  0xba   :  { %v73_v12 = vmul.f32 %v71_v10, %v71_v10 }
  0xbc   :  { %v77_v13 = vsel %vm60_vm0, %v73_v12, 0.0 }
  0xbd   :  { %78 = vadd.xlane.f32.xlu1 %v77_v13 }
 0x142   :  { %v76_v17 = vpop.xlane.xlu1 %75 }
 0x143   :  { %v80_v18 = vmul.f32 0.03125, %v76_v17 }
 0x145   :  { %v82_v19 = vadd.f32 1e-05, %v80_v18 }
 0x146   :  { %v79_v20 = vpop.xlane.xlu1 %78 }
 0x147   :  { %204 = vrsqrt.f32 %v82_v19  ;;  %v81_v21 = vmul.f32 0.03125, %v79_v20 }
 0x149   :  { %v83_v22 = vadd.f32 1e-05, %v81_v21 }
 0x14b   :  { %206 = vrsqrt.f32 %v83_v22 }
 0x154   :  { %v205_v23 = vpop.eup %204 }
 0x155   :  { %v86_v24 = vmul.f32 %v205_v23, %v70_v6 }
 0x157   :  { %v94_v28 = vmul.f32 %v180_v25, %v86_v24 }
 0x158   :  { %v207_v26 = vpop.eup %206 }
 0x159   :  { %v87_v27 = vmul.f32 %v207_v26, %v71_v10  ;;  %v102_v31 = vadd.f32 %v181_v29, %v94_v28 }
 0x15b   :  { %v95_v30 = vmul.f32 %v180_v25, %v87_v27 }
 0x15d   :  { %v103_v32 = vadd.f32 %v181_v29, %v95_v30 }
 0x15f   :  { %v104_v33 = vpack.c.bf16 %v103_v32, %v102_v31 }
 0x161   :  { %194 = vmatmul.mubr.msk.bf16.vlgmr.msra.gmra.mxu0 %vm60_vm0, %v104_v33 }
 0x221   :  { %v165_v35 = vpop.f32.mrf.mxu0 }
 0x222   :  { %v166_v36 = vadd.f32 %v182_v34, %v165_v35 }
 0x223   :  { %v195_v37 = vpop.f32.mrf.mxu0 }
 0x224   :  { %172 = vst [vmem:[%s344_s5] sm:$0xff] %v166_v36 }
 0x225   :  { %v168_v38 = vpop.f32.mrf.mxu0 }
 0x226   :  { %v169_v39 = vadd.f32 %v182_v34, %v168_v38 }
 0x227   :  { %v196_v40 = vpop.f32.mrf.mxu0 }
 0x228   :  { %173 = vst [vmem:[%s344_s5 + $0x8] sm:$0xff] %v169_v39 }
 0x229   :  { %178 = vsyncpa [#allocation3], 1 }
 0x22a   :  { %179 = vsyncpa [#allocation5], 1 }

</bundles_post_ra>
